<compile_context>
chip_gen: v6e
topology: v6e:2x2x1
jax: 0.10.0
libtpu: 0.0.40
codegen_flags: <defaults>
</compile_context>

<pallas_src>
import jax
import jax.numpy as jnp
from jax import lax
from jax.experimental import pallas as pl
from jax.experimental.pallas import tpu as pltpu

_SQRT_HALF = 0.7071067811865476


def _erf_f32(x):
    # Float32 erf rational approximation (Eigen/XLA coefficients); mul/add on
    # the VPU plus one EUP reciprocal (+1 Newton step).  Matches exact erf to
    # ~1e-7, i.e. PyTorch's default (exact) nn.GELU within f32 rounding.
    x = jnp.clip(x, -4.0, 4.0)
    x2 = x * x
    p = jnp.float32(-2.72614225801306e-10)
    p = p * x2 + jnp.float32(2.77068142495902e-08)
    p = p * x2 + jnp.float32(-2.10102402082508e-06)
    p = p * x2 + jnp.float32(-5.69250639462346e-05)
    p = p * x2 + jnp.float32(-7.34990630326855e-04)
    p = p * x2 + jnp.float32(-2.95459980854025e-03)
    p = p * x2 + jnp.float32(-1.60960333262415e-02)
    p = p * x
    q = jnp.float32(-1.45660718464996e-05)
    q = q * x2 + jnp.float32(-2.13374055278905e-04)
    q = q * x2 + jnp.float32(-1.68282697438203e-03)
    q = q * x2 + jnp.float32(-7.37332916720468e-03)
    q = q * x2 + jnp.float32(-1.42647390514189e-02)
    r = pl.reciprocal(q, approx=True)       # EUP slot, ~free next to the poly
    r = r * (2.0 - q * r)                   # one Newton step -> f32 accuracy
    return p * r


def _gelu_exact(x):
    # PyTorch nn.GELU() default is the exact erf formulation; kept in f32.
    return 0.5 * x * (1.0 + _erf_f32(x * jnp.float32(_SQRT_HALF)))


def _maxpool2x2(y, f, t, c):
    """2x2 / stride-2 max pool on a (f, t, c) value, fully in registers.

    t-pairs live on the sublane axis (reshape + max over the pair axis),
    f-pairs live on the outer axis (free split + elementwise max).
    """
    tp = jnp.max(y.reshape(f, t // 2, 2, c), axis=2)          # pool over t
    return jnp.max(tp.reshape(f // 2, 2, t // 2, c), axis=1)  # pool over f


def audio_encoder_kernel(x_ref, w1_ref, b1_ref, w2_ref, b2_ref, wp_ref, bp_ref,
                         out_ref, xpad_ref, h1p_ref):
    F, T = x_ref.shape[1], x_ref.shape[2]
    F1, T1 = F // 2, T // 2
    F2, T2 = F1 // 2, T1 // 2
    C1 = w1_ref.shape[1]
    C2 = w2_ref.shape[2]
    dim = wp_ref.shape[2]

    # ---- conv1 input: zero only the 1-wide border (interior is fully
    #      overwritten every grid step), then write the input broadcast across
    #      all C1 output channels so each tap load carries C1 useful lanes ----
    xpad_ref[0:1, :, :] = jnp.zeros((1, T + 2, C1), jnp.float32)
    xpad_ref[F + 1:F + 2, :, :] = jnp.zeros((1, T + 2, C1), jnp.float32)
    xpad_ref[:, 0:1, :] = jnp.zeros((F + 2, 1, C1), jnp.float32)
    xpad_ref[:, T + 1:T + 2, :] = jnp.zeros((F + 2, 1, C1), jnp.float32)
    xpad_ref[1:F + 1, 1:T + 1, :] = lax.broadcast_in_dim(
        x_ref[0], (F, T, C1), (0, 1))

    # ---- conv1 (1->32): nine whole-plane broadcast FMAs on the VPU ----
    acc1 = jnp.zeros((F, T, C1), jnp.float32)
    for k in range(9):
        dy, dx = divmod(k, 3)
        acc1 = acc1 + (xpad_ref[dy:dy + F, dx:dx + T, :]
                       * w1_ref[k][None, None, :])
    y1 = _gelu_exact(acc1 + b1_ref[...])                  # (F, T, C1) f32
    h1 = _maxpool2x2(y1, F, T, C1)                        # (F1, T1, C1) f32

    # ---- conv2 input: bf16 padded scratch (single cast), border-only zero ---
    h1p_ref[0:1, :, :] = jnp.zeros((1, T1 + 2, C1), jnp.bfloat16)
    h1p_ref[F1 + 1:F1 + 2, :, :] = jnp.zeros((1, T1 + 2, C1), jnp.bfloat16)
    h1p_ref[:, 0:1, :] = jnp.zeros((F1 + 2, 1, C1), jnp.bfloat16)
    h1p_ref[:, T1 + 1:T1 + 2, :] = jnp.zeros((F1 + 2, 1, C1), jnp.bfloat16)
    h1p_ref[1:F1 + 1, 1:T1 + 1, :] = h1.astype(jnp.bfloat16)

    # ---- conv2 (32->64): nine whole-plane shift matmuls on the MXU,
    #      bf16 operands / f32 accumulation, no im2col materialisation ----
    acc2 = jnp.zeros((F1 * T1, C2), jnp.float32)
    for k in range(9):
        dy, dx = divmod(k, 3)
        patch = h1p_ref[dy:dy + F1, dx:dx + T1, :].reshape(F1 * T1, C1)
        acc2 = acc2 + lax.dot_general(
            patch, w2_ref[k], (((1,), (0,)), ((), ())),
            preferred_element_type=jnp.float32)
    y2 = _gelu_exact(acc2 + b2_ref[...]).reshape(F1, T1, C2)
    h2 = _maxpool2x2(y2, F1, T1, C2)                      # (F2, T2, C2) f32

    # ---- rearrange 'b c f t -> b t (c f)' + Linear, fused as an accumulated
    #      sum of F2 matmuls (wp pre-permuted to (F2, C2, dim) in the wrapper)
    #      -- replaces the F2-way lane concat with pure MXU work ----
    proj = jnp.zeros((T2, dim), jnp.float32)
    for f in range(F2):
        proj = proj + lax.dot_general(
            h2[f].astype(jnp.bfloat16), wp_ref[f], (((1,), (0,)), ((), ())),
            preferred_element_type=jnp.float32)
    out_ref[0] = (proj + bp_ref[...]).astype(out_ref.dtype)


@jax.jit
def audio_encoder_forward(x_nchw, params):
    # x_nchw: (B, 1, n_mels, T) -- the PyTorch NCHW input convention.
    B, _, F, T = x_nchw.shape
    assert F % 4 == 0 and T % 4 == 0, "n_mels and T must be divisible by 4"
    F1, T1 = F // 2, T // 2
    F2, T2 = F1 // 2, T1 // 2
    C1 = params["w1"].shape[-1]           # 32
    C2 = params["w2"].shape[-1]           # 64
    dim = params["wp"].shape[-1]

    # Squeeze the singleton channel: (B, F, T) keeps T on lanes -> dense DMA.
    x = x_nchw.reshape(B, F, T)
    w1 = params["w1"].reshape(9, C1)                              # f32 VPU taps
    b1 = params["b1"].reshape(1, C1)
    w2 = params["w2"].reshape(9, C1, C2).astype(jnp.bfloat16)     # MXU operand
    b2 = params["b2"].reshape(1, C2)
    # Row-permute + reshape the projection weight: kernel contracts per-f
    # (C2-wide) blocks; PyTorch rearrange feature order is (c*F2 + f).
    wp = (params["wp"].reshape(C2, F2, dim).transpose(1, 0, 2)
          .astype(jnp.bfloat16))                                  # (F2, C2, dim)
    bp = params["bp"].reshape(1, dim)

    # TODO(synk): for long audio, add a T-tile grid axis (1-column halo) so the
    # fused pipeline fits v7x's 64 MiB VMEM and both TensorCores stay busy.
    return pl.pallas_call(
        audio_encoder_kernel,
        out_shape=jax.ShapeDtypeStruct((B, T2, dim), jnp.float32),
        grid_spec=pltpu.PrefetchScalarGridSpec(
            num_scalar_prefetch=0,
            grid=(B,),
            in_specs=[
                pl.BlockSpec((1, F, T), lambda b: (b, 0, 0)),
                pl.BlockSpec((9, C1), lambda b: (0, 0)),
                pl.BlockSpec((1, C1), lambda b: (0, 0)),
                pl.BlockSpec((9, C1, C2), lambda b: (0, 0, 0)),
                pl.BlockSpec((1, C2), lambda b: (0, 0)),
                pl.BlockSpec((F2, C2, dim), lambda b: (0, 0, 0)),
                pl.BlockSpec((1, dim), lambda b: (0, 0)),
            ],
            out_specs=pl.BlockSpec((1, T2, dim), lambda b: (b, 0, 0)),
            scratch_shapes=[
                pltpu.VMEM((F + 2, T + 2, C1), jnp.float32),      # conv1 in (bcast)
                pltpu.VMEM((F1 + 2, T1 + 2, C1), jnp.bfloat16),   # conv2 in (bf16)
            ],
        ),
        compiler_params=pltpu.CompilerParams(
            dimension_semantics=("parallel",),        # batch elems independent
            vmem_limit_bytes=48 * 1024 * 1024),
    )(x, w1, b1, w2, b2, wp, bp)


def reference_forward(x_nchw, params):
    # Pure-JAX reference for correctness checking (mirrors the PyTorch module).
    x = jnp.transpose(x_nchw, (0, 2, 3, 1))

    def block(x, w, b):
        y = lax.conv_general_dilated(
            x, w, window_strides=(1, 1), padding="SAME",
            dimension_numbers=("NHWC", "HWIO", "NHWC")) + b
        y = jax.nn.gelu(y, approximate=False)
        return lax.reduce_window(y, jnp.float32(-jnp.inf), lax.max,
                                 (1, 2, 2, 1), (1, 2, 2, 1), "VALID")

    h = block(block(x, params["w1"], params["b1"]), params["w2"], params["b2"])
    B, F2, T2, C2 = h.shape
    feats = jnp.transpose(h, (0, 2, 3, 1)).reshape(B, T2, C2 * F2)
    return feats @ params["wp"] + params["bp"]


if __name__ == "__main__":
    config = {"model": {"embedding_dim": 32}, "data": {"audio_n_mels": 16}}
    dim = config["model"]["embedding_dim"]
    n_mels = config["data"]["audio_n_mels"]
    B, T = 2, 16
    feat = 64 * (n_mels // 4)

    key = jax.random.PRNGKey(0)
    ks = jax.random.split(key, 7)
    params = {
        "w1": 0.2 * jax.random.normal(ks[0], (3, 3, 1, 32), jnp.float32),
        "b1": 0.1 * jax.random.normal(ks[1], (32,), jnp.float32),
        "w2": 0.05 * jax.random.normal(ks[2], (3, 3, 32, 64), jnp.float32),
        "b2": 0.1 * jax.random.normal(ks[3], (64,), jnp.float32),
        # PyTorch nn.Linear stores (dim, feat); we keep the transposed (feat, dim).
        "wp": 0.05 * jax.random.normal(ks[4], (feat, dim), jnp.float32),
        "bp": 0.1 * jax.random.normal(ks[5], (dim,), jnp.float32),
    }
    x = jax.random.normal(ks[6], (B, 1, n_mels, T), jnp.float32)

    out = jax.block_until_ready(audio_encoder_forward(x, params))
    assert out.shape == (B, T // 4, dim), out.shape

    ref = jax.block_until_ready(reference_forward(x, params))
    err = float(jnp.max(jnp.abs(out - ref)))
    # bf16 MXU operands with f32 accumulation: expect ~1e-3-level abs error.
    assert err < 1e-2, f"max abs error {err}"
    print("KERNEL_OK")
</pallas_src>

<mosaic_0001>
module attributes {stable_mosaic.version = 11 : i64} {
  func.func @audio_encoder_kernel(%arg0: i32, %arg1: memref<1x16x16xf32, #tpu.memory_space<vmem>>, %arg2: memref<9x32xf32, #tpu.memory_space<vmem>>, %arg3: memref<1x32xf32, #tpu.memory_space<vmem>>, %arg4: memref<9x32x64xbf16, #tpu.memory_space<vmem>>, %arg5: memref<1x64xf32, #tpu.memory_space<vmem>>, %arg6: memref<4x64x32xbf16, #tpu.memory_space<vmem>>, %arg7: memref<1x32xf32, #tpu.memory_space<vmem>>, %arg8: memref<1x4x32xf32, #tpu.memory_space<vmem>>, %arg9: memref<18x18x32xf32, #tpu.memory_space<vmem>>, %arg10: memref<10x10x32xbf16, #tpu.memory_space<vmem>>) attributes {dimension_semantics = [#tpu.dimension_semantics<parallel>], iteration_bounds = array<i64: 2>, scalar_prefetch = 0 : i64, scratch_operands = 2 : i64, tpu.core_type = #tpu.core_type<tc>, window_params = [{transform_indices = @transform_0, window_bounds = array<i64: 1, 16, 16>}, {pipeline_mode = #tpu.pipeline_mode<synchronous>, transform_indices = @transform_1, window_bounds = array<i64: 9, 32>}, {pipeline_mode = #tpu.pipeline_mode<synchronous>, transform_indices = @transform_2, window_bounds = array<i64: 1, 32>}, {pipeline_mode = #tpu.pipeline_mode<synchronous>, transform_indices = @transform_3, window_bounds = array<i64: 9, 32, 64>}, {pipeline_mode = #tpu.pipeline_mode<synchronous>, transform_indices = @transform_4, window_bounds = array<i64: 1, 64>}, {pipeline_mode = #tpu.pipeline_mode<synchronous>, transform_indices = @transform_5, window_bounds = array<i64: 4, 64, 32>}, {pipeline_mode = #tpu.pipeline_mode<synchronous>, transform_indices = @transform_6, window_bounds = array<i64: 1, 32>}, {transform_indices = @transform_7, window_bounds = array<i64: 1, 4, 32>}]} {
    %cst = arith.constant 0.000000e+00 : f32
    %0 = vector.broadcast %cst : f32 to vector<1x18x32xf32>
    %c0 = arith.constant 0 : index
    %c0_0 = arith.constant 0 : index
    %c0_1 = arith.constant 0 : index
    %1 = vector.load %arg9[%c0, %c0_0, %c0_1] : memref<18x18x32xf32, #tpu.memory_space<vmem>>, vector<1x18x32xf32>
    tpu.vector_store %arg9[%c0, %c0_0, %c0_1], %0 {strides = array<i32>} : memref<18x18x32xf32, #tpu.memory_space<vmem>>, vector<1x18x32xf32>,
    %cst_2 = arith.constant 0.000000e+00 : f32
    %2 = vector.broadcast %cst_2 : f32 to vector<1x18x32xf32>
    %c17 = arith.constant 17 : index
    %c0_3 = arith.constant 0 : index
    %c0_4 = arith.constant 0 : index
    %3 = vector.load %arg9[%c17, %c0_3, %c0_4] : memref<18x18x32xf32, #tpu.memory_space<vmem>>, vector<1x18x32xf32>
    tpu.vector_store %arg9[%c17, %c0_3, %c0_4], %2 {strides = array<i32>} : memref<18x18x32xf32, #tpu.memory_space<vmem>>, vector<1x18x32xf32>,
    %cst_5 = arith.constant 0.000000e+00 : f32
    %4 = vector.broadcast %cst_5 : f32 to vector<18x1x32xf32>
    %c0_6 = arith.constant 0 : index
    %c0_7 = arith.constant 0 : index
    %c0_8 = arith.constant 0 : index
    %5 = vector.load %arg9[%c0_6, %c0_7, %c0_8] : memref<18x18x32xf32, #tpu.memory_space<vmem>>, vector<18x1x32xf32>
    tpu.vector_store %arg9[%c0_6, %c0_7, %c0_8], %4 {strides = array<i32>} : memref<18x18x32xf32, #tpu.memory_space<vmem>>, vector<18x1x32xf32>,
    %cst_9 = arith.constant 0.000000e+00 : f32
    %6 = vector.broadcast %cst_9 : f32 to vector<18x1x32xf32>
    %c0_10 = arith.constant 0 : index
    %c17_11 = arith.constant 17 : index
    %c0_12 = arith.constant 0 : index
    %7 = vector.load %arg9[%c0_10, %c17_11, %c0_12] : memref<18x18x32xf32, #tpu.memory_space<vmem>>, vector<18x1x32xf32>
    tpu.vector_store %arg9[%c0_10, %c17_11, %c0_12], %6 {strides = array<i32>} : memref<18x18x32xf32, #tpu.memory_space<vmem>>, vector<18x1x32xf32>,
    %c0_13 = arith.constant 0 : index
    %c0_14 = arith.constant 0 : index
    %c0_15 = arith.constant 0 : index
    %8 = vector.load %arg1[%c0_13, %c0_14, %c0_15] : memref<1x16x16xf32, #tpu.memory_space<vmem>>, vector<1x16x16xf32>
    %9 = vector.shape_cast %8 : vector<1x16x16xf32> to vector<16x16xf32>
    %10 = vector.shape_cast %9 : vector<16x16xf32> to vector<16x16x1xf32>
    %11 = vector.broadcast %10 : vector<16x16x1xf32> to vector<16x16x32xf32>
    %c1 = arith.constant 1 : index
    %c1_16 = arith.constant 1 : index
    %c0_17 = arith.constant 0 : index
    %12 = vector.load %arg9[%c1, %c1_16, %c0_17] : memref<18x18x32xf32, #tpu.memory_space<vmem>>, vector<16x16x32xf32>
    tpu.vector_store %arg9[%c1, %c1_16, %c0_17], %11 {strides = array<i32>} : memref<18x18x32xf32, #tpu.memory_space<vmem>>, vector<16x16x32xf32>,
    %cst_18 = arith.constant 0.000000e+00 : f32
    %13 = vector.broadcast %cst_18 : f32 to vector<16x16x32xf32>
    %c0_19 = arith.constant 0 : index
    %c0_20 = arith.constant 0 : index
    %c0_21 = arith.constant 0 : index
    %14 = vector.load %arg9[%c0_19, %c0_20, %c0_21] : memref<18x18x32xf32, #tpu.memory_space<vmem>>, vector<16x16x32xf32>
    %c0_22 = arith.constant 0 : index
    %c0_23 = arith.constant 0 : index
    %15 = vector.load %arg2[%c0_22, %c0_23] : memref<9x32xf32, #tpu.memory_space<vmem>>, vector<1x32xf32>
    %16 = vector.shape_cast %15 : vector<1x32xf32> to vector<32xf32>
    %17 = vector.shape_cast %16 : vector<32xf32> to vector<1x1x32xf32>
    %18 = vector.broadcast %17 : vector<1x1x32xf32> to vector<16x16x32xf32>
    %19 = arith.mulf %14, %18 : vector<16x16x32xf32>
    %20 = arith.addf %13, %19 : vector<16x16x32xf32>
    %c0_24 = arith.constant 0 : index
    %c1_25 = arith.constant 1 : index
    %c0_26 = arith.constant 0 : index
    %21 = vector.load %arg9[%c0_24, %c1_25, %c0_26] : memref<18x18x32xf32, #tpu.memory_space<vmem>>, vector<16x16x32xf32>
    %c1_27 = arith.constant 1 : index
    %c0_28 = arith.constant 0 : index
    %22 = vector.load %arg2[%c1_27, %c0_28] : memref<9x32xf32, #tpu.memory_space<vmem>>, vector<1x32xf32>
    %23 = vector.shape_cast %22 : vector<1x32xf32> to vector<32xf32>
    %24 = vector.shape_cast %23 : vector<32xf32> to vector<1x1x32xf32>
    %25 = vector.broadcast %24 : vector<1x1x32xf32> to vector<16x16x32xf32>
    %26 = arith.mulf %21, %25 : vector<16x16x32xf32>
    %27 = arith.addf %20, %26 : vector<16x16x32xf32>
    %c0_29 = arith.constant 0 : index
    %c2 = arith.constant 2 : index
    %c0_30 = arith.constant 0 : index
    %28 = vector.load %arg9[%c0_29, %c2, %c0_30] : memref<18x18x32xf32, #tpu.memory_space<vmem>>, vector<16x16x32xf32>
    %c2_31 = arith.constant 2 : index
    %c0_32 = arith.constant 0 : index
    %29 = vector.load %arg2[%c2_31, %c0_32] : memref<9x32xf32, #tpu.memory_space<vmem>>, vector<1x32xf32>
    %30 = vector.shape_cast %29 : vector<1x32xf32> to vector<32xf32>
    %31 = vector.shape_cast %30 : vector<32xf32> to vector<1x1x32xf32>
    %32 = vector.broadcast %31 : vector<1x1x32xf32> to vector<16x16x32xf32>
    %33 = arith.mulf %28, %32 : vector<16x16x32xf32>
    %34 = arith.addf %27, %33 : vector<16x16x32xf32>
    %c1_33 = arith.constant 1 : index
    %c0_34 = arith.constant 0 : index
    %c0_35 = arith.constant 0 : index
    %35 = vector.load %arg9[%c1_33, %c0_34, %c0_35] : memref<18x18x32xf32, #tpu.memory_space<vmem>>, vector<16x16x32xf32>
    %c3 = arith.constant 3 : index
    %c0_36 = arith.constant 0 : index
    %36 = vector.load %arg2[%c3, %c0_36] : memref<9x32xf32, #tpu.memory_space<vmem>>, vector<1x32xf32>
    %37 = vector.shape_cast %36 : vector<1x32xf32> to vector<32xf32>
    %38 = vector.shape_cast %37 : vector<32xf32> to vector<1x1x32xf32>
    %39 = vector.broadcast %38 : vector<1x1x32xf32> to vector<16x16x32xf32>
    %40 = arith.mulf %35, %39 : vector<16x16x32xf32>
    %41 = arith.addf %34, %40 : vector<16x16x32xf32>
    %c1_37 = arith.constant 1 : index
    %c1_38 = arith.constant 1 : index
    %c0_39 = arith.constant 0 : index
    %42 = vector.load %arg9[%c1_37, %c1_38, %c0_39] : memref<18x18x32xf32, #tpu.memory_space<vmem>>, vector<16x16x32xf32>
    %c4 = arith.constant 4 : index
    %c0_40 = arith.constant 0 : index
    %43 = vector.load %arg2[%c4, %c0_40] : memref<9x32xf32, #tpu.memory_space<vmem>>, vector<1x32xf32>
    %44 = vector.shape_cast %43 : vector<1x32xf32> to vector<32xf32>
    %45 = vector.shape_cast %44 : vector<32xf32> to vector<1x1x32xf32>
    %46 = vector.broadcast %45 : vector<1x1x32xf32> to vector<16x16x32xf32>
    %47 = arith.mulf %42, %46 : vector<16x16x32xf32>
    %48 = arith.addf %41, %47 : vector<16x16x32xf32>
    %c1_41 = arith.constant 1 : index
    %c2_42 = arith.constant 2 : index
    %c0_43 = arith.constant 0 : index
    %49 = vector.load %arg9[%c1_41, %c2_42, %c0_43] : memref<18x18x32xf32, #tpu.memory_space<vmem>>, vector<16x16x32xf32>
    %c5 = arith.constant 5 : index
    %c0_44 = arith.constant 0 : index
    %50 = vector.load %arg2[%c5, %c0_44] : memref<9x32xf32, #tpu.memory_space<vmem>>, vector<1x32xf32>
    %51 = vector.shape_cast %50 : vector<1x32xf32> to vector<32xf32>
    %52 = vector.shape_cast %51 : vector<32xf32> to vector<1x1x32xf32>
    %53 = vector.broadcast %52 : vector<1x1x32xf32> to vector<16x16x32xf32>
    %54 = arith.mulf %49, %53 : vector<16x16x32xf32>
    %55 = arith.addf %48, %54 : vector<16x16x32xf32>
    %c2_45 = arith.constant 2 : index
    %c0_46 = arith.constant 0 : index
    %c0_47 = arith.constant 0 : index
    %56 = vector.load %arg9[%c2_45, %c0_46, %c0_47] : memref<18x18x32xf32, #tpu.memory_space<vmem>>, vector<16x16x32xf32>
    %c6 = arith.constant 6 : index
    %c0_48 = arith.constant 0 : index
    %57 = vector.load %arg2[%c6, %c0_48] : memref<9x32xf32, #tpu.memory_space<vmem>>, vector<1x32xf32>
    %58 = vector.shape_cast %57 : vector<1x32xf32> to vector<32xf32>
    %59 = vector.shape_cast %58 : vector<32xf32> to vector<1x1x32xf32>
    %60 = vector.broadcast %59 : vector<1x1x32xf32> to vector<16x16x32xf32>
    %61 = arith.mulf %56, %60 : vector<16x16x32xf32>
    %62 = arith.addf %55, %61 : vector<16x16x32xf32>
    %c2_49 = arith.constant 2 : index
    %c1_50 = arith.constant 1 : index
    %c0_51 = arith.constant 0 : index
    %63 = vector.load %arg9[%c2_49, %c1_50, %c0_51] : memref<18x18x32xf32, #tpu.memory_space<vmem>>, vector<16x16x32xf32>
    %c7 = arith.constant 7 : index
    %c0_52 = arith.constant 0 : index
    %64 = vector.load %arg2[%c7, %c0_52] : memref<9x32xf32, #tpu.memory_space<vmem>>, vector<1x32xf32>
    %65 = vector.shape_cast %64 : vector<1x32xf32> to vector<32xf32>
    %66 = vector.shape_cast %65 : vector<32xf32> to vector<1x1x32xf32>
    %67 = vector.broadcast %66 : vector<1x1x32xf32> to vector<16x16x32xf32>
    %68 = arith.mulf %63, %67 : vector<16x16x32xf32>
    %69 = arith.addf %62, %68 : vector<16x16x32xf32>
    %c2_53 = arith.constant 2 : index
    %c2_54 = arith.constant 2 : index
    %c0_55 = arith.constant 0 : index
    %70 = vector.load %arg9[%c2_53, %c2_54, %c0_55] : memref<18x18x32xf32, #tpu.memory_space<vmem>>, vector<16x16x32xf32>
    %c8 = arith.constant 8 : index
    %c0_56 = arith.constant 0 : index
    %71 = vector.load %arg2[%c8, %c0_56] : memref<9x32xf32, #tpu.memory_space<vmem>>, vector<1x32xf32>
    %72 = vector.shape_cast %71 : vector<1x32xf32> to vector<32xf32>
    %73 = vector.shape_cast %72 : vector<32xf32> to vector<1x1x32xf32>
    %74 = vector.broadcast %73 : vector<1x1x32xf32> to vector<16x16x32xf32>
    %75 = arith.mulf %70, %74 : vector<16x16x32xf32>
    %76 = arith.addf %69, %75 : vector<16x16x32xf32>
    %c0_57 = arith.constant 0 : index
    %c0_58 = arith.constant 0 : index
    %77 = vector.load %arg3[%c0_57, %c0_58] : memref<1x32xf32, #tpu.memory_space<vmem>>, vector<1x32xf32>
    %78 = vector.shape_cast %77 : vector<1x32xf32> to vector<1x1x32xf32>
    %79 = vector.broadcast %78 : vector<1x1x32xf32> to vector<16x16x32xf32>
    %80 = arith.addf %76, %79 : vector<16x16x32xf32>
    %cst_59 = arith.constant 5.000000e-01 : f32
    %81 = vector.broadcast %cst_59 : f32 to vector<16x16x32xf32>
    %82 = arith.mulf %81, %80 : vector<16x16x32xf32>
    %cst_60 = arith.constant 0.707106769 : f32
    %83 = vector.broadcast %cst_60 : f32 to vector<16x16x32xf32>
    %84 = arith.mulf %80, %83 : vector<16x16x32xf32>
    %cst_61 = arith.constant -4.000000e+00 : f32
    %cst_62 = arith.constant 4.000000e+00 : f32
    %85 = vector.broadcast %cst_61 : f32 to vector<16x16x32xf32>
    %86 = arith.maximumf %85, %84 : vector<16x16x32xf32>
    %87 = vector.broadcast %cst_62 : f32 to vector<16x16x32xf32>
    %88 = arith.minimumf %87, %86 : vector<16x16x32xf32>
    %89 = arith.mulf %88, %88 : vector<16x16x32xf32>
    %cst_63 = arith.constant -2.72614237E-10 : f32
    %90 = vector.broadcast %cst_63 : f32 to vector<16x16x32xf32>
    %91 = arith.mulf %90, %89 : vector<16x16x32xf32>
    %cst_64 = arith.constant 2.77068146E-8 : f32
    %92 = vector.broadcast %cst_64 : f32 to vector<16x16x32xf32>
    %93 = arith.addf %91, %92 : vector<16x16x32xf32>
    %94 = arith.mulf %93, %89 : vector<16x16x32xf32>
    %cst_65 = arith.constant -2.10102394E-6 : f32
    %95 = vector.broadcast %cst_65 : f32 to vector<16x16x32xf32>
    %96 = arith.addf %94, %95 : vector<16x16x32xf32>
    %97 = arith.mulf %96, %89 : vector<16x16x32xf32>
    %cst_66 = arith.constant -5.69250624E-5 : f32
    %98 = vector.broadcast %cst_66 : f32 to vector<16x16x32xf32>
    %99 = arith.addf %97, %98 : vector<16x16x32xf32>
    %100 = arith.mulf %99, %89 : vector<16x16x32xf32>
    %cst_67 = arith.constant -7.34990637E-4 : f32
    %101 = vector.broadcast %cst_67 : f32 to vector<16x16x32xf32>
    %102 = arith.addf %100, %101 : vector<16x16x32xf32>
    %103 = arith.mulf %102, %89 : vector<16x16x32xf32>
    %cst_68 = arith.constant -2.954600e-03 : f32
    %104 = vector.broadcast %cst_68 : f32 to vector<16x16x32xf32>
    %105 = arith.addf %103, %104 : vector<16x16x32xf32>
    %106 = arith.mulf %105, %89 : vector<16x16x32xf32>
    %cst_69 = arith.constant -0.0160960332 : f32
    %107 = vector.broadcast %cst_69 : f32 to vector<16x16x32xf32>
    %108 = arith.addf %106, %107 : vector<16x16x32xf32>
    %109 = arith.mulf %108, %88 : vector<16x16x32xf32>
    %cst_70 = arith.constant -1.45660715E-5 : f32
    %110 = vector.broadcast %cst_70 : f32 to vector<16x16x32xf32>
    %111 = arith.mulf %110, %89 : vector<16x16x32xf32>
    %cst_71 = arith.constant -2.13374049E-4 : f32
    %112 = vector.broadcast %cst_71 : f32 to vector<16x16x32xf32>
    %113 = arith.addf %111, %112 : vector<16x16x32xf32>
    %114 = arith.mulf %113, %89 : vector<16x16x32xf32>
    %cst_72 = arith.constant -0.00168282702 : f32
    %115 = vector.broadcast %cst_72 : f32 to vector<16x16x32xf32>
    %116 = arith.addf %114, %115 : vector<16x16x32xf32>
    %117 = arith.mulf %116, %89 : vector<16x16x32xf32>
    %cst_73 = arith.constant -0.00737332925 : f32
    %118 = vector.broadcast %cst_73 : f32 to vector<16x16x32xf32>
    %119 = arith.addf %117, %118 : vector<16x16x32xf32>
    %120 = arith.mulf %119, %89 : vector<16x16x32xf32>
    %cst_74 = arith.constant -0.0142647391 : f32
    %121 = vector.broadcast %cst_74 : f32 to vector<16x16x32xf32>
    %122 = arith.addf %120, %121 : vector<16x16x32xf32>
    %123 = tpu.reciprocal %122 {approx = true} : vector<16x16x32xf32> -> vector<16x16x32xf32>
    %124 = arith.mulf %122, %123 : vector<16x16x32xf32>
    %cst_75 = arith.constant 2.000000e+00 : f32
    %125 = vector.broadcast %cst_75 : f32 to vector<16x16x32xf32>
    %126 = arith.subf %125, %124 : vector<16x16x32xf32>
    %127 = arith.mulf %123, %126 : vector<16x16x32xf32>
    %128 = arith.mulf %109, %127 : vector<16x16x32xf32>
    %cst_76 = arith.constant 1.000000e+00 : f32
    %129 = vector.broadcast %cst_76 : f32 to vector<16x16x32xf32>
    %130 = arith.addf %129, %128 : vector<16x16x32xf32>
    %131 = arith.mulf %82, %130 : vector<16x16x32xf32>
    %132 = vector.shape_cast %131 : vector<16x16x32xf32> to vector<16x8x2x32xf32>
    %cst_77 = arith.constant dense<0xFF800000> : vector<16x8x32xf32>
    %133 = vector.multi_reduction <maximumf>, %132, %cst_77 [2] : vector<16x8x2x32xf32> to vector<16x8x32xf32>
    %134 = vector.shape_cast %133 : vector<16x8x32xf32> to vector<8x2x8x32xf32>
    %cst_78 = arith.constant dense<0xFF800000> : vector<8x8x32xf32>
    %135 = vector.multi_reduction <maximumf>, %134, %cst_78 [1] : vector<8x2x8x32xf32> to vector<8x8x32xf32>
    %cst_79 = arith.constant 0.000000e+00 : bf16
    %136 = vector.broadcast %cst_79 : bf16 to vector<1x10x32xbf16>
    %c0_80 = arith.constant 0 : index
    %c0_81 = arith.constant 0 : index
    %c0_82 = arith.constant 0 : index
    %137 = vector.load %arg10[%c0_80, %c0_81, %c0_82] : memref<10x10x32xbf16, #tpu.memory_space<vmem>>, vector<1x10x32xbf16>
    tpu.vector_store %arg10[%c0_80, %c0_81, %c0_82], %136 {strides = array<i32>} : memref<10x10x32xbf16, #tpu.memory_space<vmem>>, vector<1x10x32xbf16>,
    %cst_83 = arith.constant 0.000000e+00 : bf16
    %138 = vector.broadcast %cst_83 : bf16 to vector<1x10x32xbf16>
    %c9 = arith.constant 9 : index
    %c0_84 = arith.constant 0 : index
    %c0_85 = arith.constant 0 : index
    %139 = vector.load %arg10[%c9, %c0_84, %c0_85] : memref<10x10x32xbf16, #tpu.memory_space<vmem>>, vector<1x10x32xbf16>
    tpu.vector_store %arg10[%c9, %c0_84, %c0_85], %138 {strides = array<i32>} : memref<10x10x32xbf16, #tpu.memory_space<vmem>>, vector<1x10x32xbf16>,
    %cst_86 = arith.constant 0.000000e+00 : bf16
    %140 = vector.broadcast %cst_86 : bf16 to vector<10x1x32xbf16>
    %c0_87 = arith.constant 0 : index
    %c0_88 = arith.constant 0 : index
    %c0_89 = arith.constant 0 : index
    %141 = vector.load %arg10[%c0_87, %c0_88, %c0_89] : memref<10x10x32xbf16, #tpu.memory_space<vmem>>, vector<10x1x32xbf16>
    tpu.vector_store %arg10[%c0_87, %c0_88, %c0_89], %140 {strides = array<i32>} : memref<10x10x32xbf16, #tpu.memory_space<vmem>>, vector<10x1x32xbf16>,
    %cst_90 = arith.constant 0.000000e+00 : bf16
    %142 = vector.broadcast %cst_90 : bf16 to vector<10x1x32xbf16>
    %c0_91 = arith.constant 0 : index
    %c9_92 = arith.constant 9 : index
    %c0_93 = arith.constant 0 : index
    %143 = vector.load %arg10[%c0_91, %c9_92, %c0_93] : memref<10x10x32xbf16, #tpu.memory_space<vmem>>, vector<10x1x32xbf16>
    tpu.vector_store %arg10[%c0_91, %c9_92, %c0_93], %142 {strides = array<i32>} : memref<10x10x32xbf16, #tpu.memory_space<vmem>>, vector<10x1x32xbf16>,
    %144 = arith.truncf %135 : vector<8x8x32xf32> to vector<8x8x32xbf16>
    %c1_94 = arith.constant 1 : index
    %c1_95 = arith.constant 1 : index
    %c0_96 = arith.constant 0 : index
    %145 = vector.load %arg10[%c1_94, %c1_95, %c0_96] : memref<10x10x32xbf16, #tpu.memory_space<vmem>>, vector<8x8x32xbf16>
    tpu.vector_store %arg10[%c1_94, %c1_95, %c0_96], %144 {strides = array<i32>} : memref<10x10x32xbf16, #tpu.memory_space<vmem>>, vector<8x8x32xbf16>,
    %cst_97 = arith.constant 0.000000e+00 : f32
    %146 = vector.broadcast %cst_97 : f32 to vector<64x64xf32>
    %c0_98 = arith.constant 0 : index
    %c0_99 = arith.constant 0 : index
    %c0_100 = arith.constant 0 : index
    %147 = vector.load %arg10[%c0_98, %c0_99, %c0_100] : memref<10x10x32xbf16, #tpu.memory_space<vmem>>, vector<8x8x32xbf16>
    %148 = vector.shape_cast %147 : vector<8x8x32xbf16> to vector<64x32xbf16>
    %c0_101 = arith.constant 0 : index
    %c0_102 = arith.constant 0 : index
    %c0_103 = arith.constant 0 : index
    %149 = vector.load %arg4[%c0_101, %c0_102, %c0_103] : memref<9x32x64xbf16, #tpu.memory_space<vmem>>, vector<1x32x64xbf16>
    %150 = vector.shape_cast %149 : vector<1x32x64xbf16> to vector<32x64xbf16>
    %cst_104 = arith.constant dense<0.000000e+00> : vector<64x64xf32>
    %151 = tpu.matmul %148, %150, %cst_104 {dimension_numbers = #tpu.dot_dimension_numbers<[1], [0], [0], [1], [0, 0, 1, 1], [], []>} : vector<64x32xbf16>, vector<32x64xbf16>, vector<64x64xf32> -> vector<64x64xf32>
    %152 = arith.addf %146, %151 : vector<64x64xf32>
    %c0_105 = arith.constant 0 : index
    %c1_106 = arith.constant 1 : index
    %c0_107 = arith.constant 0 : index
    %153 = vector.load %arg10[%c0_105, %c1_106, %c0_107] : memref<10x10x32xbf16, #tpu.memory_space<vmem>>, vector<8x8x32xbf16>
    %154 = vector.shape_cast %153 : vector<8x8x32xbf16> to vector<64x32xbf16>
    %c1_108 = arith.constant 1 : index
    %c0_109 = arith.constant 0 : index
    %c0_110 = arith.constant 0 : index
    %155 = vector.load %arg4[%c1_108, %c0_109, %c0_110] : memref<9x32x64xbf16, #tpu.memory_space<vmem>>, vector<1x32x64xbf16>
    %156 = vector.shape_cast %155 : vector<1x32x64xbf16> to vector<32x64xbf16>
    %cst_111 = arith.constant dense<0.000000e+00> : vector<64x64xf32>
    %157 = tpu.matmul %154, %156, %cst_111 {dimension_numbers = #tpu.dot_dimension_numbers<[1], [0], [0], [1], [0, 0, 1, 1], [], []>} : vector<64x32xbf16>, vector<32x64xbf16>, vector<64x64xf32> -> vector<64x64xf32>
    %158 = arith.addf %152, %157 : vector<64x64xf32>
    %c0_112 = arith.constant 0 : index
    %c2_113 = arith.constant 2 : index
    %c0_114 = arith.constant 0 : index
    %159 = vector.load %arg10[%c0_112, %c2_113, %c0_114] : memref<10x10x32xbf16, #tpu.memory_space<vmem>>, vector<8x8x32xbf16>
    %160 = vector.shape_cast %159 : vector<8x8x32xbf16> to vector<64x32xbf16>
    %c2_115 = arith.constant 2 : index
    %c0_116 = arith.constant 0 : index
    %c0_117 = arith.constant 0 : index
    %161 = vector.load %arg4[%c2_115, %c0_116, %c0_117] : memref<9x32x64xbf16, #tpu.memory_space<vmem>>, vector<1x32x64xbf16>
    %162 = vector.shape_cast %161 : vector<1x32x64xbf16> to vector<32x64xbf16>
    %cst_118 = arith.constant dense<0.000000e+00> : vector<64x64xf32>
    %163 = tpu.matmul %160, %162, %cst_118 {dimension_numbers = #tpu.dot_dimension_numbers<[1], [0], [0], [1], [0, 0, 1, 1], [], []>} : vector<64x32xbf16>, vector<32x64xbf16>, vector<64x64xf32> -> vector<64x64xf32>
    %164 = arith.addf %158, %163 : vector<64x64xf32>
    %c1_119 = arith.constant 1 : index
    %c0_120 = arith.constant 0 : index
    %c0_121 = arith.constant 0 : index
    %165 = vector.load %arg10[%c1_119, %c0_120, %c0_121] : memref<10x10x32xbf16, #tpu.memory_space<vmem>>, vector<8x8x32xbf16>
    %166 = vector.shape_cast %165 : vector<8x8x32xbf16> to vector<64x32xbf16>
    %c3_122 = arith.constant 3 : index
    %c0_123 = arith.constant 0 : index
    %c0_124 = arith.constant 0 : index
    %167 = vector.load %arg4[%c3_122, %c0_123, %c0_124] : memref<9x32x64xbf16, #tpu.memory_space<vmem>>, vector<1x32x64xbf16>
    %168 = vector.shape_cast %167 : vector<1x32x64xbf16> to vector<32x64xbf16>
    %cst_125 = arith.constant dense<0.000000e+00> : vector<64x64xf32>
    %169 = tpu.matmul %166, %168, %cst_125 {dimension_numbers = #tpu.dot_dimension_numbers<[1], [0], [0], [1], [0, 0, 1, 1], [], []>} : vector<64x32xbf16>, vector<32x64xbf16>, vector<64x64xf32> -> vector<64x64xf32>
    %170 = arith.addf %164, %169 : vector<64x64xf32>
    %c1_126 = arith.constant 1 : index
    %c1_127 = arith.constant 1 : index
    %c0_128 = arith.constant 0 : index
    %171 = vector.load %arg10[%c1_126, %c1_127, %c0_128] : memref<10x10x32xbf16, #tpu.memory_space<vmem>>, vector<8x8x32xbf16>
    %172 = vector.shape_cast %171 : vector<8x8x32xbf16> to vector<64x32xbf16>
    %c4_129 = arith.constant 4 : index
    %c0_130 = arith.constant 0 : index
    %c0_131 = arith.constant 0 : index
    %173 = vector.load %arg4[%c4_129, %c0_130, %c0_131] : memref<9x32x64xbf16, #tpu.memory_space<vmem>>, vector<1x32x64xbf16>
    %174 = vector.shape_cast %173 : vector<1x32x64xbf16> to vector<32x64xbf16>
    %cst_132 = arith.constant dense<0.000000e+00> : vector<64x64xf32>
    %175 = tpu.matmul %172, %174, %cst_132 {dimension_numbers = #tpu.dot_dimension_numbers<[1], [0], [0], [1], [0, 0, 1, 1], [], []>} : vector<64x32xbf16>, vector<32x64xbf16>, vector<64x64xf32> -> vector<64x64xf32>
    %176 = arith.addf %170, %175 : vector<64x64xf32>
    %c1_133 = arith.constant 1 : index
    %c2_134 = arith.constant 2 : index
    %c0_135 = arith.constant 0 : index
    %177 = vector.load %arg10[%c1_133, %c2_134, %c0_135] : memref<10x10x32xbf16, #tpu.memory_space<vmem>>, vector<8x8x32xbf16>
    %178 = vector.shape_cast %177 : vector<8x8x32xbf16> to vector<64x32xbf16>
    %c5_136 = arith.constant 5 : index
    %c0_137 = arith.constant 0 : index
    %c0_138 = arith.constant 0 : index
    %179 = vector.load %arg4[%c5_136, %c0_137, %c0_138] : memref<9x32x64xbf16, #tpu.memory_space<vmem>>, vector<1x32x64xbf16>
    %180 = vector.shape_cast %179 : vector<1x32x64xbf16> to vector<32x64xbf16>
    %cst_139 = arith.constant dense<0.000000e+00> : vector<64x64xf32>
    %181 = tpu.matmul %178, %180, %cst_139 {dimension_numbers = #tpu.dot_dimension_numbers<[1], [0], [0], [1], [0, 0, 1, 1], [], []>} : vector<64x32xbf16>, vector<32x64xbf16>, vector<64x64xf32> -> vector<64x64xf32>
    %182 = arith.addf %176, %181 : vector<64x64xf32>
    %c2_140 = arith.constant 2 : index
    %c0_141 = arith.constant 0 : index
    %c0_142 = arith.constant 0 : index
    %183 = vector.load %arg10[%c2_140, %c0_141, %c0_142] : memref<10x10x32xbf16, #tpu.memory_space<vmem>>, vector<8x8x32xbf16>
    %184 = vector.shape_cast %183 : vector<8x8x32xbf16> to vector<64x32xbf16>
    %c6_143 = arith.constant 6 : index
    %c0_144 = arith.constant 0 : index
    %c0_145 = arith.constant 0 : index
    %185 = vector.load %arg4[%c6_143, %c0_144, %c0_145] : memref<9x32x64xbf16, #tpu.memory_space<vmem>>, vector<1x32x64xbf16>
    %186 = vector.shape_cast %185 : vector<1x32x64xbf16> to vector<32x64xbf16>
    %cst_146 = arith.constant dense<0.000000e+00> : vector<64x64xf32>
    %187 = tpu.matmul %184, %186, %cst_146 {dimension_numbers = #tpu.dot_dimension_numbers<[1], [0], [0], [1], [0, 0, 1, 1], [], []>} : vector<64x32xbf16>, vector<32x64xbf16>, vector<64x64xf32> -> vector<64x64xf32>
    %188 = arith.addf %182, %187 : vector<64x64xf32>
    %c2_147 = arith.constant 2 : index
    %c1_148 = arith.constant 1 : index
    %c0_149 = arith.constant 0 : index
    %189 = vector.load %arg10[%c2_147, %c1_148, %c0_149] : memref<10x10x32xbf16, #tpu.memory_space<vmem>>, vector<8x8x32xbf16>
    %190 = vector.shape_cast %189 : vector<8x8x32xbf16> to vector<64x32xbf16>
    %c7_150 = arith.constant 7 : index
    %c0_151 = arith.constant 0 : index
    %c0_152 = arith.constant 0 : index
    %191 = vector.load %arg4[%c7_150, %c0_151, %c0_152] : memref<9x32x64xbf16, #tpu.memory_space<vmem>>, vector<1x32x64xbf16>
    %192 = vector.shape_cast %191 : vector<1x32x64xbf16> to vector<32x64xbf16>
    %cst_153 = arith.constant dense<0.000000e+00> : vector<64x64xf32>
    %193 = tpu.matmul %190, %192, %cst_153 {dimension_numbers = #tpu.dot_dimension_numbers<[1], [0], [0], [1], [0, 0, 1, 1], [], []>} : vector<64x32xbf16>, vector<32x64xbf16>, vector<64x64xf32> -> vector<64x64xf32>
    %194 = arith.addf %188, %193 : vector<64x64xf32>
    %c2_154 = arith.constant 2 : index
    %c2_155 = arith.constant 2 : index
    %c0_156 = arith.constant 0 : index
    %195 = vector.load %arg10[%c2_154, %c2_155, %c0_156] : memref<10x10x32xbf16, #tpu.memory_space<vmem>>, vector<8x8x32xbf16>
    %196 = vector.shape_cast %195 : vector<8x8x32xbf16> to vector<64x32xbf16>
    %c8_157 = arith.constant 8 : index
    %c0_158 = arith.constant 0 : index
    %c0_159 = arith.constant 0 : index
    %197 = vector.load %arg4[%c8_157, %c0_158, %c0_159] : memref<9x32x64xbf16, #tpu.memory_space<vmem>>, vector<1x32x64xbf16>
    %198 = vector.shape_cast %197 : vector<1x32x64xbf16> to vector<32x64xbf16>
    %cst_160 = arith.constant dense<0.000000e+00> : vector<64x64xf32>
    %199 = tpu.matmul %196, %198, %cst_160 {dimension_numbers = #tpu.dot_dimension_numbers<[1], [0], [0], [1], [0, 0, 1, 1], [], []>} : vector<64x32xbf16>, vector<32x64xbf16>, vector<64x64xf32> -> vector<64x64xf32>
    %200 = arith.addf %194, %199 : vector<64x64xf32>
    %c0_161 = arith.constant 0 : index
    %c0_162 = arith.constant 0 : index
    %201 = vector.load %arg5[%c0_161, %c0_162] : memref<1x64xf32, #tpu.memory_space<vmem>>, vector<1x64xf32>
    %202 = vector.broadcast %201 : vector<1x64xf32> to vector<64x64xf32>
    %203 = arith.addf %200, %202 : vector<64x64xf32>
    %cst_163 = arith.constant 5.000000e-01 : f32
    %204 = vector.broadcast %cst_163 : f32 to vector<64x64xf32>
    %205 = arith.mulf %204, %203 : vector<64x64xf32>
    %cst_164 = arith.constant 0.707106769 : f32
    %206 = vector.broadcast %cst_164 : f32 to vector<64x64xf32>
    %207 = arith.mulf %203, %206 : vector<64x64xf32>
    %cst_165 = arith.constant -4.000000e+00 : f32
    %cst_166 = arith.constant 4.000000e+00 : f32
    %208 = vector.broadcast %cst_165 : f32 to vector<64x64xf32>
    %209 = arith.maximumf %208, %207 : vector<64x64xf32>
    %210 = vector.broadcast %cst_166 : f32 to vector<64x64xf32>
    %211 = arith.minimumf %210, %209 : vector<64x64xf32>
    %212 = arith.mulf %211, %211 : vector<64x64xf32>
    %cst_167 = arith.constant -2.72614237E-10 : f32
    %213 = vector.broadcast %cst_167 : f32 to vector<64x64xf32>
    %214 = arith.mulf %213, %212 : vector<64x64xf32>
    %cst_168 = arith.constant 2.77068146E-8 : f32
    %215 = vector.broadcast %cst_168 : f32 to vector<64x64xf32>
    %216 = arith.addf %214, %215 : vector<64x64xf32>
    %217 = arith.mulf %216, %212 : vector<64x64xf32>
    %cst_169 = arith.constant -2.10102394E-6 : f32
    %218 = vector.broadcast %cst_169 : f32 to vector<64x64xf32>
    %219 = arith.addf %217, %218 : vector<64x64xf32>
    %220 = arith.mulf %219, %212 : vector<64x64xf32>
    %cst_170 = arith.constant -5.69250624E-5 : f32
    %221 = vector.broadcast %cst_170 : f32 to vector<64x64xf32>
    %222 = arith.addf %220, %221 : vector<64x64xf32>
    %223 = arith.mulf %222, %212 : vector<64x64xf32>
    %cst_171 = arith.constant -7.34990637E-4 : f32
    %224 = vector.broadcast %cst_171 : f32 to vector<64x64xf32>
    %225 = arith.addf %223, %224 : vector<64x64xf32>
    %226 = arith.mulf %225, %212 : vector<64x64xf32>
    %cst_172 = arith.constant -2.954600e-03 : f32
    %227 = vector.broadcast %cst_172 : f32 to vector<64x64xf32>
    %228 = arith.addf %226, %227 : vector<64x64xf32>
    %229 = arith.mulf %228, %212 : vector<64x64xf32>
    %cst_173 = arith.constant -0.0160960332 : f32
    %230 = vector.broadcast %cst_173 : f32 to vector<64x64xf32>
    %231 = arith.addf %229, %230 : vector<64x64xf32>
    %232 = arith.mulf %231, %211 : vector<64x64xf32>
    %cst_174 = arith.constant -1.45660715E-5 : f32
    %233 = vector.broadcast %cst_174 : f32 to vector<64x64xf32>
    %234 = arith.mulf %233, %212 : vector<64x64xf32>
    %cst_175 = arith.constant -2.13374049E-4 : f32
    %235 = vector.broadcast %cst_175 : f32 to vector<64x64xf32>
    %236 = arith.addf %234, %235 : vector<64x64xf32>
    %237 = arith.mulf %236, %212 : vector<64x64xf32>
    %cst_176 = arith.constant -0.00168282702 : f32
    %238 = vector.broadcast %cst_176 : f32 to vector<64x64xf32>
    %239 = arith.addf %237, %238 : vector<64x64xf32>
    %240 = arith.mulf %239, %212 : vector<64x64xf32>
    %cst_177 = arith.constant -0.00737332925 : f32
    %241 = vector.broadcast %cst_177 : f32 to vector<64x64xf32>
    %242 = arith.addf %240, %241 : vector<64x64xf32>
    %243 = arith.mulf %242, %212 : vector<64x64xf32>
    %cst_178 = arith.constant -0.0142647391 : f32
    %244 = vector.broadcast %cst_178 : f32 to vector<64x64xf32>
    %245 = arith.addf %243, %244 : vector<64x64xf32>
    %246 = tpu.reciprocal %245 {approx = true} : vector<64x64xf32> -> vector<64x64xf32>
    %247 = arith.mulf %245, %246 : vector<64x64xf32>
    %cst_179 = arith.constant 2.000000e+00 : f32
    %248 = vector.broadcast %cst_179 : f32 to vector<64x64xf32>
    %249 = arith.subf %248, %247 : vector<64x64xf32>
    %250 = arith.mulf %246, %249 : vector<64x64xf32>
    %251 = arith.mulf %232, %250 : vector<64x64xf32>
    %cst_180 = arith.constant 1.000000e+00 : f32
    %252 = vector.broadcast %cst_180 : f32 to vector<64x64xf32>
    %253 = arith.addf %252, %251 : vector<64x64xf32>
    %254 = arith.mulf %205, %253 : vector<64x64xf32>
    %255 = vector.shape_cast %254 : vector<64x64xf32> to vector<8x8x64xf32>
    %256 = vector.shape_cast %255 : vector<8x8x64xf32> to vector<8x4x2x64xf32>
    %cst_181 = arith.constant dense<0xFF800000> : vector<8x4x64xf32>
    %257 = vector.multi_reduction <maximumf>, %256, %cst_181 [2] : vector<8x4x2x64xf32> to vector<8x4x64xf32>
    %258 = vector.shape_cast %257 : vector<8x4x64xf32> to vector<4x2x4x64xf32>
    %cst_182 = arith.constant dense<0xFF800000> : vector<4x4x64xf32>
    %259 = vector.multi_reduction <maximumf>, %258, %cst_182 [1] : vector<4x2x4x64xf32> to vector<4x4x64xf32>
    %cst_183 = arith.constant 0.000000e+00 : f32
    %260 = vector.broadcast %cst_183 : f32 to vector<4x32xf32>
    %261 = vector.extract_strided_slice %259 {offsets = [0, 0, 0], sizes = [1, 4, 64], strides = [1, 1, 1]} : vector<4x4x64xf32> to vector<1x4x64xf32>
    %262 = vector.shape_cast %261 : vector<1x4x64xf32> to vector<4x64xf32>
    %263 = arith.truncf %262 : vector<4x64xf32> to vector<4x64xbf16>
    %c0_184 = arith.constant 0 : index
    %c0_185 = arith.constant 0 : index
    %c0_186 = arith.constant 0 : index
    %264 = vector.load %arg6[%c0_184, %c0_185, %c0_186] : memref<4x64x32xbf16, #tpu.memory_space<vmem>>, vector<1x64x32xbf16>
    %265 = vector.shape_cast %264 : vector<1x64x32xbf16> to vector<64x32xbf16>
    %cst_187 = arith.constant dense<0.000000e+00> : vector<4x32xf32>
    %266 = tpu.matmul %263, %265, %cst_187 {dimension_numbers = #tpu.dot_dimension_numbers<[1], [0], [0], [1], [0, 0, 1, 1], [], []>} : vector<4x64xbf16>, vector<64x32xbf16>, vector<4x32xf32> -> vector<4x32xf32>
    %267 = arith.addf %260, %266 : vector<4x32xf32>
    %268 = vector.extract_strided_slice %259 {offsets = [1, 0, 0], sizes = [1, 4, 64], strides = [1, 1, 1]} : vector<4x4x64xf32> to vector<1x4x64xf32>
    %269 = vector.shape_cast %268 : vector<1x4x64xf32> to vector<4x64xf32>
    %270 = arith.truncf %269 : vector<4x64xf32> to vector<4x64xbf16>
    %c1_188 = arith.constant 1 : index
    %c0_189 = arith.constant 0 : index
    %c0_190 = arith.constant 0 : index
    %271 = vector.load %arg6[%c1_188, %c0_189, %c0_190] : memref<4x64x32xbf16, #tpu.memory_space<vmem>>, vector<1x64x32xbf16>
    %272 = vector.shape_cast %271 : vector<1x64x32xbf16> to vector<64x32xbf16>
    %cst_191 = arith.constant dense<0.000000e+00> : vector<4x32xf32>
    %273 = tpu.matmul %270, %272, %cst_191 {dimension_numbers = #tpu.dot_dimension_numbers<[1], [0], [0], [1], [0, 0, 1, 1], [], []>} : vector<4x64xbf16>, vector<64x32xbf16>, vector<4x32xf32> -> vector<4x32xf32>
    %274 = arith.addf %267, %273 : vector<4x32xf32>
    %275 = vector.extract_strided_slice %259 {offsets = [2, 0, 0], sizes = [1, 4, 64], strides = [1, 1, 1]} : vector<4x4x64xf32> to vector<1x4x64xf32>
    %276 = vector.shape_cast %275 : vector<1x4x64xf32> to vector<4x64xf32>
    %277 = arith.truncf %276 : vector<4x64xf32> to vector<4x64xbf16>
    %c2_192 = arith.constant 2 : index
    %c0_193 = arith.constant 0 : index
    %c0_194 = arith.constant 0 : index
    %278 = vector.load %arg6[%c2_192, %c0_193, %c0_194] : memref<4x64x32xbf16, #tpu.memory_space<vmem>>, vector<1x64x32xbf16>
    %279 = vector.shape_cast %278 : vector<1x64x32xbf16> to vector<64x32xbf16>
    %cst_195 = arith.constant dense<0.000000e+00> : vector<4x32xf32>
    %280 = tpu.matmul %277, %279, %cst_195 {dimension_numbers = #tpu.dot_dimension_numbers<[1], [0], [0], [1], [0, 0, 1, 1], [], []>} : vector<4x64xbf16>, vector<64x32xbf16>, vector<4x32xf32> -> vector<4x32xf32>
    %281 = arith.addf %274, %280 : vector<4x32xf32>
    %282 = vector.extract_strided_slice %259 {offsets = [3, 0, 0], sizes = [1, 4, 64], strides = [1, 1, 1]} : vector<4x4x64xf32> to vector<1x4x64xf32>
    %283 = vector.shape_cast %282 : vector<1x4x64xf32> to vector<4x64xf32>
    %284 = arith.truncf %283 : vector<4x64xf32> to vector<4x64xbf16>
    %c3_196 = arith.constant 3 : index
    %c0_197 = arith.constant 0 : index
    %c0_198 = arith.constant 0 : index
    %285 = vector.load %arg6[%c3_196, %c0_197, %c0_198] : memref<4x64x32xbf16, #tpu.memory_space<vmem>>, vector<1x64x32xbf16>
    %286 = vector.shape_cast %285 : vector<1x64x32xbf16> to vector<64x32xbf16>
    %cst_199 = arith.constant dense<0.000000e+00> : vector<4x32xf32>
    %287 = tpu.matmul %284, %286, %cst_199 {dimension_numbers = #tpu.dot_dimension_numbers<[1], [0], [0], [1], [0, 0, 1, 1], [], []>} : vector<4x64xbf16>, vector<64x32xbf16>, vector<4x32xf32> -> vector<4x32xf32>
    %288 = arith.addf %281, %287 : vector<4x32xf32>
    %c0_200 = arith.constant 0 : index
    %c0_201 = arith.constant 0 : index
    %289 = vector.load %arg7[%c0_200, %c0_201] : memref<1x32xf32, #tpu.memory_space<vmem>>, vector<1x32xf32>
    %290 = vector.broadcast %289 : vector<1x32xf32> to vector<4x32xf32>
    %291 = arith.addf %288, %290 : vector<4x32xf32>
    %c0_202 = arith.constant 0 : index
    %c0_203 = arith.constant 0 : index
    %c0_204 = arith.constant 0 : index
    %292 = vector.load %arg8[%c0_202, %c0_203, %c0_204] : memref<1x4x32xf32, #tpu.memory_space<vmem>>, vector<1x4x32xf32>
    %293 = vector.shape_cast %292 : vector<1x4x32xf32> to vector<4x32xf32>
    %294 = vector.shape_cast %291 : vector<4x32xf32> to vector<1x4x32xf32>
    tpu.vector_store %arg8[%c0_202, %c0_203, %c0_204], %294 {strides = array<i32>} : memref<1x4x32xf32, #tpu.memory_space<vmem>>, vector<1x4x32xf32>,
    return
  }
  func.func @transform_0(%arg0: i32) -> (i32, i32, i32) {
    %c0_i32 = arith.constant 0 : i32
    %c0_i32_0 = arith.constant 0 : i32
    %c0_i32_1 = arith.constant 0 : i32
    return %arg0, %c0_i32, %c0_i32_0 : i32, i32, i32
  }
  func.func @transform_1(%arg0: i32) -> (i32, i32) {
    %c0_i32 = arith.constant 0 : i32
    %c0_i32_0 = arith.constant 0 : i32
    %c0_i32_1 = arith.constant 0 : i32
    return %c0_i32, %c0_i32_0 : i32, i32
  }
  func.func @transform_2(%arg0: i32) -> (i32, i32) {
    %c0_i32 = arith.constant 0 : i32
    %c0_i32_0 = arith.constant 0 : i32
    %c0_i32_1 = arith.constant 0 : i32
    return %c0_i32, %c0_i32_0 : i32, i32
  }
  func.func @transform_3(%arg0: i32) -> (i32, i32, i32) {
    %c0_i32 = arith.constant 0 : i32
    %c0_i32_0 = arith.constant 0 : i32
    %c0_i32_1 = arith.constant 0 : i32
    %c0_i32_2 = arith.constant 0 : i32
    return %c0_i32, %c0_i32_0, %c0_i32_1 : i32, i32, i32
  }
  func.func @transform_4(%arg0: i32) -> (i32, i32) {
    %c0_i32 = arith.constant 0 : i32
    %c0_i32_0 = arith.constant 0 : i32
    %c0_i32_1 = arith.constant 0 : i32
    return %c0_i32, %c0_i32_0 : i32, i32
  }
  func.func @transform_5(%arg0: i32) -> (i32, i32, i32) {
    %c0_i32 = arith.constant 0 : i32
    %c0_i32_0 = arith.constant 0 : i32
    %c0_i32_1 = arith.constant 0 : i32
    %c0_i32_2 = arith.constant 0 : i32
    return %c0_i32, %c0_i32_0, %c0_i32_1 : i32, i32, i32
  }
  func.func @transform_6(%arg0: i32) -> (i32, i32) {
    %c0_i32 = arith.constant 0 : i32
    %c0_i32_0 = arith.constant 0 : i32
    %c0_i32_1 = arith.constant 0 : i32
    return %c0_i32, %c0_i32_0 : i32, i32
  }
  func.func @transform_7(%arg0: i32) -> (i32, i32, i32) {
    %c0_i32 = arith.constant 0 : i32
    %c0_i32_0 = arith.constant 0 : i32
    %c0_i32_1 = arith.constant 0 : i32
    return %arg0, %c0_i32, %c0_i32_0 : i32, i32, i32
  }
}

</mosaic_0001>

<bundles_post_ra>
// kernel: audio_encoder_forward.1
= control target key start
LH: loop header
LB: loop body
LE: loop exit
PB: predicated region body
PF: predicated region fallthrough
CT: control target
= control target key end

     0   :  { %12 = vsyncpa [#allocation5], 0  ;;  %s12842_s0 = inlined_call_operand.vmem [shape: f32[2,16,16], index: 0, kind: input, shape index: {}]   ;;  %s12843_s1 = inlined_call_operand.vmem [shape: f32[9,32], index: 1, kind: input, shape index: {}]   ;;  %s12844_s2 = inlined_call_operand.vmem [shape: f32[1,32], index: 2, kind: input, shape index: {}]   ;;  %s12845_s3 = inlined_call_operand.vmem [shape: bf16[9,32,64], index: 3, kind: input, shape index: {}]   ;;  %s12846_s4 = inlined_call_operand.vmem [shape: f32[1,64], index: 4, kind: input, shape index: {}]   ;;  %s12847_s5 = inlined_call_operand.vmem [shape: bf16[4,64,32], index: 5, kind: input, shape index: {}]   ;;  %s12848_s6 = inlined_call_operand.vmem [shape: f32[1,32], index: 6, kind: input, shape index: {}]   ;;  %s12849_s7 = inlined_call_operand.hbm [shape: f32[2,4,32], index: 7, kind: output, shape index: {}]  }
   0x1   :  { %14 = vsyncpa [#allocation5 + $0x1], 0  ;;  %s8594_s24 = smov 0   ;;  %s8596_s25 = smov 0  }
   0x2   :  { %s8598_s26 = smov 0   ;;  %s8600_s27 = smov 0  }
   0x3 LB: > { %s8615_s28 = sadd.s32 4294967295, %s8547_s27   ;;  %s7649_s29 = sadd.s32 4294967294, %s8547_s27   ;;  %s8547_s27 = sphi %s8600_s27, %s13270_s27   ;;  %s8543_s26 = sphi %s8598_s26, %s13269_s26   ;;  %s8539_s25 = sphi %s8596_s25, %s13268_s25   ;;  %s8535_s24 = sphi %s8594_s24, %s13267_s24  }
   0x4   : > { %s8619_s30 = sadd.s32 1, %s8547_s27   ;;  %s179_s8 = sadd.s32 1, %s8543_s26 }
   0x5   : > { %s176_s9 = ssub.s32 %s8547_s27, %s8619_s30  ;;  %p189_p0 = scmp.ne.s32.totalorder %s8543_s26, %s8539_s25 }
   0x6   : > { %p177_p1 = scmp.eq.s32.totalorder %s176_s9, 0  ;;  %p190_p2 = scmp.eq.s32.totalorder %s8615_s28, 1 }
   0x7   : > { %p195_p3 = scmp.ne.s32.totalorder %s8539_s25, %s8535_s24  ;;  %p196_p4 = scmp.eq.s32.totalorder %s7649_s29, 1 }
   0x8   : > { %s8630_s10 = scalar_select %p177_p1, %s8543_s26, %s179_s8  }
   0x9   : > { %p8632_p5 = por %p190_p2, %p189_p0  ;;  %p8636_p6 = por %p196_p4, %p195_p3 }
   0xa   : > { %p7652_p7 = scmp.ge.s32.totalorder %s8547_s27, 1  ;;  %p240_p8 = scmp.lt.s32.totalorder %s8547_s27, 3 }
   0xc   : > { %p241_p9 = pnand %p7652_p7, %p240_p8 }
   0xe   : > { %244 = sbr.rel (%p241_p9) target bundleno = 1597 (0x63d), region = 48 }
  0x13   : > { %p272_p10 = scmp.lt.s32.totalorder %s8615_s28, 1  ;;  %v326_v0 = vlaneseq  ;;  %vm278_vm0 = vcmask 261120   ;;  %vm287_vm1 = vcmask 253952   ;;  %v12850_v1 = vmov 0.0   ;;  %v8751_v35 = vld [vmem:[%s12843_s1] ss:$0 sm:$0xff] }
  0x14   : > { %279 = vst.msk [vmem:[#allocation2] sm:$0xff] %vm278_vm0, %v12850_v1  ;;  %280 = vst.msk [vmem:[#allocation2 + $0x8] sm:$0xff] %vm278_vm0, %v12850_v1  ;;  %vm281_vm2 = vcmask 254976   ;;  %v8756_v36 = vld [vmem:[%s12843_s1 + $0x1] ss:$0 sm:$0xff]  ;;  %vm4723_vm3 = vcmask 1042434  }
  0x15   : > { %284 = vst.msk [vmem:[#allocation2 + $0x198] sm:$0xff] %vm278_vm0, %v12850_v1  ;;  %285 = vst.msk [vmem:[#allocation2 + $0x1a0] sm:$0xff] %vm278_vm0, %v12850_v1  ;;  %s8652_s13 = scalar_select %p272_p10, %s8615_s28, 1  ;;  %v8654_v2 = vshrl.u32 %v326_v0, 7  ;;  %v8550_v37 = vmov 1983009808  }
  0x16   : > { %296 = vst.msk [vmem:[#allocation2 + $0xc0] sm:$0x1] %vm287_vm1, %v12850_v1  ;;  %289 = vst.msk [vmem:[#allocation2 + $0x18] sm:$0x1] %vm287_vm1, %v12850_v1  ;;  %v2574_v38 = vunpack.c.l.s4 %v8550_v37  ;;  %v8765_v43 = vld [vmem:[%s12843_s1 + $0x2] ss:$0 sm:$0xff] }
  0x17   : > { %290 = vst.msk [vmem:[#allocation2 + $0x30] sm:$0x1] %vm287_vm1, %v12850_v1  ;;  %291 = vst.msk [vmem:[#allocation2 + $0x48] sm:$0x1] %vm287_vm1, %v12850_v1  ;;  %s7974_s14 = sshll.u32 %s8652_s13, 4  ;;  %v405_v3 = vsub.s32 7, %v8654_v2 }
  0x18   : > { %292 = vst.msk [vmem:[#allocation2 + $0x60] sm:$0x1] %vm287_vm1, %v12850_v1  ;;  %293 = vst.msk [vmem:[#allocation2 + $0x78] sm:$0x1] %vm287_vm1, %v12850_v1  ;;  %v383_v4 = vsub.s32 5, %v8654_v2  ;;  %s276_s17 = scalar_lea.vmem %s12842_s0, %s7974_s14  ;;  %v328_v5 = vsub.s32 0, %v8654_v2  ;;  %v2575_v45 = vunpack.c.0.s8 %v2574_v38 }
  0x19   : > { %294 = vst.msk [vmem:[#allocation2 + $0x90] sm:$0x1] %vm287_vm1, %v12850_v1  ;;  %295 = vst.msk [vmem:[#allocation2 + $0xa8] sm:$0x1] %vm287_vm1, %v12850_v1  ;;  %v394_v6 = vsub.s32 6, %v8654_v2  ;;  %v350_v7 = vsub.s32 2, %v8654_v2 }
  0x1a   : > { %297 = vst.msk [vmem:[#allocation2 + $0xd8] sm:$0x1] %vm287_vm1, %v12850_v1  ;;  %298 = vst.msk [vmem:[#allocation2 + $0xf0] sm:$0x1] %vm287_vm1, %v12850_v1  ;;  %v339_v8 = vsub.s32 1, %v8654_v2  ;;  %v324_v9 = vld [vmem:[%s276_s17] sm:$0xff]  ;;  %v8793_v62 = vsub.s32 %v2575_v45, %v8654_v2 }
  0x1b   : > { %299 = vst.msk [vmem:[#allocation2 + $0x108] sm:$0x1] %vm287_vm1, %v12850_v1  ;;  %300 = vst.msk [vmem:[#allocation2 + $0x120] sm:$0x1] %vm287_vm1, %v12850_v1  ;;  %v325_v10 = vld [vmem:[%s276_s17 + $0x8] sm:$0xff]  ;;  %v372_v11 = vsub.s32 4, %v8654_v2  ;;  %v406_v13 = vrot.slane %v324_v9, %v405_v3  ;;  %v384_v14 = vrot.slane %v324_v9, %v383_v4  ;;  %v395_v16 = vrot.slane %v324_v9, %v394_v6 }
  0x1c   : > { %301 = vst.msk [vmem:[#allocation2 + $0x138] sm:$0x1] %vm287_vm1, %v12850_v1  ;;  %302 = vst.msk [vmem:[#allocation2 + $0x150] sm:$0x1] %vm287_vm1, %v12850_v1  ;;  %v361_v12 = vsub.s32 3, %v8654_v2  ;;  %v417_v15 = vrot.slane %v325_v10, %v328_v5  ;;  %v439_v17 = vrot.slane %v325_v10, %v350_v7  ;;  %v428_v18 = vrot.slane %v325_v10, %v339_v8  ;;  %v636_v34 = vld [vmem:[#allocation2 + $0x1] sm:$0xff] }
  0x1d   : > { %303 = vst.msk [vmem:[#allocation2 + $0x168] sm:$0x1] %vm287_vm1, %v12850_v1  ;;  %304 = vst.msk [vmem:[#allocation2 + $0x180] sm:$0x1] %vm287_vm1, %v12850_v1  ;;  %408 = vbcast.lane.b32.xlu1 %v406_v13, 256  ;;  %386 = vbcast.lane.b32.xlu0 %v384_v14, 256  ;;  %v461_v19 = vrot.slane %v325_v10, %v372_v11  ;;  %v329_v21 = vrot.slane %v324_v9, %v328_v5 }
  0x1e   : > { %307 = vst.msk [vmem:[#allocation2 + $0x29] sm:$0x1] %vm287_vm1, %v12850_v1  ;;  %308 = vst.msk [vmem:[#allocation2 + $0x41] sm:$0x1] %vm287_vm1, %v12850_v1  ;;  %v450_v20 = vrot.slane %v325_v10, %v361_v12  ;;  %v340_v22 = vrot.slane %v324_v9, %v339_v8  ;;  %v362_v23 = vrot.slane %v324_v9, %v361_v12  ;;  %v737_v44 = vld [vmem:[#allocation2 + $0x2] sm:$0xff]  ;;  %vm4725_vm4 = vcmask 1043459  }
  0x1f   : > { %309 = vst.msk [vmem:[#allocation2 + $0x59] sm:$0x1] %vm287_vm1, %v12850_v1  ;;  %310 = vst.msk [vmem:[#allocation2 + $0x71] sm:$0x1] %vm287_vm1, %v12850_v1  ;;  %v351_v24 = vrot.slane %v324_v9, %v350_v7  ;;  %v373_v25 = vrot.slane %v324_v9, %v372_v11  ;;  %v472_v26 = vrot.slane %v325_v10, %v383_v4  ;;  %v8771_v52 = vld [vmem:[%s12843_s1 + $0x3] ss:$0 sm:$0xff] }
  0x20   : > { %311 = vst.msk [vmem:[#allocation2 + $0x89] sm:$0x1] %vm287_vm1, %v12850_v1  ;;  %312 = vst.msk [vmem:[#allocation2 + $0xa1] sm:$0x1] %vm287_vm1, %v12850_v1  ;;  %v483_v27 = vrot.slane %v325_v10, %v394_v6  ;;  %v494_v28 = vrot.slane %v325_v10, %v405_v3  ;;  %v673_v42 = vmul.f32 %v8756_v36, %v636_v34  ;;  %v8778_v53 = vld [vmem:[%s12843_s1 + $0x4] ss:$0 sm:$0xff] }
  0x21   : > { %313 = vst.msk [vmem:[#allocation2 + $0xb9] sm:$0x1] %vm287_vm1, %v12850_v1  ;;  %314 = vst.msk [vmem:[#allocation2 + $0xd1] sm:$0x1] %vm287_vm1, %v12850_v1  ;;  %419 = vbcast.lane.b32.xlu1 %v417_v15, 256  ;;  %397 = vbcast.lane.b32.xlu0 %v395_v16, 256  ;;  %v774_v51 = vmul.f32 %v8765_v43, %v737_v44 }
  0x22   : > { %315 = vst.msk [vmem:[#allocation2 + $0xe9] sm:$0x1] %vm287_vm1, %v12850_v1  ;;  %316 = vst.msk [vmem:[#allocation2 + $0x101] sm:$0x1] %vm287_vm1, %v12850_v1  ;;  %v8783_v56 = vld [vmem:[%s12843_s1 + $0x6] ss:$0 sm:$0xff] }
  0x23   : > { %317 = vst.msk [vmem:[#allocation2 + $0x119] sm:$0x1] %vm287_vm1, %v12850_v1  ;;  %318 = vst.msk [vmem:[#allocation2 + $0x131] sm:$0x1] %vm287_vm1, %v12850_v1  ;;  %v8788_v57 = vld [vmem:[%s12843_s1 + $0x7] ss:$0 sm:$0xff] }
  0x24   : > { %319 = vst.msk [vmem:[#allocation2 + $0x149] sm:$0x1] %vm287_vm1, %v12850_v1  ;;  %320 = vst.msk [vmem:[#allocation2 + $0x161] sm:$0x1] %vm287_vm1, %v12850_v1  ;;  %vm4727_vm5 = vcmask 1044484   ;;  %vm4729_vm6 = vcmask 1045509  }
  0x25   : > { %321 = vst.msk [vmem:[#allocation2 + $0x179] sm:$0x1] %vm287_vm1, %v12850_v1  ;;  %322 = vst.msk [vmem:[#allocation2 + $0x191] sm:$0x1] %vm287_vm1, %v12850_v1  ;;  %441 = vbcast.lane.b32.xlu1 %v439_v17, 256  ;;  %430 = vbcast.lane.b32.xlu0 %v428_v18, 256 }
  0x26   : > { %288 = vst.msk [vmem:[#allocation2] sm:$0x1] %vm287_vm1, %v12850_v1  ;;  %305 = vst.msk [vmem:[#allocation2 + $0x198] sm:$0x1] %vm287_vm1, %v12850_v1  ;;  %vm4731_vm7 = vcmask 1046534   ;;  %vm4733_vm12 = vcmask 1047559  }
  0x27   : > { %282 = vst.msk [vmem:[#allocation2 + $0x10] sm:$0x3] %vm281_vm2, %v12850_v1  ;;  %286 = vst.msk [vmem:[#allocation2 + $0x1a8] sm:$0x3] %vm281_vm2, %v12850_v1  ;;  %vm4339_vm8 = vsmask.f32 256 }
  0x28   : > { %306 = vst.msk [vmem:[#allocation2 + $0x11] sm:$0x1] %vm287_vm1, %v12850_v1  ;;  %323 = vst.msk [vmem:[#allocation2 + $0x1a9] sm:$0x1] %vm287_vm1, %v12850_v1  ;;  %vm4371_vm10 = vsmask.f32 7938 }
  0x29   : > { %463 = vbcast.lane.b32.xlu1 %v461_v19, 256  ;;  %452 = vbcast.lane.b32.xlu0 %v450_v20, 256  ;;  %12912 = vst [vmem:[#allocation7_spill] sm:$0xff] %v8793_v62  ;;  %vm11585_vm9 = vmand %vm287_vm1, %vm4339_vm8  ;;  %vm4332_vm13 = vcmask 257024   ;;  %vm4880_vm15 = vsmask.f32 3328 }
  0x2a   : > { %vm11598_vm11 = vmand %vm287_vm1, %vm4371_vm10  ;;  %vm5234_vm8 = vcmask 1042432   ;;  %s269_s14 = sand.u32 1, %s8539_s25   ;;  %s7971_s18 = sshll.u32 %s8615_s28, 6 }
  0x2b   : > { %vm11628_vm14 = vmand %vm4332_vm13, %vm4371_vm10  ;;  %vm5235_vm10 = vcmask 1046532   ;;  %s7653_s15 = sshll.u32 %s269_s14, 2  ;;  %s12806_s23 = scalar_lea.hbm %s12849_s7, %s7971_s18 }
  0x2c   : > { %s271_s19 = scalar_lea.vmem [#allocation4], %s7653_s15  ;;  %s7577_s29 = scalar_lea.sflag [#allocation5], %s269_s14 }
  0x2d   : > { %390 = vbcast.lane.b32.xlu1 %v384_v14, 264  ;;  %331 = vbcast.lane.b32.xlu0 %v329_v21, 256  ;;  %v535_v33 = vld [vmem:[#allocation2] sm:$0xff]  ;;  %s7590_s20 = sshll.u32 %s271_s19, 4  ;;  %s8553_s28 = smov [#allocation4]   ;;  %s7591_s20 = int_to_ptr.vmem [resolvable:$true] %s7590_s20 }
  0x2e   : > { %v572_v41 = vmul.f32 %v8751_v35, %v535_v33  ;;  %s8487_s8 = scalar_lea.vmem %s7591_s20, 64  ;;  %s8491_s9 = sshll.u32 %s8553_s28, 4  ;;  %s8492_s9 = int_to_ptr.vmem [resolvable:$false] %s8491_s9 }
  0x2f   : > { %p8488_p11 = scmp.ne.s32.totalorder %s7591_s20, %s8487_s8  ;;  %s8493_s13 = scalar_lea.vmem %s8492_s9, 128 }
  0x30   : > { %v705_v50 = vadd.f32 %v673_v42, %v572_v41  ;;  %p8494_p0 = scmp.lt.s32.totalorder %s7591_s20, %s8492_s9  ;;  %p8495_p1 = scmp.lt.s32.totalorder %s8493_s13, %s8487_s8 }
  0x31   : > { %412 = vbcast.lane.b32.xlu1 %v406_v13, 264  ;;  %401 = vbcast.lane.b32.xlu0 %v395_v16, 264  ;;  %p8489_p12 = pnand %p8488_p11, %p8632_p5 }
  0x32   : > { %v8803_v7 = vadd.f32 %v774_v51, %v705_v50  ;;  %p8496_p2 = por %p8495_p1, %p8494_p0 }
  0x33   : > { %p8490_p13 = pneg %p8489_p12 }
  0x35   : > { %342 = vbcast.lane.b32.xlu1 %v340_v22, 256  ;;  %423 = vbcast.lane.b32.xlu0 %v417_v15, 264  ;;  %p8497_p3 = pnand %p8496_p2, %p8490_p13 }
  0x39   : > { %364 = vbcast.lane.b32.xlu1 %v362_v23, 256  ;;  %353 = vbcast.lane.b32.xlu0 %v351_v24, 256 }
  0x3d   : > { %434 = vbcast.lane.b32.xlu1 %v428_v18, 264  ;;  %375 = vbcast.lane.b32.xlu0 %v373_v25, 256 }
  0x41   : > { %456 = vbcast.lane.b32.xlu1 %v450_v20, 264  ;;  %445 = vbcast.lane.b32.xlu0 %v439_v17, 264 }
  0x45   : > { %335 = vbcast.lane.b32.xlu1 %v329_v21, 264  ;;  %467 = vbcast.lane.b32.xlu0 %v461_v19, 264 }
  0x49   : > { %357 = vbcast.lane.b32.xlu1 %v351_v24, 264  ;;  %346 = vbcast.lane.b32.xlu0 %v340_v22, 264 }
  0x4d   : > { %379 = vbcast.lane.b32.xlu1 %v373_v25, 264  ;;  %368 = vbcast.lane.b32.xlu0 %v362_v23, 264 }
  0x51   : > { %478 = vbcast.lane.b32.xlu1 %v472_v26, 264  ;;  %474 = vbcast.lane.b32.xlu0 %v472_v26, 256 }
  0x55   : > { %489 = vbcast.lane.b32.xlu1 %v483_v27, 264  ;;  %485 = vbcast.lane.b32.xlu0 %v483_v27, 256 }
  0x59   : > { %500 = vbcast.lane.b32.xlu1 %v494_v28, 264  ;;  %496 = vbcast.lane.b32.xlu0 %v494_v28, 256 }
  0x8f   : > { %v409_v29 = vpop.permute.xlu1 %408  ;;  %v387_v30 = vpop.permute.xlu0 %386 }
  0x90   : > { %517 = vst.msk [vmem:[#allocation2 + $0xc1] sm:$0xff] %vm278_vm0, %v409_v29  ;;  %513 = vst.msk [vmem:[#allocation2 + $0x91] sm:$0xff] %vm278_vm0, %v387_v30 }
  0x93   : > { %v420_v31 = vpop.permute.xlu1 %419  ;;  %v398_v32 = vpop.permute.xlu0 %397 }
  0x94   : > { %519 = vst.msk [vmem:[#allocation2 + $0xd9] sm:$0xff] %vm278_vm0, %v420_v31  ;;  %515 = vst.msk [vmem:[#allocation2 + $0xa9] sm:$0xff] %vm278_vm0, %v398_v32 }
  0x97   : > { %v442_v39 = vpop.permute.xlu1 %441  ;;  %v431_v40 = vpop.permute.xlu0 %430  ;;  %v551_v46 = vld [vmem:[#allocation2 + $0xc0] sm:$0xff]  ;;  %v547_v54 = vld [vmem:[#allocation2 + $0x90] sm:$0xff] }
  0x98   : > { %523 = vst.msk [vmem:[#allocation2 + $0x109] sm:$0xff] %vm278_vm0, %v442_v39  ;;  %521 = vst.msk [vmem:[#allocation2 + $0xf1] sm:$0xff] %vm278_vm0, %v431_v40  ;;  %v652_v47 = vld [vmem:[#allocation2 + $0xc1] sm:$0xff]  ;;  %v648_v55 = vld [vmem:[#allocation2 + $0x91] sm:$0xff]  ;;  %v588_v58 = vmul.f32 %v8751_v35, %v551_v46  ;;  %v8796_v63 = vmul.f32 %v8771_v52, %v551_v46  ;;  %v584_v9 = vmul.f32 %v8751_v35, %v547_v54 }
  0x99   : > { %v689_v59 = vmul.f32 %v8756_v36, %v652_v47  ;;  %v8799_v0 = vmul.f32 %v8778_v53, %v652_v47  ;;  %v685_v10 = vmul.f32 %v8756_v36, %v648_v55  ;;  %v8812_v15 = vmul.f32 %v8783_v56, %v551_v46 }
  0x9a   : > { %v8815_v16 = vmul.f32 %v8788_v57, %v652_v47  ;;  %v8827_v23 = vmul.f32 %v8771_v52, %v547_v54  ;;  %v8834_v30 = vmul.f32 %v8778_v53, %v648_v55  ;;  %v8837_v31 = vmul.f32 %v8783_v56, %v547_v54 }
  0x9b   : > { %v464_v48 = vpop.permute.xlu1 %463  ;;  %v453_v49 = vpop.permute.xlu0 %452  ;;  %v553_v60 = vld [vmem:[#allocation2 + $0xd8] sm:$0xff]  ;;  %v549_v2 = vld [vmem:[#allocation2 + $0xa8] sm:$0xff]  ;;  %v8820_v19 = vadd.f32 %v689_v59, %v588_v58  ;;  %v717_v29 = vadd.f32 %v685_v10, %v584_v9  ;;  %v8840_v32 = vmul.f32 %v8788_v57, %v648_v55 }
  0x9c   : > { %527 = vst.msk [vmem:[#allocation2 + $0x139] sm:$0xff] %vm278_vm0, %v464_v48  ;;  %525 = vst.msk [vmem:[#allocation2 + $0x121] sm:$0xff] %vm278_vm0, %v453_v49  ;;  %v654_v61 = vld [vmem:[#allocation2 + $0xd9] sm:$0xff]  ;;  %v650_v11 = vld [vmem:[#allocation2 + $0xa9] sm:$0xff]  ;;  %v590_v20 = vmul.f32 %v8751_v35, %v553_v60  ;;  %v586_v24 = vmul.f32 %v8751_v35, %v549_v2  ;;  %v8845_v33 = vmul.f32 %v8771_v52, %v553_v60 }
  0x9d   : > { %v691_v21 = vmul.f32 %v8756_v36, %v654_v61  ;;  %12914 = vst [vmem:[#allocation9_spill] sm:$0xff] %v8827_v23  ;;  %v687_v25 = vmul.f32 %v8756_v36, %v650_v11  ;;  %12915 = vst [vmem:[#allocation10_spill] sm:$0xff] %v8834_v30  ;;  %v8848_v34 = vmul.f32 %v8778_v53, %v654_v61 }
  0x9e   : > { %12916 = vst [vmem:[#allocation11_spill] sm:$0xff] %v8837_v31  ;;  %12917 = vst [vmem:[#allocation12_spill] sm:$0xff] %v8840_v32  ;;  %v8851_v37 = vmul.f32 %v8783_v56, %v553_v60  ;;  %v8854_v38 = vmul.f32 %v8788_v57, %v654_v61  ;;  %v887_v42 = vmul.f32 %v8771_v52, %v549_v2 }
  0x9f   : > { %v557_v3 = vld [vmem:[#allocation2 + $0x108] sm:$0xff]  ;;  %v8801_v5 = vld [vmem:[#allocation2 + $0xf0] sm:$0xff]  ;;  %v391_v6 = vpop.permute.xlu1 %390  ;;  %v332_v8 = vpop.permute.xlu0 %331  ;;  %v8856_v41 = vadd.f32 %v691_v21, %v590_v20  ;;  %v8860_v44 = vmul.f32 %v8778_v53, %v650_v11  ;;  %v8863_v45 = vmul.f32 %v8783_v56, %v549_v2  ;;  %v8865_v48 = vadd.f32 %v687_v25, %v586_v24 }
  0xa0   : > { %v658_v4 = vld [vmem:[#allocation2 + $0x109] sm:$0xff]  ;;  %v594_v12 = vmul.f32 %v8751_v35, %v557_v3  ;;  %v656_v14 = vld [vmem:[#allocation2 + $0xf1] sm:$0xff]  ;;  %514 = vst.msk [vmem:[#allocation2 + $0x99] sm:$0xff] %vm278_vm0, %v391_v6  ;;  %503 = vst.msk [vmem:[#allocation2 + $0x19] sm:$0xff] %vm278_vm0, %v332_v8  ;;  %v592_v17 = vmul.f32 %v8751_v35, %v8801_v5  ;;  %v8868_v49 = vmul.f32 %v8788_v57, %v650_v11 }
  0xa1   : > { %v695_v13 = vmul.f32 %v8756_v36, %v658_v4  ;;  %v693_v18 = vmul.f32 %v8756_v36, %v656_v14  ;;  %12918 = vst [vmem:[#allocation13_spill] sm:$0xff] %v8863_v45  ;;  %v8871_v50 = vmul.f32 %v8771_v52, %v557_v3  ;;  %v8874_v51 = vmul.f32 %v8778_v53, %v658_v4 }
  0xa2   : > { %12919 = vst [vmem:[#allocation14_spill] sm:$0xff] %v8868_v49  ;;  %v8877_v61 = vmul.f32 %v8783_v56, %v557_v3  ;;  %v8885_v10 = vmul.f32 %v8788_v57, %v658_v4  ;;  %v8889_v2 = vmul.f32 %v8771_v52, %v8801_v5  ;;  %v8900_v4 = vmul.f32 %v8783_v56, %v8801_v5 }
  0xa3   : > { %v8824_v22 = vadd.f32 %v695_v13, %v594_v12  ;;  %v8831_v26 = vadd.f32 %v693_v18, %v592_v17  ;;  %v413_v27 = vpop.permute.xlu1 %412  ;;  %v402_v28 = vpop.permute.xlu0 %401  ;;  %v561_v39 = vld [vmem:[#allocation2 + $0x138] sm:$0xff]  ;;  %v559_v46 = vld [vmem:[#allocation2 + $0x120] sm:$0xff]  ;;  %v8894_v12 = vmul.f32 %v8778_v53, %v656_v14  ;;  %v8903_v21 = vmul.f32 %v8788_v57, %v656_v14 }
  0xa4   : > { %518 = vst.msk [vmem:[#allocation2 + $0xc9] sm:$0xff] %vm278_vm0, %v413_v27  ;;  %516 = vst.msk [vmem:[#allocation2 + $0xb1] sm:$0xff] %vm278_vm0, %v402_v28  ;;  %v662_v40 = vld [vmem:[#allocation2 + $0x139] sm:$0xff]  ;;  %v660_v47 = vld [vmem:[#allocation2 + $0x121] sm:$0xff]  ;;  %v598_v6 = vmul.f32 %v8751_v35, %v561_v39  ;;  %v596_v13 = vmul.f32 %v8751_v35, %v559_v46  ;;  %v8906_v24 = vmul.f32 %v8771_v52, %v561_v39 }
  0xa5   : > { %12913 = vst [vmem:[#allocation8_spill] sm:$0xff] %v8824_v22  ;;  %v699_v8 = vmul.f32 %v8756_v36, %v662_v40  ;;  %12920 = vst [vmem:[#allocation15_spill] sm:$0xff] %v8885_v10  ;;  %v697_v17 = vmul.f32 %v8756_v36, %v660_v47  ;;  %v8909_v25 = vmul.f32 %v8778_v53, %v662_v40  ;;  %v8925_v14 = vld [vmem:[%s12843_s1 + $0x5] ss:$0 sm:$0xff] }
  0xa6   : > { %12921 = vst [vmem:[#allocation16_spill] sm:$0xff] %v8906_v24  ;;  %v8920_v5 = vmul.f32 %v8771_v52, %v559_v46  ;;  %v8941_v31 = vmul.f32 %v8783_v56, %v559_v46 }
  0xa7   : > { %v548_v54 = vld [vmem:[#allocation2 + $0x98] sm:$0xff]  ;;  %v343_v59 = vpop.permute.xlu1 %342  ;;  %v424_v60 = vpop.permute.xlu0 %423  ;;  %12922 = vst [vmem:[#allocation17_spill] sm:$0xff] %v8909_v25  ;;  %v8938_v32 = vadd.f32 %v697_v17, %v596_v13 }
  0xa8   : > { %v649_v55 = vld [vmem:[#allocation2 + $0x99] sm:$0xff]  ;;  %505 = vst.msk [vmem:[#allocation2 + $0x31] sm:$0xff] %vm278_vm0, %v343_v59  ;;  %520 = vst.msk [vmem:[#allocation2 + $0xe1] sm:$0xff] %vm278_vm0, %v424_v60  ;;  %v585_v3 = vmul.f32 %v8751_v35, %v548_v54  ;;  %v8911_v59 = vadd.f32 %v699_v8, %v598_v6  ;;  %v8914_v60 = vmul.f32 %v8783_v56, %v561_v39  ;;  %v8935_v39 = vld [vmem:[%s12843_s1 + $0x8] ss:$0 sm:$0xff] }
  0xa9   : > { %v749_v58 = vld [vmem:[#allocation2 + $0x92] sm:$0xff]  ;;  %v686_v11 = vmul.f32 %v8756_v36, %v649_v55  ;;  %v750_v18 = vld [vmem:[#allocation2 + $0x9a] sm:$0xff]  ;;  %12926 = vst [vmem:[#allocation21_spill] sm:$0xff] %v8920_v5  ;;  %v8930_v6 = vmul.f32 %v8778_v53, %v660_v47  ;;  %12928 = vst [vmem:[#allocation23_spill] sm:$0xff] %v8941_v31  ;;  %v8950_v45 = vmul.f32 %v8778_v53, %v649_v55 }
  0xaa   : > { %v786_v9 = vmul.f32 %v8765_v43, %v749_v58  ;;  %12923 = vst [vmem:[#allocation18_spill] sm:$0xff] %v8911_v59  ;;  %12924 = vst [vmem:[#allocation19_spill] sm:$0xff] %v8914_v60  ;;  %v787_v8 = vmul.f32 %v8765_v43, %v750_v18  ;;  %v537_v1 = vld [vmem:[#allocation2 + $0x18] sm:$0xff]  ;;  %v8968_v30 = vmul.f32 %v8788_v57, %v649_v55 }
  0xab   : > { %v365_v27 = vpop.permute.xlu1 %364  ;;  %v354_v28 = vpop.permute.xlu0 %353  ;;  %12927 = vst [vmem:[#allocation22_spill] sm:$0xff] %v8930_v6  ;;  %v638_v49 = vld [vmem:[#allocation2 + $0x19] sm:$0xff]  ;;  %12931 = vst [vmem:[#allocation26_spill] sm:$0xff] %v8950_v45  ;;  %v8961_v46 = vld [vmem:[#allocation2 + $0xb0] sm:$0xff]  ;;  %v8971_v45 = vmul.f32 %v8935_v39, %v749_v58  ;;  %v875_v55 = vmul.f32 %v8771_v52, %v537_v1 }
  0xac   : > { %v818_v20 = vadd.f32 %v786_v9, %v717_v29  ;;  %v8917_v29 = vmul.f32 %v8788_v57, %v662_v40  ;;  %509 = vst.msk [vmem:[#allocation2 + $0x61] sm:$0xff] %vm278_vm0, %v365_v27  ;;  %507 = vst.msk [vmem:[#allocation2 + $0x49] sm:$0xff] %vm278_vm0, %v354_v28  ;;  %v718_v40 = vadd.f32 %v686_v11, %v585_v3  ;;  %v8965_v13 = vld [vmem:[#allocation2 + $0xaa] sm:$0xff] }
  0xad   : > { %v8944_v27 = vmul.f32 %v8788_v57, %v660_v47  ;;  %v8947_v28 = vmul.f32 %v8771_v52, %v548_v54  ;;  %v8953_v3 = vmul.f32 %v8925_v14, %v749_v58  ;;  %v8959_v11 = vmul.f32 %v8783_v56, %v548_v54  ;;  %v8963_v47 = vld [vmem:[#allocation2 + $0xb1] sm:$0xff]  ;;  %12935 = vst [vmem:[#allocation30_spill] sm:$0xff] %v8968_v30  ;;  %v753_v30 = vld [vmem:[#allocation2 + $0xc2] sm:$0xff] }
  0xae   : > { %12925 = vst [vmem:[#allocation20_spill] sm:$0xff] %v8917_v29  ;;  %v919_v9 = vadd.f32 %v887_v42, %v818_v20  ;;  %v8956_v42 = vmul.f32 %v8925_v14, %v750_v18  ;;  %12936 = vst [vmem:[#allocation31_spill] sm:$0xff] %v8971_v45  ;;  %v574_v54 = vmul.f32 %v8751_v35, %v537_v1  ;;  %v8982_v45 = vld [vmem:[#allocation2 + $0xb2] sm:$0xff] }
  0xaf   : > { %12929 = vst [vmem:[#allocation24_spill] sm:$0xff] %v8944_v27  ;;  %12930 = vst [vmem:[#allocation25_spill] sm:$0xff] %v8947_v28  ;;  %v435_v17 = vpop.permute.xlu1 %434  ;;  %v376_v20 = vpop.permute.xlu0 %375  ;;  %v819_v28 = vadd.f32 %v787_v8, %v718_v40  ;;  %v675_v23 = vmul.f32 %v8756_v36, %v638_v49  ;;  %v788_v40 = vmul.f32 %v8765_v43, %v8965_v13 }
  0xb0   : > { %12932 = vst [vmem:[#allocation27_spill] sm:$0xff] %v8953_v3  ;;  %12933 = vst [vmem:[#allocation28_spill] sm:$0xff] %v8956_v42  ;;  %v8974_v3 = vmul.f32 %v8935_v39, %v750_v18  ;;  %v653_v42 = vld [vmem:[#allocation2 + $0xc9] sm:$0xff]  ;;  %v1020_v58 = vadd.f32 %v8860_v44, %v919_v9  ;;  %v976_v18 = vmul.f32 %v8778_v53, %v638_v49 }
  0xb1   : > { %12934 = vst [vmem:[#allocation29_spill] sm:$0xff] %v8959_v11  ;;  %v552_v11 = vld [vmem:[#allocation2 + $0xc8] sm:$0xff]  ;;  %522 = vst.msk [vmem:[#allocation2 + $0xf9] sm:$0xff] %vm278_vm0, %v435_v17  ;;  %v688_v17 = vmul.f32 %v8756_v36, %v8963_v47  ;;  %v690_v1 = vmul.f32 %v8756_v36, %v653_v42  ;;  %v888_v44 = vmul.f32 %v8771_v52, %v8961_v46 }
  0xb2   : > { %12937 = vst [vmem:[#allocation32_spill] sm:$0xff] %v8974_v3  ;;  %511 = vst.msk [vmem:[#allocation2 + $0x79] sm:$0xff] %vm278_vm0, %v376_v20  ;;  %v587_v3 = vmul.f32 %v8751_v35, %v8961_v46  ;;  %v589_v8 = vmul.f32 %v8751_v35, %v552_v11  ;;  %v754_v20 = vld [vmem:[#allocation2 + $0xca] sm:$0xff]  ;;  %v1089_v49 = vmul.f32 %v8925_v14, %v8965_v13 }
  0xb3   : > { %v457_v9 = vpop.permute.xlu1 %456  ;;  %v446_v59 = vpop.permute.xlu0 %445  ;;  %v790_v25 = vmul.f32 %v8765_v43, %v753_v30  ;;  %v789_v60 = vmul.f32 %v8765_v43, %v8982_v45  ;;  %v820_v6 = vadd.f32 %v788_v40, %v8865_v48  ;;  %v907_v5 = vadd.f32 %v875_v55, %v8803_v7 }
  0xb4   : > { %v720_v29 = vadd.f32 %v688_v17, %v587_v3  ;;  %526 = vst.msk [vmem:[#allocation2 + $0x129] sm:$0xff] %vm278_vm0, %v457_v9  ;;  %524 = vst.msk [vmem:[#allocation2 + $0x111] sm:$0xff] %vm278_vm0, %v446_v59  ;;  %v920_v24 = vadd.f32 %v888_v44, %v819_v28  ;;  %v989_v27 = vmul.f32 %v8778_v53, %v8963_v47 }
  0xb5   : > { %v1121_v31 = vadd.f32 %v1089_v49, %v1020_v58  ;;  %v791_v10 = vmul.f32 %v8765_v43, %v754_v20  ;;  %v890_v3 = vmul.f32 %v8771_v52, %v552_v11  ;;  %v921_v22 = vadd.f32 %v8796_v63, %v820_v6 }
  0xb6   : > { %v821_v17 = vadd.f32 %v789_v60, %v720_v29  ;;  %v991_v48 = vmul.f32 %v8778_v53, %v653_v42  ;;  %v1021_v40 = vadd.f32 %v989_v27, %v920_v24  ;;  %v1090_v59 = vmul.f32 %v8925_v14, %v8982_v45  ;;  %v640_v27 = vld [vmem:[#allocation2 + $0x31] sm:$0xff] }
  0xb7   : > { %v1223_v7 = vadd.f32 %v8812_v15, %v1121_v31  ;;  %v722_v28 = vadd.f32 %v690_v1, %v589_v8  ;;  %v1091_v55 = vmul.f32 %v8925_v14, %v753_v30  ;;  %v1022_v58 = vadd.f32 %v8799_v0, %v921_v22  ;;  %v9024_v15 = vld [vmem:[%s12844_s2] ss:$0 sm:$0xff]  ;;  %v539_v31 = vld [vmem:[#allocation2 + $0x30] sm:$0xff] }
  0xb8   : > { %v922_v44 = vadd.f32 %v890_v3, %v821_v17  ;;  %v1192_v49 = vmul.f32 %v8783_v56, %v552_v11  ;;  %v1393_v60 = vmul.f32 %v8935_v39, %v753_v30  ;;  %v1122_v29 = vadd.f32 %v1090_v59, %v1021_v40 }
  0xb9   : > { %v1324_v63 = vadd.f32 %v8815_v16, %v1223_v7  ;;  %v9018_v6 = vadd.f32 %v675_v23, %v574_v54  ;;  %v822_v24 = vadd.f32 %v790_v25, %v8820_v19  ;;  %v1123_v0 = vadd.f32 %v1091_v55, %v1022_v58 }
  0xba   : > { %v1023_v8 = vadd.f32 %v991_v48, %v922_v44  ;;  %v1092_v22 = vmul.f32 %v8925_v14, %v754_v20  ;;  %v1293_v30 = vmul.f32 %v8788_v57, %v653_v42  ;;  %v1224_v11 = vadd.f32 %v1192_v49, %v1122_v29  ;;  %v554_v48 = vld [vmem:[#allocation2 + $0xe0] sm:$0xff] }
  0xbb   : > { %12938 = vst [vmem:[#allocation33_spill] sm:$0xff] %v9018_v6  ;;  %v1425_v1 = vadd.f32 %v1393_v60, %v1324_v63  ;;  %v9028_v16 = vadd.f32 %v976_v18, %v907_v5  ;;  %v823_v23 = vadd.f32 %v791_v10, %v722_v28  ;;  %v1394_v19 = vmul.f32 %v8935_v39, %v754_v20  ;;  %v755_v18 = vld [vmem:[#allocation2 + $0xda] sm:$0xff] }
  0xbc   : > { %v1225_v25 = vadd.f32 %v8851_v37, %v1123_v0  ;;  %v1325_v54 = vadd.f32 %v1293_v30, %v1224_v11  ;;  %v576_v3 = vmul.f32 %v8751_v35, %v539_v31  ;;  %v677_v17 = vmul.f32 %v8756_v36, %v640_v27 }
  0xbd   : > { %12939 = vst [vmem:[#allocation34_spill] sm:$0xff] %v9028_v16  ;;  %v9033_v9 = vadd.f32 %v9024_v15, %v1425_v1  ;;  %v923_v42 = vadd.f32 %v8845_v33, %v822_v24  ;;  %v9040_v5 = vmul.f32 %v8783_v56, %v8961_v46  ;;  %v9044_v10 = vmul.f32 %v8788_v57, %v8963_v47  ;;  %v655_v33 = vld [vmem:[#allocation2 + $0xe1] sm:$0xff] }
  0xbe   : > { %v1124_v37 = vadd.f32 %v1092_v22, %v1023_v8  ;;  %v9048_v20 = vmul.f32 %v8935_v39, %v8965_v13  ;;  %v1426_v40 = vadd.f32 %v1394_v19, %v1325_v54  ;;  %v1326_v7 = vadd.f32 %v8854_v38, %v1225_v25  ;;  %v756_v38 = vld [vmem:[#allocation2 + $0xe2] sm:$0xff] }
  0xbf   : > { %12940 = vst [vmem:[#allocation35_spill] sm:$0xff] %v9040_v5  ;;  %12941 = vst [vmem:[#allocation36_spill] sm:$0xff] %v9044_v10  ;;  %v1528_v59 = vmul.f32 0.70710677, %v9033_v9  ;;  %v9054_v46 = vmul.f32 %v8935_v39, %v8982_v45  ;;  %v9057_v28 = vmul.f32 %v8771_v52, %v539_v31  ;;  %v9060_v47 = vmul.f32 %v8778_v53, %v640_v27  ;;  %v543_v16 = vld [vmem:[#allocation2 + $0x60] sm:$0xff] }
  0xc0   : > { %12942 = vst [vmem:[#allocation37_spill] sm:$0xff] %v9048_v20  ;;  %v1194_v55 = vmul.f32 %v8783_v56, %v554_v48  ;;  %v9064_v13 = vadd.f32 %v9024_v15, %v1426_v40  ;;  %v9068_v58 = vadd.f32 %v677_v17, %v576_v3  ;;  %v1395_v49 = vmul.f32 %v8935_v39, %v755_v18 }
  0xc1   : > { %12943 = vst [vmem:[#allocation38_spill] sm:$0xff] %v9054_v46  ;;  %12944 = vst [vmem:[#allocation39_spill] sm:$0xff] %v9057_v28  ;;  %v9066_v44 = vclamps-f32 %v1528_v59, 4.0  ;;  %v591_v45 = vmul.f32 %v8751_v35, %v554_v48  ;;  %v692_v60 = vmul.f32 %v8756_v36, %v655_v33  ;;  %v1295_v63 = vmul.f32 %v8788_v57, %v655_v33  ;;  %v644_v28 = vld [vmem:[#allocation2 + $0x61] sm:$0xff] }
  0xc2   : > { %12945 = vst [vmem:[#allocation40_spill] sm:$0xff] %v9060_v47  ;;  %12946 = vst [vmem:[#allocation41_spill] sm:$0xff] %v9068_v58  ;;  %v1226_v29 = vadd.f32 %v1194_v55, %v1124_v37  ;;  %v1529_v24 = vmul.f32 0.70710677, %v9064_v13  ;;  %v9080_v0 = vmul.f32 %v8783_v56, %v539_v31  ;;  %v1427_v22 = vadd.f32 %v1395_v49, %v1326_v7  ;;  %v336_v58 = vpop.permute.xlu1 %335 }
  0xc3   : > { %v9077_v8 = vmul.f32 %v9066_v44, %v9066_v44  ;;  %v9083_v30 = vmul.f32 %v8788_v57, %v640_v27  ;;  %v792_v11 = vmul.f32 %v8765_v43, %v755_v18  ;;  %v1396_v19 = vmul.f32 %v8935_v39, %v756_v38  ;;  %504 = vst.msk [vmem:[#allocation2 + $0x21] sm:$0xff] %vm278_vm0, %v336_v58 }
  0xc4   : > { %12947 = vst [vmem:[#allocation42_spill] sm:$0xff] %v9080_v0  ;;  %v1327_v1 = vadd.f32 %v1295_v63, %v1226_v29  ;;  %v9087_v25 = vclamps-f32 %v1529_v24, 4.0  ;;  %v9092_v17 = vadd.f32 %v9024_v15, %v1427_v22  ;;  %v1024_v31 = vadd.f32 %v8848_v34, %v923_v42 }
  0xc5   : > { %12948 = vst [vmem:[#allocation43_spill] sm:$0xff] %v9083_v30  ;;  %v1656_v54 = vmul.f32 -2.7261424e-10, %v9077_v8  ;;  %v2072_v3 = vmul.f32 -1.45660715e-05, %v9077_v8  ;;  %v724_v37 = vadd.f32 %v692_v60, %v591_v45  ;;  %v892_v27 = vmul.f32 %v8771_v52, %v554_v48 }
  0xc6   : > { %v1428_v40 = vadd.f32 %v1396_v19, %v1327_v1  ;;  %v9098_v59 = vmul.f32 %v9087_v25, %v9087_v25  ;;  %v793_v49 = vmul.f32 %v8765_v43, %v756_v38  ;;  %v824_v29 = vadd.f32 %v792_v11, %v8856_v41 }
  0xc7   : > { %v1688_v7 = vadd.f32 2.7706815e-08, %v1656_v54  ;;  %v2104_v55 = vadd.f32 -0.00021337405, %v2072_v3  ;;  %v993_v63 = vmul.f32 %v8778_v53, %v655_v33  ;;  %v1530_v34 = vmul.f32 0.70710677, %v9092_v17 }
  0xc8   : > { %v9104_v24 = vadd.f32 %v9024_v15, %v1428_v40  ;;  %v1657_v48 = vmul.f32 -2.7261424e-10, %v9098_v59  ;;  %v2073_v45 = vmul.f32 -1.45660715e-05, %v9098_v59  ;;  %v9111_v22 = vadd.f32 %v793_v49, %v724_v37 }
  0xc9   : > { %v1720_v42 = vmul.f32 %v1688_v7, %v9077_v8  ;;  %v2136_v60 = vmul.f32 %v2104_v55, %v9077_v8  ;;  %v924_v1 = vadd.f32 %v892_v27, %v823_v23  ;;  %v9114_v11 = vclamps-f32 %v1530_v34, 4.0 }
  0xca   : > { %v1531_v41 = vmul.f32 0.70710677, %v9104_v24  ;;  %v1689_v33 = vadd.f32 2.7706815e-08, %v1657_v48  ;;  %v2105_v54 = vadd.f32 -0.00021337405, %v2073_v45  ;;  %v1093_v3 = vmul.f32 %v8925_v14, %v755_v18 }
  0xcb   : > { %v1752_v19 = vadd.f32 -2.101024e-06, %v1720_v42  ;;  %v9118_v40 = vmul.f32 0.5, %v9033_v9  ;;  %v2168_v7 = vadd.f32 -0.001682827, %v2136_v60  ;;  %v9124_v37 = vmul.f32 %v9114_v11, %v9114_v11 }
  0xcc   : > { %v9120_v46 = vclamps-f32 %v1531_v41, 4.0  ;;  %v1721_v23 = vmul.f32 %v1689_v33, %v9098_v59  ;;  %v2137_v55 = vmul.f32 %v2105_v54, %v9098_v59  ;;  %v9130_v49 = vadd.f32 %v8889_v2, %v824_v29 }
  0xcd   : > { %v1784_v27 = vmul.f32 %v1752_v19, %v9077_v8  ;;  %v2200_v18 = vmul.f32 %v2168_v7, %v9077_v8  ;;  %v1658_v34 = vmul.f32 -2.7261424e-10, %v9124_v37  ;;  %v2074_v48 = vmul.f32 -1.45660715e-05, %v9124_v37 }
  0xce   : > { %v9135_v9 = vmul.f32 %v9120_v46, %v9120_v46  ;;  %v1753_v42 = vadd.f32 -2.101024e-06, %v1721_v23  ;;  %v2169_v60 = vadd.f32 -0.001682827, %v2137_v55  ;;  %v1025_v41 = vadd.f32 %v993_v63, %v924_v1  ;;  %v9147_v1 = vld [vmem:[#allocation2 + $0xf8] sm:$0xff] }
  0xcf   : > { %v1816_v45 = vadd.f32 -5.6925062e-05, %v1784_v27  ;;  %v2232_v33 = vadd.f32 -0.0073733293, %v2200_v18  ;;  %v1094_v19 = vmul.f32 %v8925_v14, %v756_v38  ;;  %v1690_v29 = vadd.f32 2.7706815e-08, %v1658_v34 }
  0xd0   : > { %v1659_v2 = vmul.f32 -2.7261424e-10, %v9135_v9  ;;  %v1785_v54 = vmul.f32 %v1753_v42, %v9098_v59  ;;  %v2201_v20 = vmul.f32 %v2169_v60, %v9098_v59  ;;  %v2075_v10 = vmul.f32 -1.45660715e-05, %v9135_v9  ;;  %v9149_v38 = vld [vmem:[#allocation2 + $0xf9] sm:$0xff] }
  0xd1   : > { %v1848_v7 = vmul.f32 %v1816_v45, %v9077_v8  ;;  %v2264_v5 = vmul.f32 %v2232_v33, %v9077_v8  ;;  %v1722_v27 = vmul.f32 %v1690_v29, %v9124_v37  ;;  %v2106_v63 = vadd.f32 -0.00021337405, %v2074_v48 }
  0xd2   : > { %v1691_v23 = vadd.f32 2.7706815e-08, %v1659_v2  ;;  %v1817_v55 = vadd.f32 -5.6925062e-05, %v1785_v54  ;;  %v2233_v34 = vadd.f32 -0.0073733293, %v2201_v20  ;;  %v1125_v42 = vadd.f32 %v1093_v3, %v1024_v31 }
  0xd3   : > { %v1880_v18 = vadd.f32 -0.00073499064, %v1848_v7  ;;  %v9151_v45 = vadd.f32 -0.014264739, %v2264_v5  ;;  %v1754_v30 = vadd.f32 -2.101024e-06, %v1722_v27  ;;  %v2138_v2 = vmul.f32 %v2106_v63, %v9124_v37 }
  0xd4   : > { %v1723_v60 = vmul.f32 %v1691_v23, %v9135_v9  ;;  %v2107_v47 = vadd.f32 -0.00021337405, %v2075_v10  ;;  %v1849_v33 = vmul.f32 %v1817_v55, %v9098_v59  ;;  %v2265_v48 = vmul.f32 %v2233_v34, %v9098_v59  ;;  %v9168_v7 = vld [vmem:[#allocation2 + $0xf2] sm:$0xff]  ;;  %v9170_v23 = vld [vmem:[#allocation2 + $0xfa] sm:$0xff] }
  0xd5   : > { %v593_v29 = vmul.f32 %v8751_v35, %v9147_v1  ;;  %8368 = vrcp.f32 %v9151_v45  ;;  %v1786_v5 = vmul.f32 %v1754_v30, %v9124_v37  ;;  %v1912_v10 = vmul.f32 %v1880_v18, %v9077_v8 }
  0xd6   : > { %v1755_v20 = vadd.f32 -2.101024e-06, %v1723_v60  ;;  %v2139_v31 = vmul.f32 %v2107_v47, %v9135_v9  ;;  %v1881_v3 = vadd.f32 -0.00073499064, %v1849_v33  ;;  %v9164_v58 = vadd.f32 -0.014264739, %v2265_v48 }
  0xd7   : > { %v694_v54 = vmul.f32 %v8756_v36, %v9149_v38  ;;  %v1818_v63 = vadd.f32 -5.6925062e-05, %v1786_v5  ;;  %v2170_v55 = vadd.f32 -0.001682827, %v2138_v2  ;;  %v9175_v47 = vadd.f32 %v1094_v19, %v1025_v41  ;;  %v468_v41 = vpop.permute.xlu0 %467 }
  0xd8   : > { %v1787_v27 = vmul.f32 %v1755_v20, %v9135_v9  ;;  %v2171_v34 = vadd.f32 -0.001682827, %v2139_v31  ;;  %v1913_v30 = vmul.f32 %v1881_v3, %v9098_v59  ;;  %8370 = vrcp.f32 %v9164_v58  ;;  %528 = vst.msk [vmem:[#allocation2 + $0x141] sm:$0xff] %vm278_vm0, %v468_v41 }
  0xd9   : > { %v726_v18 = vadd.f32 %v694_v54, %v593_v29  ;;  %v1850_v33 = vmul.f32 %v1818_v63, %v9124_v37  ;;  %v2202_v48 = vmul.f32 %v2170_v55, %v9124_v37  ;;  %v1944_v20 = vadd.f32 -0.0029546, %v1912_v10 }
  0xda   : > { %v1819_v60 = vadd.f32 -5.6925062e-05, %v1787_v27  ;;  %v2203_v0 = vmul.f32 %v2171_v34, %v9135_v9  ;;  %v1945_v5 = vadd.f32 -0.0029546, %v1913_v30  ;;  %v794_v2 = vmul.f32 %v8765_v43, %v9168_v7 }
  0xdb   : > { %v795_v31 = vmul.f32 %v8765_v43, %v9170_v23  ;;  %v1882_v29 = vadd.f32 -0.00073499064, %v1850_v33  ;;  %v2234_v3 = vadd.f32 -0.0073733293, %v2202_v48  ;;  %v580_v27 = vmul.f32 %v8751_v35, %v543_v16 }
  0xdc   : > { %v1851_v19 = vmul.f32 %v1819_v60, %v9135_v9  ;;  %v2235_v54 = vadd.f32 -0.0073733293, %v2203_v0  ;;  %v681_v63 = vmul.f32 %v8756_v36, %v644_v28  ;;  %v826_v10 = vadd.f32 %v794_v2, %v8831_v26 }
  0xdd   : > { %v9189_v55 = vadd.f32 %v795_v31, %v726_v18  ;;  %v1914_v30 = vmul.f32 %v1882_v29, %v9124_v37  ;;  %v2266_v6 = vmul.f32 %v2234_v3, %v9124_v37  ;;  %v9195_v33 = vmul.f32 0.5, %v9064_v13 }
  0xde   : > { %v1883_v34 = vadd.f32 -0.00073499064, %v1851_v19  ;;  %v2267_v60 = vmul.f32 %v2235_v54, %v9135_v9  ;;  %v1976_v0 = vmul.f32 %v1944_v20, %v9077_v8  ;;  %v1227_v48 = vadd.f32 %v8900_v4, %v1125_v42  ;;  %v541_v19 = vld [vmem:[#allocation2 + $0x48] sm:$0xff] }
  0xdf   : > { %v9200_v41 = vadd.f32 %v8871_v50, %v826_v10  ;;  %v1977_v26 = vmul.f32 %v1945_v5, %v9098_v59  ;;  %v9204_v2 = vadd.f32 -0.014264739, %v2266_v6  ;;  %v9208_v29 = vadd.f32 %v681_v63, %v580_v27  ;;  %v642_v6 = vld [vmem:[#allocation2 + $0x49] sm:$0xff] }
  0xe0   : > { %v1915_v18 = vmul.f32 %v1883_v34, %v9135_v9  ;;  %v9206_v31 = vadd.f32 -0.014264739, %v2267_v60  ;;  %v9211_v13 = vmul.f32 %v8771_v52, %v543_v16  ;;  %v9214_v8 = vmul.f32 %v8778_v53, %v644_v28 }
  0xe1   : > { %12949 = vst [vmem:[#allocation44_spill] sm:$0xff] %v9208_v29  ;;  %v9217_v50 = vmul.f32 %v8783_v56, %v543_v16  ;;  %v9220_v4 = vmul.f32 0.5, %v9092_v17  ;;  %v1946_v59 = vadd.f32 -0.0029546, %v1914_v30  ;;  %8372 = vrcp.f32 %v9204_v2 }
  0xe2   : > { %12950 = vst [vmem:[#allocation45_spill] sm:$0xff] %v9211_v13  ;;  %12951 = vst [vmem:[#allocation46_spill] sm:$0xff] %v9214_v8  ;;  %v894_v42 = vmul.f32 %v8771_v52, %v9147_v1  ;;  %v8369_v20 = vpop.eup %8368  ;;  %v1947_v5 = vadd.f32 -0.0029546, %v1915_v18  ;;  %v9226_v3 = vmul.f32 %v8788_v57, %v644_v28  ;;  %v578_v54 = vmul.f32 %v8751_v35, %v541_v19 }
  0xe3   : > { %12952 = vst [vmem:[#allocation47_spill] sm:$0xff] %v9217_v50  ;;  %v1196_v16 = vmul.f32 %v8783_v56, %v9147_v1  ;;  %v2008_v27 = vadd.f32 -0.016096033, %v1976_v0  ;;  %v2009_v17 = vadd.f32 -0.016096033, %v1977_v26  ;;  %v2360_v63 = vmul.f32 %v8369_v20, %v9151_v45 }
  0xe4   : > { %12953 = vst [vmem:[#allocation48_spill] sm:$0xff] %v9226_v3  ;;  %8374 = vrcp.f32 %v9206_v31  ;;  %v9234_v10 = vmul.f32 0.5, %v9104_v24  ;;  %v679_v34 = vmul.f32 %v8756_v36, %v642_v6  ;;  %v9238_v30 = vmul.f32 %v8771_v52, %v541_v19 }
  0xe5   : > { %v995_v28 = vmul.f32 %v8778_v53, %v9149_v38  ;;  %v8371_v60 = vpop.eup %8370  ;;  %v2392_v18 = vsub.f32 2.0, %v2360_v63  ;;  %v1978_v1 = vmul.f32 %v1946_v59, %v9124_v37  ;;  %v926_v0 = vadd.f32 %v894_v42, %v9111_v22 }
  0xe6   : > { %12954 = vst [vmem:[#allocation49_spill] sm:$0xff] %v9238_v30  ;;  %v1095_v45 = vmul.f32 %v8925_v14, %v9168_v7  ;;  %v2361_v24 = vmul.f32 %v8371_v60, %v9164_v58  ;;  %v1979_v26 = vmul.f32 %v1947_v5, %v9135_v9  ;;  %v1228_v3 = vadd.f32 %v1196_v16, %v9175_v47  ;;  %v646_v16 = vld [vmem:[#allocation2 + $0x79] sm:$0xff] }
  0xe7   : > { %v1297_v8 = vmul.f32 %v8788_v57, %v9149_v38  ;;  %v2040_v29 = vmul.f32 %v9066_v44, %v2008_v27  ;;  %v2041_v63 = vmul.f32 %v9087_v25, %v2009_v17  ;;  %v2424_v50 = vmul.f32 %v8369_v20, %v2392_v18  ;;  %v545_v44 = vld [vmem:[#allocation2 + $0x78] sm:$0xff] }
  0xe8   : > { %v1026_v22 = vadd.f32 %v8894_v12, %v9130_v49  ;;  %v2393_v37 = vsub.f32 2.0, %v2361_v24  ;;  %v1096_v59 = vmul.f32 %v8925_v14, %v9170_v23  ;;  %v1328_v58 = vadd.f32 %v8903_v21, %v1227_v48 }
  0xe9   : > { %v1397_v9 = vmul.f32 %v8935_v39, %v9168_v7  ;;  %v2456_v47 = vmul.f32 %v2424_v50, %v2040_v29  ;;  %v2010_v42 = vadd.f32 -0.016096033, %v1978_v1  ;;  %v1027_v38 = vadd.f32 %v995_v28, %v926_v0 }
  0xea   : > { %v1127_v5 = vadd.f32 %v1095_v45, %v1026_v22  ;;  %v2425_v25 = vmul.f32 %v8371_v60, %v2393_v37  ;;  %v2011_v20 = vadd.f32 -0.016096033, %v1979_v26  ;;  %v1329_v27 = vadd.f32 %v1297_v8, %v1228_v3 }
  0xeb   : > { %v1398_v12 = vmul.f32 %v8935_v39, %v9170_v23  ;;  %v2488_v49 = vadd.f32 1.0, %v2456_v47  ;;  %v9262_v17 = vadd.f32 %v679_v34, %v578_v54  ;;  %v9265_v21 = vmul.f32 %v8778_v53, %v642_v6 }
  0xec   : > { %v9268_v14 = vmul.f32 %v8783_v56, %v541_v19  ;;  %v2457_v7 = vmul.f32 %v2425_v25, %v2041_v63  ;;  %v1429_v48 = vadd.f32 %v1397_v9, %v1328_v58  ;;  %v582_v29 = vmul.f32 %v8751_v35, %v545_v44 }
  0xed   : > { %12955 = vst [vmem:[#allocation50_spill] sm:$0xff] %v9262_v17  ;;  %12956 = vst [vmem:[#allocation51_spill] sm:$0xff] %v9265_v21  ;;  %v683_v50 = vmul.f32 %v8756_v36, %v646_v16  ;;  %v2520_v8 = vmul.f32 %v2488_v49, %v9118_v40  ;;  %v9274_v3 = vmul.f32 %v8788_v57, %v642_v6 }
  0xee   : > { %12957 = vst [vmem:[#allocation52_spill] sm:$0xff] %v9268_v14  ;;  %v9276_v39 = vadd.f32 %v1096_v59, %v1027_v38  ;;  %v9279_v23 = vadd.f32 %v8877_v61, %v1127_v5  ;;  %v8373_v54 = vpop.eup %8372  ;;  %v2489_v34 = vadd.f32 1.0, %v2457_v7  ;;  %v9282_v19 = vmul.f32 %v9114_v11, %v2010_v42 }
  0xef   : > { %12958 = vst [vmem:[#allocation53_spill] sm:$0xff] %v9274_v3  ;;  %v9285_v28 = vmul.f32 %v9120_v46, %v2011_v20  ;;  %v1430_v60 = vadd.f32 %v1398_v12, %v1329_v27  ;;  %v2776_v18 = vcombine.high %v2520_v8, %v2520_v8  ;;  %v2783_v40 = vrot.slane %v2520_v8, %v8793_v62  ;;  %v9312_v12 = vld [vmem:[#allocation2 + $0x128] sm:$0xff] }
  0xf0   : > { %v9289_v6 = vmul.f32 %v8771_v52, %v545_v44  ;;  %v9292_v1 = vmul.f32 %v8778_v53, %v646_v16  ;;  %v2521_v0 = vmul.f32 %v2489_v34, %v9195_v33  ;;  %v2362_v45 = vmul.f32 %v8373_v54, %v9204_v2 }
  0xf1   : > { %v8375_v61 = vpop.eup %8374  ;;  %v1468_v11 = vadd.f32 %v9024_v15, %v1429_v48  ;;  %v9297_v24 = vadd.f32 %v683_v50, %v582_v29  ;;  %v2790_v46 = vrot.slane %v2776_v18, %v8793_v62  ;;  %v2791_v26 = vcombine.high %v2783_v40, %v2783_v40 }
  0xf2   : > { %12959 = vst [vmem:[#allocation54_spill] sm:$0xff] %v9289_v6  ;;  %12960 = vst [vmem:[#allocation55_spill] sm:$0xff] %v9292_v1  ;;  %v3580_v63 = vsel %vm281_vm2, %v2783_v40, -inf  ;;  %v9302_v22 = vmul.f32 %v8783_v56, %v545_v44  ;;  %v2793_v37 = vcombine.high %v2521_v0, %v2521_v0  ;;  %v2800_v53 = vrot.slane %v2521_v0, %v8793_v62 }
  0xf3   : > { %12961 = vst [vmem:[#allocation56_spill] sm:$0xff] %v9297_v24  ;;  %v3581_v59 = vrot.slane %v3580_v63, 4  ;;  %v1469_v33 = vadd.f32 %v9024_v15, %v1430_v60  ;;  %v2792_v58 = vcombine.high %v2790_v46, %v2790_v46  ;;  %v3587_v2 = vsel %vm281_vm2, %v2791_v26, -inf  ;;  %v9314_v15 = vld [vmem:[#allocation2 + $0x129] sm:$0xff] }
  0xf4   : > { %12962 = vst [vmem:[#allocation57_spill] sm:$0xff] %v9302_v22  ;;  %v3594_v9 = vsel %vm281_vm2, %v2790_v46, -inf  ;;  %v2363_v47 = vmul.f32 %v8375_v61, %v9206_v31  ;;  %v2808_v42 = vcombine.high %v2800_v53, %v2800_v53  ;;  %v3588_v5 = vrot.slane %v3587_v2, 4  ;;  %v9320_v60 = vld [vmem:[#allocation2 + $0x122] sm:$0xff] }
  0xf5   : > { %v3582_v38 = vmax.f32 %v3580_v63, %v3581_v59  ;;  %v2394_v25 = vsub.f32 2.0, %v2362_v45  ;;  %v2807_v56 = vrot.slane %v2793_v37, %v8793_v62  ;;  %v3595_v44 = vrot.slane %v3594_v9, 4 }
  0xf6   : > { %v3601_v20 = vsel %vm281_vm2, %v2792_v58, -inf  ;;  %v3608_v27 = vsel %vm281_vm2, %v2800_v53, -inf  ;;  %v3589_v7 = vmax.f32 %v3587_v2, %v3588_v5  ;;  %v9317_v31 = vmul.f32 %v8788_v57, %v646_v16 }
  0xf7   : > { %v3583_v49 = vrot.slane %v3582_v38, 2  ;;  %v3602_v48 = vrot.slane %v3601_v20, 4  ;;  %v3596_v29 = vmax.f32 %v3594_v9, %v3595_v44  ;;  %v3609_v50 = vrot.slane %v3608_v27, 4 }
  0xf8   : > { %12963 = vst [vmem:[#allocation58_spill] sm:$0xff] %v9317_v31  ;;  %v3615_v8 = vsel %vm281_vm2, %v2808_v42, -inf  ;;  %v2395_v34 = vsub.f32 2.0, %v2363_v47  ;;  %v1532_v40 = vmul.f32 0.70710677, %v1468_v11  ;;  %v597_v0 = vmul.f32 %v8751_v35, %v9312_v12  ;;  %v9333_v35 = vld [vmem:[#allocation2 + $0x12a] sm:$0xff]  ;;  %v347_v31 = vpop.permute.xlu0 %346 }
  0xf9   : > { %v3603_v18 = vmax.f32 %v3601_v20, %v3602_v48  ;;  %v698_v45 = vmul.f32 %v8756_v36, %v9314_v15  ;;  %v3590_v46 = vrot.slane %v3589_v7, 2  ;;  %v3616_v26 = vrot.slane %v3615_v8, 4  ;;  %506 = vst.msk [vmem:[#allocation2 + $0x39] sm:$0xff] %vm278_vm0, %v347_v31 }
  0xfa   : > { %v3622_v57 = vsel %vm281_vm2, %v2807_v56, -inf  ;;  %v2426_v16 = vmul.f32 %v8373_v54, %v2394_v25  ;;  %v3584_v63 = vmax.f32 %v3582_v38, %v3583_v49  ;;  %v9327_v37 = vmul.f32 0.5, %v1468_v11 }
  0xfb   : > { %v1533_v53 = vmul.f32 0.70710677, %v1469_v33  ;;  %v798_v59 = vmul.f32 %v8765_v43, %v9320_v60  ;;  %v3597_v58 = vrot.slane %v3596_v29, 2  ;;  %v3610_v2 = vmax.f32 %v3608_v27, %v3609_v50 }
  0xfc   : > { %v2427_v9 = vmul.f32 %v8375_v61, %v2395_v34  ;;  %v9331_v47 = vmul.f32 0.5, %v1469_v33  ;;  %v2809_v36 = vcombine.high %v2807_v56, %v2807_v56  ;;  %v3604_v42 = vrot.slane %v3603_v18, 2 }
  0xfd   : > { %v3623_v5 = vrot.slane %v3622_v57, 4  ;;  %v9335_v44 = vclamps-f32 %v1532_v40, 4.0  ;;  %v3591_v54 = vmax.f32 %v3589_v7, %v3590_v46  ;;  %v3617_v38 = vmax.f32 %v3615_v8, %v3616_v26 }
  0xfe   : > { %v2458_v11 = vmul.f32 %v2426_v16, %v9282_v19  ;;  %v730_v25 = vadd.f32 %v698_v45, %v597_v0  ;;  %v3585_v20 = vrot.slane %v3584_v63, 1  ;;  %v9338_v49 = vclamps-f32 %v1533_v53, 4.0 }
  0xff   : > { %v799_v61 = vmul.f32 %v8765_v43, %v9333_v35  ;;  %v9343_v33 = vadd.f32 %v798_v59, %v8938_v32  ;;  %v9345_v27 = vmax.f32 %v3596_v29, %v3597_v58  ;;  %v3611_v56 = vrot.slane %v3610_v2, 2 }
 0x100   : > { %v2459_v48 = vmul.f32 %v2427_v9, %v9285_v28  ;;  %v9350_v7 = vmul.f32 %v8771_v52, %v9312_v12  ;;  %v9352_v19 = vmax.f32 %v3603_v18, %v3604_v42  ;;  %v3624_v50 = vmax.f32 %v3622_v57, %v3623_v5 }
 0x101   : > { %v9355_v8 = vsel %vm281_vm2, %v2809_v36, -inf  ;;  %v2490_v34 = vadd.f32 1.0, %v2458_v11  ;;  %v3592_v43 = vrot.slane %v3591_v54, 1  ;;  %v3618_v40 = vrot.slane %v3617_v38, 2 }
 0x102   : > { %12964 = vst [vmem:[#allocation59_spill] sm:$0xff] %v9355_v8  ;;  %v2491_v32 = vadd.f32 1.0, %v2459_v48  ;;  %v9359_v29 = vmul.f32 %v9335_v44, %v9335_v44  ;;  %v3586_v0 = vmax.f32 %v3584_v63, %v3585_v20  ;;  %v9364_v52 = vmul.f32 %v9338_v49, %v9338_v49  ;;  %v358_v8 = vpop.permute.xlu1 %357 }
 0x103   : > { %v2522_v28 = vmul.f32 %v2490_v34, %v9220_v4  ;;  %v9366_v18 = vadd.f32 %v799_v61, %v730_v25  ;;  %v9369_v46 = vmax.f32 %v3610_v2, %v3611_v56  ;;  %v3625_v53 = vrot.slane %v3624_v50, 2  ;;  %508 = vst.msk [vmem:[#allocation2 + $0x51] sm:$0xff] %vm278_vm0, %v358_v8 }
 0x104   : > { %v2523_v57 = vmul.f32 %v2491_v32, %v9234_v10  ;;  %v9375_v59 = vmax.f32 %v3617_v38, %v3618_v40  ;;  %v9377_v58 = vmax.f32 %v3591_v54, %v3592_v43  ;;  %v9381_v2 = vsel %vm278_vm0, %v3586_v0, -inf }
 0x105   : > { %v2810_v63 = vcombine.high %v2522_v28, %v2522_v28  ;;  %v2817_v4 = vrot.slane %v2522_v28, %v8793_v62  ;;  %v9389_v34 = vmax.f32 %v3624_v50, %v3625_v53  ;;  %v3613_v31 = vrot.slane %v9369_v46, 1 }
 0x106   : > { %v2827_v9 = vcombine.high %v2523_v57, %v2523_v57  ;;  %v2834_v36 = vrot.slane %v2523_v57, %v8793_v62  ;;  %v12966_v22 = vrot.slane %v9352_v19, 1 }
 0x107   : > { %v2824_v42 = vrot.slane %v2810_v63, %v8793_v62  ;;  %v2825_v5 = vcombine.high %v2817_v4, %v2817_v4  ;;  %v3636_v10 = vsel %vm281_vm2, %v2817_v4, -inf  ;;  %v3614_v24 = vmax.f32 %v9369_v46, %v3613_v31 }
 0x108   : > { %v2841_v11 = vrot.slane %v2827_v9, %v8793_v62  ;;  %v2842_v25 = vcombine.high %v2834_v36, %v2834_v36  ;;  %v3637_v20 = vrot.slane %v3636_v10, 4  ;;  %v3664_v38 = vsel %vm281_vm2, %v2834_v36, -inf }
 0x109   : > { %v2826_v61 = vcombine.high %v2824_v42, %v2824_v42  ;;  %v3643_v54 = vsel %vm281_vm2, %v2825_v5, -inf  ;;  %v3650_v56 = vsel %vm281_vm2, %v2824_v42, -inf  ;;  %v3665_v48 = vrot.slane %v3664_v38, 4 }
 0x10a   : > { %v3638_v43 = vmax.f32 %v3636_v10, %v3637_v20  ;;  %v3644_v40 = vrot.slane %v3643_v54, 4  ;;  %v3651_v32 = vrot.slane %v3650_v56, 4  ;;  %v3671_v57 = vsel %vm281_vm2, %v2842_v25, -inf }
 0x10b   : > { %v3657_v0 = vsel %vm281_vm2, %v2826_v61, -inf  ;;  %v3666_v28 = vmax.f32 %v3664_v38, %v3665_v48  ;;  %v3678_v63 = vsel %vm281_vm2, %v2841_v11, -inf  ;;  %v2843_v5 = vcombine.high %v2841_v11, %v2841_v11 }
 0x10c   : > { %v3639_v4 = vrot.slane %v3638_v43, 2  ;;  %v3645_v9 = vmax.f32 %v3643_v54, %v3644_v40  ;;  %v3652_v36 = vmax.f32 %v3650_v56, %v3651_v32  ;;  %v3658_v26 = vrot.slane %v3657_v0, 4 }
 0x10d   : > { %v3667_v16 = vrot.slane %v3666_v28, 2  ;;  %v3672_v42 = vrot.slane %v3671_v57, 4  ;;  %v3679_v45 = vrot.slane %v3678_v63, 4  ;;  %v1660_v25 = vmul.f32 -2.7261424e-10, %v9359_v29 }
 0x10e   : > { %v3640_v50 = vmax.f32 %v3638_v43, %v3639_v4  ;;  %v3646_v53 = vrot.slane %v3645_v9, 2  ;;  %v3653_v10 = vrot.slane %v3652_v36, 2  ;;  %v3659_v20 = vmax.f32 %v3657_v0, %v3658_v26 }
 0x10f   : > { %v3668_v61 = vmax.f32 %v3666_v28, %v3667_v16  ;;  %v3673_v38 = vmax.f32 %v3671_v57, %v3672_v42  ;;  %v3680_v48 = vmax.f32 %v3678_v63, %v3679_v45  ;;  %v3685_v4 = vsel %vm281_vm2, %v2843_v5, -inf }
 0x110   : > { %v3641_v54 = vrot.slane %v3640_v50, 1  ;;  %v3647_v11 = vmax.f32 %v3645_v9, %v3646_v53  ;;  %v3654_v56 = vmax.f32 %v3652_v36, %v3653_v10  ;;  %v3660_v40 = vrot.slane %v3659_v20, 2 }
 0x111   : > { %v3674_v32 = vrot.slane %v3673_v38, 2  ;;  %v3681_v43 = vrot.slane %v3680_v48, 2  ;;  %v1661_v26 = vmul.f32 -2.7261424e-10, %v9364_v52  ;;  %v3669_v45 = vrot.slane %v3668_v61, 1 }
 0x112   : > { %v3648_v0 = vrot.slane %v3647_v11, 1  ;;  %v3655_v16 = vrot.slane %v3654_v56, 1  ;;  %v3661_v28 = vmax.f32 %v3659_v20, %v3660_v40  ;;  %v3642_v57 = vmax.f32 %v3640_v50, %v3641_v54 }
 0x113   : > { %v3675_v63 = vmax.f32 %v3673_v38, %v3674_v32  ;;  %v3682_v42 = vmax.f32 %v3680_v48, %v3681_v43  ;;  %v1692_v8 = vadd.f32 2.7706815e-08, %v1660_v25  ;;  %v3620_v9 = vrot.slane %v9375_v59, 1 }
 0x114   : > { %v3662_v36 = vrot.slane %v3661_v28, 1  ;;  %v3686_v53 = vrot.slane %v3685_v4, 4  ;;  %v12965_v10 = vrot.slane %v9345_v27, 1  ;;  %v3607_v1 = vmax.f32 %v9352_v19, %v12966_v22 }
 0x115   : > { %v3649_v20 = vmax.f32 %v3647_v11, %v3648_v0  ;;  %v1693_v40 = vadd.f32 2.7706815e-08, %v1661_v26  ;;  %v3627_v50 = vrot.slane %v9389_v34, 1  ;;  %v3656_v38 = vmax.f32 %v3654_v56, %v3655_v16 }
 0x116   : > { %v3600_v5 = vmax.f32 %v9345_v27, %v12965_v10  ;;  %v3670_v48 = vmax.f32 %v3668_v61, %v3669_v45  ;;  %v3676_v25 = vrot.slane %v3675_v63, 1  ;;  %v3663_v54 = vmax.f32 %v3661_v28, %v3662_v36 }
 0x117   : > { %v3683_v32 = vrot.slane %v3682_v42, 1  ;;  %v4213_v43 = vsel %vm278_vm0, %v3642_v57, -inf  ;;  %v1724_v6 = vmul.f32 %v1692_v8, %v9359_v29  ;;  %v3621_v27 = vmax.f32 %v9375_v59, %v3620_v9 }
 0x118   : > { %v4215_v22 = vsel %vm278_vm0, %v9377_v58, -inf  ;;  %v3687_v19 = vmax.f32 %v3685_v4, %v3686_v53  ;;  %v4218_v11 = vsel %vm278_vm0, %v3600_v5, -inf  ;;  %v4221_v56 = vsel %vm278_vm0, %v3607_v1, -inf }
 0x119   : > { %v4216_v61 = vsel %vm278_vm0, %v3649_v20, -inf  ;;  %v1725_v26 = vmul.f32 %v1693_v40, %v9364_v52  ;;  %v3677_v0 = vmax.f32 %v3675_v63, %v3676_v25  ;;  %v4214_v16 = vmax.f32 %v9381_v2, %v4213_v43 }
 0x11a   : > { %v4219_v28 = vsel %vm278_vm0, %v3656_v38, -inf  ;;  %v4225_v46 = vsel %vm278_vm0, %v3670_v48, -inf  ;;  %v3628_v59 = vmax.f32 %v9389_v34, %v3627_v50  ;;  %v3684_v45 = vmax.f32 %v3682_v42, %v3683_v32 }
 0x11b   : > { %v4222_v58 = vsel %vm278_vm0, %v3663_v54, -inf  ;;  %v1756_v4 = vadd.f32 -2.101024e-06, %v1724_v6  ;;  %v4224_v57 = vsel %vm278_vm0, %v3614_v24, -inf  ;;  %v4227_v1 = vsel %vm278_vm0, %v3621_v27, -inf  ;;  %v558_v27 = vld [vmem:[#allocation2 + $0x110] sm:$0xff] }
 0x11c   : > { %v3688_v8 = vrot.slane %v3687_v19, 2  ;;  %v4217_v31 = vmax.f32 %v4215_v22, %v4216_v61  ;;  %v4220_v9 = vmax.f32 %v4218_v11, %v4219_v28  ;;  %v4226_v63 = vmax.f32 %v4224_v57, %v4225_v46  ;;  %v659_v22 = vld [vmem:[#allocation2 + $0x111] sm:$0xff] }
 0x11d   : > { %v1757_v36 = vadd.f32 -2.101024e-06, %v1725_v26  ;;  %v1788_v2 = vmul.f32 %v1756_v4, %v9359_v29  ;;  %v9426_v53 = vmax.f32 %v4221_v56, %v4222_v58  ;;  %v4228_v10 = vsel %vm278_vm0, %v3677_v0, -inf  ;;  %v9442_v0 = vld [vmem:[#allocation2 + $0x10a] sm:$0xff]  ;;  %v9452_v4 = vld [vmem:[%s12843_s1] ss:$0 sm:$0xff] }
 0x11e   : > { %v7999_v34 = vpack.c.bf16 %v4214_v16, %v4214_v16  ;;  %v2076_v42 = vmul.f32 -1.45660715e-05, %v9359_v29  ;;  %v4231_v6 = vsel %vm278_vm0, %v3684_v45, -inf  ;;  %v2077_v20 = vmul.f32 -1.45660715e-05, %v9364_v52 }
 0x11f   : > { %v1789_v24 = vmul.f32 %v1757_v36, %v9364_v52  ;;  %v1820_v5 = vadd.f32 -5.6925062e-05, %v1788_v2  ;;  %v4230_v40 = vsel %vm278_vm0, %v3628_v59, -inf  ;;  %v9434_v50 = vmax.f32 %v3687_v19, %v3688_v8  ;;  %v760_v59 = vld [vmem:[#allocation2 + $0x112] sm:$0xff] }
 0x120   : > { %v8000_v38 = vpack.c.bf16 %v4217_v31, %v4217_v31  ;;  %v2108_v48 = vadd.f32 -0.00021337405, %v2076_v42  ;;  %v9436_v25 = vmax.f32 %v4227_v1, %v4228_v10  ;;  %v2109_v43 = vadd.f32 -0.00021337405, %v2077_v20  ;;  %v9458_v1 = vld [vmem:[%s12843_s1 + $0x1] ss:$0 sm:$0xff] }
 0x121   : > { %12967 = vst [vmem:[#allocation60_spill] sm:$0xff] %v9434_v50  ;;  %v1821_v54 = vadd.f32 -5.6925062e-05, %v1789_v24  ;;  %v1852_v32 = vmul.f32 %v1820_v5, %v9359_v29  ;;  %v9439_v11 = vmax.f32 %v4230_v40, %v4231_v6  ;;  %v8001_v56 = vpack.c.bf16 %v4220_v9, %v4220_v9  ;;  %v9465_v9 = vld [vmem:[%s12843_s1 + $0x2] ss:$0 sm:$0xff]  ;;  %v12968_v20 = vld [vmem:[#allocation8_spill] sm:$0xff] }
 0x122   : > { %v8003_v61 = vpack.c.bf16 %v4226_v63, %v4226_v63  ;;  %v2140_v26 = vmul.f32 %v2108_v48, %v9359_v29  ;;  %v8002_v19 = vpack.c.bf16 %v9426_v53, %v9426_v53  ;;  %v4683_v16 = vunpack.c.l.b16 %v7999_v34  ;;  %v9474_v34 = vld [vmem:[%s12843_s1 + $0x3] ss:$0 sm:$0xff]  ;;  %v9564_v53 = vld [vmem:[%s12844_s2] ss:$0 sm:$0xff] }
 0x123   : > { %v2141_v28 = vmul.f32 %v2109_v43, %v9364_v52  ;;  %v1028_v46 = vadd.f32 %v8874_v51, %v9200_v41  ;;  %v4684_v45 = vunpack.c.l.b16 %v8000_v38  ;;  %v595_v57 = vmul.f32 %v9452_v4, %v558_v27  ;;  %12978 = vst [vmem:[#allocation63_spill] sm:$0xff] %v9564_v53 }
 0x124   : > { %v2172_v58 = vadd.f32 -0.001682827, %v2140_v26  ;;  %v696_v8 = vmul.f32 %v9458_v1, %v659_v22  ;;  %v1853_v31 = vmul.f32 %v1821_v54, %v9364_v52  ;;  %v1884_v51 = vadd.f32 -0.00073499064, %v1852_v32  ;;  %v9491_v32 = vld [vmem:[%s12843_s1 + $0x4] ss:$0 sm:$0xff] }
 0x125   : > { %v2173_v41 = vadd.f32 -0.001682827, %v2141_v28  ;;  %v796_v63 = vmul.f32 %v9465_v9, %v9442_v0  ;;  %v797_v10 = vmul.f32 %v9465_v9, %v760_v59  ;;  %v896_v42 = vmul.f32 %v9474_v34, %v558_v27 }
 0x126   : > { %v2204_v36 = vmul.f32 %v2172_v58, %v9359_v29  ;;  %v728_v2 = vadd.f32 %v696_v8, %v595_v57  ;;  %v8004_v6 = vpack.c.bf16 %v9436_v25, %v9436_v25  ;;  %v8005_v24 = vpack.c.bf16 %v9439_v11, %v9439_v11 }
 0x127   : > { %v2205_v5 = vmul.f32 %v2173_v41, %v9364_v52  ;;  %v9483_v40 = vadd.f32 %v796_v63, %v12968_v20  ;;  %v928_v54 = vadd.f32 %v896_v42, %v9189_v55  ;;  %v997_v25 = vmul.f32 %v9491_v32, %v659_v22  ;;  %v9501_v55 = vld [vmem:[%s12843_s1 + $0x5] ss:$0 sm:$0xff] }
 0x128   : > { %v2236_v38 = vadd.f32 -0.0073733293, %v2204_v36  ;;  %v9485_v48 = vadd.f32 %v797_v10, %v728_v2  ;;  %v4685_v43 = vunpack.c.l.b16 %v8001_v56  ;;  %v1885_v11 = vadd.f32 -0.00073499064, %v1853_v31  ;;  %12970 = vst [vmem:[#allocation61_spill] sm:$0xff] %v9501_v55 }
 0x129   : > { %v1916_v26 = vmul.f32 %v1884_v51, %v9359_v29  ;;  %v2237_v28 = vadd.f32 -0.0073733293, %v2205_v5  ;;  %v9495_v58 = vunpack.c.l.b16 %v8003_v61  ;;  %v1029_v8 = vadd.f32 %v997_v25, %v928_v54  ;;  %v9510_v61 = vld [vmem:[%s12843_s1 + $0x6] ss:$0 sm:$0xff]  ;;  %v12971_v51 = vld [vmem:[#allocation15_spill] sm:$0xff] }
 0x12a   : > { %v2268_v57 = vmul.f32 %v2236_v38, %v9359_v29  ;;  %v1097_v41 = vmul.f32 %v9501_v55, %v9442_v0  ;;  %v4747_v63 = vsel %vm4723_vm3, %v4684_v45, %v4683_v16  ;;  %v1200_v31 = vmul.f32 %v9510_v61, %v9312_v12  ;;  %v9526_v38 = vld [vmem:[%s12843_s1 + $0x7] ss:$0 sm:$0xff] }
 0x12b   : > { %12969 = vst [vmem:[#allocation8_spill] sm:$0xff] %v9495_v58  ;;  %v2269_v56 = vmul.f32 %v2237_v28, %v9364_v52  ;;  %v1330_v36 = vadd.f32 %v12971_v51, %v9279_v23  ;;  %v1098_v10 = vmul.f32 %v9501_v55, %v760_v59  ;;  %v1198_v16 = vmul.f32 %v9510_v61, %v558_v27  ;;  %v740_v58 = vld [vmem:[#allocation2 + $0x22] sm:$0xff] }
 0x12c   : > { %v9516_v2 = vadd.f32 -0.014264739, %v2268_v57  ;;  %v1129_v42 = vadd.f32 %v1097_v41, %v1028_v46  ;;  %v1917_v45 = vmul.f32 %v1885_v11, %v9364_v52  ;;  %v1948_v5 = vadd.f32 -0.0029546, %v1916_v26  ;;  %v12972_v46 = vld [vmem:[#allocation23_spill] sm:$0xff]  ;;  %v12973_v57 = vld [vmem:[#allocation24_spill] sm:$0xff] }
 0x12d   : > { %v9521_v20 = vadd.f32 -0.014264739, %v2269_v56  ;;  %v1299_v12 = vmul.f32 %v9526_v38, %v659_v22  ;;  %v1130_v23 = vadd.f32 %v1098_v10, %v1029_v8  ;;  %v1230_v54 = vadd.f32 %v1198_v16, %v9276_v39  ;;  %v9538_v11 = vld [vmem:[%s12843_s1 + $0x8] ss:$0 sm:$0xff] }
 0x12e   : > { %8376 = vrcp.f32 %v9516_v2  ;;  %v1231_v25 = vadd.f32 %v12972_v46, %v1129_v42  ;;  %v1301_v27 = vmul.f32 %v9526_v38, %v9314_v15  ;;  %v1401_v22 = vmul.f32 %v9538_v11, %v9320_v60 }
 0x12f   : > { %8378 = vrcp.f32 %v9521_v20  ;;  %v1399_v26 = vmul.f32 %v9538_v11, %v9442_v0  ;;  %v1232_v28 = vadd.f32 %v1200_v31, %v1130_v23  ;;  %v1331_v39 = vadd.f32 %v1299_v12, %v1230_v54 }
 0x130   : > { %v1332_v8 = vadd.f32 %v12973_v57, %v1231_v25  ;;  %v1400_v41 = vmul.f32 %v9538_v11, %v760_v59  ;;  %v9549_v56 = vunpack.c.l.b16 %v8002_v19  ;;  %v1949_v51 = vadd.f32 -0.0029546, %v1917_v45  ;;  %v12980_v25 = vld [vmem:[#allocation21_spill] sm:$0xff] }
 0x131   : > { %v1402_v10 = vmul.f32 %v9538_v11, %v9333_v35  ;;  %v1431_v42 = vadd.f32 %v1399_v26, %v1330_v36  ;;  %v1980_v16 = vmul.f32 %v1948_v5, %v9359_v29  ;;  %v1333_v46 = vadd.f32 %v1301_v27, %v1232_v28  ;;  %v12979_v29 = vld [vmem:[#allocation16_spill] sm:$0xff] }
 0x132   : > { %12974 = vst [vmem:[#allocation15_spill] sm:$0xff] %v9549_v56  ;;  %v1432_v0 = vadd.f32 %v1400_v41, %v1331_v39  ;;  %v1433_v31 = vadd.f32 %v1401_v22, %v1332_v8  ;;  %v9554_v12 = vunpack.c.l.b16 %v8004_v6  ;;  %v9556_v23 = vunpack.c.l.b16 %v8005_v24 }
 0x133   : > { %v9559_v59 = vsel %vm4725_vm4, %v4685_v43, %v4747_v63  ;;  %v9567_v19 = vadd.f32 %v9564_v53, %v1431_v42  ;;  %v9571_v36 = vadd.f32 %v12979_v29, %v9343_v33  ;;  %v1434_v45 = vadd.f32 %v1402_v10, %v1333_v46  ;;  %v536_v43 = vld [vmem:[#allocation2 + $0x8] sm:$0xff]  ;;  %v538_v42 = vld [vmem:[#allocation2 + $0x20] sm:$0xff] }
 0x134   : > { %12975 = vst [vmem:[#allocation23_spill] sm:$0xff] %v9554_v12  ;;  %12976 = vst [vmem:[#allocation24_spill] sm:$0xff] %v9556_v23  ;;  %v9574_v6 = vadd.f32 %v9564_v53, %v1432_v0  ;;  %v9577_v24 = vadd.f32 %v9564_v53, %v1433_v31  ;;  %v637_v63 = vld [vmem:[#allocation2 + $0x9] sm:$0xff]  ;;  %v1981_v5 = vmul.f32 %v1949_v51, %v9364_v52  ;;  %v2012_v22 = vadd.f32 -0.016096033, %v1980_v16  ;;  %v12981_v46 = vld [vmem:[#allocation22_spill] sm:$0xff] }
 0x135   : > { %12977 = vst [vmem:[#allocation62_spill] sm:$0xff] %v9559_v59  ;;  %v9582_v54 = vmul.f32 %v9491_v32, %v9314_v15  ;;  %v929_v27 = vadd.f32 %v12980_v25, %v9483_v40  ;;  %v1534_v33 = vmul.f32 0.70710677, %v9567_v19  ;;  %v9589_v26 = vmul.f32 %v9501_v55, %v9320_v60  ;;  %v738_v40 = vld [vmem:[#allocation2 + $0xa] sm:$0xff] }
 0x136   : > { %v1473_v28 = vadd.f32 %v9564_v53, %v1434_v45  ;;  %v1535_v39 = vmul.f32 0.70710677, %v9574_v6  ;;  %v1536_v52 = vmul.f32 0.70710677, %v9577_v24  ;;  %v573_v15 = vmul.f32 %v9452_v4, %v536_v43 }
 0x137   : > { %v9594_v57 = vclamps-f32 %v1534_v33, 4.0  ;;  %v674_v8 = vmul.f32 %v9458_v1, %v637_v63  ;;  %v9600_v41 = vmul.f32 %v9501_v55, %v9333_v35  ;;  %v9604_v60 = vadd.f32 %v9350_v7, %v9485_v48  ;;  %v639_v35 = vld [vmem:[#allocation2 + $0x21] sm:$0xff] }
 0x138   : > { %v1537_v51 = vmul.f32 0.70710677, %v1473_v28  ;;  %v9606_v10 = vclamps-f32 %v1535_v39, 4.0  ;;  %v2013_v16 = vadd.f32 -0.016096033, %v1981_v5  ;;  %v9609_v0 = vadd.f32 %v12981_v46, %v929_v27  ;;  %v739_v63 = vld [vmem:[#allocation2 + $0x1a] sm:$0xff] }
 0x139   : > { %v9611_v31 = vclamps-f32 %v1536_v52, 4.0  ;;  %v9615_v29 = vmul.f32 %v9594_v57, %v9594_v57  ;;  %v2044_v45 = vmul.f32 %v9335_v44, %v2012_v22  ;;  %v775_v48 = vmul.f32 %v9465_v9, %v738_v40 }
 0x13a   : > { %v9618_v43 = vclamps-f32 %v1537_v51, 4.0  ;;  %v9622_v7 = vmul.f32 %v9606_v10, %v9606_v10  ;;  %v706_v33 = vadd.f32 %v674_v8, %v573_v15  ;;  %v575_v39 = vmul.f32 %v9452_v4, %v538_v42 }
 0x13b   : > { %v8377_v5 = vpop.eup %8376  ;;  %v9627_v25 = vmul.f32 %v9611_v31, %v9611_v31  ;;  %v1662_v27 = vmul.f32 -2.7261424e-10, %v9615_v29  ;;  %v676_v51 = vmul.f32 %v9458_v1, %v639_v35  ;;  %v776_v15 = vmul.f32 %v9465_v9, %v739_v63 }
 0x13c   : > { %12982 = vst [vmem:[#allocation16_spill] sm:$0xff] %v9618_v43  ;;  %v8379_v44 = vpop.eup %8378  ;;  %v2364_v22 = vmul.f32 %v8377_v5, %v9516_v2  ;;  %v9634_v52 = vmul.f32 %v9618_v43, %v9618_v43  ;;  %v1663_v40 = vmul.f32 -2.7261424e-10, %v9622_v7  ;;  %v2045_v8 = vmul.f32 %v9338_v49, %v2013_v16  ;;  %v12983_v49 = vld [vmem:[#allocation33_spill] sm:$0xff] }
 0x13d   : > { %v2365_v46 = vmul.f32 %v8379_v44, %v9521_v20  ;;  %v1664_v23 = vmul.f32 -2.7261424e-10, %v9627_v25  ;;  %v1694_v12 = vadd.f32 2.7706815e-08, %v1662_v27  ;;  %v807_v30 = vadd.f32 %v775_v48, %v706_v33 }
 0x13e   : > { %v2396_v56 = vsub.f32 2.0, %v2364_v22  ;;  %v1665_v2 = vmul.f32 -2.7261424e-10, %v9634_v52  ;;  %v1695_v59 = vadd.f32 2.7706815e-08, %v1663_v40  ;;  %v876_v3 = vmul.f32 %v9474_v34, %v538_v42 }
 0x13f   : > { %v2397_v50 = vsub.f32 2.0, %v2365_v46  ;;  %v1696_v21 = vadd.f32 2.7706815e-08, %v1664_v23  ;;  %v1726_v20 = vmul.f32 %v1694_v12, %v9615_v29  ;;  %v708_v13 = vadd.f32 %v676_v51, %v575_v39  ;;  %v12989_v39 = vld [vmem:[#allocation39_spill] sm:$0xff] }
 0x140   : > { %v2428_v14 = vmul.f32 %v8377_v5, %v2396_v56  ;;  %v777_v27 = vmul.f32 %v9465_v9, %v740_v58  ;;  %v1697_v43 = vadd.f32 2.7706815e-08, %v1665_v2  ;;  %v1727_v53 = vmul.f32 %v1695_v59, %v9622_v7 }
 0x141   : > { %v2429_v17 = vmul.f32 %v8379_v44, %v2397_v50  ;;  %v808_v16 = vadd.f32 %v776_v15, %v12983_v49  ;;  %v9649_v40 = vmul.f32 0.5, %v9567_v19  ;;  %v9652_v23 = vmul.f32 0.5, %v9574_v6 }
 0x142   : > { %v2460_v22 = vmul.f32 %v2428_v14, %v2044_v45  ;;  %v1728_v56 = vmul.f32 %v1696_v21, %v9627_v25  ;;  %v9656_v12 = vmul.f32 0.5, %v9577_v24  ;;  %v908_v48 = vadd.f32 %v876_v3, %v807_v30 }
 0x143   : > { %12984 = vst [vmem:[#allocation21_spill] sm:$0xff] %v9649_v40  ;;  %12985 = vst [vmem:[#allocation22_spill] sm:$0xff] %v9652_v23  ;;  %v2461_v42 = vmul.f32 %v2429_v17, %v2045_v8  ;;  %v977_v50 = vmul.f32 %v9491_v32, %v639_v35  ;;  %v9659_v59 = vmul.f32 0.5, %v1473_v28  ;;  %v1758_v33 = vadd.f32 -2.101024e-06, %v1726_v20 }
 0x144   : > { %12986 = vst [vmem:[#allocation33_spill] sm:$0xff] %v9656_v12  ;;  %v2492_v5 = vadd.f32 1.0, %v2460_v22  ;;  %v9661_v14 = vadd.f32 %v777_v27, %v708_v13  ;;  %v1729_v45 = vmul.f32 %v1697_v43, %v9634_v52  ;;  %v1759_v6 = vadd.f32 -2.101024e-06, %v1727_v53 }
 0x145   : > { %12987 = vst [vmem:[#allocation64_spill] sm:$0xff] %v9659_v59  ;;  %v2493_v19 = vadd.f32 1.0, %v2461_v42  ;;  %v9665_v44 = vadd.f32 %v12989_v39, %v808_v16  ;;  %v1760_v21 = vadd.f32 -2.101024e-06, %v1728_v56  ;;  %v1077_v30 = vmul.f32 %v9501_v55, %v739_v63 }
 0x146   : > { %12988 = vst [vmem:[#allocation65_spill] sm:$0xff] %v9661_v14  ;;  %v2524_v17 = vmul.f32 %v2492_v5, %v9327_v37  ;;  %v9670_v3 = vmul.f32 %v9501_v55, %v740_v58  ;;  %v2078_v13 = vmul.f32 -1.45660715e-05, %v9615_v29  ;;  %v2079_v28 = vmul.f32 -1.45660715e-05, %v9622_v7 }
 0x147   : > { %12990 = vst [vmem:[#allocation39_spill] sm:$0xff] %v9665_v44  ;;  %v2525_v24 = vmul.f32 %v2493_v19, %v9331_v47  ;;  %v9675_v35 = vadd.f32 %v977_v50, %v908_v48  ;;  %v1790_v51 = vmul.f32 %v1758_v33, %v9615_v29  ;;  %v2080_v37 = vmul.f32 -1.45660715e-05, %v9627_v25 }
 0x148   : > { %v2844_v53 = vcombine.high %v2524_v17, %v2524_v17  ;;  %v2851_v43 = vrot.slane %v2524_v17, %v8793_v62  ;;  %v1761_v58 = vadd.f32 -2.101024e-06, %v1729_v45  ;;  %v1791_v15 = vmul.f32 %v1759_v6, %v9622_v7 }
 0x149   : > { %v2861_v46 = vcombine.high %v2525_v24, %v2525_v24  ;;  %v2868_v63 = vrot.slane %v2525_v24, %v8793_v62  ;;  %v1792_v20 = vmul.f32 %v1760_v21, %v9627_v25  ;;  %v2112_v55 = vadd.f32 -0.00021337405, %v2080_v37 }
 0x14a   : > { %v2858_v47 = vrot.slane %v2844_v53, %v8793_v62  ;;  %v2859_v8 = vcombine.high %v2851_v43, %v2851_v43  ;;  %v3692_v2 = vsel %vm281_vm2, %v2851_v43, -inf }
 0x14b   : > { %v2875_v27 = vrot.slane %v2861_v46, %v8793_v62  ;;  %v2876_v49 = vcombine.high %v2868_v63, %v2868_v63  ;;  %v3693_v16 = vrot.slane %v3692_v2, 4  ;;  %v3720_v22 = vsel %vm281_vm2, %v2868_v63, -inf }
 0x14c   : > { %v2860_v56 = vcombine.high %v2858_v47, %v2858_v47  ;;  %v3699_v42 = vsel %vm281_vm2, %v2859_v8, -inf  ;;  %v3706_v48 = vsel %vm281_vm2, %v2858_v47, -inf  ;;  %v3721_v50 = vrot.slane %v3720_v22, 4  ;;  %v12991_v47 = vld [vmem:[#allocation34_spill] sm:$0xff] }
 0x14d   : > { %v2877_v5 = vcombine.high %v2875_v27, %v2875_v27  ;;  %v3694_v33 = vmax.f32 %v3692_v2, %v3693_v16  ;;  %v3700_v19 = vrot.slane %v3699_v42, 4  ;;  %v3707_v45 = vrot.slane %v3706_v48, 4 }
 0x14e   : > { %v3713_v6 = vsel %vm281_vm2, %v2860_v56, -inf  ;;  %v3722_v39 = vmax.f32 %v3720_v22, %v3721_v50  ;;  %v3727_v17 = vsel %vm281_vm2, %v2876_v49, -inf  ;;  %v3734_v21 = vsel %vm281_vm2, %v2875_v27, -inf }
 0x14f   : > { %v3695_v24 = vrot.slane %v3694_v33, 2  ;;  %v3701_v53 = vmax.f32 %v3699_v42, %v3700_v19  ;;  %v3708_v43 = vmax.f32 %v3706_v48, %v3707_v45  ;;  %v3714_v46 = vrot.slane %v3713_v6, 4 }
 0x150   : > { %v3723_v63 = vrot.slane %v3722_v39, 2  ;;  %v3728_v8 = vrot.slane %v3727_v17, 4  ;;  %v3735_v14 = vrot.slane %v3734_v21, 4  ;;  %v9693_v59 = vadd.f32 %v1077_v30, %v12991_v47 }
 0x151   : > { %v3702_v2 = vrot.slane %v3701_v53, 2  ;;  %v3741_v16 = vsel %vm281_vm2, %v2877_v5, -inf  ;;  %v1793_v56 = vmul.f32 %v1761_v58, %v9634_v52  ;;  %v1822_v22 = vadd.f32 -5.6925062e-05, %v1790_v51 }
 0x152   : > { %v3696_v50 = vmax.f32 %v3694_v33, %v3695_v24  ;;  %v3709_v49 = vrot.slane %v3708_v43, 2  ;;  %v3715_v12 = vmax.f32 %v3713_v6, %v3714_v46  ;;  %v2081_v27 = vmul.f32 -1.45660715e-05, %v9634_v52 }
 0x153   : > { %v3724_v42 = vmax.f32 %v3722_v39, %v3723_v63  ;;  %v1823_v48 = vadd.f32 -5.6925062e-05, %v1791_v15  ;;  %v1824_v19 = vadd.f32 -5.6925062e-05, %v1792_v20  ;;  %v2110_v45 = vadd.f32 -0.00021337405, %v2078_v13 }
 0x154   : > { %v3703_v62 = vmax.f32 %v3701_v53, %v3702_v2  ;;  %v3729_v44 = vmax.f32 %v3727_v17, %v3728_v8  ;;  %v3736_v23 = vmax.f32 %v3734_v21, %v3735_v14  ;;  %v3742_v30 = vrot.slane %v3741_v16, 4 }
 0x155   : > { %v1825_v47 = vadd.f32 -5.6925062e-05, %v1793_v56  ;;  %v1854_v40 = vmul.f32 %v1822_v22, %v9615_v29  ;;  %v2111_v5 = vadd.f32 -0.00021337405, %v2079_v28  ;;  %v3697_v58 = vrot.slane %v3696_v50, 1 }
 0x156   : > { %v3710_v51 = vmax.f32 %v3708_v43, %v3709_v49  ;;  %v3716_v33 = vrot.slane %v3715_v12, 2  ;;  %v2113_v24 = vadd.f32 -0.00021337405, %v2081_v27  ;;  %v3725_v6 = vrot.slane %v3724_v42, 1 }
 0x157   : > { %v1855_v46 = vmul.f32 %v1823_v48, %v9622_v7  ;;  %v1856_v15 = vmul.f32 %v1824_v19, %v9627_v25  ;;  %v2142_v13 = vmul.f32 %v2110_v45, %v9615_v29  ;;  %v3704_v20 = vrot.slane %v3703_v62, 1 }
 0x158   : > { %v3730_v39 = vrot.slane %v3729_v44, 2  ;;  %v3737_v14 = vrot.slane %v3736_v23, 2  ;;  %v3743_v17 = vmax.f32 %v3741_v16, %v3742_v30  ;;  %v1857_v21 = vmul.f32 %v1825_v47, %v9634_v52 }
 0x159   : > { %v1886_v53 = vadd.f32 -0.00073499064, %v1854_v40  ;;  %v2143_v28 = vmul.f32 %v2111_v5, %v9622_v7  ;;  %v2144_v37 = vmul.f32 %v2112_v55, %v9627_v25  ;;  %v3698_v43 = vmax.f32 %v3696_v50, %v3697_v58 }
 0x15a   : > { %v3711_v63 = vrot.slane %v3710_v51, 1  ;;  %v3717_v8 = vmax.f32 %v3715_v12, %v3716_v33  ;;  %v2145_v2 = vmul.f32 %v2113_v24, %v9634_v52  ;;  %v3726_v56 = vmax.f32 %v3724_v42, %v3725_v6 }
 0x15b   : > { %v1887_v22 = vadd.f32 -0.00073499064, %v1855_v46  ;;  %v1888_v49 = vadd.f32 -0.00073499064, %v1856_v15  ;;  %v2174_v27 = vadd.f32 -0.001682827, %v2142_v13  ;;  %v3705_v48 = vmax.f32 %v3703_v62, %v3704_v20 }
 0x15c   : > { %v3731_v19 = vmax.f32 %v3729_v44, %v3730_v39  ;;  %v3738_v45 = vmax.f32 %v3736_v23, %v3737_v14  ;;  %v3744_v16 = vrot.slane %v3743_v17, 2  ;;  %v1889_v30 = vadd.f32 -0.00073499064, %v1857_v21  ;;  %v380_v44 = vpop.permute.xlu1 %379 }
 0x15d   : > { %v1918_v40 = vmul.f32 %v1886_v53, %v9615_v29  ;;  %v2175_v47 = vadd.f32 -0.001682827, %v2143_v28  ;;  %v2206_v5 = vmul.f32 %v2174_v27, %v9615_v29  ;;  %v3712_v55 = vmax.f32 %v3710_v51, %v3711_v63  ;;  %512 = vst.msk [vmem:[#allocation2 + $0x81] sm:$0xff] %vm278_vm0, %v380_v44  ;;  %v663_v44 = vld [vmem:[#allocation2 + $0x141] sm:$0xff] }
 0x15e   : > { %v3718_v50 = vrot.slane %v3717_v8, 1  ;;  %v9709_v12 = vsel %vm278_vm0, %v3698_v43, -inf  ;;  %v2176_v58 = vadd.f32 -0.001682827, %v2144_v37  ;;  %v1919_v42 = vmul.f32 %v1887_v22, %v9622_v7 }
 0x15f   : > { %v1920_v33 = vmul.f32 %v1888_v49, %v9627_v25  ;;  %v2177_v62 = vadd.f32 -0.001682827, %v2145_v2  ;;  %v2207_v23 = vmul.f32 %v2175_v47, %v9622_v7  ;;  %v3732_v24 = vrot.slane %v3731_v19, 1 }
 0x160   : > { %v3739_v6 = vrot.slane %v3738_v45, 1  ;;  %v2208_v46 = vmul.f32 %v2176_v58, %v9627_v25  ;;  %v2238_v15 = vadd.f32 -0.0073733293, %v2206_v5  ;;  %v1921_v51 = vmul.f32 %v1889_v30, %v9634_v52 }
 0x161   : > { %v1950_v13 = vadd.f32 -0.0029546, %v1918_v40  ;;  %v2209_v20 = vmul.f32 %v2177_v62, %v9634_v52  ;;  %v2239_v39 = vadd.f32 -0.0073733293, %v2207_v23  ;;  %v9718_v14 = vmax.f32 %v3743_v17, %v3744_v16  ;;  %v12993_v62 = vld [vmem:[#allocation19_spill] sm:$0xff] }
 0x162   : > { %v9721_v21 = vsel %vm278_vm0, %v3726_v56, -inf  ;;  %v2240_v53 = vadd.f32 -0.0073733293, %v2208_v46  ;;  %v2270_v28 = vmul.f32 %v2238_v15, %v9615_v29  ;;  %v1951_v37 = vadd.f32 -0.0029546, %v1919_v42 }
 0x163   : > { %12992 = vst [vmem:[#allocation34_spill] sm:$0xff] %v9718_v14  ;;  %v1952_v43 = vadd.f32 -0.0029546, %v1920_v33  ;;  %v2241_v63 = vadd.f32 -0.0073733293, %v2209_v20  ;;  %v2271_v2 = vmul.f32 %v2239_v39, %v9622_v7  ;;  %v3719_v22 = vmax.f32 %v3717_v8, %v3718_v50 }
 0x164   : > { %v9726_v49 = vsel %vm278_vm0, %v3705_v48, -inf  ;;  %v2272_v27 = vmul.f32 %v2240_v53, %v9627_v25  ;;  %v9729_v30 = vadd.f32 -0.014264739, %v2270_v28  ;;  %v1953_v17 = vadd.f32 -0.0029546, %v1921_v51  ;;  %v764_v28 = vld [vmem:[#allocation2 + $0x142] sm:$0xff] }
 0x165   : > { %v1982_v56 = vmul.f32 %v1950_v13, %v9615_v29  ;;  %v2273_v16 = vmul.f32 %v2241_v63, %v9634_v52  ;;  %v9733_v40 = vadd.f32 -0.014264739, %v2271_v2  ;;  %v1031_v8 = vadd.f32 %v9582_v54, %v9604_v60  ;;  %v562_v29 = vld [vmem:[#allocation2 + $0x140] sm:$0xff] }
 0x166   : > { %v9735_v47 = vadd.f32 -0.014264739, %v2272_v27  ;;  %8380 = vrcp.f32 %v9729_v30  ;;  %v1131_v48 = vadd.f32 %v9589_v26, %v9609_v0  ;;  %v1983_v5 = vmul.f32 %v1951_v37, %v9622_v7  ;;  %v763_v0 = vld [vmem:[#allocation2 + $0x13a] sm:$0xff] }
 0x167   : > { %v1984_v50 = vmul.f32 %v1952_v43, %v9627_v25  ;;  %v9744_v58 = vadd.f32 -0.014264739, %v2273_v16  ;;  %8382 = vrcp.f32 %v9733_v40  ;;  %v3733_v42 = vmax.f32 %v3731_v19, %v3732_v24  ;;  %v12994_v19 = vld [vmem:[#allocation20_spill] sm:$0xff] }
 0x168   : > { %v3740_v33 = vmax.f32 %v3738_v45, %v3739_v6  ;;  %8384 = vrcp.f32 %v9735_v47  ;;  %v1233_v23 = vadd.f32 %v12993_v62, %v1131_v48  ;;  %v9750_v54 = vsel %vm278_vm0, %v3712_v55, -inf  ;;  %v12997_v48 = vld [vmem:[#allocation63_spill] sm:$0xff]  ;;  %v13000_v62 = vld [vmem:[#allocation18_spill] sm:$0xff] }
 0x169   : > { %v1985_v26 = vmul.f32 %v1953_v17, %v9634_v52  ;;  %v2014_v60 = vadd.f32 -0.016096033, %v1982_v56  ;;  %8386 = vrcp.f32 %v9744_v58  ;;  %v9755_v7 = vsel %vm278_vm0, %v3719_v22, -inf }
 0x16a   : > { %v1132_v25 = vadd.f32 %v9600_v41, %v1031_v8  ;;  %v1334_v45 = vadd.f32 %v12994_v19, %v1233_v23  ;;  %v900_v24 = vmul.f32 %v9474_v34, %v562_v29  ;;  %v2015_v6 = vadd.f32 -0.016096033, %v1983_v5  ;;  %v542_v5 = vld [vmem:[#allocation2 + $0x50] sm:$0xff] }
 0x16b   : > { %v2016_v46 = vadd.f32 -0.016096033, %v1984_v50  ;;  %v599_v55 = vmul.f32 %v9452_v4, %v562_v29  ;;  %v700_v15 = vmul.f32 %v9458_v1, %v663_v44  ;;  %v9763_v52 = vsel %vm278_vm0, %v3733_v42, -inf  ;;  %v643_v50 = vld [vmem:[#allocation2 + $0x51] sm:$0xff] }
 0x16c   : > { %v9766_v51 = vsel %vm278_vm0, %v3740_v33, -inf  ;;  %v1202_v13 = vmul.f32 %v9510_v61, %v562_v29  ;;  %v1403_v41 = vmul.f32 %v9538_v11, %v763_v0  ;;  %v2017_v20 = vadd.f32 -0.016096033, %v1985_v26  ;;  %v12998_v29 = vld [vmem:[#allocation16_spill] sm:$0xff]  ;;  %v13002_v26 = vld [vmem:[#allocation61_spill] sm:$0xff] }
 0x16d   : > { %v2046_v39 = vmul.f32 %v9594_v57, %v2014_v60  ;;  %v9773_v53 = vadd.f32 %v9670_v3, %v9675_v35  ;;  %v800_v37 = vmul.f32 %v9465_v9, %v763_v0  ;;  %v932_v43 = vadd.f32 %v900_v24, %v9366_v18  ;;  %v12996_v57 = vld [vmem:[#allocation17_spill] sm:$0xff]  ;;  %v743_v23 = vld [vmem:[#allocation2 + $0x4a] sm:$0xff] }
 0x16e   : > { %v1234_v63 = vadd.f32 %v1202_v13, %v1132_v25  ;;  %v1303_v2 = vmul.f32 %v9526_v38, %v663_v44  ;;  %v1435_v22 = vadd.f32 %v1403_v41, %v1334_v45  ;;  %v2047_v27 = vmul.f32 %v9606_v10, %v2015_v6  ;;  %v12999_v10 = vld [vmem:[#allocation42_spill] sm:$0xff]  ;;  %v744_v45 = vld [vmem:[#allocation2 + $0x52] sm:$0xff] }
 0x16f   : > { %12995 = vst [vmem:[#allocation19_spill] sm:$0xff] %v9773_v53  ;;  %v9780_v17 = vmul.f32 %v9611_v31, %v2016_v46  ;;  %v1032_v56 = vadd.f32 %v12996_v57, %v9571_v36  ;;  %v732_v16 = vadd.f32 %v700_v15, %v599_v55  ;;  %v1001_v3 = vmul.f32 %v9491_v32, %v663_v44 }
 0x170   : > { %v1335_v35 = vadd.f32 %v1303_v2, %v1234_v63  ;;  %v1404_v8 = vmul.f32 %v9538_v11, %v764_v28  ;;  %v1474_v18 = vadd.f32 %v12997_v48, %v1435_v22  ;;  %v2049_v42 = vmul.f32 %v12998_v29, %v2017_v20 }
 0x171   : > { %v9790_v33 = vadd.f32 %v12999_v10, %v9693_v59  ;;  %v801_v31 = vmul.f32 %v9465_v9, %v764_v28  ;;  %v9794_v36 = vadd.f32 %v800_v37, %v13000_v62  ;;  %v1033_v44 = vadd.f32 %v1001_v3, %v932_v43 }
 0x172   : > { %v1101_v60 = vmul.f32 %v13002_v26, %v763_v0  ;;  %v1436_v25 = vadd.f32 %v1404_v8, %v1335_v35  ;;  %v1538_v19 = vmul.f32 0.70710677, %v1474_v18  ;;  %v1102_v46 = vmul.f32 %v13002_v26, %v764_v28 }
 0x173   : > { %13001 = vst [vmem:[#allocation20_spill] sm:$0xff] %v9794_v36  ;;  %v8381_v24 = vpop.eup %8380  ;;  %v9797_v6 = vadd.f32 %v801_v31, %v732_v16  ;;  %v579_v59 = vmul.f32 %v9452_v4, %v542_v5  ;;  %v680_v55 = vmul.f32 %v9458_v1, %v643_v50  ;;  %v780_v0 = vmul.f32 %v9465_v9, %v743_v23 }
 0x174   : > { %v8383_v15 = vpop.eup %8382  ;;  %v2366_v13 = vmul.f32 %v8381_v24, %v9729_v30  ;;  %v9803_v41 = vadd.f32 %v1101_v60, %v1032_v56  ;;  %v1475_v20 = vadd.f32 %v12997_v48, %v1436_v25  ;;  %v781_v63 = vmul.f32 %v9465_v9, %v744_v45 }
 0x175   : > { %13003 = vst [vmem:[#allocation17_spill] sm:$0xff] %v9797_v6  ;;  %v8385_v37 = vpop.eup %8384  ;;  %v2367_v43 = vmul.f32 %v8383_v15, %v9733_v40  ;;  %v9810_v28 = vmul.f32 %v9474_v34, %v542_v5  ;;  %v9813_v2 = vmul.f32 %v9491_v32, %v643_v50  ;;  %v9816_v56 = vadd.f32 %v1102_v46, %v1033_v44  ;;  %v13009_v34 = vld [vmem:[#allocation50_spill] sm:$0xff] }
 0x176   : > { %13004 = vst [vmem:[#allocation63_spill] sm:$0xff] %v9803_v41  ;;  %v8387_v22 = vpop.eup %8386  ;;  %v2368_v30 = vmul.f32 %v8385_v37, %v9735_v47  ;;  %v2398_v57 = vsub.f32 2.0, %v2366_v13  ;;  %v9818_v16 = vclamps-f32 %v1538_v19, 4.0  ;;  %v1539_v40 = vmul.f32 0.70710677, %v1475_v20 }
 0x177   : > { %13005 = vst [vmem:[#allocation16_spill] sm:$0xff] %v9810_v28  ;;  %13006 = vst [vmem:[#allocation42_spill] sm:$0xff] %v9813_v2  ;;  %v2369_v3 = vmul.f32 %v8387_v22, %v9744_v58  ;;  %v2399_v35 = vsub.f32 2.0, %v2367_v43  ;;  %v712_v8 = vadd.f32 %v680_v55, %v579_v59  ;;  %v812_v10 = vadd.f32 %v780_v0, %v13009_v34  ;;  %v9883_v34 = vld [vmem:[#allocation2 + $0x3a] sm:$0xff] }
 0x178   : > { %13007 = vst [vmem:[#allocation18_spill] sm:$0xff] %v9816_v56  ;;  %13008 = vst [vmem:[#allocation61_spill] sm:$0xff] %v9818_v16  ;;  %v2400_v48 = vsub.f32 2.0, %v2368_v30  ;;  %v2430_v29 = vmul.f32 %v8381_v24, %v2398_v57  ;;  %v9823_v32 = vmul.f32 %v13002_v26, %v743_v23  ;;  %v9826_v47 = vmul.f32 %v13002_v26, %v744_v45  ;;  %v9843_v26 = vld [vmem:[#allocation2 + $0x39] sm:$0xff] }
 0x179   : > { %v2401_v31 = vsub.f32 2.0, %v2369_v3  ;;  %v2431_v62 = vmul.f32 %v8383_v15, %v2399_v35  ;;  %v9829_v44 = vmul.f32 %v9510_v61, %v542_v5  ;;  %v9831_v25 = vmul.f32 0.5, %v1474_v18  ;;  %v9841_v15 = vld [vmem:[#allocation2 + $0x38] sm:$0xff] }
 0x17a   : > { %13010 = vst [vmem:[#allocation50_spill] sm:$0xff] %v9823_v32  ;;  %13011 = vst [vmem:[#allocation66_spill] sm:$0xff] %v9826_v47  ;;  %v2432_v60 = vmul.f32 %v8385_v37, %v2400_v48  ;;  %v2462_v58 = vmul.f32 %v2430_v29, %v2046_v39  ;;  %v9835_v19 = vmul.f32 %v9818_v16, %v9818_v16  ;;  %v9837_v59 = vclamps-f32 %v1539_v40, 4.0  ;;  %v13016_v5 = vld [vmem:[#allocation45_spill] sm:$0xff]  ;;  %v13026_v40 = vld [vmem:[#allocation7_spill] sm:$0xff] }
 0x17b   : > { %13012 = vst [vmem:[#allocation67_spill] sm:$0xff] %v9829_v44  ;;  %13013 = vst [vmem:[#allocation68_spill] sm:$0xff] %v9831_v25  ;;  %v2433_v24 = vmul.f32 %v8387_v22, %v2401_v31  ;;  %v2463_v46 = vmul.f32 %v2431_v62, %v2047_v27  ;;  %v9839_v55 = vadd.f32 %v781_v63, %v712_v8  ;;  %v13021_v63 = vld [vmem:[#allocation21_spill] sm:$0xff]  ;;  %v9875_v48 = vmul.f32 0.5, %v1475_v20 }
 0x17c   : > { %13014 = vst [vmem:[#allocation69_spill] sm:$0xff] %v9837_v59  ;;  %v2494_v61 = vadd.f32 1.0, %v2462_v58  ;;  %v9846_v13 = vadd.f32 %v13016_v5, %v812_v10  ;;  %v9849_v39 = vmul.f32 %v9526_v38, %v643_v50  ;;  %v9852_v18 = vmul.f32 %v9538_v11, %v743_v23  ;;  %v13022_v50 = vld [vmem:[#allocation22_spill] sm:$0xff]  ;;  %v9881_v29 = vld [vmem:[#allocation2 + $0x32] sm:$0xff] }
 0x17d   : > { %13015 = vst [vmem:[#allocation70_spill] sm:$0xff] %v9839_v55  ;;  %v2464_v27 = vmul.f32 %v2432_v60, %v9780_v17  ;;  %v2465_v0 = vmul.f32 %v2433_v24, %v2049_v42  ;;  %v2495_v37 = vadd.f32 1.0, %v2463_v46  ;;  %v9856_v43 = vmul.f32 %v9538_v11, %v744_v45  ;;  %v13023_v11 = vld [vmem:[#allocation39_spill] sm:$0xff]  ;;  %v13024_v45 = vld [vmem:[#allocation40_spill] sm:$0xff]  ;;  %13027 = vst [vmem:[#allocation22_spill] sm:$0xff] %v9875_v48 }
 0x17e   : > { %13017 = vst [vmem:[#allocation45_spill] sm:$0xff] %v9846_v13  ;;  %13018 = vst [vmem:[#allocation71_spill] sm:$0xff] %v9849_v39  ;;  %v2526_v22 = vmul.f32 %v2494_v61, %v13021_v63  ;;  %v1666_v30 = vmul.f32 -2.7261424e-10, %v9835_v19  ;;  %v577_v57 = vmul.f32 %v9452_v4, %v9841_v15  ;;  %v678_v38 = vmul.f32 %v9458_v1, %v9843_v26  ;;  %v13028_v4 = vld [vmem:[#allocation43_spill] sm:$0xff] }
 0x17f   : > { %13019 = vst [vmem:[#allocation72_spill] sm:$0xff] %v9852_v18  ;;  %13020 = vst [vmem:[#allocation73_spill] sm:$0xff] %v9856_v43  ;;  %v2527_v23 = vmul.f32 %v2495_v37, %v13022_v50  ;;  %v9867_v17 = vmul.f32 %v9837_v59, %v9837_v59  ;;  %v2082_v42 = vmul.f32 -1.45660715e-05, %v9835_v19  ;;  %v9872_v3 = vadd.f32 %v13024_v45, %v13023_v11 }
 0x180   : > { %v2878_v35 = vcombine.high %v2526_v22, %v2526_v22  ;;  %v2885_v8 = vrot.slane %v2526_v22, %v13026_v40  ;;  %v9879_v1 = vadd.f32 %v13028_v4, %v9790_v33  ;;  %13030 = vst [vmem:[#allocation40_spill] sm:$0xff] %v9881_v29  ;;  %13031 = vst [vmem:[#allocation43_spill] sm:$0xff] %v9883_v34  ;;  %v2496_v10 = vadd.f32 1.0, %v2464_v27 }
 0x181   : > { %13025 = vst [vmem:[#allocation21_spill] sm:$0xff] %v9872_v3  ;;  %v2497_v31 = vadd.f32 1.0, %v2465_v0  ;;  %v2895_v62 = vcombine.high %v2527_v23, %v2527_v23  ;;  %v2902_v60 = vrot.slane %v2527_v23, %v13026_v40  ;;  %v1698_v46 = vadd.f32 2.7706815e-08, %v1666_v30  ;;  %v13035_v30 = vld [vmem:[#allocation33_spill] sm:$0xff] }
 0x182   : > { %13029 = vst [vmem:[#allocation39_spill] sm:$0xff] %v9879_v1  ;;  %v2892_v58 = vrot.slane %v2878_v35, %v13026_v40  ;;  %v2893_v24 = vcombine.high %v2885_v8, %v2885_v8  ;;  %v9887_v61 = vadd.f32 %v678_v38, %v577_v57  ;;  %v1667_v20 = vmul.f32 -2.7261424e-10, %v9867_v17  ;;  %v13036_v38 = vld [vmem:[#allocation64_spill] sm:$0xff] }
 0x183   : > { %v2114_v5 = vadd.f32 -0.00021337405, %v2082_v42  ;;  %v9892_v33 = vmul.f32 %v9465_v9, %v9881_v29  ;;  %v9896_v27 = vmul.f32 %v9465_v9, %v9883_v34  ;;  %v2909_v37 = vrot.slane %v2895_v62, %v13026_v40 }
 0x184   : > { %13032 = vst [vmem:[#allocation74_spill] sm:$0xff] %v9887_v61  ;;  %v2894_v0 = vcombine.high %v2892_v58, %v2892_v58  ;;  %v2910_v63 = vcombine.high %v2902_v60, %v2902_v60  ;;  %v3748_v22 = vsel %vm281_vm2, %v2885_v8, -inf  ;;  %v2528_v57 = vmul.f32 %v2496_v10, %v13035_v30 }
 0x185   : > { %13033 = vst [vmem:[#allocation75_spill] sm:$0xff] %v9892_v33  ;;  %13034 = vst [vmem:[#allocation76_spill] sm:$0xff] %v9896_v27  ;;  %v2529_v50 = vmul.f32 %v2497_v31, %v13036_v38  ;;  %v3749_v23 = vrot.slane %v3748_v22, 4  ;;  %v2083_v42 = vmul.f32 -1.45660715e-05, %v9867_v17  ;;  %v3755_v11 = vsel %vm281_vm2, %v2893_v24, -inf }
 0x186   : > { %v3762_v45 = vsel %vm281_vm2, %v2892_v58, -inf  ;;  %v3769_v9 = vsel %vm281_vm2, %v2894_v0, -inf  ;;  %v1730_v35 = vmul.f32 %v1698_v46, %v9835_v19  ;;  %v3756_v62 = vrot.slane %v3755_v11, 4 }
 0x187   : > { %v3750_v4 = vmax.f32 %v3748_v22, %v3749_v23  ;;  %v3763_v14 = vrot.slane %v3762_v45, 4  ;;  %v2146_v8 = vmul.f32 %v2114_v5, %v9835_v19  ;;  %v3770_v6 = vrot.slane %v3769_v9, 4  ;;  %v369_v22 = vpop.permute.xlu0 %368 }
 0x188   : > { %v3776_v10 = vsel %vm281_vm2, %v2902_v60, -inf  ;;  %v3783_v31 = vsel %vm281_vm2, %v2910_v63, -inf  ;;  %v3790_v30 = vsel %vm281_vm2, %v2909_v37, -inf  ;;  %v2912_v38 = vcombine.high %v2528_v57, %v2528_v57  ;;  %510 = vst.msk [vmem:[#allocation2 + $0x69] sm:$0xff] %vm278_vm0, %v369_v22 }
 0x189   : > { %v2929_v24 = vcombine.high %v2529_v50, %v2529_v50  ;;  %v3751_v56 = vrot.slane %v3750_v4, 2  ;;  %v3777_v58 = vrot.slane %v3776_v10, 4  ;;  %v3757_v41 = vmax.f32 %v3755_v11, %v3756_v62 }
 0x18a   : > { %v3764_v0 = vmax.f32 %v3762_v45, %v3763_v14  ;;  %v3784_v36 = vrot.slane %v3783_v31, 4  ;;  %v3791_v46 = vrot.slane %v3790_v30, 4  ;;  %v2911_v23 = vcombine.high %v2909_v37, %v2909_v37 }
 0x18b   : > { %v2919_v47 = vrot.slane %v2528_v57, %v13026_v40  ;;  %v3771_v5 = vmax.f32 %v3769_v9, %v3770_v6  ;;  %v3778_v55 = vmax.f32 %v3776_v10, %v3777_v58  ;;  %v1699_v13 = vadd.f32 2.7706815e-08, %v1667_v20 }
 0x18c   : > { %v3785_v60 = vmax.f32 %v3783_v31, %v3784_v36  ;;  %v3792_v63 = vmax.f32 %v3790_v30, %v3791_v46  ;;  %v1762_v2 = vadd.f32 -2.101024e-06, %v1730_v35  ;;  %v2926_v32 = vrot.slane %v2912_v38, %v13026_v40 }
 0x18d   : > { %v2936_v48 = vrot.slane %v2529_v50, %v13026_v40  ;;  %v2943_v14 = vrot.slane %v2929_v24, %v13026_v40  ;;  %v9916_v11 = vadd.f32 -0.00021337405, %v2083_v42  ;;  %v3752_v45 = vmax.f32 %v3750_v4, %v3751_v56 }
 0x18e   : > { %v3758_v37 = vrot.slane %v3757_v41, 2  ;;  %v3765_v62 = vrot.slane %v3764_v0, 2  ;;  %v9918_v57 = vadd.f32 -0.001682827, %v2146_v8  ;;  %v2927_v6 = vcombine.high %v2919_v47, %v2919_v47 }
 0x18f   : > { %v3772_v9 = vrot.slane %v3771_v5, 2  ;;  %v3779_v10 = vrot.slane %v3778_v55, 2  ;;  %v3797_v36 = vsel %vm281_vm2, %v2911_v23, -inf  ;;  %v3786_v20 = vrot.slane %v3785_v60, 2 }
 0x190   : > { %v3793_v35 = vrot.slane %v3792_v63, 2  ;;  %v9922_v31 = vmul.f32 %v1699_v13, %v9867_v17  ;;  %v9925_v50 = vmul.f32 %v1762_v2, %v9835_v19  ;;  %v2928_v42 = vcombine.high %v2926_v32, %v2926_v32 }
 0x191   : > { %v2944_v30 = vcombine.high %v2936_v48, %v2936_v48  ;;  %v2945_v56 = vcombine.high %v2943_v14, %v2943_v14  ;;  %v3804_v4 = vsel %vm281_vm2, %v2919_v47, -inf  ;;  %v3753_v8 = vrot.slane %v3752_v45, 1 }
 0x192   : > { %v3759_v38 = vmax.f32 %v3757_v41, %v3758_v37  ;;  %v3766_v24 = vmax.f32 %v3764_v0, %v3765_v62  ;;  %v3798_v58 = vrot.slane %v3797_v36, 4  ;;  %v3773_v46 = vmax.f32 %v3771_v5, %v3772_v9 }
 0x193   : > { %v3780_v22 = vmax.f32 %v3778_v55, %v3779_v10  ;;  %v3811_v23 = vsel %vm281_vm2, %v2927_v6, -inf  ;;  %v3818_v40 = vsel %vm281_vm2, %v2926_v32, -inf  ;;  %v3787_v13 = vmax.f32 %v3785_v60, %v3786_v20 }
 0x194   : > { %v3794_v25 = vmax.f32 %v3792_v63, %v3793_v35  ;;  %v3805_v59 = vrot.slane %v3804_v4, 4  ;;  %v3812_v2 = vrot.slane %v3811_v23, 4  ;;  %v3819_v16 = vrot.slane %v3818_v40, 4 }
 0x195   : > { %v3825_v28 = vsel %vm281_vm2, %v2928_v42, -inf  ;;  %v3832_v27 = vsel %vm281_vm2, %v2936_v48, -inf  ;;  %v3839_v47 = vsel %vm281_vm2, %v2944_v30, -inf  ;;  %v3754_v41 = vmax.f32 %v3752_v45, %v3753_v8 }
 0x196   : > { %v3760_v0 = vrot.slane %v3759_v38, 1  ;;  %v3826_v37 = vrot.slane %v3825_v28, 4  ;;  %v3833_v5 = vrot.slane %v3832_v27, 4  ;;  %v3767_v55 = vrot.slane %v3766_v24, 1 }
 0x197   : > { %v3774_v62 = vrot.slane %v3773_v46, 1  ;;  %v3840_v6 = vrot.slane %v3839_v47, 4  ;;  %v3846_v32 = vsel %vm281_vm2, %v2943_v14, -inf  ;;  %v3781_v60 = vrot.slane %v3780_v22, 1 }
 0x198   : > { %v3788_v63 = vrot.slane %v3787_v13, 1  ;;  %v3795_v9 = vrot.slane %v3794_v25, 1  ;;  %v3853_v10 = vsel %vm281_vm2, %v2945_v56, -inf  ;;  %v3806_v20 = vmax.f32 %v3804_v4, %v3805_v59 }
 0x199   : > { %v3813_v35 = vmax.f32 %v3811_v23, %v3812_v2  ;;  %v3820_v42 = vmax.f32 %v3818_v40, %v3819_v16  ;;  %v3847_v48 = vrot.slane %v3846_v32, 4  ;;  %v3761_v61 = vmax.f32 %v3759_v38, %v3760_v0 }
 0x19a   : > { %v3827_v30 = vmax.f32 %v3825_v28, %v3826_v37  ;;  %v3834_v45 = vmax.f32 %v3832_v27, %v3833_v5  ;;  %v3841_v8 = vmax.f32 %v3839_v47, %v3840_v6  ;;  %v3768_v43 = vmax.f32 %v3766_v24, %v3767_v55 }
 0x19b   : > { %v3799_v33 = vmax.f32 %v3797_v36, %v3798_v58  ;;  %v3848_v18 = vmax.f32 %v3846_v32, %v3847_v48  ;;  %v3854_v39 = vrot.slane %v3853_v10, 4  ;;  %v3775_v1 = vmax.f32 %v3773_v46, %v3774_v62 }
 0x19c   : > { %v3782_v44 = vmax.f32 %v3780_v22, %v3781_v60  ;;  %v3789_v14 = vmax.f32 %v3787_v13, %v3788_v63  ;;  %v3796_v53 = vmax.f32 %v3794_v25, %v3795_v9  ;;  %v3807_v3 = vrot.slane %v3806_v20, 2 }
 0x19d   : > { %v3814_v34 = vrot.slane %v3813_v35, 2  ;;  %v3821_v29 = vrot.slane %v3820_v42, 2  ;;  %v4237_v59 = vsel %vm278_vm0, %v3754_v41, -inf  ;;  %v3828_v56 = vrot.slane %v3827_v30, 2 }
 0x19e   : > { %v3835_v16 = vrot.slane %v3834_v45, 2  ;;  %v3842_v40 = vrot.slane %v3841_v8, 2  ;;  %v4240_v28 = vsel %vm278_vm0, %v3761_v61, -inf  ;;  %v3849_v27 = vrot.slane %v3848_v18, 2 }
 0x19f   : > { %v3855_v4 = vmax.f32 %v3853_v10, %v3854_v39  ;;  %v4238_v36 = vmax.f32 %v9709_v12, %v4237_v59  ;;  %v4241_v38 = vmax.f32 %v9726_v49, %v4240_v28  ;;  %v4243_v24 = vsel %vm278_vm0, %v3768_v43, -inf }
 0x1a0   : > { %v4246_v25 = vsel %vm278_vm0, %v3775_v1, -inf  ;;  %v4249_v58 = vsel %vm278_vm0, %v3782_v44, -inf  ;;  %v4252_v46 = vsel %vm278_vm0, %v3789_v14, -inf  ;;  %v3800_v22 = vrot.slane %v3799_v33, 2 }
 0x1a1   : > { %v3808_v23 = vmax.f32 %v3806_v20, %v3807_v3  ;;  %v3815_v13 = vmax.f32 %v3813_v35, %v3814_v34  ;;  %v4244_v2 = vmax.f32 %v9750_v54, %v4243_v24  ;;  %v3822_v61 = vmax.f32 %v3820_v42, %v3821_v29  ;;  %v13042_v24 = vld [vmem:[#allocation65_spill] sm:$0xff] }
 0x1a2   : > { %v4247_v39 = vmax.f32 %v9755_v7, %v4246_v25  ;;  %v4250_v12 = vmax.f32 %v9721_v21, %v4249_v58  ;;  %v4255_v49 = vsel %vm278_vm0, %v3796_v53, -inf  ;;  %v9947_v47 = vmax.f32 %v3827_v30, %v3828_v56  ;;  %v10003_v58 = vld [vmem:[%s12843_s1 + $0x5] ss:$0 sm:$0xff] }
 0x1a3   : > { %v9949_v43 = vmax.f32 %v3834_v45, %v3835_v16  ;;  %v4253_v44 = vmax.f32 %v9763_v52, %v4252_v46  ;;  %v8008_v1 = vpack.c.bf16 %v4241_v38, %v4241_v38  ;;  %v9952_v41 = vmax.f32 %v3841_v8, %v3842_v40  ;;  %13043 = vst [vmem:[#allocation65_spill] sm:$0xff] %v10003_v58  ;;  %v13044_v46 = vld [vmem:[#allocation40_spill] sm:$0xff] }
 0x1a4   : > { %v9954_v3 = vmax.f32 %v3848_v18, %v3849_v27  ;;  %v3856_v34 = vrot.slane %v3855_v4, 2  ;;  %v8007_v54 = vpack.c.bf16 %v4238_v36, %v4238_v36  ;;  %v9956_v29 = vmax.f32 %v3799_v33, %v3800_v22 }
 0x1a5   : > { %v3809_v7 = vrot.slane %v3808_v23, 1  ;;  %v4256_v21 = vmax.f32 %v9766_v51, %v4255_v49  ;;  %v8009_v0 = vpack.c.bf16 %v4244_v2, %v4244_v2  ;;  %v3816_v53 = vrot.slane %v3815_v13, 1 }
 0x1a6   : > { %13037 = vst [vmem:[#allocation33_spill] sm:$0xff] %v9956_v29  ;;  %v3823_v37 = vrot.slane %v3822_v61, 1  ;;  %v8010_v5 = vpack.c.bf16 %v4247_v39, %v4247_v39  ;;  %v8011_v55 = vpack.c.bf16 %v4250_v12, %v4250_v12  ;;  %v3830_v62 = vrot.slane %v9947_v47, 1 }
 0x1a7   : > { %v3837_v52 = vrot.slane %v9949_v43, 1  ;;  %v8012_v6 = vpack.c.bf16 %v4253_v44, %v4253_v44  ;;  %v4692_v32 = vunpack.c.l.b16 %v8008_v1  ;;  %v3844_v18 = vrot.slane %v9952_v41, 1  ;;  %v13047_v1 = vld [vmem:[#allocation21_spill] sm:$0xff] }
 0x1a8   : > { %v3851_v60 = vrot.slane %v9954_v3, 1  ;;  %v9963_v33 = vmax.f32 %v3855_v4, %v3856_v34  ;;  %v4691_v63 = vunpack.c.l.b16 %v8007_v54  ;;  %v8013_v9 = vpack.c.bf16 %v4256_v21, %v4256_v21 }
 0x1a9   : > { %v4693_v51 = vunpack.c.l.b16 %v8009_v0  ;;  %v9965_v10 = vmax.f32 %v3808_v23, %v3809_v7  ;;  %v1763_v20 = vadd.f32 -2.101024e-06, %v9922_v31  ;;  %v9968_v35 = vunpack.c.l.b16 %v8010_v5  ;;  %v10023_v0 = vld [vmem:[%s12843_s1 + $0x6] ss:$0 sm:$0xff] }
 0x1aa   : > { %13038 = vst [vmem:[#allocation64_spill] sm:$0xff] %v9963_v33  ;;  %v9970_v42 = vunpack.c.l.b16 %v8011_v55  ;;  %v1826_v48 = vadd.f32 -5.6925062e-05, %v9925_v50  ;;  %v2147_v30 = vmul.f32 %v9916_v11, %v9867_v17  ;;  %v9975_v45 = vunpack.c.l.b16 %v8012_v6  ;;  %v9987_v50 = vld [vmem:[%s12843_s1 + $0x3] ss:$0 sm:$0xff]  ;;  %13049 = vst [vmem:[#allocation21_spill] sm:$0xff] %v10023_v0 }
 0x1ab   : > { %13039 = vst [vmem:[#allocation77_spill] sm:$0xff] %v9968_v35  ;;  %v4753_v8 = vsel %vm4723_vm3, %v4692_v32, %v4691_v63  ;;  %v1795_v14 = vmul.f32 %v1763_v20, %v9867_v17  ;;  %v2210_v59 = vmul.f32 %v9918_v57, %v9835_v19  ;;  %v9981_v56 = vmax.f32 %v3815_v13, %v3816_v53  ;;  %v9994_v57 = vld [vmem:[%s12843_s1 + $0x4] ss:$0 sm:$0xff]  ;;  %v13050_v6 = vld [vmem:[#allocation52_spill] sm:$0xff]  ;;  %v13051_v63 = vld [vmem:[#allocation19_spill] sm:$0xff] }
 0x1ac   : > { %13040 = vst [vmem:[#allocation78_spill] sm:$0xff] %v9970_v42  ;;  %13041 = vst [vmem:[#allocation79_spill] sm:$0xff] %v9975_v45  ;;  %v1858_v31 = vmul.f32 %v1826_v48, %v9835_v19  ;;  %v2179_v16 = vadd.f32 -0.001682827, %v2147_v30  ;;  %v878_v11 = vmul.f32 %v9987_v50, %v9841_v15  ;;  %v3824_v40 = vmax.f32 %v3822_v61, %v3823_v37  ;;  %v13046_v61 = vld [vmem:[#allocation43_spill] sm:$0xff]  ;;  %v10185_v45 = vld [vmem:[#allocation2 + $0x7a] sm:$0xff] }
 0x1ad   : > { %v1827_v28 = vadd.f32 -5.6925062e-05, %v1795_v14  ;;  %v2242_v27 = vadd.f32 -0.0073733293, %v2210_v59  ;;  %v979_v4 = vmul.f32 %v9994_v57, %v9843_v26  ;;  %v1079_v22 = vmul.f32 %v10003_v58, %v13044_v46  ;;  %v13054_v30 = vld [vmem:[#allocation67_spill] sm:$0xff]  ;;  %v13055_v14 = vld [vmem:[#allocation53_spill] sm:$0xff] }
 0x1ae   : > { %v1890_v36 = vadd.f32 -0.00073499064, %v1858_v31  ;;  %v2211_v38 = vmul.f32 %v2179_v16, %v9867_v17  ;;  %v910_v25 = vadd.f32 %v878_v11, %v13042_v24  ;;  %v10007_v23 = vunpack.c.l.b16 %v8013_v9  ;;  %v13056_v11 = vld [vmem:[#allocation39_spill] sm:$0xff] }
 0x1af   : > { %v1859_v13 = vmul.f32 %v1827_v28, %v9867_v17  ;;  %v2274_v2 = vmul.f32 %v2242_v27, %v9835_v19  ;;  %v1080_v39 = vmul.f32 %v10003_v58, %v13046_v61  ;;  %v1111_v34 = vadd.f32 %v1079_v22, %v13047_v1  ;;  %v13060_v22 = vld [vmem:[#allocation75_spill] sm:$0xff] }
 0x1b0   : > { %13045 = vst [vmem:[#allocation40_spill] sm:$0xff] %v10007_v23  ;;  %v1922_v12 = vmul.f32 %v1890_v36, %v9835_v19  ;;  %v2243_v49 = vadd.f32 -0.0073733293, %v2211_v38  ;;  %v1011_v44 = vadd.f32 %v979_v4, %v910_v25  ;;  %v10016_v54 = vsel %vm4725_vm4, %v4693_v51, %v4753_v8  ;;  %v10035_v51 = vld [vmem:[%s12843_s1 + $0x7] ss:$0 sm:$0xff]  ;;  %v13057_v4 = vld [vmem:[#allocation71_spill] sm:$0xff] }
 0x1b1   : > { %13048 = vst [vmem:[#allocation43_spill] sm:$0xff] %v10016_v54  ;;  %v1891_v7 = vadd.f32 -0.00073499064, %v1859_v13  ;;  %v10018_v21 = vadd.f32 -0.014264739, %v2274_v2  ;;  %v1180_v53 = vmul.f32 %v10023_v0, %v9841_v15  ;;  %v3831_v37 = vmax.f32 %v9947_v47, %v3830_v62  ;;  %13052 = vst [vmem:[#allocation52_spill] sm:$0xff] %v10035_v51 }
 0x1b2   : > { %v2275_v5 = vmul.f32 %v2243_v49, %v9867_v17  ;;  %v1112_v55 = vadd.f32 %v1080_v39, %v1011_v44  ;;  %v1213_v32 = vadd.f32 %v13050_v6, %v1111_v34  ;;  %v1281_v20 = vmul.f32 %v10035_v51, %v9843_v26  ;;  %v10042_v15 = vld [vmem:[%s12843_s1 + $0x8] ss:$0 sm:$0xff]  ;;  %v13058_v38 = vld [vmem:[#allocation72_spill] sm:$0xff]  ;;  %v13073_v23 = vld [vmem:[#allocation69_spill] sm:$0xff] }
 0x1b3   : > { %8388 = vrcp.f32 %v10018_v21  ;;  %v1212_v9 = vadd.f32 %v1180_v53, %v13051_v63  ;;  %13053 = vst [vmem:[#allocation19_spill] sm:$0xff] %v10042_v15  ;;  %v1381_v47 = vmul.f32 %v10042_v15, %v13044_v46  ;;  %v1954_v62 = vadd.f32 -0.0029546, %v1922_v12  ;;  %v13059_v46 = vld [vmem:[#allocation41_spill] sm:$0xff]  ;;  %v13063_v53 = vld [vmem:[#allocation74_spill] sm:$0xff] }
 0x1b4   : > { %v10046_v48 = vadd.f32 -0.014264739, %v2275_v5  ;;  %v1214_v8 = vadd.f32 %v13054_v30, %v1112_v55  ;;  %v1314_v59 = vadd.f32 %v13055_v14, %v1213_v32  ;;  %v1923_v31 = vmul.f32 %v1891_v7, %v9867_v17  ;;  %v13062_v12 = vld [vmem:[#allocation73_spill] sm:$0xff]  ;;  %v10119_v14 = vld [vmem:[#allocation2 + $0x80] sm:$0xff]  ;;  %13074 = vst [vmem:[#allocation41_spill] sm:$0xff] %v10185_v45 }
 0x1b5   : > { %v1313_v16 = vadd.f32 %v1281_v20, %v1212_v9  ;;  %v1382_v26 = vmul.f32 %v10042_v15, %v13046_v61  ;;  %v1413_v28 = vadd.f32 %v1381_v47, %v13056_v11  ;;  %v3838_v27 = vmax.f32 %v9949_v43, %v3837_v52  ;;  %v10068_v61 = vld [vmem:[%s12844_s2] ss:$0 sm:$0xff]  ;;  %v13065_v55 = vld [vmem:[#allocation49_spill] sm:$0xff]  ;;  %v13069_v11 = vld [vmem:[#allocation51_spill] sm:$0xff] }
 0x1b6   : > { %8390 = vrcp.f32 %v10046_v48  ;;  %v1315_v36 = vadd.f32 %v13057_v4, %v1214_v8  ;;  %v1415_v24 = vadd.f32 %v13058_v38, %v1314_v59  ;;  %v3845_v25 = vmax.f32 %v9952_v41, %v3844_v18  ;;  %13061 = vst [vmem:[#allocation67_spill] sm:$0xff] %v10068_v61  ;;  %v10189_v35 = vld [vmem:[#allocation2 + $0x82] sm:$0xff] }
 0x1b7   : > { %v810_v13 = vadd.f32 %v13060_v22, %v13059_v46  ;;  %v1414_v2 = vadd.f32 %v1382_v26, %v1313_v16  ;;  %v1452_v43 = vadd.f32 %v10068_v61, %v1413_v28  ;;  %v3852_v52 = vmax.f32 %v9954_v3, %v3851_v60  ;;  %13075 = vst [vmem:[#allocation75_spill] sm:$0xff] %v10189_v35 }
 0x1b8   : > { %v1986_v39 = vmul.f32 %v1954_v62, %v9835_v19  ;;  %v1416_v49 = vadd.f32 %v13062_v12, %v1315_v36  ;;  %v10077_v41 = vadd.f32 %v10068_v61, %v1415_v24  ;;  %v10081_v18 = vsel %vm278_vm0, %v9965_v10, -inf  ;;  %v13064_v10 = vld [vmem:[#allocation76_spill] sm:$0xff]  ;;  %v10144_v36 = vld [vmem:[#allocation2 + $0x81] sm:$0xff]  ;;  %v13070_v24 = vld [vmem:[#allocation61_spill] sm:$0xff] }
 0x1b9   : > { %v1955_v44 = vadd.f32 -0.0029546, %v1923_v31  ;;  %v10084_v1 = vadd.f32 %v10068_v61, %v1414_v2  ;;  %v1516_v34 = vmul.f32 0.70710677, %v1452_v43  ;;  %v10088_v7 = vsel %vm278_vm0, %v9981_v56, -inf }
 0x1ba   : > { %v10091_v19 = vsel %vm278_vm0, %v3824_v40, -inf  ;;  %v10094_v3 = vadd.f32 %v10068_v61, %v1416_v49  ;;  %v1518_v60 = vmul.f32 0.70710677, %v10077_v41  ;;  %v811_v5 = vadd.f32 %v13064_v10, %v13063_v53  ;;  %v10167_v53 = vld [vmem:[%s12843_s1 + $0x1] ss:$0 sm:$0xff] }
 0x1bb   : > { %v911_v6 = vadd.f32 %v13065_v55, %v810_v13  ;;  %v1517_v32 = vmul.f32 0.70710677, %v10084_v1  ;;  %v10101_v63 = vclamps-f32 %v1516_v34, 4.0  ;;  %v10104_v56 = vsel %vm278_vm0, %v3831_v37, -inf  ;;  %v10155_v13 = vld [vmem:[%s12843_s1] ss:$0 sm:$0xff] }
 0x1bc   : > { %v2018_v9 = vadd.f32 -0.016096033, %v1986_v39  ;;  %v1519_v40 = vmul.f32 0.70710677, %v10094_v3  ;;  %v10107_v20 = vclamps-f32 %v1518_v60, 4.0  ;;  %v10110_v47 = vsel %vm278_vm0, %v3838_v27, -inf }
 0x1bd   : > { %v1987_v62 = vmul.f32 %v1955_v44, %v9867_v17  ;;  %v10113_v30 = vclamps-f32 %v1517_v32, 4.0  ;;  %v10117_v8 = vmul.f32 %v10101_v63, %v10101_v63  ;;  %v10122_v37 = vsel %vm278_vm0, %v3845_v25, -inf  ;;  %v13067_v17 = vld [vmem:[#allocation16_spill] sm:$0xff] }
 0x1be   : > { %v10125_v59 = vsel %vm278_vm0, %v3852_v52, -inf  ;;  %v10127_v31 = vclamps-f32 %v1519_v40, 4.0  ;;  %v10131_v16 = vmul.f32 %v10107_v20, %v10107_v20  ;;  %v10134_v26 = vadd.f32 %v13067_v17, %v811_v5 }
 0x1bf   : > { %v10137_v28 = vadd.f32 %v13069_v11, %v911_v6  ;;  %v10141_v27 = vmul.f32 %v10113_v30, %v10113_v30  ;;  %v1644_v4 = vmul.f32 -2.7261424e-10, %v10117_v8  ;;  %v2050_v25 = vmul.f32 %v13070_v24, %v2018_v9 }
 0x1c0   : > { %13066 = vst [vmem:[#allocation53_spill] sm:$0xff] %v10127_v31  ;;  %13068 = vst [vmem:[#allocation39_spill] sm:$0xff] %v10134_v26  ;;  %v8389_v38 = vpop.eup %8388  ;;  %v10149_v46 = vmul.f32 %v10127_v31, %v10127_v31  ;;  %v1646_v22 = vmul.f32 -2.7261424e-10, %v10131_v16  ;;  %v583_v2 = vmul.f32 %v10155_v13, %v10119_v14  ;;  %v2019_v52 = vadd.f32 -0.016096033, %v1987_v62 }
 0x1c1   : > { %v2370_v39 = vmul.f32 %v8389_v38, %v10018_v21  ;;  %v1645_v12 = vmul.f32 -2.7261424e-10, %v10141_v27  ;;  %v1676_v49 = vadd.f32 2.7706815e-08, %v1644_v4  ;;  %v10161_v44 = vmul.f32 0.5, %v1452_v43 }
 0x1c2   : > { %v1647_v34 = vmul.f32 -2.7261424e-10, %v10149_v46  ;;  %v1678_v60 = vadd.f32 2.7706815e-08, %v1646_v22  ;;  %v684_v10 = vmul.f32 %v10167_v53, %v10144_v36  ;;  %v2060_v32 = vmul.f32 -1.45660715e-05, %v10117_v8 }
 0x1c3   : > { %13071 = vst [vmem:[#allocation71_spill] sm:$0xff] %v10161_v44  ;;  %v8391_v5 = vpop.eup %8390  ;;  %v2402_v55 = vsub.f32 2.0, %v2370_v39  ;;  %v1677_v6 = vadd.f32 2.7706815e-08, %v1645_v12  ;;  %v1708_v21 = vmul.f32 %v1676_v49, %v10117_v8  ;;  %v2061_v62 = vmul.f32 -1.45660715e-05, %v10141_v27 }
 0x1c4   : > { %v2371_v43 = vmul.f32 %v8391_v5, %v10046_v48  ;;  %v1679_v9 = vadd.f32 2.7706815e-08, %v1647_v34  ;;  %v1710_v40 = vmul.f32 %v1678_v60, %v10131_v16  ;;  %v2062_v24 = vmul.f32 -1.45660715e-05, %v10131_v16 }
 0x1c5   : > { %v2434_v17 = vmul.f32 %v8389_v38, %v2402_v55  ;;  %v1709_v11 = vmul.f32 %v1677_v6, %v10141_v27  ;;  %v1740_v4 = vadd.f32 -2.101024e-06, %v1708_v21  ;;  %v2063_v49 = vmul.f32 -1.45660715e-05, %v10149_v46 }
 0x1c6   : > { %v2403_v22 = vsub.f32 2.0, %v2371_v43  ;;  %v1711_v39 = vmul.f32 %v1679_v9, %v10149_v46  ;;  %v1742_v12 = vadd.f32 -2.101024e-06, %v1710_v40  ;;  %v10181_v48 = vmul.f32 0.5, %v10077_v41 }
 0x1c7   : > { %v2466_v33 = vmul.f32 %v2434_v17, %v2050_v25  ;;  %v1741_v34 = vadd.f32 -2.101024e-06, %v1709_v11  ;;  %v1772_v60 = vmul.f32 %v1740_v4, %v10117_v8  ;;  %v2051_v38 = vmul.f32 %v13073_v23, %v2019_v52  ;;  %v13076_v4 = vld [vmem:[#allocation68_spill] sm:$0xff] }
 0x1c8   : > { %13072 = vst [vmem:[#allocation72_spill] sm:$0xff] %v10181_v48  ;;  %v2435_v55 = vmul.f32 %v8391_v5, %v2403_v22  ;;  %v2092_v6 = vadd.f32 -0.00021337405, %v2060_v32  ;;  %v2093_v21 = vadd.f32 -0.00021337405, %v2061_v62  ;;  %v10187_v40 = vadd.f32 %v684_v10, %v583_v2  ;;  %v13079_v22 = vld [vmem:[#allocation7_spill] sm:$0xff] }
 0x1c9   : > { %v2498_v43 = vadd.f32 1.0, %v2466_v33  ;;  %v1743_v42 = vadd.f32 -2.101024e-06, %v1711_v39  ;;  %v2094_v9 = vadd.f32 -0.00021337405, %v2062_v24  ;;  %v1773_v41 = vmul.f32 %v1741_v34, %v10141_v27  ;;  %v13080_v34 = vld [vmem:[#allocation22_spill] sm:$0xff] }
 0x1ca   : > { %v2467_v25 = vmul.f32 %v2435_v55, %v2051_v38  ;;  %v1774_v17 = vmul.f32 %v1742_v12, %v10131_v16  ;;  %v2095_v11 = vadd.f32 -0.00021337405, %v2063_v49  ;;  %v10195_v52 = vmul.f32 0.5, %v10084_v1  ;;  %v10200_v33 = vld [vmem:[%s12843_s1 + $0x2] ss:$0 sm:$0xff] }
 0x1cb   : > { %v2530_v23 = vmul.f32 %v2498_v43, %v13076_v4  ;;  %v1804_v5 = vadd.f32 -5.6925062e-05, %v1772_v60  ;;  %13078 = vst [vmem:[#allocation74_spill] sm:$0xff] %v10200_v33  ;;  %v10204_v2 = vmul.f32 %v10200_v33, %v10185_v45  ;;  %v2124_v32 = vmul.f32 %v2092_v6, %v10117_v8 }
 0x1cc   : > { %13077 = vst [vmem:[#allocation73_spill] sm:$0xff] %v10195_v52  ;;  %v2499_v10 = vadd.f32 1.0, %v2467_v25  ;;  %v10208_v62 = vmul.f32 %v2093_v21, %v10141_v27  ;;  %v10212_v1 = vmul.f32 %v10200_v33, %v10189_v35  ;;  %v1775_v12 = vmul.f32 %v1743_v42, %v10149_v46 }
 0x1cd   : > { %v2946_v24 = vcombine.high %v2530_v23, %v2530_v23  ;;  %v2953_v39 = vrot.slane %v2530_v23, %v13079_v22  ;;  %v10217_v49 = vmul.f32 %v2094_v9, %v10131_v16  ;;  %v1805_v38 = vadd.f32 -5.6925062e-05, %v1773_v41 }
 0x1ce   : > { %v2531_v60 = vmul.f32 %v2499_v10, %v13080_v34  ;;  %v1806_v55 = vadd.f32 -5.6925062e-05, %v1774_v17  ;;  %v10221_v6 = vmul.f32 %v2095_v11, %v10149_v46  ;;  %v1836_v4 = vmul.f32 %v1804_v5, %v10117_v8 }
 0x1cf   : > { %v2960_v21 = vrot.slane %v2946_v24, %v13079_v22  ;;  %v2961_v43 = vcombine.high %v2953_v39, %v2953_v39  ;;  %v3860_v25 = vsel %vm281_vm2, %v2953_v39, -inf  ;;  %v10227_v9 = vadd.f32 -0.001682827, %v2124_v32 }
 0x1d0   : > { %v2963_v23 = vcombine.high %v2531_v60, %v2531_v60  ;;  %v2970_v42 = vrot.slane %v2531_v60, %v13079_v22  ;;  %v3861_v54 = vrot.slane %v3860_v25, 4  ;;  %v1807_v11 = vadd.f32 -5.6925062e-05, %v1775_v12 }
 0x1d1   : > { %v2962_v29 = vcombine.high %v2960_v21, %v2960_v21  ;;  %v3867_v41 = vsel %vm281_vm2, %v2961_v43, -inf  ;;  %v3874_v17 = vsel %vm281_vm2, %v2960_v21, -inf  ;;  %v1838_v60 = vmul.f32 %v1806_v55, %v10131_v16 }
 0x1d2   : > { %v2977_v10 = vrot.slane %v2963_v23, %v13079_v22  ;;  %v2978_v24 = vcombine.high %v2970_v42, %v2970_v42  ;;  %v3862_v34 = vmax.f32 %v3860_v25, %v3861_v54  ;;  %v3868_v48 = vrot.slane %v3867_v41, 4 }
 0x1d3   : > { %v3875_v39 = vrot.slane %v3874_v17, 4  ;;  %v3881_v5 = vsel %vm281_vm2, %v2962_v29, -inf  ;;  %v3888_v52 = vsel %vm281_vm2, %v2970_v42, -inf  ;;  %v1837_v43 = vmul.f32 %v1805_v38, %v10141_v27 }
 0x1d4   : > { %v3863_v32 = vrot.slane %v3862_v34, 2  ;;  %v3869_v44 = vmax.f32 %v3867_v41, %v3868_v48  ;;  %v3882_v15 = vrot.slane %v3881_v5, 4  ;;  %v3889_v21 = vrot.slane %v3888_v52, 4 }
 0x1d5   : > { %v3876_v51 = vmax.f32 %v3874_v17, %v3875_v39  ;;  %v3895_v12 = vsel %vm281_vm2, %v2978_v24, -inf  ;;  %v3902_v23 = vsel %vm281_vm2, %v2977_v10, -inf  ;;  %v10238_v35 = vadd.f32 -0.00073499064, %v1836_v4 }
 0x1d6   : > { %v3864_v54 = vmax.f32 %v3862_v34, %v3863_v32  ;;  %v3870_v25 = vrot.slane %v3869_v44, 2  ;;  %v3883_v22 = vmax.f32 %v3881_v5, %v3882_v15  ;;  %v3896_v0 = vrot.slane %v3895_v12, 4 }
 0x1d7   : > { %v3877_v29 = vrot.slane %v3876_v51, 2  ;;  %v3890_v26 = vmax.f32 %v3888_v52, %v3889_v21  ;;  %v3903_v42 = vrot.slane %v3902_v23, 4  ;;  %v2979_v38 = vcombine.high %v2977_v10, %v2977_v10 }
 0x1d8   : > { %v3865_v55 = vrot.slane %v3864_v54, 1  ;;  %v3871_v48 = vmax.f32 %v3869_v44, %v3870_v25  ;;  %v3884_v41 = vrot.slane %v3883_v22, 2  ;;  %v3897_v58 = vmax.f32 %v3895_v12, %v3896_v0 }
 0x1d9   : > { %v3878_v17 = vmax.f32 %v3876_v51, %v3877_v29  ;;  %v3891_v39 = vrot.slane %v3890_v26, 2  ;;  %v3904_v45 = vmax.f32 %v3902_v23, %v3903_v42  ;;  %v1839_v52 = vmul.f32 %v1807_v11, %v10149_v46 }
 0x1da   : > { %v3866_v24 = vmax.f32 %v3864_v54, %v3865_v55  ;;  %v3872_v31 = vrot.slane %v3871_v48, 1  ;;  %v3885_v33 = vmax.f32 %v3883_v22, %v3884_v41  ;;  %v3898_v34 = vrot.slane %v3897_v58, 2 }
 0x1db   : > { %v3879_v32 = vrot.slane %v3878_v17, 1  ;;  %v3892_v15 = vmax.f32 %v3890_v26, %v3891_v39  ;;  %v3905_v5 = vrot.slane %v3904_v45, 2  ;;  %v3909_v51 = vsel %vm281_vm2, %v2979_v38, -inf }
 0x1dc   : > { %v3873_v21 = vmax.f32 %v3871_v48, %v3872_v31  ;;  %v3886_v4 = vrot.slane %v3885_v33, 1  ;;  %v3899_v61 = vmax.f32 %v3897_v58, %v3898_v34  ;;  %v4261_v44 = vsel %vm278_vm0, %v3866_v24, -inf }
 0x1dd   : > { %v3880_v25 = vmax.f32 %v3878_v17, %v3879_v32  ;;  %v3893_v0 = vrot.slane %v3892_v15, 1  ;;  %v3906_v10 = vmax.f32 %v3904_v45, %v3905_v5  ;;  %v4262_v22 = vmax.f32 %v10081_v18, %v4261_v44 }
 0x1de   : > { %v3887_v12 = vmax.f32 %v3885_v33, %v3886_v4  ;;  %v3900_v23 = vrot.slane %v3899_v61, 1  ;;  %v4264_v54 = vsel %vm278_vm0, %v3873_v21, -inf  ;;  %v1870_v31 = vadd.f32 -0.00073499064, %v1838_v60 }
 0x1df   : > { %v3894_v26 = vmax.f32 %v3892_v15, %v3893_v0  ;;  %v3907_v29 = vrot.slane %v3906_v10, 1  ;;  %v4265_v11 = vmax.f32 %v10088_v7, %v4264_v54  ;;  %v4267_v42 = vsel %vm278_vm0, %v3880_v25, -inf }
 0x1e0   : > { %v3901_v58 = vmax.f32 %v3899_v61, %v3900_v23  ;;  %v4270_v55 = vsel %vm278_vm0, %v3887_v12, -inf  ;;  %v8015_v45 = vpack.c.bf16 %v4262_v22, %v4262_v22  ;;  %v3910_v33 = vrot.slane %v3909_v51, 4 }
 0x1e1   : > { %v3908_v48 = vmax.f32 %v3906_v10, %v3907_v29  ;;  %v4268_v41 = vmax.f32 %v10091_v19, %v4267_v42  ;;  %v4271_v18 = vmax.f32 %v10104_v56, %v4270_v55  ;;  %v4273_v38 = vsel %vm278_vm0, %v3894_v26, -inf  ;;  %v13084_v55 = vld [vmem:[#allocation25_spill] sm:$0xff] }
 0x1e2   : > { %v4276_v7 = vsel %vm278_vm0, %v3901_v58, -inf  ;;  %v8016_v60 = vpack.c.bf16 %v4265_v11, %v4265_v11  ;;  %v1869_v17 = vadd.f32 -0.00073499064, %v1837_v43  ;;  %v4274_v61 = vmax.f32 %v10110_v47, %v4273_v38 }
 0x1e3   : > { %v4277_v39 = vmax.f32 %v10122_v37, %v4276_v7  ;;  %v4279_v24 = vsel %vm278_vm0, %v3908_v48, -inf  ;;  %v4699_v34 = vunpack.c.l.b16 %v8015_v45  ;;  %v8017_v19 = vpack.c.bf16 %v4268_v41, %v4268_v41 }
 0x1e4   : > { %v10256_v32 = vmax.f32 %v10125_v59, %v4279_v24  ;;  %v8018_v15 = vpack.c.bf16 %v4271_v18, %v4271_v18  ;;  %v4700_v56 = vunpack.c.l.b16 %v8016_v60  ;;  %v3911_v5 = vmax.f32 %v3909_v51, %v3910_v33  ;;  %v13081_v59 = vld [vmem:[#allocation56_spill] sm:$0xff] }
 0x1e5   : > { %v8019_v21 = vpack.c.bf16 %v4274_v61, %v4274_v61  ;;  %v8020_v4 = vpack.c.bf16 %v4277_v39, %v4277_v39  ;;  %v1871_v44 = vadd.f32 -0.00073499064, %v1839_v52  ;;  %v4701_v25 = vunpack.c.l.b16 %v8017_v19  ;;  %v13085_v19 = vld [vmem:[#allocation10_spill] sm:$0xff] }
 0x1e6   : > { %v4702_v0 = vunpack.c.l.b16 %v8018_v15  ;;  %v4759_v43 = vsel %vm4723_vm3, %v4700_v56, %v4699_v34  ;;  %v1900_v47 = vmul.f32 %v10238_v35, %v10117_v8  ;;  %v2157_v37 = vadd.f32 -0.001682827, %v10208_v62  ;;  %v13086_v56 = vld [vmem:[#allocation26_spill] sm:$0xff] }
 0x1e7   : > { %v2158_v10 = vadd.f32 -0.001682827, %v10217_v49  ;;  %v816_v12 = vadd.f32 %v10204_v2, %v13081_v59  ;;  %v817_v51 = vadd.f32 %v10212_v1, %v10187_v40  ;;  %v4703_v23 = vunpack.c.l.b16 %v8019_v21 }
 0x1e8   : > { %v4760_v52 = vsel %vm4725_vm4, %v4701_v25, %v4759_v43  ;;  %v1901_v22 = vmul.f32 %v1869_v17, %v10141_v27  ;;  %v1902_v54 = vmul.f32 %v1870_v31, %v10131_v16  ;;  %v3912_v26 = vrot.slane %v3911_v5, 2  ;;  %v13083_v31 = vld [vmem:[#allocation9_spill] sm:$0xff]  ;;  %v13087_v43 = vld [vmem:[#allocation27_spill] sm:$0xff] }
 0x1e9   : > { %v4704_v29 = vunpack.c.l.b16 %v8020_v4  ;;  %v4761_v35 = vsel %vm4727_vm5, %v4702_v0, %v4760_v52  ;;  %v2159_v62 = vadd.f32 -0.001682827, %v10221_v6  ;;  %v1903_v2 = vmul.f32 %v1871_v44, %v10149_v46  ;;  %v13090_v52 = vld [vmem:[#allocation35_spill] sm:$0xff] }
 0x1ea   : > { %v4762_v49 = vsel %vm4729_vm6, %v4703_v23, %v4761_v35  ;;  %v1932_v11 = vadd.f32 -0.0029546, %v1900_v47  ;;  %v2188_v40 = vmul.f32 %v10227_v9, %v10117_v8  ;;  %v2189_v58 = vmul.f32 %v2157_v37, %v10141_v27  ;;  %v13088_v47 = vld [vmem:[#allocation28_spill] sm:$0xff] }
 0x1eb   : > { %v10277_v1 = vsel %vm4731_vm7, %v4704_v29, %v4762_v49  ;;  %v917_v42 = vadd.f32 %v13083_v31, %v816_v12  ;;  %v918_v45 = vadd.f32 %v13084_v55, %v817_v51  ;;  %v1933_v48 = vadd.f32 -0.0029546, %v1901_v22  ;;  %v13089_v51 = vld [vmem:[#allocation13_spill] sm:$0xff]  ;;  %v13091_v49 = vld [vmem:[#allocation14_spill] sm:$0xff] }
 0x1ec   : > { %13082 = vst [vmem:[#allocation76_spill] sm:$0xff] %v10277_v1  ;;  %v1934_v33 = vadd.f32 -0.0029546, %v1902_v54  ;;  %v2190_v6 = vmul.f32 %v2158_v10, %v10131_v16  ;;  %v2191_v41 = vmul.f32 %v2159_v62, %v10149_v46  ;;  %v3913_v18 = vmax.f32 %v3911_v5, %v3912_v26  ;;  %v10314_v54 = vld [vmem:[#allocation2 + $0x68] sm:$0xff] }
 0x1ed   : > { %v10285_v38 = vmul.f32 0.5, %v10094_v3  ;;  %v2220_v9 = vadd.f32 -0.0073733293, %v2188_v40  ;;  %v2221_v7 = vadd.f32 -0.0073733293, %v2189_v58  ;;  %v1964_v17 = vmul.f32 %v1932_v11, %v10117_v8  ;;  %v10316_v26 = vld [vmem:[#allocation2 + $0x69] sm:$0xff] }
 0x1ee   : > { %v1935_v60 = vadd.f32 -0.0029546, %v1903_v2  ;;  %v2222_v61 = vadd.f32 -0.0073733293, %v2190_v6  ;;  %v2223_v39 = vadd.f32 -0.0073733293, %v2191_v41  ;;  %v1018_v15 = vadd.f32 %v13085_v19, %v917_v42 }
 0x1ef   : > { %v2252_v24 = vmul.f32 %v2220_v9, %v10117_v8  ;;  %v2253_v34 = vmul.f32 %v2221_v7, %v10141_v27  ;;  %v1019_v21 = vadd.f32 %v13086_v56, %v918_v45  ;;  %v1965_v5 = vmul.f32 %v1933_v48, %v10141_v27  ;;  %v13092_v11 = vld [vmem:[#allocation36_spill] sm:$0xff]  ;;  %v10329_v42 = vld [vmem:[#allocation2 + $0x62] sm:$0xff]  ;;  %v13094_v48 = vld [vmem:[#allocation37_spill] sm:$0xff] }
 0x1f0   : > { %v1966_v3 = vmul.f32 %v1934_v33, %v10131_v16  ;;  %v2254_v4 = vmul.f32 %v2222_v61, %v10131_v16  ;;  %v2255_v44 = vmul.f32 %v2223_v39, %v10149_v46  ;;  %v1119_v8 = vadd.f32 %v13087_v43, %v1018_v15  ;;  %v13095_v6 = vld [vmem:[#allocation38_spill] sm:$0xff]  ;;  %v13102_v56 = vld [vmem:[#allocation65_spill] sm:$0xff]  ;;  %v13104_v43 = vld [vmem:[#allocation39_spill] sm:$0xff] }
 0x1f1   : > { %v10296_v25 = vadd.f32 -0.014264739, %v2252_v24  ;;  %v10298_v0 = vadd.f32 -0.014264739, %v2253_v34  ;;  %v1120_v37 = vadd.f32 %v13088_v47, %v1019_v21  ;;  %v1967_v10 = vmul.f32 %v1935_v60, %v10149_v46  ;;  %v10354_v24 = vld [vmem:[#allocation2 + $0x6a] sm:$0xff]  ;;  %v13099_v34 = vld [vmem:[#allocation74_spill] sm:$0xff] }
 0x1f2   : > { %v10303_v59 = vadd.f32 -0.014264739, %v2254_v4  ;;  %v10305_v12 = vadd.f32 -0.014264739, %v2255_v44  ;;  %v10309_v27 = vmul.f32 %v9987_v50, %v10119_v14  ;;  %v3914_v16 = vrot.slane %v3913_v18, 1 }
 0x1f3   : > { %8392 = vrcp.f32 %v10296_v25  ;;  %v1221_v23 = vadd.f32 %v13089_v51, %v1119_v8  ;;  %v1222_v22 = vadd.f32 %v13090_v52, %v1120_v37  ;;  %v8021_v46 = vpack.c.bf16 %v10256_v32, %v10256_v32  ;;  %v13105_v8 = vld [vmem:[#allocation42_spill] sm:$0xff]  ;;  %v13106_v37 = vld [vmem:[#allocation21_spill] sm:$0xff] }
 0x1f4   : > { %v1996_v29 = vadd.f32 -0.016096033, %v1964_v17  ;;  %v1997_v35 = vadd.f32 -0.016096033, %v1965_v5  ;;  %8394 = vrcp.f32 %v10298_v0  ;;  %v1998_v62 = vadd.f32 -0.016096033, %v1966_v3 }
 0x1f5   : > { %8396 = vrcp.f32 %v10303_v59  ;;  %v1322_v2 = vadd.f32 %v13091_v49, %v1221_v23  ;;  %v1323_v40 = vadd.f32 %v13092_v11, %v1222_v22  ;;  %v1999_v58 = vadd.f32 -0.016096033, %v1967_v10  ;;  %v13098_v17 = vld [vmem:[#allocation67_spill] sm:$0xff]  ;;  %v479_v49 = vpop.permute.xlu1 %478  ;;  %v13112_v11 = vld [vmem:[#allocation45_spill] sm:$0xff] }
 0x1f6   : > { %8398 = vrcp.f32 %v10305_v12  ;;  %v581_v31 = vmul.f32 %v10155_v13, %v10314_v54  ;;  %v682_v32 = vmul.f32 %v10167_v53, %v10316_v26  ;;  %v10331_v55 = vmax.f32 %v3913_v18, %v3914_v16  ;;  %v13097_v53 = vld [vmem:[#allocation50_spill] sm:$0xff]  ;;  %v13103_v5 = vld [vmem:[#allocation75_spill] sm:$0xff]  ;;  %v13107_v16 = vld [vmem:[#allocation52_spill] sm:$0xff]  ;;  %530 = vst.msk [vmem:[#allocation2 + $0x159] sm:$0xff] %vm278_vm0, %v479_v49 }
 0x1f7   : > { %v10335_v45 = vmul.f32 %v9994_v57, %v10144_v36  ;;  %v1423_v33 = vadd.f32 %v13094_v48, %v1322_v2  ;;  %v1424_v41 = vadd.f32 %v13095_v6, %v1323_v40  ;;  %v10339_v9 = vunpack.c.l.b16 %v8021_v46  ;;  %v13108_v23 = vld [vmem:[#allocation47_spill] sm:$0xff]  ;;  %v475_v2 = vpop.permute.xlu0 %474  ;;  %v13113_v40 = vld [vmem:[#allocation46_spill] sm:$0xff] }
 0x1f8   : > { %13093 = vst [vmem:[#allocation49_spill] sm:$0xff] %v10331_v55  ;;  %v10342_v7 = vmul.f32 %v10101_v63, %v1996_v29  ;;  %v10345_v13 = vmul.f32 %v10113_v30, %v1997_v35  ;;  %v1113_v18 = vadd.f32 %v13097_v53, %v10137_v28  ;;  %v10350_v60 = vmul.f32 %v10107_v20, %v1998_v62  ;;  %v13100_v63 = vld [vmem:[#allocation53_spill] sm:$0xff]  ;;  %v13109_v22 = vld [vmem:[#allocation19_spill] sm:$0xff]  ;;  %v13111_v62 = vld [vmem:[#allocation44_spill] sm:$0xff] }
 0x1f9   : > { %13096 = vst [vmem:[#allocation16_spill] sm:$0xff] %v10339_v9  ;;  %v1462_v61 = vadd.f32 %v13098_v17, %v1423_v33  ;;  %v1463_v39 = vadd.f32 %v13098_v17, %v1424_v41  ;;  %v782_v19 = vmul.f32 %v13099_v34, %v10329_v42  ;;  %v10359_v15 = vmul.f32 %v13100_v63, %v1999_v58  ;;  %v13101_v30 = vld [vmem:[#allocation41_spill] sm:$0xff]  ;;  %v13115_v41 = vld [vmem:[#allocation66_spill] sm:$0xff] }
 0x1fa   : > { %v10363_v21 = vmul.f32 %v13102_v56, %v13101_v30  ;;  %v714_v28 = vadd.f32 %v682_v32, %v581_v31  ;;  %v882_v20 = vmul.f32 %v9987_v50, %v10314_v54  ;;  %v10369_v3 = vmul.f32 %v13102_v56, %v13103_v5  ;;  %v13114_v32 = vld [vmem:[#allocation70_spill] sm:$0xff]  ;;  %529 = vst.msk [vmem:[#allocation2 + $0x151] sm:$0xff] %vm278_vm0, %v475_v2 }
 0x1fb   : > { %v1526_v4 = vmul.f32 0.70710677, %v1462_v61  ;;  %v1527_v44 = vmul.f32 0.70710677, %v1463_v39  ;;  %v1013_v47 = vadd.f32 %v13105_v8, %v13104_v43  ;;  %v10375_v10 = vmul.f32 %v13106_v37, %v10119_v14 }
 0x1fc   : > { %v10379_v51 = vmul.f32 %v13107_v16, %v10144_v36  ;;  %v1215_v52 = vadd.f32 %v13108_v23, %v1113_v18  ;;  %v783_v50 = vmul.f32 %v13099_v34, %v10354_v24  ;;  %v10386_v46 = vmul.f32 %v13109_v22, %v13101_v30 }
 0x1fd   : > { %v10388_v29 = vclamps-f32 %v1526_v4, 4.0  ;;  %v10390_v35 = vclamps-f32 %v1527_v44, 4.0  ;;  %v814_v14 = vadd.f32 %v782_v19, %v13111_v62  ;;  %v10395_v36 = vmul.f32 %v13109_v22, %v13103_v5  ;;  %v13117_v19 = vld [vmem:[#allocation48_spill] sm:$0xff] }
 0x1fe   : > { %v1014_v58 = vadd.f32 %v13113_v40, %v13112_v11  ;;  %v815_v31 = vadd.f32 %v783_v50, %v714_v28  ;;  %v914_v48 = vadd.f32 %v882_v20, %v13114_v32  ;;  %v1114_v53 = vadd.f32 %v13115_v41, %v1013_v47  ;;  %v13120_v41 = vld [vmem:[#allocation55_spill] sm:$0xff] }
 0x1ff   : > { %13110 = vst [vmem:[#allocation51_spill] sm:$0xff] %v10390_v35  ;;  %v10404_v33 = vmul.f32 %v10388_v29, %v10388_v29  ;;  %v10408_v6 = vmul.f32 %v10390_v35, %v10390_v35  ;;  %v983_v18 = vmul.f32 %v9994_v57, %v10316_v26  ;;  %v10413_v34 = vmul.f32 0.5, %v1462_v61  ;;  %v13119_v57 = vld [vmem:[#allocation54_spill] sm:$0xff] }
 0x200   : > { %v8393_v17 = vpop.eup %8392  ;;  %v10416_v63 = vadd.f32 %v13117_v19, %v1215_v52  ;;  %v1083_v30 = vmul.f32 %v13102_v56, %v10329_v42  ;;  %v1084_v28 = vmul.f32 %v13102_v56, %v10354_v24  ;;  %v10423_v4 = vmul.f32 0.5, %v1463_v39 }
 0x201   : > { %13116 = vst [vmem:[#allocation61_spill] sm:$0xff] %v10413_v34  ;;  %v8395_v20 = vpop.eup %8394  ;;  %v2348_v5 = vmul.f32 %v8393_v17, %v10296_v25  ;;  %v1654_v44 = vmul.f32 -2.7261424e-10, %v10404_v33  ;;  %v915_v43 = vadd.f32 %v13119_v57, %v814_v14  ;;  %v1655_v47 = vmul.f32 -2.7261424e-10, %v10408_v6 }
 0x202   : > { %13118 = vst [vmem:[#allocation69_spill] sm:$0xff] %v10423_v4  ;;  %v8397_v61 = vpop.eup %8396  ;;  %v2349_v8 = vmul.f32 %v8395_v20, %v10298_v0  ;;  %v916_v23 = vadd.f32 %v10309_v27, %v815_v31  ;;  %v1015_v52 = vadd.f32 %v983_v18, %v914_v48  ;;  %v2070_v25 = vmul.f32 -1.45660715e-05, %v10404_v33 }
 0x203   : > { %v8399_v50 = vpop.eup %8398  ;;  %v2350_v56 = vmul.f32 %v8397_v61, %v10303_v59  ;;  %v2380_v62 = vsub.f32 2.0, %v2348_v5  ;;  %v1115_v39 = vadd.f32 %v1083_v30, %v1014_v58  ;;  %v2071_v14 = vmul.f32 -1.45660715e-05, %v10408_v6 }
 0x204   : > { %v2351_v49 = vmul.f32 %v8399_v50, %v10305_v12  ;;  %v2381_v2 = vsub.f32 2.0, %v2349_v8  ;;  %v1184_v0 = vmul.f32 %v13106_v37, %v10314_v54  ;;  %v1686_v32 = vadd.f32 2.7706815e-08, %v1654_v44 }
 0x205   : > { %v2382_v11 = vsub.f32 2.0, %v2350_v56  ;;  %v2412_v40 = vmul.f32 %v8393_v17, %v2380_v62  ;;  %v10438_v27 = vmul.f32 %v13107_v16, %v10316_v26  ;;  %v1687_v48 = vadd.f32 2.7706815e-08, %v1655_v47 }
 0x206   : > { %v2383_v59 = vsub.f32 2.0, %v2351_v49  ;;  %v2413_v31 = vmul.f32 %v8395_v20, %v2381_v2  ;;  %v1016_v58 = vadd.f32 %v13120_v41, %v915_v43  ;;  %v2102_v19 = vadd.f32 -0.00021337405, %v2070_v25  ;;  %v13121_v20 = vld [vmem:[#allocation57_spill] sm:$0xff] }
 0x207   : > { %v2414_v18 = vmul.f32 %v8397_v61, %v2382_v11  ;;  %v2444_v12 = vmul.f32 %v2412_v40, %v10342_v7  ;;  %v1017_v30 = vadd.f32 %v10335_v45, %v916_v23  ;;  %v2103_v37 = vadd.f32 -0.00021337405, %v2071_v14  ;;  %v13122_v45 = vld [vmem:[#allocation71_spill] sm:$0xff]  ;;  %v13125_v40 = vld [vmem:[#allocation58_spill] sm:$0xff] }
 0x208   : > { %v2415_v5 = vmul.f32 %v8399_v50, %v2383_v59  ;;  %v2445_v54 = vmul.f32 %v2413_v31, %v10345_v13  ;;  %v1116_v17 = vadd.f32 %v1084_v28, %v1015_v52  ;;  %v1718_v16 = vmul.f32 %v1686_v32, %v10404_v33  ;;  %v13123_v52 = vld [vmem:[#allocation73_spill] sm:$0xff] }
 0x209   : > { %v2446_v44 = vmul.f32 %v2414_v18, %v10350_v60  ;;  %v2476_v26 = vadd.f32 1.0, %v2444_v12  ;;  %v1217_v57 = vadd.f32 %v13121_v20, %v1115_v39  ;;  %v1719_v7 = vmul.f32 %v1687_v48, %v10408_v6  ;;  %v13127_v48 = vld [vmem:[#allocation11_spill] sm:$0xff] }
 0x20a   : > { %v2447_v43 = vmul.f32 %v2415_v5, %v10359_v15  ;;  %v2477_v61 = vadd.f32 1.0, %v2445_v54  ;;  %v10449_v8 = vadd.f32 %v1184_v0, %v1114_v53  ;;  %v2134_v13 = vmul.f32 %v2102_v19, %v10404_v33  ;;  %v13124_v53 = vld [vmem:[#allocation7_spill] sm:$0xff] }
 0x20b   : > { %v2508_v47 = vmul.f32 %v2476_v26, %v13122_v45  ;;  %v1117_v28 = vadd.f32 %v10363_v21, %v1016_v58  ;;  %v10456_v60 = vmul.f32 %v13109_v22, %v10329_v42  ;;  %v2478_v23 = vadd.f32 1.0, %v2446_v44 }
 0x20c   : > { %v2509_v50 = vmul.f32 %v2477_v61, %v13123_v52  ;;  %v2135_v15 = vmul.f32 %v2103_v37, %v10408_v6  ;;  %v1118_v56 = vadd.f32 %v10369_v3, %v1017_v30  ;;  %v1750_v39 = vadd.f32 -2.101024e-06, %v1718_v16  ;;  %v13126_v3 = vld [vmem:[#allocation72_spill] sm:$0xff] }
 0x20d   : > { %v2572_v62 = vcombine.high %v2508_v47, %v2508_v47  ;;  %v2579_v25 = vrot.slane %v2508_v47, %v13124_v53  ;;  %v10463_v49 = vadd.f32 %v10375_v10, %v1116_v17  ;;  %v2479_v2 = vadd.f32 1.0, %v2447_v43  ;;  %v13128_v10 = vld [vmem:[#allocation29_spill] sm:$0xff] }
 0x20e   : > { %v2589_v21 = vcombine.high %v2509_v50, %v2509_v50  ;;  %v2596_v14 = vrot.slane %v2509_v50, %v13124_v53  ;;  %v1751_v42 = vadd.f32 -2.101024e-06, %v1719_v7  ;;  %v2166_v11 = vadd.f32 -0.001682827, %v2134_v13 }
 0x20f   : > { %v2586_v22 = vrot.slane %v2572_v62, %v13124_v53  ;;  %v2587_v0 = vcombine.high %v2579_v25, %v2579_v25  ;;  %v10468_v32 = vadd.f32 %v13125_v40, %v1217_v57  ;;  %v2510_v59 = vmul.f32 %v2478_v23, %v13126_v3 }
 0x210   : > { %v2167_v31 = vadd.f32 -0.001682827, %v2135_v15  ;;  %v10472_v41 = vadd.f32 %v13127_v48, %v1117_v28  ;;  %v10475_v58 = vadd.f32 %v13128_v10, %v1118_v56  ;;  %v2603_v12 = vrot.slane %v2589_v21, %v13124_v53 }
 0x211   : > { %v2588_v18 = vcombine.high %v2586_v22, %v2586_v22  ;;  %v2604_v19 = vcombine.high %v2596_v14, %v2596_v14  ;;  %v3244_v30 = vsel %vm281_vm2, %v2579_v25, -inf  ;;  %v2511_v5 = vmul.f32 %v2479_v2, %v10285_v38 }
 0x212   : > { %v3245_v54 = vrot.slane %v3244_v30, 4  ;;  %v1782_v37 = vmul.f32 %v1750_v39, %v10404_v33  ;;  %v1783_v17 = vmul.f32 %v1751_v42, %v10408_v6  ;;  %v3251_v44 = vsel %vm281_vm2, %v2587_v0, -inf }
 0x213   : > { %v3258_v26 = vsel %vm281_vm2, %v2586_v22, -inf  ;;  %v3265_v16 = vsel %vm281_vm2, %v2588_v18, -inf  ;;  %v2198_v20 = vmul.f32 %v2166_v11, %v10404_v33  ;;  %v2606_v57 = vcombine.high %v2510_v59, %v2510_v59 }
 0x214   : > { %v3246_v43 = vmax.f32 %v3244_v30, %v3245_v54  ;;  %v3252_v61 = vrot.slane %v3251_v44, 4  ;;  %v3259_v7 = vrot.slane %v3258_v26, 4  ;;  %v3266_v45 = vrot.slane %v3265_v16, 4 }
 0x215   : > { %v3272_v38 = vsel %vm281_vm2, %v2596_v14, -inf  ;;  %v3279_v47 = vsel %vm281_vm2, %v2604_v19, -inf  ;;  %v3286_v13 = vsel %vm281_vm2, %v2603_v12, -inf  ;;  %v2605_v28 = vcombine.high %v2603_v12, %v2603_v12 }
 0x216   : > { %v2623_v23 = vcombine.high %v2511_v5, %v2511_v5  ;;  %v3247_v52 = vrot.slane %v3246_v43, 2  ;;  %v3253_v50 = vmax.f32 %v3251_v44, %v3252_v61  ;;  %v3260_v15 = vmax.f32 %v3258_v26, %v3259_v7 }
 0x217   : > { %v3267_v56 = vmax.f32 %v3265_v16, %v3266_v45  ;;  %v3273_v62 = vrot.slane %v3272_v38, 4  ;;  %v3280_v25 = vrot.slane %v3279_v47, 4  ;;  %v2613_v39 = vrot.slane %v2510_v59, %v13124_v53 }
 0x218   : > { %v3287_v2 = vrot.slane %v3286_v13, 4  ;;  %v1814_v21 = vadd.f32 -5.6925062e-05, %v1782_v37  ;;  %v2199_v42 = vmul.f32 %v2167_v31, %v10408_v6  ;;  %v2630_v14 = vrot.slane %v2511_v5, %v13124_v53 }
 0x219   : > { %v3254_v22 = vrot.slane %v3253_v50, 2  ;;  %v1815_v0 = vadd.f32 -5.6925062e-05, %v1783_v17  ;;  %v10492_v11 = vadd.f32 -0.0073733293, %v2198_v20  ;;  %v2620_v40 = vrot.slane %v2606_v57, %v13124_v53 }
 0x21a   : > { %v10496_v3 = vrot.slane %v2623_v23, %v13124_v53  ;;  %v10498_v48 = vmax.f32 %v3246_v43, %v3247_v52  ;;  %v3293_v10 = vsel %vm281_vm2, %v2605_v28, -inf  ;;  %v3261_v59 = vrot.slane %v3260_v15, 2 }
 0x21b   : > { %v3268_v18 = vrot.slane %v3267_v56, 2  ;;  %v3274_v12 = vmax.f32 %v3272_v38, %v3273_v62  ;;  %v3281_v19 = vmax.f32 %v3279_v47, %v3280_v25  ;;  %v2621_v31 = vcombine.high %v2613_v39, %v2613_v39 }
 0x21c   : > { %v3288_v30 = vmax.f32 %v3286_v13, %v3287_v2  ;;  %v10502_v5 = vmul.f32 %v1814_v21, %v10404_v33  ;;  %v10504_v54 = vadd.f32 -0.0073733293, %v2199_v42  ;;  %v2638_v37 = vcombine.high %v2630_v14, %v2630_v14 }
 0x21d   : > { %v10506_v17 = vmax.f32 %v3253_v50, %v3254_v22  ;;  %v3294_v44 = vrot.slane %v3293_v10, 4  ;;  %v10509_v26 = vmul.f32 %v1815_v0, %v10408_v6  ;;  %v2622_v16 = vcombine.high %v2620_v40, %v2620_v40 }
 0x21e   : > { %v3249_v57 = vrot.slane %v10498_v48, 1  ;;  %v3300_v43 = vsel %vm281_vm2, %v2613_v39, -inf  ;;  %v3262_v61 = vmax.f32 %v3260_v15, %v3261_v59  ;;  %v10515_v7 = vmax.f32 %v3267_v56, %v3268_v18 }
 0x21f   : > { %v3275_v45 = vrot.slane %v3274_v12, 2  ;;  %v3282_v38 = vrot.slane %v3281_v19, 2  ;;  %v3289_v47 = vrot.slane %v3288_v30, 2  ;;  %v3301_v13 = vrot.slane %v3300_v43, 4 }
 0x220   : > { %v3307_v28 = vsel %vm281_vm2, %v2621_v31, -inf  ;;  %v3314_v23 = vsel %vm281_vm2, %v2620_v40, -inf  ;;  %v3256_v52 = vrot.slane %v10506_v17, 1  ;;  %v3295_v50 = vmax.f32 %v3293_v10, %v3294_v44 }
 0x221   : > { %v3308_v62 = vrot.slane %v3307_v28, 4  ;;  %v3315_v25 = vrot.slane %v3314_v23, 4  ;;  %v3302_v2 = vmax.f32 %v3300_v43, %v3301_v13  ;;  %v3321_v21 = vsel %vm281_vm2, %v2622_v16, -inf }
 0x222   : > { %v3328_v15 = vsel %vm281_vm2, %v2630_v14, -inf  ;;  %v3335_v56 = vsel %vm281_vm2, %v2638_v37, -inf  ;;  %v3322_v22 = vrot.slane %v3321_v21, 4  ;;  %v3276_v59 = vmax.f32 %v3274_v12, %v3275_v45 }
 0x223   : > { %v3309_v39 = vmax.f32 %v3307_v28, %v3308_v62  ;;  %v3316_v42 = vmax.f32 %v3314_v23, %v3315_v25  ;;  %v3329_v0 = vrot.slane %v3328_v15, 4  ;;  %v3303_v18 = vrot.slane %v3302_v2, 2 }
 0x224   : > { %v3336_v31 = vrot.slane %v3335_v56, 4  ;;  %v3342_v40 = vsel %vm281_vm2, %v10496_v3, -inf  ;;  %v3323_v20 = vmax.f32 %v3321_v21, %v3322_v22  ;;  %v3283_v13 = vmax.f32 %v3281_v19, %v3282_v38 }
 0x225   : > { %v3310_v10 = vrot.slane %v3309_v39, 2  ;;  %v3317_v44 = vrot.slane %v3316_v42, 2  ;;  %v3330_v43 = vmax.f32 %v3328_v15, %v3329_v0  ;;  %v3304_v16 = vmax.f32 %v3302_v2, %v3303_v18 }
 0x226   : > { %v3337_v55 = vmax.f32 %v3335_v56, %v3336_v31  ;;  %v3343_v14 = vrot.slane %v3342_v40, 4  ;;  %v3324_v28 = vrot.slane %v3323_v20, 2  ;;  %v3290_v62 = vmax.f32 %v3288_v30, %v3289_v47 }
 0x227   : > { %v3311_v9 = vmax.f32 %v3309_v39, %v3310_v10  ;;  %v3318_v37 = vmax.f32 %v3316_v42, %v3317_v44  ;;  %v3331_v23 = vrot.slane %v3330_v43, 2  ;;  %v3305_v25 = vrot.slane %v3304_v16, 1 }
 0x228   : > { %v3338_v12 = vrot.slane %v3337_v55, 2  ;;  %v3344_v45 = vmax.f32 %v3342_v40, %v3343_v14  ;;  %v3325_v4 = vmax.f32 %v3323_v20, %v3324_v28  ;;  %v3263_v35 = vrot.slane %v3262_v61, 1 }
 0x229   : > { %v3312_v1 = vrot.slane %v3311_v9, 1  ;;  %v3319_v53 = vrot.slane %v3318_v37, 1  ;;  %v3332_v34 = vmax.f32 %v3330_v43, %v3331_v23  ;;  %v3270_v21 = vrot.slane %v10515_v7, 1 }
 0x22a   : > { %v3339_v15 = vmax.f32 %v3337_v55, %v3338_v12  ;;  %v3345_v19 = vrot.slane %v3344_v45, 2  ;;  %v3296_v38 = vrot.slane %v3295_v50, 2  ;;  %v3306_v2 = vmax.f32 %v3304_v16, %v3305_v25 }
 0x22b   : > { %v3326_v56 = vrot.slane %v3325_v4, 1  ;;  %v3333_v39 = vrot.slane %v3332_v34, 1  ;;  %v3277_v42 = vrot.slane %v3276_v59, 1  ;;  %v3313_v22 = vmax.f32 %v3311_v9, %v3312_v1 }
 0x22c   : > { %v3340_v0 = vrot.slane %v3339_v15, 1  ;;  %v3346_v30 = vmax.f32 %v3344_v45, %v3345_v19  ;;  %v3250_v47 = vmax.f32 %v10498_v48, %v3249_v57  ;;  %v3284_v18 = vrot.slane %v3283_v13, 1 }
 0x22d   : > { %v3291_v31 = vrot.slane %v3290_v62, 1  ;;  %v3320_v40 = vmax.f32 %v3318_v37, %v3319_v53  ;;  %v3257_v20 = vmax.f32 %v10506_v17, %v3256_v52  ;;  %v3264_v10 = vmax.f32 %v3262_v61, %v3263_v35 }
 0x22e   : > { %v3327_v44 = vmax.f32 %v3325_v4, %v3326_v56  ;;  %v3334_v43 = vmax.f32 %v3332_v34, %v3333_v39  ;;  %v3271_v55 = vmax.f32 %v10515_v7, %v3270_v21  ;;  %v10529_v14 = vmax.f32 %v3295_v50, %v3296_v38 }
 0x22f   : > { %v3347_v16 = vrot.slane %v3346_v30, 1  ;;  %v4141_v28 = vsel %vm278_vm0, %v3306_v2, -inf  ;;  %v3278_v1 = vmax.f32 %v3276_v59, %v3277_v42  ;;  %v3341_v9 = vmax.f32 %v3339_v15, %v3340_v0 }
 0x230   : > { %13129 = vst [vmem:[#allocation68_spill] sm:$0xff] %v10529_v14  ;;  %v13130_v48 = vcombine.high %v10496_v3, %v10496_v3  ;;  %v4144_v53 = vsel %vm278_vm0, %v3313_v22, -inf  ;;  %v3285_v35 = vmax.f32 %v3283_v13, %v3284_v18  ;;  %v3292_v4 = vmax.f32 %v3290_v62, %v3291_v31 }
 0x231   : > { %v4140_v34 = vsel %vm278_vm0, %v3250_v47, -inf  ;;  %v4147_v17 = vsel %vm278_vm0, %v3320_v40, -inf  ;;  %v4143_v7 = vsel %vm278_vm0, %v3257_v20, -inf  ;;  %v4150_v52 = vsel %vm278_vm0, %v3327_v44, -inf }
 0x232   : > { %v10536_v57 = vsel %vm281_vm2, %v13130_v48, -inf  ;;  %v4142_v61 = vmax.f32 %v4140_v34, %v4141_v28  ;;  %v4153_v50 = vsel %vm278_vm0, %v3334_v43, -inf  ;;  %v3348_v59 = vmax.f32 %v3346_v30, %v3347_v16  ;;  %v13134_v16 = vld [vmem:[#allocation31_spill] sm:$0xff] }
 0x233   : > { %13131 = vst [vmem:[#allocation22_spill] sm:$0xff] %v10536_v57  ;;  %v4145_v37 = vmax.f32 %v4143_v7, %v4144_v53  ;;  %v4146_v23 = vsel %vm278_vm0, %v3264_v10, -inf  ;;  %v4149_v13 = vsel %vm278_vm0, %v3271_v55, -inf  ;;  %v4152_v62 = vsel %vm278_vm0, %v3278_v1, -inf  ;;  %v13133_v10 = vld [vmem:[#allocation30_spill] sm:$0xff]  ;;  %v13135_v1 = vld [vmem:[#allocation32_spill] sm:$0xff] }
 0x234   : > { %v4148_v25 = vmax.f32 %v4146_v23, %v4147_v17  ;;  %v4156_v12 = vsel %vm278_vm0, %v3341_v9, -inf  ;;  %v4151_v45 = vmax.f32 %v4149_v13, %v4150_v52  ;;  %v4154_v21 = vmax.f32 %v4152_v62, %v4153_v50 }
 0x235   : > { %v4155_v15 = vsel %vm278_vm0, %v3285_v35, -inf  ;;  %v1878_v19 = vadd.f32 -0.00073499064, %v10502_v5  ;;  %v4158_v38 = vsel %vm278_vm0, %v3292_v4, -inf  ;;  %v7975_v2 = vpack.c.bf16 %v4142_v61, %v4142_v61 }
 0x236   : > { %v1879_v56 = vadd.f32 -0.00073499064, %v10509_v26  ;;  %v2262_v39 = vmul.f32 %v10492_v11, %v10404_v33  ;;  %v4157_v42 = vmax.f32 %v4155_v15, %v4156_v12  ;;  %v4159_v22 = vsel %vm278_vm0, %v3348_v59, -inf  ;;  %v13132_v11 = vld [vmem:[#allocation12_spill] sm:$0xff]  ;;  %v490_v15 = vpop.permute.xlu1 %489 }
 0x237   : > { %v7976_v0 = vpack.c.bf16 %v4145_v37, %v4145_v37  ;;  %v2263_v30 = vmul.f32 %v10504_v54, %v10408_v6  ;;  %v7977_v47 = vpack.c.bf16 %v4148_v25, %v4148_v25  ;;  %v1317_v5 = vadd.f32 %v10438_v27, %v10449_v8  ;;  %v10576_v27 = vld [vmem:[%s12843_s1 + $0x8] ss:$0 sm:$0xff]  ;;  %532 = vst.msk [vmem:[#allocation2 + $0x171] sm:$0xff] %vm278_vm0, %v490_v15 }
 0x238   : > { %v10558_v18 = vadd.f32 -0.014264739, %v2262_v39  ;;  %v1319_v31 = vadd.f32 %v10379_v51, %v10463_v49  ;;  %v1910_v26 = vmul.f32 %v1878_v19, %v10404_v33  ;;  %v1320_v20 = vadd.f32 %v13132_v11, %v10472_v41  ;;  %v486_v19 = vpop.permute.xlu0 %485 }
 0x239   : > { %v10565_v40 = vadd.f32 -0.014264739, %v2263_v30  ;;  %v1321_v44 = vadd.f32 %v13133_v10, %v10475_v58  ;;  %v1911_v54 = vmul.f32 %v1879_v56, %v10408_v6  ;;  %v1386_v51 = vmul.f32 %v10576_v27, %v10354_v24  ;;  %v10593_v24 = vld [vmem:[%s12844_s2] ss:$0 sm:$0xff]  ;;  %531 = vst.msk [vmem:[#allocation2 + $0x169] sm:$0xff] %vm278_vm0, %v486_v19 }
 0x23a   : > { %8400 = vrcp.f32 %v10558_v18  ;;  %v1417_v8 = vadd.f32 %v10456_v60, %v10416_v63  ;;  %v10582_v49 = vmax.f32 %v4158_v38, %v4159_v22  ;;  %v1419_v41 = vadd.f32 %v10386_v46, %v10468_v32 }
 0x23b   : > { %8402 = vrcp.f32 %v10565_v40  ;;  %v1420_v58 = vadd.f32 %v10395_v36, %v1319_v31  ;;  %v7978_v43 = vpack.c.bf16 %v4151_v45, %v4151_v45  ;;  %v1418_v55 = vadd.f32 %v1386_v51, %v1317_v5 }
 0x23c   : > { %v1421_v28 = vadd.f32 %v13134_v16, %v1320_v20  ;;  %v1422_v9 = vadd.f32 %v13135_v1, %v1321_v44  ;;  %v1942_v48 = vadd.f32 -0.0029546, %v1910_v26  ;;  %v10596_v63 = vadd.f32 %v10593_v24, %v1417_v8 }
 0x23d   : > { %v10599_v60 = vadd.f32 %v10593_v24, %v1419_v41  ;;  %v10602_v46 = vadd.f32 %v10593_v24, %v1420_v58  ;;  %v1943_v36 = vadd.f32 -0.0029546, %v1911_v54  ;;  %v10605_v32 = vadd.f32 %v10593_v24, %v1418_v55 }
 0x23e   : > { %v10608_v53 = vadd.f32 %v10593_v24, %v1421_v28  ;;  %v10611_v35 = vadd.f32 %v10593_v24, %v1422_v9  ;;  %v7979_v4 = vpack.c.bf16 %v4154_v21, %v4154_v21  ;;  %v7980_v34 = vpack.c.bf16 %v4157_v42, %v4157_v42 }
 0x23f   : > { %v4659_v17 = vunpack.c.l.b16 %v7975_v2  ;;  %v4660_v61 = vunpack.c.l.b16 %v7976_v0  ;;  %v7981_v7 = vpack.c.bf16 %v10582_v49, %v10582_v49  ;;  %v10615_v52 = vunpack.c.l.b16 %v7977_v47 }
 0x240   : > { %v10617_v50 = vunpack.c.l.b16 %v7978_v43  ;;  %v1520_v59 = vmul.f32 0.70710677, %v10596_v63  ;;  %v1974_v37 = vmul.f32 %v1942_v48, %v10404_v33  ;;  %v1521_v23 = vmul.f32 0.70710677, %v10605_v32 }
 0x241   : > { %v1522_v25 = vmul.f32 0.70710677, %v10599_v60  ;;  %v1523_v13 = vmul.f32 0.70710677, %v10602_v46  ;;  %v1975_v62 = vmul.f32 %v1943_v36, %v10408_v6  ;;  %v1524_v12 = vmul.f32 0.70710677, %v10608_v53 }
 0x242   : > { %13136 = vst [vmem:[#allocation56_spill] sm:$0xff] %v10617_v50  ;;  %v1525_v45 = vmul.f32 0.70710677, %v10611_v35  ;;  %v10627_v21 = vclamps-f32 %v1520_v59, 4.0  ;;  %v10629_v38 = vunpack.c.l.b16 %v7979_v4  ;;  %v10631_v2 = vclamps-f32 %v1521_v23, 4.0 }
 0x243   : > { %v10633_v33 = vclamps-f32 %v1522_v25, 4.0  ;;  %v10635_v56 = vclamps-f32 %v1523_v13, 4.0  ;;  %v10639_v6 = vunpack.c.l.b16 %v7980_v34  ;;  %v10641_v39 = vclamps-f32 %v1524_v12, 4.0  ;;  %v13139_v13 = vld [vmem:[#allocation51_spill] sm:$0xff] }
 0x244   : > { %13137 = vst [vmem:[#allocation9_spill] sm:$0xff] %v10629_v38  ;;  %v10643_v42 = vclamps-f32 %v1525_v45, 4.0  ;;  %v10647_v22 = vmul.f32 %v10627_v21, %v10627_v21  ;;  %v2006_v0 = vadd.f32 -0.016096033, %v1974_v37  ;;  %v10651_v30 = vmul.f32 %v10631_v2, %v10631_v2 }
 0x245   : > { %13138 = vst [vmem:[#allocation25_spill] sm:$0xff] %v10639_v6  ;;  %v10655_v47 = vmul.f32 %v10633_v33, %v10633_v33  ;;  %v10659_v5 = vmul.f32 %v10635_v56, %v10635_v56  ;;  %v2007_v31 = vadd.f32 -0.016096033, %v1975_v62  ;;  %v10663_v26 = vmul.f32 %v10641_v39, %v10641_v39 }
 0x246   : > { %v10667_v11 = vmul.f32 %v10643_v42, %v10643_v42  ;;  %v1648_v20 = vmul.f32 -2.7261424e-10, %v10647_v22  ;;  %v4724_v44 = vsel %vm4723_vm3, %v4660_v61, %v4659_v17  ;;  %v1649_v54 = vmul.f32 -2.7261424e-10, %v10651_v30 }
 0x247   : > { %v8401_v10 = vpop.eup %8400  ;;  %v1650_v51 = vmul.f32 -2.7261424e-10, %v10655_v47  ;;  %v1651_v8 = vmul.f32 -2.7261424e-10, %v10659_v5  ;;  %v1652_v58 = vmul.f32 -2.7261424e-10, %v10663_v26  ;;  %v2038_v37 = vmul.f32 %v10388_v29, %v2006_v0 }
 0x248   : > { %v8403_v49 = vpop.eup %8402  ;;  %v2358_v41 = vmul.f32 %v8401_v10, %v10558_v18  ;;  %v1653_v43 = vmul.f32 -2.7261424e-10, %v10667_v11  ;;  %v1680_v55 = vadd.f32 2.7706815e-08, %v1648_v20  ;;  %v1681_v28 = vadd.f32 2.7706815e-08, %v1649_v54 }
 0x249   : > { %v2359_v16 = vmul.f32 %v8403_v49, %v10565_v40  ;;  %v1682_v1 = vadd.f32 2.7706815e-08, %v1650_v51  ;;  %v1683_v9 = vadd.f32 2.7706815e-08, %v1651_v8  ;;  %v1684_v36 = vadd.f32 2.7706815e-08, %v1652_v58 }
 0x24a   : > { %v2390_v48 = vsub.f32 2.0, %v2358_v41  ;;  %v1685_v4 = vadd.f32 2.7706815e-08, %v1653_v43  ;;  %v1712_v34 = vmul.f32 %v1680_v55, %v10647_v22  ;;  %v1713_v61 = vmul.f32 %v1681_v28, %v10651_v30  ;;  %v13142_v55 = vld [vmem:[#allocation61_spill] sm:$0xff] }
 0x24b   : > { %v2391_v17 = vsub.f32 2.0, %v2359_v16  ;;  %v1714_v18 = vmul.f32 %v1682_v1, %v10655_v47  ;;  %v1715_v59 = vmul.f32 %v1683_v9, %v10659_v5  ;;  %v1716_v40 = vmul.f32 %v1684_v36, %v10663_v26  ;;  %v13143_v9 = vld [vmem:[#allocation69_spill] sm:$0xff] }
 0x24c   : > { %v2422_v23 = vmul.f32 %v8401_v10, %v2390_v48  ;;  %v1717_v25 = vmul.f32 %v1685_v4, %v10667_v11  ;;  %v2039_v62 = vmul.f32 %v13139_v13, %v2007_v31  ;;  %v1744_v45 = vadd.f32 -2.101024e-06, %v1712_v34  ;;  %v10698_v31 = vld [vmem:[#allocation2 + $0x159] sm:$0xff] }
 0x24d   : > { %v2423_v12 = vmul.f32 %v8403_v49, %v2391_v17  ;;  %v1745_v15 = vadd.f32 -2.101024e-06, %v1713_v61  ;;  %v10686_v19 = vunpack.c.l.b16 %v7981_v7  ;;  %v10690_v20 = vsel %vm4725_vm4, %v10615_v52, %v4724_v44  ;;  %v10700_v49 = vld [vmem:[#allocation2 + $0x15a] sm:$0xff]  ;;  %v13144_v17 = vld [vmem:[#allocation7_spill] sm:$0xff] }
 0x24e   : > { %13141 = vst [vmem:[#allocation26_spill] sm:$0xff] %v10690_v20  ;;  %v2454_v54 = vmul.f32 %v2422_v23, %v2038_v37  ;;  %v1746_v51 = vadd.f32 -2.101024e-06, %v1714_v18  ;;  %v10693_v29 = vmul.f32 0.5, %v10596_v63  ;;  %v10696_v0 = vmul.f32 0.5, %v10599_v60 }
 0x24f   : > { %13140 = vst [vmem:[#allocation10_spill] sm:$0xff] %v10686_v19  ;;  %v2455_v8 = vmul.f32 %v2423_v12, %v2039_v62  ;;  %v1747_v10 = vadd.f32 -2.101024e-06, %v1715_v59  ;;  %v10703_v41 = vmul.f32 0.5, %v10602_v46  ;;  %v1748_v52 = vadd.f32 -2.101024e-06, %v1716_v40  ;;  %v501_v19 = vpop.permute.xlu1 %500 }
 0x250   : > { %v2486_v7 = vadd.f32 1.0, %v2454_v54  ;;  %v1749_v44 = vadd.f32 -2.101024e-06, %v1717_v25  ;;  %v10706_v43 = vmul.f32 0.5, %v10605_v32  ;;  %v1776_v63 = vmul.f32 %v1744_v45, %v10647_v22  ;;  %v10723_v32 = vld [vmem:[%s12843_s1 + $0x1] ss:$0 sm:$0xff] }
 0x251   : > { %v2487_v58 = vadd.f32 1.0, %v2455_v8  ;;  %v1777_v60 = vmul.f32 %v1745_v15, %v10651_v30  ;;  %v10712_v28 = vmul.f32 0.5, %v10608_v53  ;;  %v10715_v1 = vmul.f32 0.5, %v10611_v35  ;;  %v10732_v53 = vld [vmem:[%s12843_s1 + $0x2] ss:$0 sm:$0xff]  ;;  %534 = vst.msk [vmem:[#allocation2 + $0x189] sm:$0xff] %vm278_vm0, %v501_v19 }
 0x252   : > { %v2518_v16 = vmul.f32 %v2486_v7, %v13142_v55  ;;  %v1778_v46 = vmul.f32 %v1746_v51, %v10655_v47  ;;  %v1779_v36 = vmul.f32 %v1747_v10, %v10659_v5  ;;  %v10727_v4 = vmul.f32 %v10723_v32, %v10698_v31 }
 0x253   : > { %v2519_v48 = vmul.f32 %v2487_v58, %v13143_v9  ;;  %v10736_v35 = vmul.f32 %v10732_v53, %v10700_v49  ;;  %v1780_v18 = vmul.f32 %v1748_v52, %v10663_v26  ;;  %v1781_v59 = vmul.f32 %v1749_v44, %v10667_v11 }
 0x254   : > { %v2742_v34 = vcombine.high %v2518_v16, %v2518_v16  ;;  %v2749_v61 = vrot.slane %v2518_v16, %v13144_v17  ;;  %v1808_v40 = vadd.f32 -5.6925062e-05, %v1776_v63  ;;  %v1809_v25 = vadd.f32 -5.6925062e-05, %v1777_v60 }
 0x255   : > { %v2759_v37 = vcombine.high %v2519_v48, %v2519_v48  ;;  %v2766_v23 = vrot.slane %v2519_v48, %v13144_v17  ;;  %v1810_v45 = vadd.f32 -5.6925062e-05, %v1778_v46  ;;  %v1811_v55 = vadd.f32 -5.6925062e-05, %v1779_v36 }
 0x256   : > { %v2756_v13 = vrot.slane %v2742_v34, %v13144_v17  ;;  %v2757_v62 = vcombine.high %v2749_v61, %v2749_v61  ;;  %v3524_v12 = vsel %vm281_vm2, %v2749_v61, -inf }
 0x257   : > { %v2773_v15 = vrot.slane %v2759_v37, %v13144_v17  ;;  %v2774_v54 = vcombine.high %v2766_v23, %v2766_v23  ;;  %v3525_v51 = vrot.slane %v3524_v12, 4  ;;  %v3552_v8 = vsel %vm281_vm2, %v2766_v23, -inf }
 0x258   : > { %v2758_v10 = vcombine.high %v2756_v13, %v2756_v13  ;;  %v3531_v7 = vsel %vm281_vm2, %v2757_v62, -inf  ;;  %v3538_v52 = vsel %vm281_vm2, %v2756_v13, -inf  ;;  %v3553_v44 = vrot.slane %v3552_v8, 4 }
 0x259   : > { %v3526_v58 = vmax.f32 %v3524_v12, %v3525_v51  ;;  %v3532_v63 = vrot.slane %v3531_v7, 4  ;;  %v3539_v60 = vrot.slane %v3538_v52, 4  ;;  %v3559_v46 = vsel %vm281_vm2, %v2774_v54, -inf  ;;  %v497_v12 = vpop.permute.xlu0 %496 }
 0x25a   : > { %v3545_v16 = vsel %vm281_vm2, %v2758_v10, -inf  ;;  %v3554_v9 = vmax.f32 %v3552_v8, %v3553_v44  ;;  %v3566_v48 = vsel %vm281_vm2, %v2773_v15, -inf  ;;  %v3560_v62 = vrot.slane %v3559_v46, 4  ;;  %533 = vst.msk [vmem:[#allocation2 + $0x181] sm:$0xff] %vm278_vm0, %v497_v12 }
 0x25b   : > { %v3527_v34 = vrot.slane %v3526_v58, 2  ;;  %v3533_v61 = vmax.f32 %v3531_v7, %v3532_v63  ;;  %v3540_v37 = vmax.f32 %v3538_v52, %v3539_v60  ;;  %v3546_v23 = vrot.slane %v3545_v16, 4 }
 0x25c   : > { %v3555_v3 = vrot.slane %v3554_v9, 2  ;;  %v3567_v14 = vrot.slane %v3566_v48, 4  ;;  %v1812_v13 = vadd.f32 -5.6925062e-05, %v1780_v18  ;;  %v3561_v54 = vmax.f32 %v3559_v46, %v3560_v62 }
 0x25d   : > { %v3528_v51 = vmax.f32 %v3526_v58, %v3527_v34  ;;  %v3534_v6 = vrot.slane %v3533_v61, 2  ;;  %v3541_v36 = vrot.slane %v3540_v37, 2  ;;  %v3547_v38 = vmax.f32 %v3545_v16, %v3546_v23 }
 0x25e   : > { %v3568_v8 = vmax.f32 %v3566_v48, %v3567_v14  ;;  %v1840_v10 = vmul.f32 %v1808_v40, %v10647_v22  ;;  %v1841_v7 = vmul.f32 %v1809_v25, %v10651_v30  ;;  %v3556_v44 = vmax.f32 %v3554_v9, %v3555_v3  ;;  %v10774_v9 = vld [vmem:[%s12843_s1 + $0x5] ss:$0 sm:$0xff] }
 0x25f   : > { %v3548_v52 = vrot.slane %v3547_v38, 2  ;;  %v1813_v63 = vadd.f32 -5.6925062e-05, %v1781_v59  ;;  %v1842_v18 = vmul.f32 %v1810_v45, %v10655_v47  ;;  %v2775_v60 = vcombine.high %v2773_v15, %v2773_v15  ;;  %v10762_v45 = vld [vmem:[%s12843_s1 + $0x4] ss:$0 sm:$0xff] }
 0x260   : > { %v3529_v58 = vrot.slane %v3528_v51, 1  ;;  %v3562_v34 = vrot.slane %v3561_v54, 2  ;;  %v1843_v16 = vmul.f32 %v1811_v55, %v10659_v5  ;;  %v3535_v23 = vmax.f32 %v3533_v61, %v3534_v6 }
 0x261   : > { %v3542_v19 = vmax.f32 %v3540_v37, %v3541_v36  ;;  %v3569_v50 = vrot.slane %v3568_v8, 2  ;;  %v1844_v46 = vmul.f32 %v1812_v13, %v10663_v26  ;;  %v3549_v14 = vmax.f32 %v3547_v38, %v3548_v52 }
 0x262   : > { %v3563_v48 = vmax.f32 %v3561_v54, %v3562_v34  ;;  %v1872_v40 = vadd.f32 -0.00073499064, %v1840_v10  ;;  %v1873_v62 = vadd.f32 -0.00073499064, %v1841_v7  ;;  %v3557_v25 = vrot.slane %v3556_v44, 1 }
 0x263   : > { %v1845_v3 = vmul.f32 %v1813_v63, %v10667_v11  ;;  %v1874_v59 = vadd.f32 -0.00073499064, %v1842_v18  ;;  %v10766_v6 = vmul.f32 %v10762_v45, %v10698_v31  ;;  %v3530_v15 = vmax.f32 %v3528_v51, %v3529_v58 }
 0x264   : > { %v10769_v55 = vsel %vm281_vm2, %v2775_v60, -inf  ;;  %v1875_v38 = vadd.f32 -0.00073499064, %v1843_v16  ;;  %v10778_v61 = vmul.f32 %v10774_v9, %v10700_v49  ;;  %v3536_v37 = vrot.slane %v3535_v23, 1  ;;  %v10788_v60 = vld [vmem:[%s12843_s1 + $0x7] ss:$0 sm:$0xff] }
 0x265   : > { %13145 = vst [vmem:[#allocation27_spill] sm:$0xff] %v10769_v55  ;;  %v3543_v13 = vrot.slane %v3542_v19, 1  ;;  %v10780_v12 = vmax.f32 %v3568_v8, %v3569_v50  ;;  %v1876_v36 = vadd.f32 -0.00073499064, %v1844_v46  ;;  %v3550_v54 = vrot.slane %v3549_v14, 1 }
 0x266   : > { %v3564_v51 = vrot.slane %v3563_v48, 1  ;;  %v1904_v10 = vmul.f32 %v1872_v40, %v10647_v22  ;;  %v1905_v7 = vmul.f32 %v1873_v62, %v10651_v30  ;;  %v3558_v52 = vmax.f32 %v3556_v44, %v3557_v25 }
 0x267   : > { %v1877_v63 = vadd.f32 -0.00073499064, %v1845_v3  ;;  %v1906_v18 = vmul.f32 %v1874_v59, %v10655_v47  ;;  %v10792_v50 = vmul.f32 %v10788_v60, %v10698_v31  ;;  %v1907_v58 = vmul.f32 %v1875_v38, %v10659_v5 }
 0x268   : > { %v1936_v34 = vadd.f32 -0.0029546, %v1904_v10  ;;  %v2064_v16 = vmul.f32 -1.45660715e-05, %v10647_v22  ;;  %v3537_v44 = vmax.f32 %v3535_v23, %v3536_v37  ;;  %v3544_v46 = vmax.f32 %v3542_v19, %v3543_v13 }
 0x269   : > { %v10798_v40 = vsel %vm278_vm0, %v3530_v15, -inf  ;;  %v1908_v62 = vmul.f32 %v1876_v36, %v10663_v26  ;;  %v3551_v25 = vmax.f32 %v3549_v14, %v3550_v54  ;;  %v3565_v3 = vmax.f32 %v3563_v48, %v3564_v51 }
 0x26a   : > { %v3571_v59 = vrot.slane %v10780_v12, 1  ;;  %v1937_v31 = vadd.f32 -0.0029546, %v1905_v7  ;;  %v10803_v20 = vsel %vm278_vm0, %v3558_v52, -inf  ;;  %v1909_v38 = vmul.f32 %v1877_v63, %v10667_v11 }
 0x26b   : > { %13146 = vst [vmem:[#allocation28_spill] sm:$0xff] %v10803_v20  ;;  %v1938_v10 = vadd.f32 -0.0029546, %v1906_v18  ;;  %v1968_v8 = vmul.f32 %v1936_v34, %v10647_v22  ;;  %v1939_v23 = vadd.f32 -0.0029546, %v1907_v58  ;;  %v10811_v14 = vmul.f32 %v10576_v27, %v10700_v49  ;;  %v563_v34 = vld [vmem:[#allocation2 + $0x150] sm:$0xff] }
 0x26c   : > { %v2065_v19 = vmul.f32 -1.45660715e-05, %v10651_v30  ;;  %v2066_v15 = vmul.f32 -1.45660715e-05, %v10655_v47  ;;  %v10814_v48 = vsel %vm278_vm0, %v3537_v44, -inf  ;;  %v10817_v37 = vsel %vm278_vm0, %v3544_v46, -inf }
 0x26d   : > { %13147 = vst [vmem:[#allocation13_spill] sm:$0xff] %v10814_v48  ;;  %13148 = vst [vmem:[#allocation35_spill] sm:$0xff] %v10817_v37  ;;  %v1940_v13 = vadd.f32 -0.0029546, %v1908_v62  ;;  %v2067_v36 = vmul.f32 -1.45660715e-05, %v10659_v5  ;;  %v1969_v7 = vmul.f32 %v1937_v31, %v10651_v30  ;;  %v1970_v63 = vmul.f32 %v1938_v10, %v10655_v47 }
 0x26e   : > { %v10821_v54 = vsel %vm278_vm0, %v3551_v25, -inf  ;;  %v10824_v51 = vsel %vm278_vm0, %v3565_v3, -inf  ;;  %v2068_v49 = vmul.f32 -1.45660715e-05, %v10663_v26  ;;  %v1941_v52 = vadd.f32 -0.0029546, %v1909_v38 }
 0x26f   : > { %13149 = vst [vmem:[#allocation14_spill] sm:$0xff] %v10821_v54  ;;  %13150 = vst [vmem:[#allocation36_spill] sm:$0xff] %v10824_v51  ;;  %v2000_v18 = vadd.f32 -0.016096033, %v1968_v8  ;;  %v2069_v58 = vmul.f32 -1.45660715e-05, %v10667_v11  ;;  %v1971_v44 = vmul.f32 %v1939_v23, %v10659_v5  ;;  %v1972_v55 = vmul.f32 %v1940_v13, %v10663_v26 }
 0x270   : > { %v2096_v46 = vadd.f32 -0.00021337405, %v2064_v16  ;;  %v2097_v62 = vadd.f32 -0.00021337405, %v2065_v19  ;;  %v2098_v25 = vadd.f32 -0.00021337405, %v2066_v15 }
 0x271   : > { %v2099_v3 = vadd.f32 -0.00021337405, %v2067_v36  ;;  %v2100_v51 = vadd.f32 -0.00021337405, %v2068_v49  ;;  %v2101_v57 = vadd.f32 -0.00021337405, %v2069_v58  ;;  %v1973_v49 = vmul.f32 %v1941_v52, %v10667_v11 }
 0x272   : > { %v2001_v31 = vadd.f32 -0.016096033, %v1969_v7  ;;  %v2128_v20 = vmul.f32 %v2096_v46, %v10647_v22  ;;  %v2129_v38 = vmul.f32 %v2097_v62, %v10651_v30  ;;  %v2130_v8 = vmul.f32 %v2098_v25, %v10655_v47  ;;  %v10843_v36 = vld [vmem:[%s12843_s1] ss:$0 sm:$0xff]  ;;  %v564_v25 = vld [vmem:[#allocation2 + $0x158] sm:$0xff] }
 0x273   : > { %v10835_v10 = vadd.f32 -0.016096033, %v1970_v63  ;;  %v2131_v54 = vmul.f32 %v2099_v3, %v10659_v5  ;;  %v2132_v16 = vmul.f32 %v2100_v51, %v10663_v26  ;;  %v2133_v23 = vmul.f32 %v2101_v57, %v10667_v11  ;;  %v664_v52 = vld [vmem:[#allocation2 + $0x151] sm:$0xff] }
 0x274   : > { %v2160_v19 = vadd.f32 -0.001682827, %v2128_v20  ;;  %v2161_v15 = vadd.f32 -0.001682827, %v2129_v38  ;;  %v2162_v13 = vadd.f32 -0.001682827, %v2130_v8  ;;  %v600_v7 = vmul.f32 %v10843_v36, %v563_v34 }
 0x275   : > { %v2163_v63 = vadd.f32 -0.001682827, %v2131_v54  ;;  %v2164_v58 = vadd.f32 -0.001682827, %v2132_v16  ;;  %v2165_v46 = vadd.f32 -0.001682827, %v2133_v23  ;;  %v10856_v54 = vmax.f32 %v10780_v12, %v3571_v59 }
 0x276   : > { %v10847_v62 = vadd.f32 -0.016096033, %v1971_v44  ;;  %v2192_v51 = vmul.f32 %v2160_v19, %v10647_v22  ;;  %v2193_v57 = vmul.f32 %v2161_v15, %v10651_v30  ;;  %v2194_v20 = vmul.f32 %v2162_v13, %v10655_v47 }
 0x277   : > { %v2004_v3 = vadd.f32 -0.016096033, %v1972_v55  ;;  %v2195_v38 = vmul.f32 %v2163_v63, %v10659_v5  ;;  %v2196_v8 = vmul.f32 %v2164_v58, %v10663_v26  ;;  %v2197_v37 = vmul.f32 %v2165_v46, %v10667_v11  ;;  %13151 = vst [vmem:[#allocation37_spill] sm:$0xff] %v10856_v54  ;;  %v10865_v46 = vld [vmem:[%s12843_s1 + $0x3] ss:$0 sm:$0xff] }
 0x278   : > { %v2224_v44 = vadd.f32 -0.0073733293, %v2192_v51  ;;  %v2225_v16 = vadd.f32 -0.0073733293, %v2193_v57  ;;  %v2226_v23 = vadd.f32 -0.0073733293, %v2194_v20  ;;  %v601_v13 = vmul.f32 %v10843_v36, %v564_v25 }
 0x279   : > { %v2227_v19 = vadd.f32 -0.0073733293, %v2195_v38  ;;  %v2228_v48 = vadd.f32 -0.0073733293, %v2196_v8  ;;  %v2229_v15 = vadd.f32 -0.0073733293, %v2197_v37  ;;  %v901_v12 = vmul.f32 %v10865_v46, %v563_v34 }
 0x27a   : > { %v2256_v55 = vmul.f32 %v2224_v44, %v10647_v22  ;;  %v2257_v63 = vmul.f32 %v2225_v16, %v10651_v30  ;;  %v2258_v58 = vmul.f32 %v2226_v23, %v10655_v47  ;;  %13152 = vst [vmem:[#allocation38_spill] sm:$0xff] %v10865_v46  ;;  %v2005_v59 = vadd.f32 -0.016096033, %v1973_v49  ;;  %v13154_v44 = vld [vmem:[#allocation20_spill] sm:$0xff]  ;;  %v13155_v23 = vld [vmem:[#allocation63_spill] sm:$0xff] }
 0x27b   : > { %v2259_v51 = vmul.f32 %v2227_v19, %v10659_v5  ;;  %v2260_v37 = vmul.f32 %v2228_v48, %v10663_v26  ;;  %v2261_v57 = vmul.f32 %v2229_v15, %v10667_v11  ;;  %v701_v47 = vmul.f32 %v10723_v32, %v664_v52  ;;  %v10887_v5 = vld [vmem:[%s12843_s1 + $0x6] ss:$0 sm:$0xff]  ;;  %v765_v48 = vld [vmem:[#allocation2 + $0x152] sm:$0xff] }
 0x27c   : > { %v10871_v20 = vadd.f32 -0.014264739, %v2256_v55  ;;  %v10873_v22 = vadd.f32 -0.014264739, %v2257_v63  ;;  %v10875_v30 = vadd.f32 -0.014264739, %v2258_v58  ;;  %v10879_v38 = vmul.f32 %v10627_v21, %v2000_v18 }
 0x27d   : > { %v10881_v8 = vadd.f32 -0.014264739, %v2259_v51  ;;  %v902_v49 = vmul.f32 %v10865_v46, %v564_v25  ;;  %13153 = vst [vmem:[#allocation50_spill] sm:$0xff] %v10887_v5  ;;  %v1203_v26 = vmul.f32 %v10887_v5, %v563_v34  ;;  %v10890_v11 = vadd.f32 -0.014264739, %v2260_v37  ;;  %v13156_v63 = vld [vmem:[#allocation18_spill] sm:$0xff] }
 0x27e   : > { %8404 = vrcp.f32 %v10871_v20  ;;  %v933_v16 = vadd.f32 %v901_v12, %v13154_v44  ;;  %v1204_v21 = vmul.f32 %v10887_v5, %v564_v25  ;;  %v10895_v18 = vadd.f32 -0.014264739, %v2261_v57  ;;  %v10917_v44 = vld [vmem:[#allocation2 + $0x169] sm:$0xff] }
 0x27f   : > { %8406 = vrcp.f32 %v10873_v22  ;;  %v1235_v19 = vadd.f32 %v1203_v26, %v13155_v23  ;;  %v1304_v15 = vmul.f32 %v10788_v60, %v664_v52  ;;  %v10901_v55 = vmul.f32 %v10631_v2, %v2001_v31  ;;  %v13157_v2 = vld [vmem:[#allocation17_spill] sm:$0xff] }
 0x280   : > { %8408 = vrcp.f32 %v10875_v30  ;;  %v733_v34 = vadd.f32 %v701_v47, %v600_v7  ;;  %v1236_v58 = vadd.f32 %v1204_v21, %v13156_v63  ;;  %v1002_v25 = vmul.f32 %v10762_v45, %v664_v52  ;;  %v565_v52 = vld [vmem:[#allocation2 + $0x168] sm:$0xff]  ;;  %v768_v23 = vld [vmem:[#allocation2 + $0x172] sm:$0xff] }
 0x281   : > { %8410 = vrcp.f32 %v10881_v8  ;;  %v1336_v12 = vadd.f32 %v1304_v15, %v1235_v19  ;;  %v1405_v51 = vmul.f32 %v10576_v27, %v765_v48  ;;  %v10910_v37 = vmul.f32 %v10633_v33, %v10835_v10 }
 0x282   : > { %8412 = vrcp.f32 %v10890_v11  ;;  %v934_v31 = vadd.f32 %v902_v49, %v13157_v2  ;;  %v1337_v57 = vadd.f32 %v10792_v50, %v1236_v58  ;;  %v802_v7 = vmul.f32 %v10732_v53, %v765_v48  ;;  %v667_v49 = vld [vmem:[#allocation2 + $0x171] sm:$0xff] }
 0x283   : > { %8414 = vrcp.f32 %v10895_v18  ;;  %v1034_v47 = vadd.f32 %v1002_v25, %v933_v16  ;;  %v1437_v26 = vadd.f32 %v1405_v51, %v1336_v12  ;;  %v10921_v21 = vmul.f32 %v10635_v56, %v10847_v62  ;;  %v10933_v58 = vld [vmem:[#allocation2 + $0x170] sm:$0xff] }
 0x284   : > { %v10924_v33 = vmul.f32 %v10641_v39, %v2004_v3  ;;  %v10927_v10 = vmul.f32 %v10643_v42, %v2005_v59  ;;  %v1438_v50 = vadd.f32 %v10811_v14, %v1337_v57  ;;  %v734_v16 = vadd.f32 %v10727_v4, %v601_v13  ;;  %v10946_v59 = vld [vmem:[#allocation2 + $0x16a] sm:$0xff] }
 0x285   : > { %v834_v19 = vadd.f32 %v802_v7, %v733_v34  ;;  %v1103_v15 = vmul.f32 %v10774_v9, %v765_v48  ;;  %v1476_v63 = vadd.f32 %v10593_v24, %v1437_v26  ;;  %v1035_v56 = vadd.f32 %v10766_v6, %v934_v31 }
 0x286   : > { %v1477_v39 = vadd.f32 %v10593_v24, %v1438_v50  ;;  %v602_v42 = vmul.f32 %v10843_v36, %v565_v52  ;;  %v703_v14 = vmul.f32 %v10723_v32, %v10917_v44  ;;  %v704_v4 = vmul.f32 %v10723_v32, %v667_v49 }
 0x287   : > { %v10940_v62 = vadd.f32 %v1103_v15, %v1034_v47  ;;  %v1540_v3 = vmul.f32 0.70710677, %v1476_v63  ;;  %v10944_v13 = vmul.f32 %v10732_v53, %v768_v23  ;;  %v1005_v6 = vmul.f32 %v10762_v45, %v667_v49 }
 0x288   : > { %v1541_v48 = vmul.f32 0.70710677, %v1477_v39  ;;  %v603_v24 = vmul.f32 %v10843_v36, %v10933_v58  ;;  %v903_v34 = vmul.f32 %v10865_v46, %v565_v52  ;;  %v10955_v12 = vmul.f32 %v10774_v9, %v768_v23 }
 0x289   : > { %13158 = vst [vmem:[#allocation67_spill] sm:$0xff] %v10944_v13  ;;  %v10952_v25 = vclamps-f32 %v1540_v3, 4.0  ;;  %v835_v32 = vadd.f32 %v10736_v35, %v734_v16  ;;  %v904_v51 = vmul.f32 %v10865_v46, %v10933_v58  ;;  %v10963_v31 = vmul.f32 %v10788_v60, %v667_v49 }
 0x28a   : > { %13160 = vst [vmem:[#allocation53_spill] sm:$0xff] %v10955_v12  ;;  %v10960_v2 = vclamps-f32 %v1541_v48, 4.0  ;;  %v735_v57 = vadd.f32 %v703_v14, %v602_v42  ;;  %v804_v36 = vmul.f32 %v10732_v53, %v10946_v59  ;;  %v10972_v26 = vmul.f32 %v10576_v27, %v768_v23 }
 0x28b   : > { %13159 = vst [vmem:[#allocation74_spill] sm:$0xff] %v10952_v25  ;;  %v8405_v7 = vpop.eup %8404  ;;  %v10969_v47 = vmul.f32 %v10952_v25, %v10952_v25  ;;  %v10975_v35 = vadd.f32 %v10778_v61, %v1035_v56  ;;  %v1004_v50 = vmul.f32 %v10762_v45, %v10917_v44  ;;  %v10980_v15 = vadd.f32 %v704_v4, %v603_v24 }
 0x28c   : > { %13161 = vst [vmem:[#allocation41_spill] sm:$0xff] %v10960_v2  ;;  %v8407_v49 = vpop.eup %8406  ;;  %v2352_v16 = vmul.f32 %v8405_v7, %v10871_v20  ;;  %v935_v53 = vadd.f32 %v903_v34, %v834_v19  ;;  %v1105_v42 = vmul.f32 %v10774_v9, %v10946_v59  ;;  %v10985_v23 = vmul.f32 0.5, %v1476_v63 }
 0x28d   : > { %13162 = vst [vmem:[#allocation65_spill] sm:$0xff] %v10980_v15  ;;  %v8409_v14 = vpop.eup %8408  ;;  %v2353_v3 = vmul.f32 %v8407_v49, %v10873_v22  ;;  %v10987_v48 = vmul.f32 0.5, %v1477_v39  ;;  %v936_v61 = vadd.f32 %v904_v51, %v835_v32  ;;  %v10992_v20 = vmul.f32 %v10960_v2, %v10960_v2 }
 0x28e   : > { %13163 = vst [vmem:[#allocation75_spill] sm:$0xff] %v10985_v23  ;;  %v8411_v56 = vpop.eup %8410  ;;  %v2354_v54 = vmul.f32 %v8409_v14, %v10875_v30  ;;  %v2384_v25 = vsub.f32 2.0, %v2352_v16  ;;  %v10994_v19 = vadd.f32 %v804_v36, %v735_v57  ;;  %v1668_v22 = vmul.f32 -2.7261424e-10, %v10969_v47 }
 0x28f   : > { %13164 = vst [vmem:[#allocation39_spill] sm:$0xff] %v10987_v48  ;;  %v8413_v4 = vpop.eup %8412  ;;  %v2355_v24 = vmul.f32 %v8411_v56, %v10881_v8  ;;  %v2385_v34 = vsub.f32 2.0, %v2353_v3  ;;  %v1205_v63 = vmul.f32 %v10887_v5, %v565_v52  ;;  %v1036_v16 = vadd.f32 %v1004_v50, %v935_v53 }
 0x290   : > { %13165 = vst [vmem:[#allocation42_spill] sm:$0xff] %v10994_v19  ;;  %v8415_v39 = vpop.eup %8414  ;;  %v2356_v32 = vmul.f32 %v8413_v4, %v10890_v11  ;;  %v2386_v51 = vsub.f32 2.0, %v2354_v54  ;;  %v2416_v30 = vmul.f32 %v8405_v7, %v2384_v25  ;;  %v11001_v57 = vadd.f32 %v1005_v6, %v936_v61 }
 0x291   : > { %v2357_v48 = vmul.f32 %v8415_v39, %v10895_v18  ;;  %v2387_v23 = vsub.f32 2.0, %v2355_v24  ;;  %v2417_v2 = vmul.f32 %v8407_v49, %v2385_v34  ;;  %v1669_v3 = vmul.f32 -2.7261424e-10, %v10992_v20 }
 0x292   : > { %13166 = vst [vmem:[#allocation21_spill] sm:$0xff] %v11001_v57  ;;  %v2388_v36 = vsub.f32 2.0, %v2356_v32  ;;  %v2418_v19 = vmul.f32 %v8409_v14, %v2386_v51  ;;  %v2448_v8 = vmul.f32 %v2416_v30, %v10879_v38  ;;  %v1700_v11 = vadd.f32 2.7706815e-08, %v1668_v22 }
 0x293   : > { %v2389_v46 = vsub.f32 2.0, %v2357_v48  ;;  %v2419_v52 = vmul.f32 %v8411_v56, %v2387_v23  ;;  %v2449_v12 = vmul.f32 %v2417_v2, %v10901_v55  ;;  %v1206_v18 = vmul.f32 %v10887_v5, %v10933_v58  ;;  %v11029_v56 = vld [vmem:[#allocation2 + $0x18a] sm:$0xff] }
 0x294   : > { %v2420_v54 = vmul.f32 %v8413_v4, %v2388_v36  ;;  %v2450_v25 = vmul.f32 %v2418_v19, %v10910_v37  ;;  %v2480_v7 = vadd.f32 1.0, %v2448_v8  ;;  %v1237_v38 = vadd.f32 %v1205_v63, %v10940_v62  ;;  %13169 = vst [vmem:[#allocation19_spill] sm:$0xff] %v11029_v56 }
 0x295   : > { %v2421_v6 = vmul.f32 %v8415_v39, %v2389_v46  ;;  %v2451_v50 = vmul.f32 %v2419_v52, %v10921_v21  ;;  %v2481_v49 = vadd.f32 1.0, %v2449_v12  ;;  %v1701_v55 = vadd.f32 2.7706815e-08, %v1669_v3 }
 0x296   : > { %v2452_v53 = vmul.f32 %v2420_v54, %v10924_v33  ;;  %v2482_v14 = vadd.f32 1.0, %v2450_v25  ;;  %v2512_v23 = vmul.f32 %v2480_v7, %v10693_v29  ;;  %v1732_v48 = vmul.f32 %v1700_v11, %v10969_v47  ;;  %v11024_v29 = vld [vmem:[#allocation2 + $0x189] sm:$0xff] }
 0x297   : > { %v2453_v2 = vmul.f32 %v2421_v6, %v10927_v10  ;;  %v2513_v37 = vmul.f32 %v2481_v49, %v10706_v43  ;;  %v1306_v46 = vmul.f32 %v10788_v60, %v10917_v44  ;;  %v11022_v33 = vmul.f32 %v10576_v27, %v10946_v59  ;;  %13167 = vst [vmem:[#allocation52_spill] sm:$0xff] %v11024_v29 }
 0x298   : > { %v2514_v21 = vmul.f32 %v2482_v14, %v10696_v0  ;;  %v2640_v58 = vcombine.high %v2512_v23, %v2512_v23  ;;  %v2647_v62 = vrot.slane %v2512_v23, %v13144_v17  ;;  %v2483_v12 = vadd.f32 1.0, %v2451_v50 }
 0x299   : > { %v2657_v10 = vcombine.high %v2513_v37, %v2513_v37  ;;  %v11026_v61 = vadd.f32 %v1105_v42, %v1036_v16  ;;  %v1238_v43 = vadd.f32 %v1206_v18, %v10975_v35  ;;  %v2484_v60 = vadd.f32 1.0, %v2452_v53 }
 0x29a   : > { %v2654_v0 = vrot.slane %v2640_v58, %v13144_v17  ;;  %v1733_v44 = vmul.f32 %v1701_v55, %v10992_v20  ;;  %v2084_v19 = vmul.f32 -1.45660715e-05, %v10969_v47  ;;  %v2485_v4 = vadd.f32 1.0, %v2453_v2 }
 0x29b   : > { %13168 = vst [vmem:[#allocation47_spill] sm:$0xff] %v11026_v61  ;;  %v2664_v27 = vrot.slane %v2513_v37, %v13144_v17  ;;  %v1764_v59 = vadd.f32 -2.101024e-06, %v1732_v48  ;;  %v11037_v24 = vmul.f32 %v10762_v45, %v11024_v29  ;;  %v2655_v42 = vcombine.high %v2647_v62, %v2647_v62 }
 0x29c   : > { %v2674_v34 = vcombine.high %v2514_v21, %v2514_v21  ;;  %v11039_v35 = vadd.f32 %v1306_v46, %v1237_v38  ;;  %v11043_v22 = vmul.f32 %v10774_v9, %v11029_v56  ;;  %v2515_v63 = vmul.f32 %v2483_v12, %v10703_v41 }
 0x29d   : > { %13170 = vst [vmem:[#allocation44_spill] sm:$0xff] %v11037_v24  ;;  %v2671_v39 = vrot.slane %v2657_v10, %v13144_v17  ;;  %v11048_v32 = vmul.f32 -1.45660715e-05, %v10992_v20  ;;  %v11051_v51 = vadd.f32 %v10963_v31, %v1238_v43  ;;  %v2516_v45 = vmul.f32 %v2484_v60, %v10712_v28 }
 0x29e   : > { %13171 = vst [vmem:[#allocation45_spill] sm:$0xff] %v11043_v22  ;;  %v2656_v30 = vcombine.high %v2654_v0, %v2654_v0  ;;  %v11054_v16 = vadd.f32 -2.101024e-06, %v1733_v44  ;;  %v11056_v36 = vadd.f32 -0.00021337405, %v2084_v19  ;;  %v2517_v9 = vmul.f32 %v2485_v4, %v10715_v1 }
 0x29f   : > { %v2672_v8 = vcombine.high %v2664_v27, %v2664_v27  ;;  %v3356_v41 = vsel %vm281_vm2, %v2647_v62, -inf  ;;  %v11061_v3 = vmul.f32 %v1764_v59, %v10969_v47  ;;  %v2681_v52 = vrot.slane %v2514_v21, %v13144_v17 }
 0x2a0   : > { %v11065_v31 = vrot.slane %v2674_v34, %v13144_v17  ;;  %v3357_v11 = vrot.slane %v3356_v41, 4  ;;  %v3363_v28 = vsel %vm281_vm2, %v2655_v42, -inf  ;;  %v2673_v54 = vcombine.high %v2671_v39, %v2671_v39 }
 0x2a1   : > { %v2691_v25 = vcombine.high %v2515_v63, %v2515_v63  ;;  %v3364_v7 = vrot.slane %v3363_v28, 4  ;;  %v3370_v18 = vsel %vm281_vm2, %v2654_v0, -inf  ;;  %v2708_v1 = vcombine.high %v2516_v45, %v2516_v45 }
 0x2a2   : > { %v3358_v6 = vmax.f32 %v3356_v41, %v3357_v11  ;;  %v3371_v50 = vrot.slane %v3370_v18, 4  ;;  %v3377_v49 = vsel %vm281_vm2, %v2656_v30, -inf  ;;  %v3384_v14 = vsel %vm281_vm2, %v2664_v27, -inf }
 0x2a3   : > { %v3365_v38 = vmax.f32 %v3363_v28, %v3364_v7  ;;  %v3378_v53 = vrot.slane %v3377_v49, 4  ;;  %v3391_v23 = vsel %vm281_vm2, %v2672_v8, -inf  ;;  %v2725_v55 = vcombine.high %v2517_v9, %v2517_v9 }
 0x2a4   : > { %v3359_v2 = vrot.slane %v3358_v6, 2  ;;  %v3372_v37 = vmax.f32 %v3370_v18, %v3371_v50  ;;  %v3385_v48 = vrot.slane %v3384_v14, 4  ;;  %v2698_v46 = vrot.slane %v2515_v63, %v13144_v17 }
 0x2a5   : > { %v3366_v21 = vrot.slane %v3365_v38, 2  ;;  %v3392_v58 = vrot.slane %v3391_v23, 4  ;;  %v3398_v62 = vsel %vm281_vm2, %v2671_v39, -inf  ;;  %v11075_v12 = vrot.slane %v2691_v25, %v13144_v17 }
 0x2a6   : > { %v11078_v10 = vrot.slane %v2516_v45, %v13144_v17  ;;  %v11081_v43 = vrot.slane %v2708_v1, %v13144_v17  ;;  %v3379_v60 = vmax.f32 %v3377_v49, %v3378_v53  ;;  %v3373_v0 = vrot.slane %v3372_v37, 2 }
 0x2a7   : > { %v3386_v44 = vmax.f32 %v3384_v14, %v3385_v48  ;;  %v3399_v19 = vrot.slane %v3398_v62, 4  ;;  %v3405_v4 = vsel %vm281_vm2, %v2673_v54, -inf  ;;  %v2689_v27 = vcombine.high %v2681_v52, %v2681_v52 }
 0x2a8   : > { %v11085_v59 = vrot.slane %v2517_v9, %v13144_v17  ;;  %v11088_v42 = vrot.slane %v2725_v55, %v13144_v17  ;;  %v3360_v34 = vmax.f32 %v3358_v6, %v3359_v2  ;;  %v2690_v63 = vcombine.high %v11065_v31, %v11065_v31 }
 0x2a9   : > { %v3367_v39 = vmax.f32 %v3365_v38, %v3366_v21  ;;  %v3393_v45 = vmax.f32 %v3391_v23, %v3392_v58  ;;  %v3400_v30 = vmax.f32 %v3398_v62, %v3399_v19  ;;  %v2706_v8 = vcombine.high %v2698_v46, %v2698_v46 }
 0x2aa   : > { %v3380_v11 = vrot.slane %v3379_v60, 2  ;;  %v3406_v28 = vrot.slane %v3405_v4, 4  ;;  %v2707_v9 = vcombine.high %v11075_v12, %v11075_v12  ;;  %v3374_v25 = vmax.f32 %v3372_v37, %v3373_v0 }
 0x2ab   : > { %v3387_v7 = vrot.slane %v3386_v44, 2  ;;  %v3361_v6 = vrot.slane %v3360_v34, 1  ;;  %v3412_v50 = vsel %vm281_vm2, %v2681_v52, -inf  ;;  %v3368_v49 = vrot.slane %v3367_v39, 1 }
 0x2ac   : > { %v3394_v38 = vrot.slane %v3393_v45, 2  ;;  %v3401_v53 = vrot.slane %v3400_v30, 2  ;;  %v3413_v14 = vrot.slane %v3412_v50, 4  ;;  %v3381_v23 = vmax.f32 %v3379_v60, %v3380_v11 }
 0x2ad   : > { %v3407_v55 = vmax.f32 %v3405_v4, %v3406_v28  ;;  %v3419_v2 = vsel %vm281_vm2, %v2689_v27, -inf  ;;  %v3426_v37 = vsel %vm281_vm2, %v11065_v31, -inf  ;;  %v3375_v48 = vrot.slane %v3374_v25, 1 }
 0x2ae   : > { %v3388_v21 = vmax.f32 %v3386_v44, %v3387_v7  ;;  %v3414_v58 = vmax.f32 %v3412_v50, %v3413_v14  ;;  %v3420_v62 = vrot.slane %v3419_v2, 4  ;;  %v3427_v0 = vrot.slane %v3426_v37, 4 }
 0x2af   : > { %v3433_v19 = vsel %vm281_vm2, %v2690_v63, -inf  ;;  %v3440_v52 = vsel %vm281_vm2, %v2698_v46, -inf  ;;  %v3447_v1 = vsel %vm281_vm2, %v2706_v8, -inf  ;;  %v3395_v18 = vmax.f32 %v3393_v45, %v3394_v38 }
 0x2b0   : > { %v3402_v54 = vmax.f32 %v3400_v30, %v3401_v53  ;;  %v3415_v60 = vrot.slane %v3414_v58, 2  ;;  %v3421_v4 = vmax.f32 %v3419_v2, %v3420_v62  ;;  %v3428_v11 = vmax.f32 %v3426_v37, %v3427_v0 }
 0x2b1   : > { %v3434_v27 = vrot.slane %v3433_v19, 4  ;;  %v3441_v28 = vrot.slane %v3440_v52, 4  ;;  %v3448_v41 = vrot.slane %v3447_v1, 4  ;;  %v3382_v31 = vrot.slane %v3381_v23, 1 }
 0x2b2   : > { %v3416_v17 = vmax.f32 %v3414_v58, %v3415_v60  ;;  %v3422_v44 = vrot.slane %v3421_v4, 2  ;;  %v3454_v7 = vsel %vm281_vm2, %v11075_v12, -inf  ;;  %v3429_v50 = vrot.slane %v3428_v11, 2 }
 0x2b3   : > { %v3435_v63 = vmax.f32 %v3433_v19, %v3434_v27  ;;  %v3442_v14 = vmax.f32 %v3440_v52, %v3441_v28  ;;  %v3449_v46 = vmax.f32 %v3447_v1, %v3448_v41  ;;  %v11111_v22 = vmax.f32 %v3360_v34, %v3361_v6 }
 0x2b4   : > { %v3389_v45 = vrot.slane %v3388_v21, 1  ;;  %v3408_v30 = vrot.slane %v3407_v55, 2  ;;  %v3455_v8 = vrot.slane %v3454_v7, 4  ;;  %v11113_v38 = vmax.f32 %v3367_v39, %v3368_v49 }
 0x2b5   : > { %v3396_v53 = vrot.slane %v3395_v18, 1  ;;  %v3403_v2 = vrot.slane %v3402_v54, 1  ;;  %v3417_v37 = vrot.slane %v3416_v17, 1  ;;  %v11115_v62 = vmax.f32 %v3374_v25, %v3375_v48 }
 0x2b6   : > { %v3423_v58 = vmax.f32 %v3421_v4, %v3422_v44  ;;  %v3436_v0 = vrot.slane %v3435_v63, 2  ;;  %v3461_v12 = vsel %vm281_vm2, %v2707_v9, -inf  ;;  %v11118_v60 = vmax.f32 %v3381_v23, %v3382_v31 }
 0x2b7   : > { %v3430_v19 = vmax.f32 %v3428_v11, %v3429_v50  ;;  %v3443_v41 = vrot.slane %v3442_v14, 2  ;;  %v3450_v34 = vrot.slane %v3449_v46, 2  ;;  %v11120_v1 = vmax.f32 %v3388_v21, %v3389_v45 }
 0x2b8   : > { %v11122_v6 = vmax.f32 %v3407_v55, %v3408_v30  ;;  %v3456_v39 = vmax.f32 %v3454_v7, %v3455_v8  ;;  %v3468_v49 = vsel %vm281_vm2, %v11078_v10, -inf  ;;  %v11126_v52 = vmax.f32 %v3395_v18, %v3396_v53 }
 0x2b9   : > { %v11128_v25 = vmax.f32 %v3402_v54, %v3403_v2  ;;  %v3418_v48 = vmax.f32 %v3416_v17, %v3417_v37  ;;  %v3462_v4 = vrot.slane %v3461_v12, 4  ;;  %v3424_v9 = vrot.slane %v3423_v58, 1 }
 0x2ba   : > { %v3437_v23 = vmax.f32 %v3435_v63, %v3436_v0  ;;  %v3469_v27 = vrot.slane %v3468_v49, 4  ;;  %v13172_v11 = vcombine.high %v11078_v10, %v11078_v10  ;;  %v3431_v55 = vrot.slane %v3430_v19, 1 }
 0x2bb   : > { %v3444_v28 = vmax.f32 %v3442_v14, %v3443_v41  ;;  %v3451_v31 = vmax.f32 %v3449_v46, %v3450_v34  ;;  %v3457_v7 = vrot.slane %v3456_v39, 2  ;;  %v3482_v54 = vsel %vm281_vm2, %v11081_v43, -inf }
 0x2bc   : > { %v3475_v21 = vsel %vm281_vm2, %v13172_v11, -inf  ;;  %v3470_v50 = vmax.f32 %v3468_v49, %v3469_v27  ;;  %v13173_v17 = vcombine.high %v11081_v43, %v11081_v43  ;;  %v3483_v45 = vrot.slane %v3482_v54, 4 }
 0x2bd   : > { %v3476_v44 = vrot.slane %v3475_v21, 4  ;;  %v3496_v10 = vsel %vm281_vm2, %v11085_v59, -inf  ;;  %v3438_v8 = vrot.slane %v3437_v23, 1  ;;  %v13174_v53 = vcombine.high %v11085_v59, %v11085_v59 }
 0x2be   : > { %v3489_v18 = vsel %vm281_vm2, %v13173_v17, -inf  ;;  %v3471_v14 = vrot.slane %v3470_v50, 2  ;;  %v3497_v46 = vrot.slane %v3496_v10, 4  ;;  %v3484_v0 = vmax.f32 %v3482_v54, %v3483_v45 }
 0x2bf   : > { %v3477_v63 = vmax.f32 %v3475_v21, %v3476_v44  ;;  %v3490_v30 = vrot.slane %v3489_v18, 4  ;;  %v3503_v2 = vsel %vm281_vm2, %v13174_v53, -inf  ;;  %v3445_v34 = vrot.slane %v3444_v28, 1 }
 0x2c0   : > { %v3504_v43 = vrot.slane %v3503_v2, 4  ;;  %v3472_v49 = vmax.f32 %v3470_v50, %v3471_v14  ;;  %v3498_v27 = vmax.f32 %v3496_v10, %v3497_v46  ;;  %v3510_v11 = vsel %vm281_vm2, %v11088_v42, -inf }
 0x2c1   : > { %v3478_v37 = vrot.slane %v3477_v63, 2  ;;  %v3491_v41 = vmax.f32 %v3489_v18, %v3490_v30  ;;  %v3485_v44 = vrot.slane %v3484_v0, 2  ;;  %v3452_v24 = vrot.slane %v3451_v31, 1 }
 0x2c2   : > { %v3505_v61 = vmax.f32 %v3503_v2, %v3504_v43  ;;  %v3458_v5 = vmax.f32 %v3456_v39, %v3457_v7  ;;  %v3499_v57 = vrot.slane %v3498_v27, 2  ;;  %v3511_v59 = vrot.slane %v3510_v11, 4 }
 0x2c3   : > { %v3479_v21 = vmax.f32 %v3477_v63, %v3478_v37  ;;  %v3492_v17 = vrot.slane %v3491_v41, 2  ;;  %v3473_v13 = vrot.slane %v3472_v49, 1  ;;  %v3486_v15 = vmax.f32 %v3484_v0, %v3485_v44  ;;  %v13176_v44 = vld [vmem:[#allocation35_spill] sm:$0xff] }
 0x2c4   : > { %v3425_v18 = vmax.f32 %v3423_v58, %v3424_v9  ;;  %v11148_v45 = vmax.f32 %v3461_v12, %v3462_v4  ;;  %v3500_v50 = vmax.f32 %v3498_v27, %v3499_v57  ;;  %v3506_v30 = vrot.slane %v3505_v61, 2 }
 0x2c5   : > { %v3480_v53 = vrot.slane %v3479_v21, 1  ;;  %v3493_v54 = vmax.f32 %v3491_v41, %v3492_v17  ;;  %v3432_v10 = vmax.f32 %v3430_v19, %v3431_v55  ;;  %v3439_v14 = vmax.f32 %v3437_v23, %v3438_v8 }
 0x2c6   : > { %v3446_v46 = vmax.f32 %v3444_v28, %v3445_v34  ;;  %v3487_v63 = vrot.slane %v3486_v15, 1  ;;  %v3453_v37 = vmax.f32 %v3451_v31, %v3452_v24  ;;  %v3459_v56 = vrot.slane %v3458_v5, 1 }
 0x2c7   : > { %v3494_v2 = vrot.slane %v3493_v54, 1  ;;  %v3512_v43 = vmax.f32 %v3510_v11, %v3511_v59  ;;  %v3474_v39 = vmax.f32 %v3472_v49, %v3473_v13  ;;  %v3481_v7 = vmax.f32 %v3479_v21, %v3480_v53  ;;  %v13175_v11 = vld [vmem:[#allocation13_spill] sm:$0xff] }
 0x2c8   : > { %v3501_v29 = vrot.slane %v3500_v50, 1  ;;  %v4164_v0 = vsel %vm278_vm0, %v11111_v22, -inf  ;;  %v3507_v41 = vmax.f32 %v3505_v61, %v3506_v30  ;;  %v4165_v58 = vsel %vm278_vm0, %v3418_v48, -inf  ;;  %v13179_v30 = vld [vmem:[#allocation28_spill] sm:$0xff] }
 0x2c9   : > { %v4167_v57 = vsel %vm278_vm0, %v11113_v38, -inf  ;;  %v4168_v12 = vsel %vm278_vm0, %v3425_v18, -inf  ;;  %v3488_v19 = vmax.f32 %v3486_v15, %v3487_v63  ;;  %v4170_v24 = vsel %vm278_vm0, %v11115_v62, -inf  ;;  %v13177_v18 = vld [vmem:[#allocation14_spill] sm:$0xff] }
 0x2ca   : > { %v4171_v4 = vsel %vm278_vm0, %v3432_v10, -inf  ;;  %v4173_v13 = vsel %vm278_vm0, %v11118_v60, -inf  ;;  %v3495_v9 = vmax.f32 %v3493_v54, %v3494_v2  ;;  %v3513_v23 = vrot.slane %v3512_v43, 2 }
 0x2cb   : > { %v4174_v61 = vsel %vm278_vm0, %v3439_v14, -inf  ;;  %v4176_v22 = vsel %vm278_vm0, %v11120_v1, -inf  ;;  %v3502_v48 = vmax.f32 %v3500_v50, %v3501_v29  ;;  %v4166_v38 = vmax.f32 %v4164_v0, %v4165_v58 }
 0x2cc   : > { %v4169_v55 = vmax.f32 %v4167_v57, %v4168_v12  ;;  %v4177_v15 = vsel %vm278_vm0, %v3446_v46, -inf  ;;  %v4172_v28 = vmax.f32 %v4170_v24, %v4171_v4  ;;  %v4175_v31 = vmax.f32 %v4173_v13, %v4174_v61 }
 0x2cd   : > { %v4179_v62 = vsel %vm278_vm0, %v11126_v52, -inf  ;;  %v4180_v8 = vsel %vm278_vm0, %v3453_v37, -inf  ;;  %v4178_v60 = vmax.f32 %v4176_v22, %v4177_v15  ;;  %v4188_v34 = vsel %vm278_vm0, %v3474_v39, -inf }
 0x2ce   : > { %v4191_v49 = vsel %vm278_vm0, %v3481_v7, -inf  ;;  %v4194_v27 = vsel %vm278_vm0, %v3488_v19, -inf  ;;  %v3460_v1 = vmax.f32 %v3458_v5, %v3459_v56  ;;  %v11172_v29 = vmax.f32 %v4188_v34, %v10798_v40 }
 0x2cf   : > { %v11175_v21 = vmax.f32 %v4191_v49, %v13175_v11  ;;  %v11178_v17 = vmax.f32 %v4194_v27, %v13176_v44  ;;  %v4181_v52 = vmax.f32 %v4179_v62, %v4180_v8  ;;  %v4197_v59 = vsel %vm278_vm0, %v3495_v9, -inf }
 0x2d0   : > { %v4200_v53 = vsel %vm278_vm0, %v3502_v48, -inf  ;;  %v7983_v54 = vpack.c.bf16 %v4166_v38, %v4166_v38  ;;  %v11183_v50 = vmax.f32 %v4197_v59, %v13177_v18  ;;  %v7984_v40 = vpack.c.bf16 %v4169_v55, %v4169_v55 }
 0x2d1   : > { %v11186_v5 = vmax.f32 %v4200_v53, %v13179_v30  ;;  %v7985_v56 = vpack.c.bf16 %v4172_v28, %v4172_v28  ;;  %v3508_v10 = vrot.slane %v3507_v41, 1  ;;  %v3514_v14 = vmax.f32 %v3512_v43, %v3513_v23 }
 0x2d2   : > { %13178 = vst [vmem:[#allocation46_spill] sm:$0xff] %v11183_v50  ;;  %v7986_v46 = vpack.c.bf16 %v4175_v31, %v4175_v31  ;;  %v7987_v63 = vpack.c.bf16 %v4178_v60, %v4178_v60  ;;  %v4182_v37 = vsel %vm278_vm0, %v11128_v25, -inf  ;;  %v4183_v2 = vsel %vm278_vm0, %v3460_v1, -inf }
 0x2d3   : > { %v1797_v39 = vmul.f32 %v11054_v16, %v10992_v20  ;;  %v1828_v7 = vadd.f32 -5.6925062e-05, %v11061_v3  ;;  %v3410_v0 = vrot.slane %v11122_v6, 1  ;;  %v3464_v58 = vrot.slane %v11148_v45, 2 }
 0x2d4   : > { %v4668_v57 = vunpack.c.l.b16 %v7984_v40  ;;  %v4669_v12 = vunpack.c.l.b16 %v7985_v56  ;;  %v13180_v43 = vcombine.high %v11088_v42, %v11088_v42  ;;  %v7988_v25 = vpack.c.bf16 %v4181_v52, %v4181_v52 }
 0x2d5   : > { %v4667_v24 = vunpack.c.l.b16 %v7983_v54  ;;  %v4670_v4 = vunpack.c.l.b16 %v7986_v46  ;;  %v3509_v13 = vmax.f32 %v3507_v41, %v3508_v10  ;;  %v3515_v9 = vrot.slane %v3514_v14, 1 }
 0x2d6   : > { %v11200_v19 = vsel %vm281_vm2, %v13180_v43, -inf  ;;  %v4184_v16 = vmax.f32 %v4182_v37, %v4183_v2  ;;  %v4671_v23 = vunpack.c.l.b16 %v7987_v63  ;;  %v1829_v61 = vadd.f32 -5.6925062e-05, %v1797_v39  ;;  %v13195_v2 = vld [vmem:[#allocation45_spill] sm:$0xff] }
 0x2d7   : > { %v4735_v3 = vsel %vm4723_vm3, %v4668_v57, %v4667_v24  ;;  %v1860_v22 = vmul.f32 %v1828_v7, %v10969_v47  ;;  %v2117_v48 = vadd.f32 -0.00021337405, %v11048_v32  ;;  %v2148_v42 = vmul.f32 %v11056_v36, %v10969_v47  ;;  %v11219_v36 = vld [vmem:[%s12844_s2] ss:$0 sm:$0xff] }
 0x2d8   : > { %v4736_v38 = vsel %vm4725_vm4, %v4669_v12, %v4735_v3  ;;  %v1439_v55 = vadd.f32 %v11022_v33, %v11039_v35  ;;  %v1440_v41 = vadd.f32 %v10972_v26, %v11051_v51  ;;  %v4672_v15 = vunpack.c.l.b16 %v7988_v25 }
 0x2d9   : > { %v4737_v28 = vsel %vm4727_vm5, %v4670_v4, %v4736_v38  ;;  %v1861_v31 = vmul.f32 %v1829_v61, %v10992_v20  ;;  %v2149_v62 = vmul.f32 %v2117_v48, %v10992_v20  ;;  %v2180_v8 = vadd.f32 -0.001682827, %v2148_v42  ;;  %v13184_v48 = vld [vmem:[#allocation52_spill] sm:$0xff]  ;;  %v868_v42 = vld [vmem:[#allocation2 + $0x180] sm:$0xff] }
 0x2da   : > { %v4738_v32 = vsel %vm4729_vm6, %v4671_v23, %v4737_v28  ;;  %v11222_v33 = vadd.f32 %v11219_v36, %v1439_v55  ;;  %v11225_v26 = vadd.f32 %v11219_v36, %v1440_v41  ;;  %v11228_v35 = vmax.f32 %v11122_v6, %v3410_v0  ;;  %v11295_v28 = vld [vmem:[%s12843_s1 + $0x8] ss:$0 sm:$0xff] }
 0x2db   : > { %v11231_v51 = vsel %vm4731_vm7, %v4672_v15, %v4738_v32  ;;  %v1892_v60 = vadd.f32 -0.00073499064, %v1860_v22  ;;  %v2181_v34 = vadd.f32 -0.001682827, %v2149_v62  ;;  %v11234_v49 = vmax.f32 %v11148_v45, %v3464_v58  ;;  %v8479_v22 = vld [vmem:[%s12843_s1 + $0x7] ss:$0 sm:$0xff] }
 0x2dc   : > { %13181 = vst [vmem:[#allocation70_spill] sm:$0xff] %v11231_v51  ;;  %v2212_v1 = vmul.f32 %v2180_v8, %v10969_v47  ;;  %v1542_v11 = vmul.f32 0.70710677, %v11222_v33  ;;  %v11239_v44 = vmax.f32 %v3514_v14, %v3515_v9  ;;  %v1893_v52 = vadd.f32 -0.00073499064, %v1861_v31  ;;  %v13185_v31 = vld [vmem:[#allocation19_spill] sm:$0xff] }
 0x2dd   : > { %v2213_v6 = vmul.f32 %v2181_v34, %v10992_v20  ;;  %v1543_v59 = vmul.f32 0.70710677, %v11225_v26  ;;  %v11244_v53 = vsel %vm278_vm0, %v3509_v13, -inf  ;;  %v7989_v54 = vpack.c.bf16 %v4184_v16, %v4184_v16  ;;  %v869_v32 = vld [vmem:[#allocation2 + $0x188] sm:$0xff] }
 0x2de   : > { %13182 = vst [vmem:[#allocation66_spill] sm:$0xff] %v11239_v44  ;;  %v2244_v18 = vadd.f32 -0.0073733293, %v2212_v1  ;;  %v11246_v45 = vclamps-f32 %v1542_v11, 4.0  ;;  %v7991_v30 = vpack.c.bf16 %v11172_v29, %v11172_v29  ;;  %v1924_v40 = vmul.f32 %v1892_v60, %v10969_v47  ;;  %v969_v8 = vld [vmem:[#allocation2 + $0x181] sm:$0xff]  ;;  %v13186_v1 = vld [vmem:[#allocation65_spill] sm:$0xff] }
 0x2df   : > { %v2245_v56 = vadd.f32 -0.0073733293, %v2213_v6  ;;  %v11251_v10 = vclamps-f32 %v1543_v59, 4.0  ;;  %v7992_v14 = vpack.c.bf16 %v11175_v21, %v11175_v21  ;;  %v1925_v39 = vmul.f32 %v1893_v52, %v10992_v20  ;;  %v13187_v11 = vld [vmem:[#allocation67_spill] sm:$0xff]  ;;  %v13188_v6 = vld [vmem:[#allocation21_spill] sm:$0xff] }
 0x2e0   : > { %v2276_v63 = vmul.f32 %v2244_v18, %v10969_v47  ;;  %v11260_v37 = vmul.f32 %v11246_v45, %v11246_v45  ;;  %v11276_v25 = vunpack.c.l.b16 %v7989_v54  ;;  %v1956_v24 = vadd.f32 -0.0029546, %v1924_v40  ;;  %v13189_v59 = vld [vmem:[#allocation53_spill] sm:$0xff]  ;;  %v1070_v18 = vld [vmem:[#allocation2 + $0x182] sm:$0xff] }
 0x2e1   : > { %v2277_v7 = vmul.f32 %v2245_v56, %v10992_v20  ;;  %v11268_v0 = vmul.f32 %v11251_v10, %v11251_v10  ;;  %v1957_v3 = vadd.f32 -0.0029546, %v1925_v39  ;;  %v11288_v38 = vmul.f32 %v8479_v22, %v13184_v48  ;;  %v13190_v39 = vld [vmem:[#allocation38_spill] sm:$0xff] }
 0x2e2   : > { %v11272_v57 = vadd.f32 -0.014264739, %v2276_v63  ;;  %v1670_v12 = vmul.f32 -2.7261424e-10, %v11260_v37  ;;  %v2086_v43 = vmul.f32 -1.45660715e-05, %v11260_v37  ;;  %v11299_v62 = vmul.f32 %v11295_v28, %v13185_v31 }
 0x2e3   : > { %13183 = vst [vmem:[#allocation48_spill] sm:$0xff] %v11276_v25  ;;  %v11278_v4 = vadd.f32 -0.014264739, %v2277_v7  ;;  %v1671_v13 = vmul.f32 -2.7261424e-10, %v11268_v0  ;;  %v1988_v60 = vmul.f32 %v1956_v24, %v10969_v47  ;;  %v837_v52 = vadd.f32 %v13187_v11, %v13186_v1  ;;  %v13191_v48 = vld [vmem:[#allocation42_spill] sm:$0xff] }
 0x2e4   : > { %8416 = vrcp.f32 %v11272_v57  ;;  %v1702_v9 = vadd.f32 2.7706815e-08, %v1670_v12  ;;  %v2087_v16 = vmul.f32 -1.45660715e-05, %v11268_v0  ;;  %v2118_v23 = vadd.f32 -0.00021337405, %v2086_v43 }
 0x2e5   : > { %8418 = vrcp.f32 %v11278_v4  ;;  %v1703_v61 = vadd.f32 2.7706815e-08, %v1671_v13  ;;  %v1138_v54 = vadd.f32 %v13189_v59, %v13188_v6  ;;  %v905_v7 = vmul.f32 %v13190_v39, %v868_v42  ;;  %v1172_v13 = vld [vmem:[#allocation2 + $0x198] sm:$0xff]  ;;  %v8481_v24 = vld [vmem:[%s12843_s1 + $0x4] ss:$0 sm:$0xff] }
 0x2e6   : > { %v1734_v55 = vmul.f32 %v1702_v9, %v11260_v37  ;;  %v2119_v41 = vadd.f32 -0.00021337405, %v2087_v16  ;;  %v2150_v15 = vmul.f32 %v2118_v23, %v11260_v37  ;;  %v1989_v12 = vmul.f32 %v1957_v3, %v10992_v20  ;;  %v13192_v31 = vld [vmem:[#allocation50_spill] sm:$0xff] }
 0x2e7   : > { %v1735_v34 = vmul.f32 %v1703_v61, %v11268_v0  ;;  %v906_v47 = vmul.f32 %v13190_v39, %v869_v32  ;;  %v1006_v9 = vmul.f32 %v8481_v24, %v969_v8  ;;  %v1173_v61 = vld [vmem:[#allocation2 + $0x1a0] sm:$0xff]  ;;  %v1208_v1 = vmul.f32 %v13192_v31, %v869_v32  ;;  %v13194_v32 = vld [vmem:[#allocation47_spill] sm:$0xff] }
 0x2e8   : > { %v1766_v40 = vadd.f32 -2.101024e-06, %v1734_v55  ;;  %v2151_v56 = vmul.f32 %v2119_v41, %v11268_v0  ;;  %v2182_v63 = vadd.f32 -0.001682827, %v2150_v15  ;;  %v937_v55 = vadd.f32 %v905_v7, %v13191_v48  ;;  %v8482_v41 = vld [vmem:[%s12843_s1 + $0x5] ss:$0 sm:$0xff] }
 0x2e9   : > { %v1767_v43 = vadd.f32 -2.101024e-06, %v1735_v34  ;;  %v1107_v20 = vmul.f32 %v8482_v41, %v1070_v18  ;;  %v938_v15 = vadd.f32 %v906_v47, %v837_v52  ;;  %v1207_v34 = vmul.f32 %v13192_v31, %v868_v42  ;;  %v1273_v24 = vld [vmem:[#allocation2 + $0x199] sm:$0xff]  ;;  %v13193_v48 = vld [vmem:[#allocation44_spill] sm:$0xff]  ;;  %v1274_v42 = vld [vmem:[#allocation2 + $0x1a1] sm:$0xff] }
 0x2ea   : > { %v1798_v16 = vmul.f32 %v1766_v40, %v11260_v37  ;;  %v2183_v23 = vadd.f32 -0.001682827, %v2151_v56  ;;  %v2214_v6 = vmul.f32 %v2182_v63, %v11260_v37  ;;  %v1209_v59 = vmul.f32 %v13192_v31, %v1172_v13 }
 0x2eb   : > { %v1799_v3 = vmul.f32 %v1767_v43, %v11268_v0  ;;  %v1038_v40 = vadd.f32 %v1006_v9, %v937_v55  ;;  %v1210_v7 = vmul.f32 %v13192_v31, %v1173_v61  ;;  %v1039_v41 = vadd.f32 %v13193_v48, %v938_v15  ;;  %v1374_v48 = vld [vmem:[#allocation2 + $0x19a] sm:$0xff] }
 0x2ec   : > { %v1830_v11 = vadd.f32 -5.6925062e-05, %v1798_v16  ;;  %v2215_v39 = vmul.f32 %v2183_v23, %v11268_v0  ;;  %v2020_v43 = vadd.f32 -0.016096033, %v1988_v60  ;;  %v1239_v16 = vadd.f32 %v1207_v34, %v13194_v32 }
 0x2ed   : > { %v1831_v56 = vadd.f32 -5.6925062e-05, %v1799_v3  ;;  %v1139_v47 = vadd.f32 %v1107_v20, %v1038_v40  ;;  %v1140_v13 = vadd.f32 %v13195_v2, %v1039_v41  ;;  %v1240_v9 = vadd.f32 %v1208_v1, %v1138_v54 }
 0x2ee   : > { %v1862_v52 = vmul.f32 %v1830_v11, %v11260_v37  ;;  %v1308_v55 = vmul.f32 %v8479_v22, %v969_v8  ;;  %v2246_v23 = vadd.f32 -0.0073733293, %v2214_v6  ;;  %v1310_v27 = vmul.f32 %v8479_v22, %v1273_v24  ;;  %v1375_v6 = vld [vmem:[#allocation2 + $0x1a2] sm:$0xff] }
 0x2ef   : > { %v1863_v63 = vmul.f32 %v1831_v56, %v11268_v0  ;;  %v1241_v61 = vadd.f32 %v1209_v59, %v1139_v47  ;;  %v2247_v15 = vadd.f32 -0.0073733293, %v2215_v39  ;;  %v1311_v60 = vmul.f32 %v8479_v22, %v1274_v42  ;;  %v13197_v47 = vld [vmem:[#allocation41_spill] sm:$0xff] }
 0x2f0   : > { %v1894_v3 = vadd.f32 -0.00073499064, %v1862_v52  ;;  %v1242_v11 = vadd.f32 %v1210_v7, %v1140_v13  ;;  %v1340_v40 = vadd.f32 %v1308_v55, %v1239_v16  ;;  %v1409_v2 = vmul.f32 %v11295_v28, %v1070_v18 }
 0x2f1   : > { %v8417_v31 = vpop.eup %8416  ;;  %v1895_v58 = vadd.f32 -0.00073499064, %v1863_v63  ;;  %v2021_v54 = vadd.f32 -0.016096033, %v1989_v12  ;;  %v1341_v59 = vadd.f32 %v11288_v38, %v1240_v9  ;;  %v2278_v22 = vmul.f32 %v2246_v23, %v11260_v37 }
 0x2f2   : > { %v8419_v46 = vpop.eup %8418  ;;  %v2372_v20 = vmul.f32 %v8417_v31, %v11272_v57  ;;  %v1926_v34 = vmul.f32 %v1894_v3, %v11260_v37  ;;  %v1411_v39 = vmul.f32 %v11295_v28, %v1374_v48  ;;  %v1342_v7 = vadd.f32 %v1310_v27, %v1241_v61  ;;  %v13196_v57 = vld [vmem:[#allocation74_spill] sm:$0xff] }
 0x2f3   : > { %v2373_v8 = vmul.f32 %v8419_v46, %v11278_v4  ;;  %v1927_v1 = vmul.f32 %v1895_v58, %v11268_v0  ;;  %v2052_v24 = vmul.f32 %v13196_v57, %v2020_v43  ;;  %v2279_v18 = vmul.f32 %v2247_v15, %v11268_v0 }
 0x2f4   : > { %v2404_v56 = vsub.f32 2.0, %v2372_v20  ;;  %v1958_v52 = vadd.f32 -0.0029546, %v1926_v34  ;;  %v1412_v4 = vmul.f32 %v11295_v28, %v1375_v6  ;;  %v1343_v42 = vadd.f32 %v1311_v60, %v1242_v11  ;;  %v13204_v60 = vld [vmem:[#allocation75_spill] sm:$0xff] }
 0x2f5   : > { %v2405_v41 = vsub.f32 2.0, %v2373_v8  ;;  %v1441_v58 = vadd.f32 %v1409_v2, %v1340_v40  ;;  %v2053_v32 = vmul.f32 %v13197_v47, %v2021_v54  ;;  %v1959_v16 = vadd.f32 -0.0029546, %v1927_v1  ;;  %v13205_v20 = vld [vmem:[#allocation39_spill] sm:$0xff] }
 0x2f6   : > { %v2436_v12 = vmul.f32 %v8417_v31, %v2404_v56  ;;  %v1442_v63 = vadd.f32 %v11299_v62, %v1341_v59  ;;  %v11347_v27 = vunpack.c.l.b16 %v7991_v30  ;;  %v11349_v13 = vadd.f32 -0.014264739, %v2278_v22  ;;  %v13206_v2 = vld [vmem:[#allocation7_spill] sm:$0xff] }
 0x2f7   : > { %v2437_v38 = vmul.f32 %v8419_v46, %v2405_v41  ;;  %v1443_v9 = vadd.f32 %v1411_v39, %v1342_v7  ;;  %v11354_v28 = vunpack.c.l.b16 %v7992_v14  ;;  %v1990_v46 = vmul.f32 %v1958_v52, %v11260_v37 }
 0x2f8   : > { %13198 = vst [vmem:[#allocation54_spill] sm:$0xff] %v11347_v27  ;;  %v2468_v43 = vmul.f32 %v2436_v12, %v2052_v24  ;;  %v11357_v3 = vadd.f32 -0.014264739, %v2279_v18  ;;  %v13200_v62 = vpack.c.bf16 %v11178_v17, %v11178_v17  ;;  %v1444_v23 = vadd.f32 %v1412_v4, %v1343_v42 }
 0x2f9   : > { %13199 = vst [vmem:[#allocation55_spill] sm:$0xff] %v11354_v28  ;;  %v2469_v55 = vmul.f32 %v2437_v38, %v2053_v32  ;;  %v1480_v61 = vadd.f32 %v11219_v36, %v1441_v58  ;;  %v13202_v31 = vpack.c.bf16 %v11186_v5, %v11186_v5  ;;  %v1991_v15 = vmul.f32 %v1959_v16, %v11268_v0 }
 0x2fa   : > { %v11362_v29 = vunpack.c.l.b16 %v13200_v62  ;;  %v2500_v30 = vadd.f32 1.0, %v2468_v43  ;;  %v1481_v37 = vadd.f32 %v11219_v36, %v1442_v63  ;;  %v11374_v17 = vmul.f32 0.5, %v11222_v33 }
 0x2fb   : > { %v11368_v21 = vunpack.c.l.b16 %v13202_v31  ;;  %v2501_v14 = vadd.f32 1.0, %v2469_v55  ;;  %8420 = vrcp.f32 %v11349_v13  ;;  %v1482_v11 = vadd.f32 %v11219_v36, %v1443_v9 }
 0x2fc   : > { %13201 = vst [vmem:[#allocation57_spill] sm:$0xff] %v11362_v29  ;;  %v2532_v48 = vmul.f32 %v2500_v30, %v13204_v60  ;;  %v11380_v5 = vmul.f32 0.5, %v11225_v26  ;;  %v2022_v40 = vadd.f32 -0.016096033, %v1990_v46  ;;  %8422 = vrcp.f32 %v11357_v3 }
 0x2fd   : > { %13203 = vst [vmem:[#allocation71_spill] sm:$0xff] %v11368_v21  ;;  %v2533_v34 = vmul.f32 %v2501_v14, %v13205_v20  ;;  %v1483_v8 = vadd.f32 %v11219_v36, %v1444_v23  ;;  %v11385_v1 = vmul.f32 0.5, %v1480_v61  ;;  %v2023_v59 = vadd.f32 -0.016096033, %v1991_v15 }
 0x2fe   : > { %v2980_v0 = vcombine.high %v2532_v48, %v2532_v48  ;;  %v2987_v54 = vrot.slane %v2532_v48, %v13206_v2  ;;  %v11388_v56 = vmul.f32 0.5, %v1481_v37  ;;  %v11392_v7 = vmul.f32 0.5, %v1482_v11 }
 0x2ff   : > { %v2997_v33 = vcombine.high %v2533_v34, %v2533_v34  ;;  %v3004_v6 = vrot.slane %v2533_v34, %v13206_v2  ;;  %v1544_v62 = vmul.f32 0.70710677, %v1480_v61  ;;  %v1545_v48 = vmul.f32 0.70710677, %v1481_v37 }
 0x300   : > { %v2994_v22 = vrot.slane %v2980_v0, %v13206_v2  ;;  %v2995_v26 = vcombine.high %v2987_v54, %v2987_v54  ;;  %v3916_v39 = vsel %vm281_vm2, %v2987_v54, -inf  ;;  %v1546_v20 = vmul.f32 0.70710677, %v1482_v11 }
 0x301   : > { %v3011_v57 = vrot.slane %v2997_v33, %v13206_v2  ;;  %v3012_v24 = vcombine.high %v3004_v6, %v3004_v6  ;;  %v3917_v41 = vrot.slane %v3916_v39, 4  ;;  %v3944_v36 = vsel %vm281_vm2, %v3004_v6, -inf }
 0x302   : > { %v2996_v52 = vcombine.high %v2994_v22, %v2994_v22  ;;  %v3923_v18 = vsel %vm281_vm2, %v2995_v26, -inf  ;;  %v3930_v12 = vsel %vm281_vm2, %v2994_v22, -inf  ;;  %v3945_v4 = vrot.slane %v3944_v36, 4 }
 0x303   : > { %v3013_v42 = vcombine.high %v3011_v57, %v3011_v57  ;;  %v3918_v58 = vmax.f32 %v3916_v39, %v3917_v41  ;;  %v3924_v47 = vrot.slane %v3923_v18, 4  ;;  %v3931_v32 = vrot.slane %v3930_v12, 4 }
 0x304   : > { %v3937_v38 = vsel %vm281_vm2, %v2996_v52, -inf  ;;  %v3946_v16 = vmax.f32 %v3944_v36, %v3945_v4  ;;  %v3951_v63 = vsel %vm281_vm2, %v3012_v24, -inf  ;;  %v3958_v43 = vsel %vm281_vm2, %v3011_v57, -inf }
 0x305   : > { %v3925_v9 = vmax.f32 %v3923_v18, %v3924_v47  ;;  %v3932_v55 = vmax.f32 %v3930_v12, %v3931_v32  ;;  %v3938_v46 = vrot.slane %v3937_v38, 4  ;;  %v3919_v30 = vrot.slane %v3918_v58, 2 }
 0x306   : > { %v3952_v23 = vrot.slane %v3951_v63, 4  ;;  %v3959_v31 = vrot.slane %v3958_v43, 4  ;;  %v3965_v14 = vsel %vm281_vm2, %v3013_v42, -inf  ;;  %v3947_v60 = vrot.slane %v3946_v16, 2 }
 0x307   : > { %v3939_v15 = vmax.f32 %v3937_v38, %v3938_v46  ;;  %v3926_v34 = vrot.slane %v3925_v9, 2  ;;  %v3933_v0 = vrot.slane %v3932_v55, 2  ;;  %v3966_v26 = vrot.slane %v3965_v14, 4 }
 0x308   : > { %v3953_v54 = vmax.f32 %v3951_v63, %v3952_v23  ;;  %v3960_v33 = vmax.f32 %v3958_v43, %v3959_v31  ;;  %v8421_v6 = vpop.eup %8420  ;;  %v2054_v39 = vmul.f32 %v11246_v45, %v2022_v40  ;;  %v1547_v57 = vmul.f32 0.70710677, %v1483_v8  ;;  %v13209_v43 = vld [vmem:[#allocation60_spill] sm:$0xff] }
 0x309   : > { %v3940_v22 = vrot.slane %v3939_v15, 2  ;;  %v8423_v61 = vpop.eup %8422  ;;  %v3920_v24 = vmax.f32 %v3918_v58, %v3919_v30  ;;  %v11403_v36 = vmul.f32 0.5, %v1483_v8  ;;  %v11405_v52 = vclamps-f32 %v1544_v62, 4.0  ;;  %v13207_v8 = vld [vmem:[#allocation59_spill] sm:$0xff]  ;;  %v8324_v30 = vld [vmem:[%s12845_s3 + $0x18] sm:$0xff]  }
 0x30a   : > { %v3954_v41 = vrot.slane %v3953_v54, 2  ;;  %v3948_v18 = vmax.f32 %v3946_v16, %v3947_v60  ;;  %v2055_v37 = vmul.f32 %v11251_v10, %v2023_v59  ;;  %v11408_v11 = vclamps-f32 %v1545_v48, 4.0  ;;  %8121 = vmatprep.subr.bf16.mxu0 %v8324_v30  ;;  %8277 = vmatprep.subr.bf16.mxu1 %v8324_v30 }
 0x30b   : > { %v11410_v12 = vclamps-f32 %v1546_v20, 4.0  ;;  %v3927_v4 = vmax.f32 %v3925_v9, %v3926_v34  ;;  %v3934_v42 = vmax.f32 %v3932_v55, %v3933_v0  ;;  %v3961_v47 = vrot.slane %v3960_v33, 2  ;;  %8122 = vmatpush3.bf16.msra.mxu0 %v8324_v30  ;;  %8279 = vmatpush3.bf16.msra.mxu1 %v8324_v30 }
 0x30c   : > { %v2374_v45 = vmul.f32 %v8421_v6, %v11349_v13  ;;  %v3941_v40 = vmax.f32 %v3939_v15, %v3940_v22  ;;  %v3967_v32 = vmax.f32 %v3965_v14, %v3966_v26  ;;  %v11413_v58 = vclamps-f32 %v1547_v57, 4.0 }
 0x30d   : > { %v13208_v38 = vrot.slane %v13207_v8, 4  ;;  %v3921_v16 = vrot.slane %v3920_v24, 1  ;;  %v3955_v10 = vmax.f32 %v3953_v54, %v3954_v41  ;;  %v11422_v59 = vmul.f32 %v11405_v52, %v11405_v52 }
 0x30e   : > { %v3949_v55 = vrot.slane %v3948_v18, 1  ;;  %v2375_v13 = vmul.f32 %v8423_v61, %v11357_v3  ;;  %v11428_v46 = vmul.f32 %v11408_v11, %v11408_v11  ;;  %v11432_v62 = vmul.f32 %v11410_v12, %v11410_v12 }
 0x30f   : > { %v11418_v63 = vmax.f32 %v13207_v8, %v13208_v38  ;;  %v3928_v23 = vrot.slane %v3927_v4, 1  ;;  %v3935_v31 = vrot.slane %v3934_v42, 1  ;;  %v3962_v14 = vmax.f32 %v3960_v33, %v3961_v47 }
 0x310   : > { %v2406_v15 = vsub.f32 2.0, %v2374_v45  ;;  %v3942_v60 = vrot.slane %v3941_v40, 1  ;;  %v3968_v48 = vrot.slane %v3967_v32, 2  ;;  %v2407_v20 = vsub.f32 2.0, %v2375_v13 }
 0x311   : > { %v11439_v3 = vmul.f32 %v11413_v58, %v11413_v58  ;;  %v3922_v34 = vmax.f32 %v3920_v24, %v3921_v16  ;;  %v3956_v0 = vrot.slane %v3955_v10, 1  ;;  %v1672_v22 = vmul.f32 -2.7261424e-10, %v11422_v59 }
 0x312   : > { %v2438_v54 = vmul.f32 %v8421_v6, %v2406_v15  ;;  %v3950_v26 = vmax.f32 %v3948_v18, %v3949_v55  ;;  %v2439_v57 = vmul.f32 %v8423_v61, %v2407_v20  ;;  %v1673_v33 = vmul.f32 -2.7261424e-10, %v11428_v46  ;;  %v8325_v55 = vld [vmem:[%s12845_s3 + $0x10] sm:$0xff]  }
 0x313   : > { %v1674_v41 = vmul.f32 -2.7261424e-10, %v11432_v62  ;;  %v3929_v47 = vmax.f32 %v3927_v4, %v3928_v23  ;;  %v3936_v45 = vmax.f32 %v3934_v42, %v3935_v31  ;;  %v1675_v38 = vmul.f32 -2.7261424e-10, %v11439_v3  ;;  %8123 = vmatprep.subr.bf16.mxu0 %v8325_v55  ;;  %8278 = vmatprep.subr.bf16.mxu1 %v8325_v55 }
 0x314   : > { %v2470_v8 = vmul.f32 %v2438_v54, %v2054_v39  ;;  %v3943_v13 = vmax.f32 %v3941_v40, %v3942_v60  ;;  %v3963_v9 = vrot.slane %v3962_v14, 1  ;;  %v11445_v24 = vmax.f32 %v3967_v32, %v3968_v48  ;;  %8124 = vmatpush3.bf16.msra.mxu0 %v8325_v55  ;;  %8280 = vmatpush3.bf16.msra.mxu1 %v8325_v55 }
 0x315   : > { %v2471_v6 = vmul.f32 %v2439_v57, %v2055_v37  ;;  %v3957_v16 = vmax.f32 %v3955_v10, %v3956_v0  ;;  %v11448_v15 = vsel %vm278_vm0, %v3922_v34, -inf  ;;  %v1704_v61 = vadd.f32 2.7706815e-08, %v1672_v22 }
 0x316   : > { %13210 = vst [vmem:[#allocation73_spill] sm:$0xff] %v11445_v24  ;;  %v2502_v18 = vadd.f32 1.0, %v2470_v8  ;;  %v11454_v4 = vsel %vm278_vm0, %v3950_v26, -inf  ;;  %v1705_v42 = vadd.f32 2.7706815e-08, %v1673_v33  ;;  %v11457_v32 = vsel %vm278_vm0, %v3929_v47, -inf }
 0x317   : > { %v2503_v39 = vadd.f32 1.0, %v2471_v6  ;;  %v1706_v40 = vadd.f32 2.7706815e-08, %v1674_v41  ;;  %v11460_v37 = vsel %vm278_vm0, %v3936_v45, -inf  ;;  %v1707_v30 = vadd.f32 2.7706815e-08, %v1675_v38 }
 0x318   : > { %v2534_v10 = vmul.f32 %v2502_v18, %v11374_v17  ;;  %v11463_v23 = vmax.f32 %v3962_v14, %v3963_v9  ;;  %v11467_v60 = vsel %vm278_vm0, %v3943_v13, -inf  ;;  %v11471_v20 = vsel %vm278_vm0, %v3957_v16, -inf }
 0x319   : > { %v2535_v48 = vmul.f32 %v2503_v39, %v11380_v5  ;;  %v1736_v0 = vmul.f32 %v1704_v61, %v11422_v59  ;;  %v1737_v14 = vmul.f32 %v1705_v42, %v11428_v46  ;;  %v1738_v22 = vmul.f32 %v1706_v40, %v11432_v62 }
 0x31a   : > { %v3014_v34 = vcombine.high %v2534_v10, %v2534_v10  ;;  %v3021_v17 = vrot.slane %v2534_v10, %v13206_v2  ;;  %v1739_v33 = vmul.f32 %v1707_v30, %v11439_v3 }
 0x31b   : > { %v3031_v54 = vcombine.high %v2535_v48, %v2535_v48  ;;  %v3038_v9 = vrot.slane %v2535_v48, %v13206_v2 }
 0x31c   : > { %v3028_v26 = vrot.slane %v3014_v34, %v13206_v2  ;;  %v3029_v5 = vcombine.high %v3021_v17, %v3021_v17  ;;  %v3972_v57 = vsel %vm281_vm2, %v3021_v17, -inf }
 0x31d   : > { %v3045_v41 = vrot.slane %v3031_v54, %v13206_v2  ;;  %v3046_v47 = vcombine.high %v3038_v9, %v3038_v9  ;;  %v3973_v45 = vrot.slane %v3972_v57, 4  ;;  %v4000_v8 = vsel %vm281_vm2, %v3038_v9, -inf }
 0x31e   : > { %v3030_v38 = vcombine.high %v3028_v26, %v3028_v26  ;;  %v3979_v13 = vsel %vm281_vm2, %v3029_v5, -inf  ;;  %v3986_v6 = vsel %vm281_vm2, %v3028_v26, -inf  ;;  %v4001_v16 = vrot.slane %v4000_v8, 4 }
 0x31f   : > { %v3047_v18 = vcombine.high %v3045_v41, %v3045_v41  ;;  %v3974_v61 = vmax.f32 %v3972_v57, %v3973_v45  ;;  %v3980_v55 = vrot.slane %v3979_v13, 4  ;;  %v3987_v39 = vrot.slane %v3986_v6, 4 }
 0x320   : > { %v3993_v42 = vsel %vm281_vm2, %v3030_v38, -inf  ;;  %v4002_v40 = vmax.f32 %v4000_v8, %v4001_v16  ;;  %v4007_v10 = vsel %vm281_vm2, %v3046_v47, -inf  ;;  %v4014_v30 = vsel %vm281_vm2, %v3045_v41, -inf }
 0x321   : > { %v3975_v48 = vrot.slane %v3974_v61, 2  ;;  %v3981_v34 = vmax.f32 %v3979_v13, %v3980_v55  ;;  %v3988_v17 = vmax.f32 %v3986_v6, %v3987_v39  ;;  %v3994_v54 = vrot.slane %v3993_v42, 4 }
 0x322   : > { %v4003_v9 = vrot.slane %v4002_v40, 2  ;;  %v4008_v5 = vrot.slane %v4007_v10, 4  ;;  %v4015_v31 = vrot.slane %v4014_v30, 4  ;;  %v4021_v26 = vsel %vm281_vm2, %v3047_v18, -inf }
 0x323   : > { %v3976_v24 = vmax.f32 %v3974_v61, %v3975_v48  ;;  %v3982_v57 = vrot.slane %v3981_v34, 2  ;;  %v3989_v45 = vrot.slane %v3988_v17, 2  ;;  %v3995_v21 = vmax.f32 %v3993_v42, %v3994_v54 }
 0x324   : > { %v4004_v29 = vmax.f32 %v4002_v40, %v4003_v9  ;;  %v4009_v38 = vmax.f32 %v4007_v10, %v4008_v5  ;;  %v4016_v8 = vmax.f32 %v4014_v30, %v4015_v31  ;;  %v4022_v16 = vrot.slane %v4021_v26, 4 }
 0x325   : > { %v3977_v47 = vrot.slane %v3976_v24, 1  ;;  %v3983_v28 = vmax.f32 %v3981_v34, %v3982_v57  ;;  %v3990_v41 = vmax.f32 %v3988_v17, %v3989_v45  ;;  %v3996_v27 = vrot.slane %v3995_v21, 2  ;;  %v8326_v45 = vld [vmem:[%s12845_s3 + $0x28] sm:$0xff]  }
 0x326   : > { %v4005_v13 = vrot.slane %v4004_v29, 1  ;;  %v4010_v6 = vrot.slane %v4009_v38, 2  ;;  %v4017_v55 = vrot.slane %v4016_v8, 2  ;;  %v1768_v39 = vadd.f32 -2.101024e-06, %v1736_v0  ;;  %8145 = vmatprep.subr.bf16.mxu0 %v8326_v45 }
 0x327   : > { %v3984_v25 = vrot.slane %v3983_v28, 1  ;;  %v3991_v51 = vrot.slane %v3990_v41, 1  ;;  %v3997_v50 = vmax.f32 %v3995_v21, %v3996_v27  ;;  %v4023_v18 = vmax.f32 %v4021_v26, %v4022_v16 }
 0x328   : > { %v3978_v61 = vmax.f32 %v3976_v24, %v3977_v47  ;;  %v4011_v48 = vmax.f32 %v4009_v38, %v4010_v6  ;;  %v4018_v44 = vmax.f32 %v4016_v8, %v4017_v55  ;;  %v1769_v42 = vadd.f32 -2.101024e-06, %v1737_v14  ;;  %v8327_v38 = vld [vmem:[%s12845_s3 + $0x8] sm:$0xff]  }
 0x329   : > { %v3985_v40 = vmax.f32 %v3983_v28, %v3984_v25  ;;  %v3998_v10 = vrot.slane %v3997_v50, 1  ;;  %v1770_v31 = vadd.f32 -2.101024e-06, %v1738_v22  ;;  %v1771_v30 = vadd.f32 -2.101024e-06, %v1739_v33  ;;  %8133 = vmatprep.subr.bf16.mxu1 %v8327_v38 }
 0x32a   : > { %v3992_v54 = vmax.f32 %v3990_v41, %v3991_v51  ;;  %v4006_v34 = vmax.f32 %v4004_v29, %v4005_v13  ;;  %v4012_v17 = vrot.slane %v4011_v48, 1  ;;  %v4019_v9 = vrot.slane %v4018_v44, 1 }
 0x32b   : > { %v4302_v5 = vsel %vm278_vm0, %v11463_v23, -inf  ;;  %v4024_v0 = vrot.slane %v4023_v18, 2  ;;  %v1800_v57 = vmul.f32 %v1768_v39, %v11422_v59  ;;  %v2088_v27 = vmul.f32 -1.45660715e-05, %v11422_v59 }
 0x32c   : > { %v3999_v21 = vmax.f32 %v3997_v50, %v3998_v10  ;;  %v4285_v24 = vsel %vm278_vm0, %v3978_v61, -inf  ;;  %v1801_v25 = vmul.f32 %v1769_v42, %v11428_v46  ;;  %v2089_v28 = vmul.f32 -1.45660715e-05, %v11428_v46 }
 0x32d   : > { %v4288_v51 = vsel %vm278_vm0, %v3985_v40, -inf  ;;  %v1802_v29 = vmul.f32 %v1770_v31, %v11432_v62  ;;  %v1803_v14 = vmul.f32 %v1771_v30, %v11439_v3  ;;  %v2090_v23 = vmul.f32 -1.45660715e-05, %v11432_v62 }
 0x32e   : > { %v4013_v22 = vmax.f32 %v4011_v48, %v4012_v17  ;;  %v4020_v33 = vmax.f32 %v4018_v44, %v4019_v9  ;;  %v4291_v26 = vsel %vm278_vm0, %v3992_v54, -inf  ;;  %v4297_v50 = vsel %vm278_vm0, %v4006_v34, -inf }
 0x32f   : > { %v11508_v8 = vmax.f32 %v4023_v18, %v4024_v0  ;;  %v4286_v16 = vmax.f32 %v11448_v15, %v4285_v24  ;;  %v1832_v47 = vadd.f32 -5.6925062e-05, %v1800_v57  ;;  %v2091_v41 = vmul.f32 -1.45660715e-05, %v11439_v3 }
 0x330   : > { %v4289_v44 = vmax.f32 %v11457_v32, %v4288_v51  ;;  %v4294_v13 = vsel %vm278_vm0, %v3999_v21, -inf  ;;  %v1833_v6 = vadd.f32 -5.6925062e-05, %v1801_v25  ;;  %v2120_v55 = vadd.f32 -0.00021337405, %v2088_v27 }
 0x331   : > { %v4292_v39 = vmax.f32 %v11460_v37, %v4291_v26  ;;  %v11516_v61 = vmax.f32 %v11454_v4, %v4297_v50  ;;  %v2121_v18 = vadd.f32 -0.00021337405, %v2089_v28  ;;  %v2122_v48 = vadd.f32 -0.00021337405, %v2090_v23 }
 0x332   : > { %v4300_v15 = vsel %vm278_vm0, %v4013_v22, -inf  ;;  %v4303_v42 = vsel %vm278_vm0, %v4020_v33, -inf  ;;  %v1834_v40 = vadd.f32 -5.6925062e-05, %v1802_v29  ;;  %v1835_v10 = vadd.f32 -5.6925062e-05, %v1803_v14 }
 0x333   : > { %v4295_v31 = vmax.f32 %v11467_v60, %v4294_v13  ;;  %v8023_v30 = vpack.c.bf16 %v4286_v16, %v4286_v16  ;;  %v1864_v54 = vmul.f32 %v1832_v47, %v11422_v59  ;;  %v8024_v34 = vpack.c.bf16 %v4289_v44, %v4289_v44 }
 0x334   : > { %v1865_v37 = vmul.f32 %v1833_v6, %v11428_v46  ;;  %v1866_v4 = vmul.f32 %v1834_v40, %v11432_v62  ;;  %v1867_v17 = vmul.f32 %v1835_v10, %v11439_v3  ;;  %v11527_v9 = vmax.f32 %v11471_v20, %v4300_v15 }
 0x335   : > { %v11529_v0 = vmax.f32 %v4302_v5, %v4303_v42  ;;  %v2123_v57 = vadd.f32 -0.00021337405, %v2091_v41  ;;  %v2152_v27 = vmul.f32 %v2120_v55, %v11422_v59  ;;  %v8025_v21 = vpack.c.bf16 %v4292_v39, %v4292_v39 }
 0x336   : > { %v8027_v60 = vpack.c.bf16 %v11516_v61, %v11516_v61  ;;  %v1896_v24 = vadd.f32 -0.00073499064, %v1864_v54  ;;  %v2153_v25 = vmul.f32 %v2121_v18, %v11428_v46  ;;  %v1897_v28 = vadd.f32 -0.00073499064, %v1865_v37 }
 0x337   : > { %v2154_v51 = vmul.f32 %v2122_v48, %v11432_v62  ;;  %v2155_v29 = vmul.f32 %v2123_v57, %v11439_v3  ;;  %v2184_v14 = vadd.f32 -0.001682827, %v2152_v27  ;;  %v8026_v20 = vpack.c.bf16 %v4295_v31, %v4295_v31 }
 0x338   : > { %v1898_v23 = vadd.f32 -0.00073499064, %v1866_v4  ;;  %v1899_v5 = vadd.f32 -0.00073499064, %v1867_v17  ;;  %v2185_v22 = vadd.f32 -0.001682827, %v2153_v25  ;;  %v4708_v33 = vunpack.c.l.b16 %v8024_v34 }
 0x339   : > { %v2186_v26 = vadd.f32 -0.001682827, %v2154_v51  ;;  %v2187_v50 = vadd.f32 -0.001682827, %v2155_v29  ;;  %v2216_v45 = vmul.f32 %v2184_v14, %v11422_v59  ;;  %v8028_v38 = vpack.c.bf16 %v11527_v9, %v11527_v9 }
 0x33a   : > { %v4707_v16 = vunpack.c.l.b16 %v8023_v30  ;;  %v1928_v47 = vmul.f32 %v1896_v24, %v11422_v59  ;;  %v2217_v41 = vmul.f32 %v2185_v22, %v11428_v46  ;;  %v1929_v44 = vmul.f32 %v1897_v28, %v11428_v46 }
 0x33b   : > { %v2218_v13 = vmul.f32 %v2186_v26, %v11432_v62  ;;  %v2219_v6 = vmul.f32 %v2187_v50, %v11439_v3  ;;  %v2248_v55 = vadd.f32 -0.0073733293, %v2216_v45  ;;  %v4709_v39 = vunpack.c.l.b16 %v8025_v21  ;;  %v4353_v50 = vld [vmem:[#allocation3 + $0x20] sm:$0x1]  ;;  %v4356_v45 = vld [vmem:[#allocation3 + $0x28] sm:$0x1] }
 0x33c   : > { %v1930_v18 = vmul.f32 %v1898_v23, %v11432_v62  ;;  %v1931_v48 = vmul.f32 %v1899_v5, %v11439_v3  ;;  %v2249_v15 = vadd.f32 -0.0073733293, %v2217_v41  ;;  %v4765_v42 = vsel %vm4723_vm3, %v4708_v33, %v4707_v16  ;;  %v13212_v5 = vld [vmem:[#allocation34_spill] sm:$0xff]  ;;  %v13213_v33 = vld [vmem:[#allocation33_spill] sm:$0xff] }
 0x33d   : > { %v2250_v40 = vadd.f32 -0.0073733293, %v2218_v13  ;;  %v2251_v10 = vadd.f32 -0.0073733293, %v2219_v6  ;;  %v2280_v31 = vmul.f32 %v2248_v55, %v11422_v59  ;;  %v8029_v30 = vpack.c.bf16 %v11529_v0, %v11529_v0  ;;  %v4385_v6 = vld [vmem:[#allocation3 + $0x24] sm:$0x1] }
 0x33e   : > { %v11551_v54 = vunpack.c.l.b16 %v8026_v20  ;;  %v1960_v34 = vadd.f32 -0.0029546, %v1928_v47  ;;  %v2281_v37 = vmul.f32 %v2249_v15, %v11428_v46  ;;  %v1961_v4 = vadd.f32 -0.0029546, %v1929_v44 }
 0x33f   : > { %v2282_v17 = vmul.f32 %v2250_v40, %v11432_v62  ;;  %v2283_v57 = vmul.f32 %v2251_v10, %v11439_v3  ;;  %v11556_v27 = vadd.f32 -0.014264739, %v2280_v31  ;;  %v11559_v21 = vsel %vm4725_vm4, %v4709_v39, %v4765_v42  ;;  %v13218_v42 = vld [vmem:[#allocation62_spill] sm:$0xff]  ;;  %v13219_v40 = vld [vmem:[#allocation15_spill] sm:$0xff] }
 0x340   : > { %v1962_v24 = vadd.f32 -0.0029546, %v1930_v18  ;;  %v11561_v25 = vadd.f32 -0.0029546, %v1931_v48  ;;  %v11563_v28 = vadd.f32 -0.014264739, %v2281_v37  ;;  %v1992_v16 = vmul.f32 %v1960_v34, %v11422_v59 }
 0x341   : > { %v11565_v51 = vadd.f32 -0.014264739, %v2282_v17  ;;  %v11567_v29 = vadd.f32 -0.014264739, %v2283_v57  ;;  %8424 = vrcp.f32 %v11556_v27  ;;  %v3632_v14 = vrot.slane %v11418_v63, 2  ;;  %v13220_v17 = vld [vmem:[#allocation8_spill] sm:$0xff] }
 0x342   : > { %8426 = vrcp.f32 %v11563_v28  ;;  %v13211_v20 = vrot.slane %v13209_v43, 1  ;;  %v3746_v22 = vrot.slane %v13212_v5, 1  ;;  %v3802_v26 = vrot.slane %v13213_v33, 1  ;;  %v4388_v59 = vld [vmem:[#allocation3 + $0x2c] sm:$0x1] }
 0x343   : > { %8428 = vrcp.f32 %v11565_v51  ;;  %v3633_v47 = vmax.f32 %v11418_v63, %v3632_v14  ;;  %v1993_v41 = vmul.f32 %v1961_v4, %v11428_v46  ;;  %v4354_v63 = vsel %vm11585_vm9, 0, %v4353_v50  ;;  %v13221_v14 = vld [vmem:[#allocation43_spill] sm:$0xff]  ;;  %v13224_v50 = vld [vmem:[#allocation78_spill] sm:$0xff] }
 0x344   : > { %v3691_v23 = vmax.f32 %v13209_v43, %v13211_v20  ;;  %8430 = vrcp.f32 %v11567_v29  ;;  %v3747_v44 = vmax.f32 %v13212_v5, %v3746_v22  ;;  %v3803_v43 = vmax.f32 %v13213_v33, %v3802_v26  ;;  %4355 = vst [vmem:[#allocation3 + $0x20] sm:$0x1] %v4354_v63  ;;  %v13222_v20 = vld [vmem:[#allocation77_spill] sm:$0xff]  ;;  %v13223_v33 = vld [vmem:[#allocation23_spill] sm:$0xff] }
 0x345   : > { %v3634_v55 = vrot.slane %v3633_v47, 1  ;;  %v4357_v46 = vsel %vm11585_vm9, 0, %v4356_v45  ;;  %v4749_v10 = vsel %vm4727_vm5, %v13219_v40, %v13218_v42  ;;  %v4386_v34 = vsel %vm11598_vm11, 0, %v4385_v6  ;;  %v13225_v6 = vld [vmem:[#allocation24_spill] sm:$0xff]  ;;  %v13230_v42 = vld [vmem:[#allocation22_spill] sm:$0xff] }
 0x346   : > { %v4234_v39 = vsel %vm278_vm0, %v3691_v23, -inf  ;;  %v4257_v18 = vsel %vm278_vm0, %v3747_v44, -inf  ;;  %v4258_v48 = vsel %vm278_vm0, %v3803_v43, -inf  ;;  %4358 = vst [vmem:[#allocation3 + $0x28] sm:$0x1] %v4357_v46  ;;  %v4389_v37 = vsel %vm11598_vm11, 0, %v4388_v59 }
 0x347   : > { %v3635_v31 = vmax.f32 %v3633_v47, %v3634_v55  ;;  %v4259_v4 = vmax.f32 %v4257_v18, %v4258_v48  ;;  %4387 = vst [vmem:[#allocation3 + $0x24] sm:$0x1] %v4386_v34  ;;  %4390 = vst [vmem:[#allocation3 + $0x2c] sm:$0x1] %v4389_v37  ;;  %v4750_v57 = vsel %vm4729_vm6, %v13220_v17, %v4749_v10  ;;  %v4344_v47 = vld [vmem:[#allocation3 + $0x8] sm:$0x1] }
 0x348   : > { %v4755_v23 = vsel %vm4727_vm5, %v13222_v20, %v13221_v14  ;;  %v1994_v5 = vmul.f32 %v1962_v24, %v11432_v62  ;;  %v4751_v26 = vsel %vm4731_vm7, %v13223_v33, %v4750_v57  ;;  %v2024_v44 = vadd.f32 -0.016096033, %v1992_v16  ;;  %v13226_v55 = vld [vmem:[#allocation79_spill] sm:$0xff]  ;;  %v4376_v46 = vld [vmem:[#allocation3 + $0xc] sm:$0x1]  ;;  %v13227_v18 = vld [vmem:[#allocation40_spill] sm:$0xff] }
 0x349   : > { %v4233_v22 = vsel %vm278_vm0, %v3635_v31, -inf  ;;  %v4756_v45 = vsel %vm4729_vm6, %v13224_v50, %v4755_v23  ;;  %v4752_v59 = vsel %vm4733_vm12, %v13225_v6, %v4751_v26  ;;  %v13231_v16 = vrot.slane %v13230_v42, 4  ;;  %v13232_v23 = vld [vmem:[#allocation26_spill] sm:$0xff]  ;;  %v12178_v48 = vld [vmem:[%s12845_s3 + $0x88] sm:$0xff]  }
 0x34a   : > { %v4235_v43 = vmax.f32 %v4233_v22, %v4234_v39  ;;  %v4757_v63 = vsel %vm4731_vm7, %v13226_v55, %v4756_v45  ;;  %v4783_v24 = vpack.c.b16 %v4752_v59, %v4752_v59  ;;  %v8043_v31 = vpack.c.bf16 %v4259_v4, %v4259_v4  ;;  %v13233_v22 = vld [vmem:[#allocation56_spill] sm:$0xff] }
 0x34b   : > { %v4758_v62 = vsel %vm4733_vm12, %v13227_v18, %v4757_v63  ;;  %v3351_v39 = vmax.f32 %v13230_v42, %v13231_v16  ;;  %v8551_v34 = vmov 0   ;;  %v4345_v37 = vsel %vm11585_vm9, 0, %v4344_v47  ;;  %v4830_v57 = vld [vmem:[#allocation3 + $0x20] sm:$0xf] }
 0x34c   : > { %v8042_v40 = vpack.c.bf16 %v4235_v43, %v4235_v43  ;;  %v4785_v10 = vpack.c.b16 %v4758_v62, %v4758_v62  ;;  %4333 = vst.msk [vmem:[#allocation3] sm:$0xf] %vm4332_vm13, %v8551_v34  ;;  %4336 = vst.msk [vmem:[#allocation3 + $0x48] sm:$0xf] %vm4332_vm13, %v8551_v34  ;;  %v1995_v17 = vmul.f32 %v11561_v25, %v11439_v3  ;;  %v4377_v4 = vsel %vm11598_vm11, 0, %v4376_v46  ;;  %v13234_v3 = vld [vmem:[#allocation9_spill] sm:$0xff] }
 0x34d   : > { %4334 = vst.msk [vmem:[#allocation3 + $0x4] sm:$0x1] %vm287_vm1, %v8551_v34  ;;  %4337 = vst.msk [vmem:[#allocation3 + $0x4c] sm:$0x1] %vm287_vm1, %v8551_v34  ;;  %v4836_v14 = vld [vmem:[#allocation3 + $0x28] sm:$0xf]  ;;  %v4728_v33 = vsel %vm4727_vm5, %v13233_v22, %v13232_v23  ;;  %v4831_v45 = vsel %vm11628_vm14, %v4783_v24, %v4830_v57 }
 0x34e   : > { %v3352_v20 = vrot.slane %v3351_v39, 2  ;;  %4346 = vst [vmem:[#allocation3 + $0x8] sm:$0x1] %v4345_v37  ;;  %v8425_v26 = vpop.eup %8424  ;;  %v2025_v50 = vadd.f32 -0.016096033, %v1993_v41  ;;  %v4837_v47 = vsel %vm11628_vm14, %v4785_v10, %v4836_v14  ;;  %v4730_v25 = vsel %vm4729_vm6, %v13234_v3, %v4728_v33  ;;  %v13235_v41 = vld [vmem:[#allocation25_spill] sm:$0xff] }
 0x34f   : > { %4378 = vst [vmem:[#allocation3 + $0xc] sm:$0x1] %v4377_v4  ;;  %v8427_v43 = vpop.eup %8426  ;;  %v2026_v6 = vadd.f32 -0.016096033, %v1994_v5  ;;  %v2376_v59 = vmul.f32 %v8425_v26, %v11556_v27  ;;  %4832 = vst [vmem:[#allocation3 + $0x20] sm:$0xf] %v4831_v45  ;;  %v4732_v18 = vsel %vm4731_vm7, %v13235_v41, %v4730_v25  ;;  %v2056_v14 = vmul.f32 %v11405_v52, %v2024_v44 }
 0x350   : > { %v4833_v55 = vld [vmem:[#allocation3 + $0x24] sm:$0x1]  ;;  %4838 = vst [vmem:[#allocation3 + $0x28] sm:$0xf] %v4837_v47  ;;  %v4839_v63 = vld [vmem:[#allocation3 + $0x2c] sm:$0x1]  ;;  %v3353_v46 = vmax.f32 %v3351_v39, %v3352_v20  ;;  %v8429_v62 = vpop.eup %8428  ;;  %v2377_v24 = vmul.f32 %v8427_v43, %v11563_v28 }
 0x351   : > { %v4834_v42 = vsel %vm11585_vm9, %v8042_v40, %v4833_v55  ;;  %v4840_v16 = vsel %vm11585_vm9, %v8043_v31, %v4839_v63  ;;  %v13236_v5 = vld [vmem:[#allocation10_spill] sm:$0xff]  ;;  %v8431_v10 = vpop.eup %8430  ;;  %v2027_v34 = vadd.f32 -0.016096033, %v1995_v17  ;;  %v2378_v37 = vmul.f32 %v8429_v62, %v11565_v51  ;;  %v13237_v40 = vld [vmem:[#allocation68_spill] sm:$0xff] }
 0x352   : > { %v4734_v27 = vsel %vm4733_vm12, %v13236_v5, %v4732_v18  ;;  %v2408_v39 = vsub.f32 2.0, %v2376_v59  ;;  %4835 = vst [vmem:[#allocation3 + $0x24] sm:$0x1] %v4834_v42  ;;  %4841 = vst [vmem:[#allocation3 + $0x2c] sm:$0x1] %v4840_v16  ;;  %v2379_v28 = vmul.f32 %v8431_v10, %v11567_v29  ;;  %v2409_v20 = vsub.f32 2.0, %v2377_v24 }
 0x353   : > { %v4777_v57 = vpack.c.b16 %v4734_v27, %v4734_v27  ;;  %v3298_v4 = vrot.slane %v13237_v40, 1  ;;  %v2057_v31 = vmul.f32 %v11408_v11, %v2025_v50  ;;  %v2410_v23 = vsub.f32 2.0, %v2378_v37  ;;  %v4341_v45 = vld [vmem:[#allocation3] sm:$0x1] }
 0x354   : > { %v2440_v22 = vmul.f32 %v8425_v26, %v2408_v39  ;;  %v3354_v33 = vrot.slane %v3353_v46, 1  ;;  %v4373_v17 = vld [vmem:[#allocation3 + $0x4] sm:$0x1]  ;;  %v2411_v47 = vsub.f32 2.0, %v2379_v28  ;;  %v2441_v51 = vmul.f32 %v8427_v43, %v2409_v20 }
 0x355   : > { %v4342_v3 = vsel %vm11585_vm9, 0, %v4341_v45  ;;  %v4374_v52 = vsel %vm11598_vm11, 0, %v4373_v17  ;;  %v4812_v44 = vld [vmem:[#allocation3 + $0x8] sm:$0xf]  ;;  %v2058_v29 = vmul.f32 %v11410_v12, %v2026_v6  ;;  %v2442_v25 = vmul.f32 %v8429_v62, %v2410_v23 }
 0x356   : > { %v2472_v59 = vmul.f32 %v2440_v22, %v2056_v14  ;;  %4343 = vst [vmem:[#allocation3] sm:$0x1] %v4342_v3  ;;  %4375 = vst [vmem:[#allocation3 + $0x4] sm:$0x1] %v4374_v52  ;;  %v4813_v11 = vsel %vm11628_vm14, %v4777_v57, %v4812_v44  ;;  %v2059_v26 = vmul.f32 %v11413_v58, %v2027_v34  ;;  %v13238_v55 = vrot.slane %v11200_v19, 4 }
 0x357   : > { %v2443_v50 = vmul.f32 %v8431_v10, %v2411_v47  ;;  %v2473_v43 = vmul.f32 %v2441_v51, %v2057_v31  ;;  %4814 = vst [vmem:[#allocation3 + $0x8] sm:$0xf] %v4813_v11  ;;  %v4711_v12 = vunpack.c.l.b16 %v8027_v60  ;;  %v2474_v6 = vmul.f32 %v2442_v25, %v2058_v29  ;;  %v4864_v0 = vld [vmem:[#allocation3 + $0x20] sm:$0xf]  ;;  %v11710_v14 = vld [vmem:[#allocation3 + $0x28] sm:$0xf] }
 0x358   : > { %v3519_v63 = vmax.f32 %v11200_v19, %v13238_v55  ;;  %v2504_v41 = vadd.f32 1.0, %v2472_v59  ;;  %v3355_v18 = vmax.f32 %v3353_v46, %v3354_v33  ;;  %v4767_v62 = vsel %vm4727_vm5, %v11551_v54, %v11559_v21 }
 0x359   : > { %v2475_v24 = vmul.f32 %v2443_v50, %v2059_v26  ;;  %v2505_v58 = vadd.f32 1.0, %v2473_v43  ;;  %v3299_v42 = vmax.f32 %v13237_v40, %v3298_v4  ;;  %v11690_v16 = vunpack.c.l.b16 %v8028_v38  ;;  %v13239_v4 = vld [vmem:[#allocation27_spill] sm:$0xff] }
 0x35a   : > { %v2506_v19 = vadd.f32 1.0, %v2474_v6  ;;  %v2536_v61 = vmul.f32 %v2504_v41, %v11385_v1  ;;  %v3466_v60 = vrot.slane %v11234_v49, 1  ;;  %v11697_v46 = vunpack.c.l.b16 %v8029_v30 }
 0x35b   : > { %v2507_v54 = vadd.f32 1.0, %v2475_v24  ;;  %v2537_v21 = vmul.f32 %v2505_v58, %v11388_v56  ;;  %v3520_v5 = vrot.slane %v3519_v63, 2  ;;  %v11701_v27 = vsel %vm4729_vm6, %v4711_v12, %v4767_v62 }
 0x35c   : > { %v3048_v9 = vcombine.high %v2536_v61, %v2536_v61  ;;  %v3055_v38 = vrot.slane %v2536_v61, %v13206_v2  ;;  %v4162_v10 = vsel %vm278_vm0, %v3355_v18, -inf  ;;  %v2538_v1 = vmul.f32 %v2506_v19, %v11392_v7 }
 0x35d   : > { %v3065_v34 = vcombine.high %v2537_v21, %v2537_v21  ;;  %v3072_v37 = vrot.slane %v2537_v21, %v13206_v2  ;;  %v4161_v30 = vsel %vm278_vm0, %v3299_v42, -inf  ;;  %v2539_v39 = vmul.f32 %v2507_v54, %v11403_v36 }
 0x35e   : > { %v3062_v56 = vrot.slane %v3048_v9, %v13206_v2  ;;  %v3063_v57 = vcombine.high %v3055_v38, %v3055_v38  ;;  %v11713_v28 = vmax.f32 %v11234_v49, %v3466_v60  ;;  %v11716_v40 = vmax.f32 %v4161_v30, %v4162_v10 }
 0x35f   : > { %v3079_v20 = vrot.slane %v3065_v34, %v13206_v2  ;;  %v11718_v7 = vmax.f32 %v3519_v63, %v3520_v5  ;;  %v13240_v31 = vrot.slane %v13239_v4, 4  ;;  %v3080_v22 = vcombine.high %v3072_v37, %v3072_v37 }
 0x360   : > { %v3064_v36 = vcombine.high %v3062_v56, %v3062_v56  ;;  %v4028_v33 = vsel %vm281_vm2, %v3055_v38, -inf  ;;  %v4940_v45 = vshrl.u32 %v4864_v0, 16  ;;  %v3082_v17 = vcombine.high %v2538_v1, %v2538_v1  ;;  %v11735_v38 = vld [vmem:[#allocation3 + $0x24] sm:$0x1] }
 0x361   : > { %v11723_v23 = vmax.f32 %v13239_v4, %v13240_v31  ;;  %v4029_v47 = vrot.slane %v4028_v33, 4  ;;  %v4943_v49 = vshll.u32 %v4864_v0, 16  ;;  %v4954_v51 = vshrl.u32 %v11710_v14, 16 }
 0x362   : > { %v3099_v3 = vcombine.high %v2539_v39, %v2539_v39  ;;  %v4035_v52 = vsel %vm281_vm2, %v3063_v57, -inf  ;;  %v4042_v44 = vsel %vm281_vm2, %v3062_v56, -inf  ;;  %v4049_v29 = vsel %vm281_vm2, %v3064_v36, -inf }
 0x363   : > { %v3081_v25 = vcombine.high %v3079_v20, %v3079_v20  ;;  %v4030_v59 = vmax.f32 %v4028_v33, %v4029_v47  ;;  %v4036_v11 = vrot.slane %v4035_v52, 4  ;;  %v4043_v26 = vrot.slane %v4042_v44, 4 }
 0x364   : > { %v4050_v50 = vrot.slane %v4049_v29, 4  ;;  %v4056_v43 = vsel %vm281_vm2, %v3072_v37, -inf  ;;  %v4063_v55 = vsel %vm281_vm2, %v3080_v22, -inf  ;;  %v4070_v63 = vsel %vm281_vm2, %v3079_v20, -inf }
 0x365   : > { %v4031_v12 = vrot.slane %v4030_v59, 2  ;;  %v4037_v6 = vmax.f32 %v4035_v52, %v4036_v11  ;;  %v4044_v41 = vmax.f32 %v4042_v44, %v4043_v26  ;;  %v4057_v18 = vrot.slane %v4056_v43, 4 }
 0x366   : > { %v3089_v62 = vrot.slane %v2538_v1, %v13206_v2  ;;  %v4051_v24 = vmax.f32 %v4049_v29, %v4050_v50  ;;  %v4064_v58 = vrot.slane %v4063_v55, 4  ;;  %v4071_v42 = vrot.slane %v4070_v63, 4 }
 0x367   : > { %v4032_v19 = vmax.f32 %v4030_v59, %v4031_v12  ;;  %v4038_v61 = vrot.slane %v4037_v6, 2  ;;  %v4045_v60 = vrot.slane %v4044_v41, 2  ;;  %v4077_v54 = vsel %vm281_vm2, %v3081_v25, -inf }
 0x368   : > { %v4052_v21 = vrot.slane %v4051_v24, 2  ;;  %v4058_v5 = vmax.f32 %v4056_v43, %v4057_v18  ;;  %v4065_v9 = vmax.f32 %v4063_v55, %v4064_v58  ;;  %v3096_v34 = vrot.slane %v3082_v17, %v13206_v2 }
 0x369   : > { %v3106_v1 = vrot.slane %v2539_v39, %v13206_v2  ;;  %v11742_v37 = vrot.slane %v3099_v3, %v13206_v2  ;;  %v11744_v0 = vrot.slane %v4940_v45, 4  ;;  %v4033_v30 = vrot.slane %v4032_v19, 1 }
 0x36a   : > { %v4039_v56 = vmax.f32 %v4037_v6, %v4038_v61  ;;  %v4072_v57 = vmax.f32 %v4070_v63, %v4071_v42  ;;  %v4078_v20 = vrot.slane %v4077_v54, 4  ;;  %v3097_v4 = vcombine.high %v3089_v62, %v3089_v62 }
 0x36b   : > { %v11746_v31 = vmax.f32 %v4044_v41, %v4045_v60  ;;  %v11748_v36 = vrot.slane %v4943_v49, 5  ;;  %v11751_v33 = vmax.f32 %v4051_v24, %v4052_v21  ;;  %v4059_v17 = vrot.slane %v4058_v5, 2 }
 0x36c   : > { %v4066_v39 = vrot.slane %v4065_v9, 2  ;;  %v11753_v47 = vrot.slane %v4954_v51, 4  ;;  %v3098_v3 = vcombine.high %v3096_v34, %v3096_v34  ;;  %v3114_v45 = vcombine.high %v3106_v1, %v3106_v1 }
 0x36d   : > { %v4084_v44 = vsel %vm281_vm2, %v3089_v62, -inf  ;;  %v11758_v29 = vmax.f32 %v4032_v19, %v4033_v30  ;;  %v4040_v25 = vrot.slane %v4039_v56, 1  ;;  %v4073_v49 = vrot.slane %v4072_v57, 2 }
 0x36e   : > { %v11760_v59 = vmax.f32 %v4077_v54, %v4078_v20  ;;  %v4047_v11 = vrot.slane %v11746_v31, 1  ;;  %v4085_v26 = vrot.slane %v4084_v44, 4  ;;  %v4091_v50 = vsel %vm281_vm2, %v3097_v4, -inf }
 0x36f   : > { %v4098_v51 = vsel %vm281_vm2, %v3096_v34, -inf  ;;  %v4054_v43 = vrot.slane %v11751_v33, 1  ;;  %v4060_v55 = vmax.f32 %v4058_v5, %v4059_v17  ;;  %v11766_v63 = vmax.f32 %v4065_v9, %v4066_v39 }
 0x370   : > { %v4092_v12 = vrot.slane %v4091_v50, 4  ;;  %v4086_v6 = vmax.f32 %v4084_v44, %v4085_v26  ;;  %v4099_v41 = vrot.slane %v4098_v51, 4  ;;  %v4105_v18 = vsel %vm281_vm2, %v3098_v3, -inf }
 0x371   : > { %v4112_v62 = vsel %vm281_vm2, %v3106_v1, -inf  ;;  %v4106_v58 = vrot.slane %v4105_v18, 4  ;;  %v4119_v19 = vsel %vm281_vm2, %v3114_v45, -inf  ;;  %v4126_v21 = vsel %vm281_vm2, %v11742_v37, -inf }
 0x372   : > { %v4093_v24 = vmax.f32 %v4091_v50, %v4092_v12  ;;  %v4113_v42 = vrot.slane %v4112_v62, 4  ;;  %v4087_v61 = vrot.slane %v4086_v6, 2  ;;  %v4100_v60 = vmax.f32 %v4098_v51, %v4099_v41 }
 0x373   : > { %v4120_v54 = vrot.slane %v4119_v19, 4  ;;  %v4107_v9 = vmax.f32 %v4105_v18, %v4106_v58  ;;  %v4127_v30 = vrot.slane %v4126_v21, 4  ;;  %v4074_v20 = vmax.f32 %v4072_v57, %v4073_v49 }
 0x374   : > { %v4094_v5 = vrot.slane %v4093_v24, 2  ;;  %v4114_v34 = vmax.f32 %v4112_v62, %v4113_v42  ;;  %v4088_v4 = vmax.f32 %v4086_v6, %v4087_v61  ;;  %v4101_v17 = vrot.slane %v4100_v60, 2 }
 0x375   : > { %v4121_v39 = vmax.f32 %v4119_v19, %v4120_v54  ;;  %v4108_v3 = vrot.slane %v4107_v9, 2  ;;  %v4128_v26 = vmax.f32 %v4126_v21, %v4127_v30  ;;  %v4041_v50 = vmax.f32 %v4039_v56, %v4040_v25 }
 0x376   : > { %v4095_v1 = vmax.f32 %v4093_v24, %v4094_v5  ;;  %v4115_v44 = vrot.slane %v4114_v34, 2  ;;  %v4089_v45 = vrot.slane %v4088_v4, 1  ;;  %v4102_v12 = vmax.f32 %v4100_v60, %v4101_v17 }
 0x377   : > { %v4122_v51 = vrot.slane %v4121_v39, 2  ;;  %v4109_v32 = vmax.f32 %v4107_v9, %v4108_v3  ;;  %v4129_v22 = vrot.slane %v4128_v26, 2  ;;  %v4061_v52 = vrot.slane %v4060_v55, 1 }
 0x378   : > { %v4096_v41 = vrot.slane %v4095_v1, 1  ;;  %v4116_v10 = vmax.f32 %v4114_v34, %v4115_v44  ;;  %v4090_v18 = vmax.f32 %v4088_v4, %v4089_v45  ;;  %v4103_v62 = vrot.slane %v4102_v12, 1 }
 0x379   : > { %v4123_v58 = vmax.f32 %v4121_v39, %v4122_v51  ;;  %v4110_v49 = vrot.slane %v4109_v32, 1  ;;  %v4130_v42 = vmax.f32 %v4128_v26, %v4129_v22  ;;  %vm4881_vm1 = vsmask.f32 7440 }
 0x37a   : > { %v4097_v57 = vmax.f32 %v4095_v1, %v4096_v41  ;;  %v4117_v6 = vrot.slane %v4116_v10, 1  ;;  %v4048_v24 = vmax.f32 %v11746_v31, %v4047_v11  ;;  %v4104_v56 = vmax.f32 %v4102_v12, %v4103_v62 }
 0x37b   : > { %v4124_v25 = vrot.slane %v4123_v58, 1  ;;  %v4309_v19 = vsel %vm278_vm0, %v4090_v18, -inf  ;;  %v4068_v61 = vrot.slane %v11766_v63, 1  ;;  %v4111_v60 = vmax.f32 %v4109_v32, %v4110_v49  ;;  %v4815_v49 = vld [vmem:[#allocation3 + $0xc] sm:$0x1] }
 0x37c   : > { %v4118_v54 = vmax.f32 %v4116_v10, %v4117_v6  ;;  %v4131_v21 = vrot.slane %v4130_v42, 1  ;;  %v4055_v5 = vmax.f32 %v11751_v33, %v4054_v43  ;;  %v4075_v9 = vrot.slane %v4074_v20, 1 }
 0x37d   : > { %v4308_v34 = vsel %vm278_vm0, %v11758_v29, -inf  ;;  %v4312_v22 = vsel %vm278_vm0, %v4097_v57, -inf  ;;  %v4062_v30 = vmax.f32 %v4060_v55, %v4061_v52  ;;  %v4125_v4 = vmax.f32 %v4123_v58, %v4124_v25  ;;  %v11822_v25 = vld [vmem:[#allocation3] sm:$0xf] }
 0x37e   : > { %v4310_v31 = vmax.f32 %v4308_v34, %v4309_v19  ;;  %v4946_v11 = vor.u32 %v11748_v36, %v11744_v0  ;;  %v4132_v17 = vmax.f32 %v4130_v42, %v4131_v21  ;;  %v4311_v39 = vsel %vm278_vm0, %v4041_v50, -inf  ;;  %v11829_v21 = vld [vmem:[#allocation3 + $0x8] sm:$0xf] }
 0x37f   : > { %v4315_v32 = vsel %vm278_vm0, %v4104_v56, -inf  ;;  %v4318_v10 = vsel %vm278_vm0, %v4111_v60, -inf  ;;  %v4069_v33 = vmax.f32 %v11766_v63, %v4068_v61  ;;  %v4080_v43 = vrot.slane %v11760_v59, 2 }
 0x380   : > { %v4313_v29 = vmax.f32 %v4311_v39, %v4312_v22  ;;  %v4321_v1 = vsel %vm278_vm0, %v4118_v54, -inf  ;;  %v4076_v52 = vmax.f32 %v4074_v20, %v4075_v9  ;;  %v13241_v55 = vcombine.high %v11742_v37, %v11742_v37  ;;  %v11803_v37 = vld [vmem:[#allocation3 + $0x2c] sm:$0x1] }
 0x381   : > { %v4314_v36 = vsel %vm278_vm0, %v4048_v24, -inf  ;;  %v4317_v3 = vsel %vm278_vm0, %v4055_v5, -inf  ;;  %v4320_v63 = vsel %vm278_vm0, %v4062_v30, -inf  ;;  %v4324_v50 = vsel %vm278_vm0, %v4125_v4, -inf }
 0x382   : > { %v11792_v0 = vsel %vm281_vm2, %v13241_v55, -inf  ;;  %v4316_v44 = vmax.f32 %v4314_v36, %v4315_v32  ;;  %v11796_v26 = vmax.f32 %v4317_v3, %v4318_v10  ;;  %v11800_v45 = vmax.f32 %v4320_v63, %v4321_v1  ;;  %vm11817_vm2 = vmor %vm4880_vm15, %vm4881_vm1 }
 0x383   : > { %v4327_v20 = vsel %vm278_vm0, %v4132_v17, -inf  ;;  %v8031_v12 = vpack.c.bf16 %v4310_v31, %v4310_v31  ;;  %v13242_v51 = vshll.u32 %v11735_v38, 16  ;;  %v11808_v18 = vmax.f32 %v11760_v59, %v4080_v43  ;;  %v11842_v31 = vld [vmem:[#allocation3 + $0x4] sm:$0x1]  ;;  %vm11974_vm15 = vmor %vm5234_vm8, %vm5235_vm10 }
 0x384   : > { %v4323_v62 = vsel %vm278_vm0, %v4069_v33, -inf  ;;  %v8032_v58 = vpack.c.bf16 %v4313_v29, %v4313_v29  ;;  %v4947_v57 = vrot.slane %v4946_v11, 4  ;;  %v4134_v6 = vrot.slane %v11792_v0, 4 }
 0x385   : > { %v4951_v41 = vrot.slane %v13242_v51, 5  ;;  %v11812_v42 = vmax.f32 %v4323_v62, %v4324_v50  ;;  %v4326_v24 = vsel %vm278_vm0, %v4076_v52, -inf  ;;  %v4957_v59 = vshll.u32 %v11710_v14, 16 }
 0x386   : > { %v11824_v19 = vmax.f32 %v4326_v24, %v4327_v20  ;;  %v8033_v61 = vpack.c.bf16 %v4316_v44, %v4316_v44  ;;  %v8034_v60 = vpack.c.bf16 %v11796_v26, %v11796_v26  ;;  %v4963_v54 = vshll.u32 %v11803_v37, 16  ;;  %v13259_v26 = vld [vmem:[#allocation76_spill] sm:$0xff] }
 0x387   : > { %v8035_v5 = vpack.c.bf16 %v11800_v45, %v11800_v45  ;;  %v11833_v9 = vunpack.c.l.b16 %v8031_v12  ;;  %v4959_v34 = vrot.slane %v4957_v59, 5  ;;  %v13245_v14 = vpack.c.bf16 %v11716_v40, %v11716_v40 }
 0x388   : > { %v4716_v30 = vunpack.c.l.b16 %v8032_v58  ;;  %v4952_v4 = vsel %vm11817_vm2, %v4947_v57, %v4951_v41  ;;  %v4884_v11 = vshrl.u32 %v11822_v25, 16  ;;  %v4887_v17 = vshll.u32 %v11822_v25, 16  ;;  %v13246_v41 = vld [vmem:[#allocation36_spill] sm:$0xff]  ;;  %v4347_v58 = vld [vmem:[#allocation3 + $0x10] sm:$0x1] }
 0x389   : > { %v4816_v22 = vsel %vm11585_vm9, %v13245_v14, %v4815_v49  ;;  %v4960_v39 = vor.u32 %v4959_v34, %v11753_v47  ;;  %v4893_v32 = vshll.u32 %v11842_v31, 16  ;;  %v4898_v40 = vshrl.u32 %v11829_v21, 16  ;;  %v4379_v57 = vld [vmem:[#allocation3 + $0x14] sm:$0x1]  ;;  %v4382_v34 = vld [vmem:[#allocation3 + $0x1c] sm:$0x1] }
 0x38a   : > { %4817 = vst [vmem:[#allocation3 + $0xc] sm:$0x1] %v4816_v22  ;;  %v4901_v10 = vshll.u32 %v11829_v21, 16  ;;  %v4965_v33 = vrot.slane %v4963_v54, 5  ;;  %v4886_v43 = vrot.slane %v4884_v11, 4  ;;  %v4889_v29 = vrot.slane %v4887_v17, 5 }
 0x38b   : > { %v3522_v1 = vrot.slane %v11718_v7, 1  ;;  %v4961_v52 = vrot.slane %v4960_v39, 4  ;;  %v4895_v55 = vrot.slane %v4893_v32, 5  ;;  %v4900_v36 = vrot.slane %v4898_v40, 4  ;;  %v4350_v54 = vld [vmem:[#allocation3 + $0x18] sm:$0x1] }
 0x38c   : > { %v4903_v3 = vrot.slane %v4901_v10, 5  ;;  %v4890_v44 = vor.u32 %v4889_v29, %v4886_v43  ;;  %v3576_v47 = vrot.slane %v11723_v23, 2  ;;  %v4185_v50 = vsel %vm278_vm0, %v11228_v35, -inf  ;;  %v13247_v11 = vld [vmem:[#allocation66_spill] sm:$0xff] }
 0x38d   : > { %v3523_v63 = vmax.f32 %v11718_v7, %v3522_v1  ;;  %v4966_v20 = vsel %vm11817_vm2, %v4961_v52, %v4965_v33  ;;  %v4186_v51 = vsel %vm278_vm0, %v11713_v28, -inf  ;;  %v4205_v62 = vmax.f32 %v11244_v53, %v13246_v41  ;;  %v13248_v28 = vld [vmem:[#allocation37_spill] sm:$0xff] }
 0x38e   : > { %v4904_v12 = vor.u32 %v4903_v3, %v4900_v36  ;;  %v4717_v49 = vunpack.c.l.b16 %v8033_v61  ;;  %v7776_v24 = vcombine.low %v4952_v4, %v4966_v20  ;;  %v4891_v7 = vrot.slane %v4890_v44, 4  ;;  %v13249_v36 = vld [vmem:[#allocation46_spill] sm:$0xff] }
 0x38f   : > { %v3577_v59 = vmax.f32 %v11723_v23, %v3576_v47  ;;  %v4187_v22 = vmax.f32 %v4185_v50, %v4186_v51  ;;  %v4206_v17 = vsel %vm278_vm0, %v13247_v11, -inf  ;;  %v4207_v39 = vsel %vm278_vm0, %v13248_v28, -inf  ;;  %v13252_v47 = vld [vmem:[#allocation48_spill] sm:$0xff]  ;;  %v13253_v20 = vld [vmem:[#allocation54_spill] sm:$0xff] }
 0x390   : > { %v4905_v14 = vrot.slane %v4904_v12, 4  ;;  %8129 = vmatprep.mubr.msk.bf16.mxu1 %vm278_vm0, %v7776_v24  ;;  %v4896_v53 = vsel %vm11817_vm2, %v4891_v7, %v4895_v55  ;;  %v4209_v4 = vsel %vm278_vm0, %v3523_v63, -inf  ;;  %v4208_v32 = vmax.f32 %v4206_v17, %v4207_v39  ;;  %v13251_v63 = vld [vmem:[#allocation70_spill] sm:$0xff]  ;;  %v13254_v12 = vld [vmem:[#allocation55_spill] sm:$0xff] }
 0x391   : > { %v11862_v35 = vld [vmem:[#allocation3 + $0xc] sm:$0x1]  ;;  %v3578_v23 = vrot.slane %v3577_v59, 1  ;;  %v4348_v40 = vsel %vm11585_vm9, 0, %v4347_v58  ;;  %v4351_v10 = vsel %vm11585_vm9, 0, %v4350_v54  ;;  %v4380_v33 = vsel %vm11598_vm11, 0, %v4379_v57 }
 0x392   : > { %v4907_v61 = vshll.u32 %v11862_v35, 16  ;;  %4349 = vst [vmem:[#allocation3 + $0x10] sm:$0x1] %v4348_v40  ;;  %4352 = vst [vmem:[#allocation3 + $0x18] sm:$0x1] %v4351_v10  ;;  %v4383_v1 = vsel %vm11598_vm11, 0, %v4382_v34  ;;  %v7996_v52 = vpack.c.bf16 %v4205_v62, %v4205_v62  ;;  %v7997_v55 = vpack.c.bf16 %v4208_v32, %v4208_v32 }
 0x393   : > { %v3579_v29 = vmax.f32 %v3577_v59, %v3578_v23  ;;  %4381 = vst [vmem:[#allocation3 + $0x14] sm:$0x1] %v4380_v33  ;;  %4384 = vst [vmem:[#allocation3 + $0x1c] sm:$0x1] %v4383_v1  ;;  %v13250_v3 = vpack.c.bf16 %v13249_v36, %v13249_v36  ;;  %v4740_v50 = vsel %vm4733_vm12, %v13252_v47, %v13251_v63  ;;  %v13255_v57 = vld [vmem:[#allocation57_spill] sm:$0xff]  ;;  %v13256_v17 = vld [vmem:[#allocation71_spill] sm:$0xff]  ;;  %v4718_v23 = vunpack.c.l.b16 %v8034_v60 }
 0x394   : > { %v4909_v43 = vrot.slane %v4907_v61, 5  ;;  %v4741_v51 = vsel %vm4723_vm3, %v13254_v12, %v13253_v20  ;;  %v4771_v41 = vsel %vm4723_vm3, %v4716_v30, %v11833_v9  ;;  %v4680_v54 = vunpack.c.l.b16 %v7996_v52  ;;  %v4359_v10 = vld [vmem:[#allocation3 + $0x30] sm:$0x1]  ;;  %v13260_v60 = vld [vmem:[#allocation16_spill] sm:$0xff]  ;;  %v13261_v47 = vld [vmem:[#allocation73_spill] sm:$0xff] }
 0x395   : > { %v4678_v44 = vunpack.c.l.b16 %v13250_v3  ;;  %v4210_v58 = vsel %vm278_vm0, %v3579_v29, -inf  ;;  %v4742_v24 = vsel %vm4725_vm4, %v13255_v57, %v4741_v51  ;;  %v4681_v11 = vunpack.c.l.b16 %v7997_v55  ;;  %v4394_v57 = vld [vmem:[#allocation3 + $0x3c] sm:$0x1] }
 0x396   : > { %v4910_v62 = vsel %vm11817_vm2, %v4905_v14, %v4909_v43  ;;  %v4211_v59 = vmax.f32 %v4209_v4, %v4210_v58  ;;  %v4779_v39 = vpack.c.b16 %v4740_v50, %v4740_v50  ;;  %v8040_v61 = vpack.c.bf16 %v4187_v22, %v4187_v22  ;;  %v13257_v22 = vld [vmem:[#allocation64_spill] sm:$0xff] }
 0x397   : > { %v7774_v7 = vcombine.low %v4896_v53, %v4910_v62  ;;  %v4743_v34 = vsel %vm4727_vm5, %v4678_v44, %v4742_v24  ;;  %v8036_v9 = vpack.c.bf16 %v11812_v42, %v11812_v42  ;;  %v8037_v30 = vpack.c.bf16 %v11824_v19, %v11824_v19  ;;  %v4391_v42 = vld [vmem:[#allocation3 + $0x34] sm:$0x1]  ;;  %v5210_v44 = vld [vmem:[#allocation3] sm:$0xe]  ;;  %v13263_v62 = vld [vmem:[#allocation49_spill] sm:$0xff] }
 0x398   : > { %v4744_v28 = vsel %vm4729_vm6, %v13256_v17, %v4743_v34  ;;  %v8041_v53 = vpack.c.bf16 %v4211_v59, %v4211_v59  ;;  %v5239_v4 = vrot.slane %v11842_v31, 5  ;;  %v3858_v40 = vrot.slane %v13257_v22, 1 }
 0x399   : > { %8125 = vmatprep.mubr.msk.bf16.mxu0 %vm278_vm0, %v7774_v7  ;;  %v4745_v14 = vsel %vm4731_vm7, %v4680_v54, %v4744_v28  ;;  %v4772_v33 = vsel %vm4725_vm4, %v4717_v49, %v4771_v41  ;;  %v4818_v43 = vld [vmem:[#allocation3 + $0x10] sm:$0xf]  ;;  %v4824_v1 = vld [vmem:[#allocation3 + $0x18] sm:$0xf]  ;;  %v13258_v52 = vrot.slane %v11508_v8, 1  ;;  %v11919_v31 = vsel %vm4733_vm12, %v13260_v60, %v13259_v26 }
 0x39a   : > { %v4746_v32 = vsel %vm4733_vm12, %v4681_v11, %v4745_v14  ;;  %v4821_v29 = vld [vmem:[#allocation3 + $0x14] sm:$0x1]  ;;  %v4819_v36 = vsel %vm11628_vm14, %v4779_v39, %v4818_v43  ;;  %v4827_v49 = vld [vmem:[#allocation3 + $0x1c] sm:$0x1]  ;;  %v3859_v63 = vmax.f32 %v13257_v22, %v3858_v40  ;;  %v13262_v50 = vrot.slane %v13261_v47, 1 }
 0x39b   : > { %v4781_v19 = vpack.c.b16 %v4746_v32, %v4746_v32  ;;  %v4027_v55 = vmax.f32 %v11508_v8, %v13258_v52  ;;  %v4822_v3 = vsel %vm11585_vm9, %v8040_v61, %v4821_v29  ;;  %v4362_v8 = vld [vmem:[#allocation3 + $0x38] sm:$0x1]  ;;  %4820 = vst [vmem:[#allocation3 + $0x10] sm:$0xf] %v4819_v36  ;;  %v4828_v51 = vsel %vm11585_vm9, %v8041_v53, %v4827_v49  ;;  %v5211_v41 = vld [vmem:[#allocation3 + $0x8] sm:$0xe] }
 0x39c   : > { %v3971_v20 = vmax.f32 %v13261_v47, %v13262_v50  ;;  %4823 = vst [vmem:[#allocation3 + $0x14] sm:$0x1] %v4822_v3  ;;  %v4282_v58 = vsel %vm278_vm0, %v13263_v62, -inf  ;;  %4829 = vst [vmem:[#allocation3 + $0x1c] sm:$0x1] %v4828_v51  ;;  %v4281_v24 = vsel %vm278_vm0, %v3859_v63, -inf  ;;  %v4769_v14 = vsel %vm4731_vm7, %v11690_v16, %v11701_v27 }
 0x39d   : > { %v4825_v12 = vsel %vm11628_vm14, %v4781_v19, %v4824_v1  ;;  %v4306_v7 = vsel %vm278_vm0, %v4027_v55, -inf  ;;  %v4360_v59 = vsel %vm11585_vm9, 0, %v4359_v10  ;;  %v7794_v54 = vrot.slane %v5210_v44, 9 }
 0x39e   : > { %4826 = vst [vmem:[#allocation3 + $0x18] sm:$0xf] %v4825_v12  ;;  %v4283_v34 = vmax.f32 %v4281_v24, %v4282_v58  ;;  %4361 = vst [vmem:[#allocation3 + $0x30] sm:$0x1] %v4360_v59  ;;  %v4363_v11 = vsel %vm11585_vm9, 0, %v4362_v8  ;;  %v4392_v17 = vsel %vm11598_vm11, 0, %v4391_v42  ;;  %v11953_v32 = vmax.f32 %v11792_v0, %v4134_v6 }
 0x39f   : > { %v7795_v28 = vrot.slane %v5211_v41, 9  ;;  %v4305_v39 = vsel %vm278_vm0, %v3971_v20, -inf  ;;  %4364 = vst [vmem:[#allocation3 + $0x38] sm:$0x1] %v4363_v11  ;;  %4393 = vst [vmem:[#allocation3 + $0x34] sm:$0x1] %v4392_v17  ;;  %v11958_v40 = vunpack.c.l.b16 %v8035_v5  ;;  %v11960_v10 = vunpack.c.l.b16 %v8036_v9 }
 0x3a0   : > { %v4395_v61 = vsel %vm11598_vm11, 0, %v4394_v57  ;;  %v4082_v53 = vrot.slane %v11808_v18, 1  ;;  %v4307_v22 = vmax.f32 %v4305_v39, %v4306_v7  ;;  %v5243_v42 = vrot.slane %v11862_v35, 5  ;;  %v5214_v5 = vld [vmem:[#allocation3 + $0x20] sm:$0xe] }
 0x3a1   : > { %4396 = vst [vmem:[#allocation3 + $0x3c] sm:$0x1] %v4395_v61  ;;  %v4770_v16 = vsel %vm4733_vm12, %v11697_v46, %v4769_v14  ;;  %v11965_v27 = vunpack.c.l.b16 %v8037_v30  ;;  %v11968_v19 = vsel %vm4727_vm5, %v4718_v23, %v4772_v33  ;;  %v5255_v0 = vrot.slane %v11735_v38, 5  ;;  %v5215_v35 = vld [vmem:[#allocation3 + $0x28] sm:$0xe] }
 0x3a2   : > { %v5259_v6 = vrot.slane %v11803_v37, 5  ;;  %v11978_v9 = vld [vmem:[#allocation3 + $0x10] sm:$0xf]  ;;  %v11984_v30 = vsel %vm11974_vm15, %v7794_v54, %v5239_v4  ;;  %v11988_v38 = vsel %vm11974_vm15, %v7795_v28, %v5243_v42  ;;  %v4787_v37 = vpack.c.b16 %v11919_v31, %v11919_v31  ;;  %v5513_v33 = vld [vmem:[#allocation3 + $0x8] sm:$0xf] }
 0x3a3   : > { %v11980_v46 = vld [vmem:[#allocation3 + $0x14] sm:$0x1]  ;;  %v8044_v23 = vpack.c.bf16 %v4283_v34, %v4283_v34  ;;  %v11994_v29 = vld [vmem:[#allocation3 + $0x1c] sm:$0x1]  ;;  %v4912_v1 = vshrl.u32 %v11978_v9, 16  ;;  %v4915_v52 = vshll.u32 %v11978_v9, 16  ;;  %v4789_v55 = vpack.c.b16 %v4770_v16, %v4770_v16 }
 0x3a4   : > { %v8045_v4 = vpack.c.bf16 %v4307_v22, %v4307_v22  ;;  %v7798_v3 = vrot.slane %v5214_v5, 9  ;;  %v7799_v49 = vrot.slane %v5215_v35, 9  ;;  %v12000_v31 = vld [vmem:[#allocation3 + $0xc] sm:$0x1]  ;;  %v5530_v50 = vshrl.u32 %v5513_v33, 16 }
 0x3a5   : > { %v11992_v43 = vld [vmem:[#allocation3 + $0x18] sm:$0xf]  ;;  %v4842_v36 = vld [vmem:[#allocation3 + $0x30] sm:$0xf]  ;;  %v4914_v44 = vrot.slane %v4912_v1, 4  ;;  %v4917_v63 = vrot.slane %v4915_v52, 5  ;;  %v7806_v11 = vcombine.low %v11984_v30, %v11988_v38  ;;  %v7784_v28 = vcombine.low %v11822_v25, %v11829_v21 }
 0x3a6   : > { %v4926_v26 = vshrl.u32 %v11992_v43, 16  ;;  %v4929_v60 = vshll.u32 %v11992_v43, 16  ;;  %v4845_v47 = vld [vmem:[#allocation3 + $0x34] sm:$0x1]  ;;  %v5533_v20 = vshll.u32 %v5513_v33, 16  ;;  %v4921_v8 = vshll.u32 %v11980_v46, 16 }
 0x3a7   : > { %v4935_v41 = vshll.u32 %v11994_v29, 16  ;;  %v4848_v62 = vld [vmem:[#allocation3 + $0x38] sm:$0xf]  ;;  %v4918_v58 = vor.u32 %v4917_v63, %v4914_v44  ;;  %v4843_v57 = vsel %vm11628_vm14, %v4787_v37, %v4842_v36  ;;  %v4846_v24 = vsel %vm11585_vm9, %v8044_v23, %v4845_v47  ;;  %v5212_v54 = vld [vmem:[#allocation3 + $0x10] sm:$0xe] }
 0x3a8   : > { %v4928_v12 = vrot.slane %v4926_v26, 4  ;;  %v4931_v51 = vrot.slane %v4929_v60, 5  ;;  %v4849_v7 = vsel %vm11628_vm14, %v4789_v55, %v4848_v62  ;;  %v4851_v59 = vld [vmem:[#allocation3 + $0x3c] sm:$0x1]  ;;  %4844 = vst [vmem:[#allocation3 + $0x30] sm:$0xf] %v4843_v57  ;;  %v12021_v33 = vsel %vm11974_vm15, %v7798_v3, %v5255_v0 }
 0x3a9   : > { %4847 = vst [vmem:[#allocation3 + $0x34] sm:$0x1] %v4846_v24  ;;  %4850 = vst [vmem:[#allocation3 + $0x38] sm:$0xf] %v4849_v7  ;;  %v4852_v17 = vsel %vm11585_vm9, %v8045_v4, %v4851_v59  ;;  %v5213_v39 = vld [vmem:[#allocation3 + $0x18] sm:$0xe]  ;;  %v12025_v1 = vsel %vm11974_vm15, %v7799_v49, %v5259_v6  ;;  %v4774_v0 = vsel %vm4729_vm6, %v11958_v40, %v11968_v19 }
 0x3aa   : > { %v4932_v34 = vor.u32 %v4931_v51, %v4928_v12  ;;  %v5515_v61 = vld [vmem:[#allocation3 + $0x10] sm:$0xf]  ;;  %v4919_v14 = vrot.slane %v4918_v58, 4  ;;  %4853 = vst [vmem:[#allocation3 + $0x3c] sm:$0x1] %v4852_v17  ;;  %v5532_v22 = vrot.slane %v5530_v50, 4  ;;  %v12061_v62 = vsel %vm4731_vm7, %v11960_v10, %v4774_v0 }
 0x3ab   : > { %v5535_v42 = vrot.slane %v5533_v20, 5  ;;  %v5539_v16 = vshll.u32 %v12000_v31, 16  ;;  %v4923_v5 = vrot.slane %v4921_v8, 5  ;;  %v4937_v30 = vrot.slane %v4935_v41, 5  ;;  %v12017_v37 = vld [vmem:[#allocation3 + $0x20] sm:$0xf] }
 0x3ac   : > { %v4933_v35 = vrot.slane %v4932_v34, 4  ;;  %v7796_v38 = vrot.slane %v5212_v54, 9  ;;  %v7797_v23 = vrot.slane %v5213_v39, 9  ;;  %v12027_v52 = vld [vmem:[#allocation3 + $0x14] sm:$0x1]  ;;  %v5544_v55 = vshrl.u32 %v5515_v61, 16 }
 0x3ad   : > { %v4924_v4 = vsel %vm11817_vm2, %v4919_v14, %v4923_v5  ;;  %v8328_v60 = vld [vmem:[%s12845_s3 + $0x20] sm:$0xff]   ;;  %v5547_v36 = vshll.u32 %v5515_v61, 16  ;;  %v5247_v3 = vrot.slane %v11980_v46, 5  ;;  %v5251_v49 = vrot.slane %v11994_v29, 5  ;;  %v5517_v63 = vld [vmem:[#allocation3 + $0x18] sm:$0xf] }
 0x3ae   : > { %v4938_v26 = vsel %vm11817_vm2, %v4933_v35, %v4937_v30  ;;  %v5536_v44 = vor.u32 %v5535_v42, %v5532_v22  ;;  %v5546_v47 = vrot.slane %v5544_v55, 4  ;;  %v5553_v20 = vshll.u32 %v12027_v52, 16  ;;  %v8332_v41 = vld [vmem:[%s12845_s3 + $0x48] sm:$0xff]   ;;  %v8336_v0 = vld [vmem:[%s12845_s3 + $0x40] sm:$0xff]  }
 0x3af   : > { %v7775_v6 = vcombine.low %v4924_v4, %v4938_v26  ;;  %v5549_v50 = vrot.slane %v5547_v36, 5  ;;  %v5572_v8 = vshrl.u32 %v12017_v37, 16  ;;  %v12044_v12 = vld [vmem:[#allocation3 + $0x30] sm:$0xf]  ;;  %v5248_v19 = vsel %vm11974_vm15, %v7796_v38, %v5247_v3  ;;  %v8483_v58 = vld [vmem:[%s12845_s3 + $0x28] sm:$0xff]  }
 0x3b0   : > { %v12046_v51 = vld [vmem:[#allocation3 + $0x38] sm:$0xf]  ;;  %v12048_v40 = vld [vmem:[#allocation3 + $0x34] sm:$0x1]  ;;  %v5252_v46 = vsel %vm11974_vm15, %v7797_v23, %v5251_v49  ;;  %v7808_v29 = vcombine.low %v12021_v33, %v12025_v1  ;;  %v4968_v24 = vshrl.u32 %v12044_v12, 16  ;;  %v4971_v7 = vshll.u32 %v12044_v12, 16 }
 0x3b1   : > { %8126 = vmatmul.mubr.msk.bf16.vlgmr.msra.gmra.mxu0 %vm278_vm0, %v7775_v6  ;;  %v4879_v57 = vld [vmem:[#allocation3 + $0x3c] sm:$0x1]  ;;  %v4982_v59 = vshrl.u32 %v12046_v51, 16  ;;  %v5558_v54 = vshrl.u32 %v5517_v63, 16  ;;  %v4985_v34 = vshll.u32 %v12046_v51, 16  ;;  %v12071_v17 = vrot.slane %v5536_v44, 4 }
 0x3b2   : > { %8146 = vmatpush3.bf16.msra.mxu0 %v8483_v58  ;;  %8149 = vmatprep.mubr.msk.bf16.mxu0 %vm278_vm0, %v7806_v11  ;;  %v5217_v10 = vld [vmem:[#allocation3 + $0x38] sm:$0xe]  ;;  %v12073_v39 = vrot.slane %v5539_v16, 5  ;;  %v5561_v61 = vshll.u32 %v5517_v63, 16  ;;  %v4970_v14 = vrot.slane %v4968_v24, 4  ;;  %v4973_v22 = vrot.slane %v4971_v7, 5 }
 0x3b3   : > { %8147 = vmatprep.subr.bf16.mxu0 %v8328_v60  ;;  %v4977_v11 = vshll.u32 %v12048_v40, 16  ;;  %v4984_v42 = vrot.slane %v4982_v59, 4  ;;  %v12076_v5 = vld [vmem:[#allocation3 + $0x1c] sm:$0x1]  ;;  %v4987_v35 = vrot.slane %v4985_v34, 5  ;;  %v4991_v30 = vshll.u32 %v4879_v57, 16 }
 0x3b4   : > { %v7807_v38 = vcombine.low %v5248_v19, %v5252_v46  ;;  %v5216_v23 = vld [vmem:[#allocation3 + $0x30] sm:$0xe]  ;;  %v5550_v33 = vor.u32 %v5549_v50, %v5546_v47  ;;  %v4974_v1 = vor.u32 %v4973_v22, %v4970_v14  ;;  %v7801_v55 = vrot.slane %v5217_v10, 9  ;;  %v5521_v49 = vld [vmem:[#allocation3 + $0x28] sm:$0xf] }
 0x3b5   : > { %v5555_v4 = vrot.slane %v5553_v20, 5  ;;  %v5560_v26 = vrot.slane %v5558_v54, 4  ;;  %v4988_v16 = vor.u32 %v4987_v35, %v4984_v42  ;;  %v5542_v36 = vsel %vm11817_vm2, %v12071_v17, %v12073_v39  ;;  %v5523_v50 = vld [vmem:[#allocation3 + $0x30] sm:$0xf]  ;;  %v12096_v10 = vld [vmem:[#allocation3 + $0x24] sm:$0x1] }
 0x3b6   : > { %8148 = vmatpush3.bf16.msra.mxu0 %v8328_v60  ;;  %v5563_v6 = vrot.slane %v5561_v61, 5  ;;  %v5567_v3 = vshll.u32 %v12076_v5, 16  ;;  %v4975_v44 = vrot.slane %v4974_v1, 4  ;;  %v4979_v60 = vrot.slane %v4977_v11, 5  ;;  %v12106_v61 = vld [vmem:[%s12845_s3 + $0x68] sm:$0xff]  }
 0x3b7   : > { %8169 = vmatprep.subr.bf16.mxu0 %v8332_v41  ;;  %v7800_v63 = vrot.slane %v5216_v23, 9  ;;  %v5267_v47 = vrot.slane %v4879_v57, 5  ;;  %v4989_v20 = vrot.slane %v4988_v16, 4  ;;  %v4993_v19 = vrot.slane %v4991_v30, 5  ;;  %v4365_v14 = vld [vmem:[#allocation3 + $0x40] sm:$0x1] }
 0x3b8   : > { %v5263_v46 = vrot.slane %v12048_v40, 5  ;;  %v5551_v58 = vrot.slane %v5550_v33, 4  ;;  %v5574_v7 = vrot.slane %v5572_v8, 4  ;;  %v5575_v59 = vshll.u32 %v12017_v37, 16  ;;  %v12110_v42 = vld [vmem:[#allocation3 + $0x34] sm:$0x1] }
 0x3b9   : > { %8150 = vmatmul.mubr.msk.bf16.vlgmr.msra.gmra.mxu0 %vm278_vm0, %v7807_v38  ;;  %v5268_v24 = vsel %vm11974_vm15, %v7801_v55, %v5267_v47  ;;  %v5586_v54 = vshrl.u32 %v5521_v49, 16  ;;  %v4980_v57 = vsel %vm11817_vm2, %v4975_v44, %v4979_v60  ;;  %v4994_v34 = vsel %vm11817_vm2, %v4989_v20, %v4993_v19  ;;  %v4397_v38 = vld [vmem:[#allocation3 + $0x44] sm:$0x1]  ;;  %v12114_v1 = vld [vmem:[#allocation3 + $0x2c] sm:$0x1] }
 0x3ba   : > { %8153 = vmatprep.mubr.msk.bf16.mxu0 %vm278_vm0, %v7808_v29  ;;  %8170 = vmatpush3.bf16.msra.mxu0 %v8332_v41  ;;  %v5564_v40 = vor.u32 %v5563_v6, %v5560_v26  ;;  %v5589_v17 = vshll.u32 %v5521_v49, 16  ;;  %v7777_v29 = vcombine.low %v4980_v57, %v4994_v34  ;;  %v8329_v41 = vld [vmem:[%s12845_s3] sm:$0xff]   ;;  %v5264_v37 = vsel %vm11974_vm15, %v7800_v63, %v5263_v46  ;;  %v8330_v44 = vld [vmem:[%s12845_s3 + $0x38] sm:$0xff]   ;;  %v5757_v13 = vld [vmem:[#allocation3 + $0x18] sm:$0xe] }
 0x3bb   : > { %8171 = vmatprep.subr.bf16.mxu0 %v8336_v0  ;;  %v5577_v8 = vrot.slane %v5575_v59, 5  ;;  %v5588_v39 = vrot.slane %v5586_v54, 4  ;;  %v7809_v22 = vcombine.low %v5264_v37, %v5268_v24  ;;  %v5556_v11 = vsel %vm11817_vm2, %v5551_v58, %v5555_v4  ;;  %v8484_v4 = vld [vmem:[%s12845_s3 + $0x8] sm:$0xff]   ;;  %v8486_v57 = vld [vmem:[#allocation3 + $0x28] sm:$0xf] }
 0x3bc   : > { %v5591_v35 = vrot.slane %v5589_v17, 5  ;;  %v5600_v30 = vshrl.u32 %v5523_v50, 16  ;;  %8130 = vmatmul.mubr.msk.bf16.vlgmr.msra.gmra.mxu1 %vm278_vm0, %v7777_v29  ;;  %v5581_v33 = vshll.u32 %v12096_v10, 16  ;;  %v5603_v55 = vshll.u32 %v5523_v50, 16  ;;  %v5525_v17 = vld [vmem:[#allocation3 + $0x38] sm:$0xf] }
 0x3bd   : > { %v5578_v23 = vor.u32 %v5577_v8, %v5574_v7  ;;  %v4136_v26 = vrot.slane %v11953_v32, 2  ;;  %8134 = vmatpush3.bf16.msra.mxu1 %v8484_v4  ;;  %8137 = vmatprep.mubr.msk.bf16.mxu1 %vm278_vm0, %v7784_v28  ;;  %v5565_v16 = vrot.slane %v5564_v40, 4  ;;  %v4366_v49 = vsel %vm11585_vm9, 0, %v4365_v14 }
 0x3be   : > { %8172 = vmatpush3.bf16.msra.mxu0 %v8336_v0  ;;  %v5592_v0 = vor.u32 %v5591_v35, %v5588_v39  ;;  %v5602_v6 = vrot.slane %v5600_v30, 4  ;;  %8135 = vmatprep.subr.bf16.mxu1 %v8329_v41  ;;  %v7834_v60 = vcombine.low %v5542_v36, %v5556_v11  ;;  %v5605_v63 = vrot.slane %v5603_v55, 5  ;;  %4367 = vst [vmem:[#allocation3 + $0x40] sm:$0x1] %v4366_v49  ;;  %v12166_v35 = vld [vmem:[%s12845_s3 + $0x58] sm:$0xff]  }
 0x3bf   : > { %v5609_v47 = vshll.u32 %v12110_v42, 16  ;;  %8193 = vmatprep.subr.bf16.mxu0 %v12106_v61  ;;  %v4137_v25 = vmax.f32 %v11953_v32, %v4136_v26  ;;  %v5569_v21 = vrot.slane %v5567_v3, 5  ;;  %v5595_v28 = vshll.u32 %v12114_v1, 16  ;;  %v8335_v49 = vld [vmem:[#allocation3 + $0x8] ss:$8 sps:$4 sm:$0xff]  }
 0x3c0   : > { %v4398_v50 = vsel %vm11598_vm11, 0, %v4397_v38  ;;  %v4776_v36 = vsel %vm4733_vm12, %v11965_v27, %v12061_v62  ;;  %v5579_v20 = vrot.slane %v5578_v23, 4  ;;  %v5606_v19 = vor.u32 %v5605_v63, %v5602_v6  ;;  %v8333_v27 = vld [vmem:[%s12845_s3 + $0x30] sm:$0xff]   ;;  %v5756_v63 = vld [vmem:[#allocation3 + $0x10] sm:$0xe] }
 0x3c1   : > { %8154 = vmatmul.mubr.msk.bf16.gmra.mxu0 %vm278_vm0, %v7809_v22  ;;  %v4083_v32 = vmax.f32 %v11808_v18, %v4082_v53  ;;  %v4138_v46 = vrot.slane %v4137_v25, 1  ;;  %4399 = vst [vmem:[#allocation3 + $0x44] sm:$0x1] %v4398_v50  ;;  %8136 = vmatpush3.bf16.msra.mxu1 %v8329_v41  ;;  %v7785_v3 = vcombine.low %v11978_v9, %v11992_v43  ;;  %v5583_v24 = vrot.slane %v5581_v33, 5  ;;  %v8485_v53 = vld [vmem:[#allocation3 + $0x20] sm:$0xf] }
 0x3c2   : > { %8173 = vmatprep.mubr.msk.bf16.mxu0 %vm278_vm0, %v7834_v60  ;;  %v5570_v58 = vsel %vm11817_vm2, %v5565_v16, %v5569_v21  ;;  %v5593_v7 = vrot.slane %v5592_v0, 4  ;;  %8157 = vmatprep.subr.bf16.mxu1 %v8330_v44  ;;  %v5607_v62 = vrot.slane %v5606_v19, 4  ;;  %v5611_v59 = vrot.slane %v5609_v47, 5  ;;  %v8344_v22 = vld [vmem:[%s12845_s3 + $0x60] sm:$0xff]   ;;  %v4368_v33 = vld [vmem:[#allocation3 + $0x48] sm:$0x1] }
 0x3c3   : > { %v4139_v54 = vmax.f32 %v4137_v25, %v4138_v46  ;;  %v4791_v18 = vpack.c.b16 %v4776_v36, %v4776_v36  ;;  %v7786_v34 = vcombine.low %v8485_v53, %v8486_v57  ;;  %v5597_v40 = vrot.slane %v5595_v28, 5  ;;  %v5755_v60 = vld [vmem:[#allocation3 + $0x8] sm:$0xe]  ;;  %v12191_v36 = vld [vmem:[#allocation3 + $0x20] sm:$0xe] }
 0x3c4   : > { %8138 = vmatmul.mubr.msk.bf16.vlgmr.msra.gmra.mxu1 %vm278_vm0, %v7785_v3  ;;  %v5584_v9 = vsel %vm11817_vm2, %v5579_v20, %v5583_v24  ;;  %v5612_v43 = vsel %vm11817_vm2, %v5607_v62, %v5611_v59  ;;  %v4329_v29 = vsel %vm278_vm0, %v4083_v32, -inf  ;;  %v5614_v38 = vshrl.u32 %v5525_v17, 16  ;;  %v8338_v20 = vld [vmem:[#allocation3 + $0x18] ss:$8 sps:$4 sm:$0xff]   ;;  %v5760_v3 = vld [vmem:[#allocation3 + $0x30] sm:$0xe] }
 0x3c5   : > { %v4330_v41 = vsel %vm278_vm0, %v4139_v54, -inf  ;;  %8158 = vmatpush3.bf16.msra.mxu1 %v8330_v44  ;;  %8141 = vmatprep.mubr.msk.bf16.mxu1 %vm278_vm0, %v7786_v34  ;;  %v7835_v37 = vcombine.low %v5570_v58, %v5584_v9  ;;  %v5598_v8 = vsel %vm11817_vm2, %v5593_v7, %v5597_v40  ;;  %v4854_v14 = vld [vmem:[#allocation3 + $0x40] sm:$0xf]  ;;  %v5617_v23 = vshll.u32 %v5525_v17, 16  ;;  %v12185_v44 = vld [vmem:[#allocation3 + $0x3c] sm:$0x1] }
 0x3c6   : > { %v4331_v39 = vmax.f32 %v4329_v29, %v4330_v41  ;;  %8159 = vmatprep.subr.bf16.mxu1 %v8333_v27  ;;  %v7836_v11 = vcombine.low %v5598_v8, %v5612_v43  ;;  %v4855_v30 = vsel %vm11628_vm14, %v4791_v18, %v4854_v14  ;;  %v4369_v16 = vsel %vm11585_vm9, 0, %v4368_v33  ;;  %v8341_v19 = vld [vmem:[%s12845_s3 + $0x50] sm:$0xff]   ;;  %v6056_v58 = vld [vmem:[#allocation3 + $0x10] sm:$0xf]  ;;  %v5759_v53 = vld [vmem:[#allocation3 + $0x28] sm:$0xe] }
 0x3c7   : > { %4856 = vst [vmem:[#allocation3 + $0x40] sm:$0xf] %v4855_v30  ;;  %v7787_v0 = vcombine.low %v12044_v12, %v12046_v51  ;;  %v5619_v6 = vrot.slane %v5617_v23, 5  ;;  %4370 = vst [vmem:[#allocation3 + $0x48] sm:$0x1] %v4369_v16  ;;  %v5623_v47 = vshll.u32 %v12185_v44, 16 }
 0x3c8   : > { %v8046_v55 = vpack.c.bf16 %v4331_v39, %v4331_v39  ;;  %v4857_v26 = vld [vmem:[#allocation3 + $0x44] sm:$0x1]  ;;  %v7844_v28 = vrot.slane %v5755_v60, 9  ;;  %v7845_v50 = vrot.slane %v5756_v63, 9  ;;  %v5781_v32 = vrot.slane %v12000_v31, 5 }
 0x3c9   : > { %8174 = vmatmul.mubr.msk.bf16.vlgmr.msra.gmra.mxu0 %vm278_vm0, %v7835_v37  ;;  %8160 = vmatpush3.bf16.msra.mxu1 %v8333_v27  ;;  %v5785_v46 = vrot.slane %v12027_v52, 5  ;;  %v5625_v59 = vrot.slane %v5623_v47, 5  ;;  %v7846_v18 = vrot.slane %v5757_v13, 9  ;;  %v6058_v57 = vld [vmem:[#allocation3 + $0x18] sm:$0xf]  ;;  %v5789_v17 = vrot.slane %v12076_v5, 5 }
 0x3ca   : > { %8177 = vmatprep.mubr.msk.bf16.mxu0 %vm278_vm0, %v7836_v11  ;;  %8194 = vmatpush3.bf16.msra.mxu0 %v12106_v61  ;;  %v4858_v4 = vsel %vm11585_vm9, %v8046_v55, %v4857_v26  ;;  %v5616_v61 = vrot.slane %v5614_v38, 4  ;;  %v8339_v34 = vld [vmem:[#allocation3 + $0x28] ss:$8 sps:$4 sm:$0xff]   ;;  %v5782_v31 = vsel %vm11974_vm15, %v7844_v28, %v5781_v32  ;;  %v12206_v9 = vld [vmem:[#allocation3 + $0x1c] sm:$0x1]  ;;  %v7847_v43 = vrot.slane %v12191_v36, 9 }
 0x3cb   : > { %8195 = vmatprep.subr.bf16.mxu0 %v8344_v22  ;;  %8181 = vmatprep.subr.bf16.mxu1 %v12166_v35  ;;  %4859 = vst [vmem:[#allocation3 + $0x44] sm:$0x1] %v4858_v4  ;;  %v5786_v52 = vsel %vm11974_vm15, %v7845_v50, %v5785_v46  ;;  %v7849_v29 = vrot.slane %v5760_v3, 9  ;;  %v6299_v41 = vld [vmem:[#allocation3 + $0x18] sm:$0xe]  ;;  %v6073_v37 = vshrl.u32 %v6056_v58, 16  ;;  %v12221_v23 = vsel %vm11974_vm15, %v7846_v18, %v5789_v17 }
 0x3cc   : > { %8142 = vmatmul.mubr.msk.bf16.gmra.mxu1 %vm278_vm0, %v7787_v0  ;;  %v5620_v51 = vor.u32 %v5619_v6, %v5616_v61  ;;  %v6076_v8 = vshll.u32 %v6056_v58, 16  ;;  %v6087_v11 = vshrl.u32 %v6058_v57, 16  ;;  %v6090_v30 = vshll.u32 %v6058_v57, 16  ;;  %v12217_v38 = vld [vmem:[%s12845_s3 + $0x78] sm:$0xff]   ;;  %v12228_v16 = vld [vmem:[#allocation3 + $0x14] sm:$0x1] }
 0x3cd   : > { %8161 = vmatprep.mubr.msk.bf16.mxu1 %vm278_vm0, %v8335_v49  ;;  %v5801_v33 = vrot.slane %v12110_v42, 5  ;;  %v7848_v26 = vrot.slane %v5759_v53, 9  ;;  %v5797_v4 = vrot.slane %v12114_v1, 5  ;;  %v7895_v0 = vrot.slane %v6299_v41, 9  ;;  %v8342_v63 = vld [vmem:[#allocation3 + $0x10] ss:$8 sps:$4 sm:$0xff]  }
 0x3ce   : > { %8196 = vmatpush3.bf16.msra.mxu0 %v8344_v22  ;;  %v5527_v12 = vld [vmem:[#allocation3 + $0x40] sm:$0xf]  ;;  %v5621_v62 = vrot.slane %v5620_v51, 4  ;;  %v6298_v22 = vld [vmem:[#allocation3 + $0x10] sm:$0xe]  ;;  %v6328_v60 = vrot.slane %v12206_v9, 5  ;;  %v7856_v47 = vcombine.low %v5782_v31, %v5786_v52 }
 0x3cf   : > { %8217 = vmatprep.subr.bf16.mxu0 %v12178_v48  ;;  %v5628_v25 = vshrl.u32 %v5527_v12, 16  ;;  %v5631_v21 = vshll.u32 %v5527_v12, 16  ;;  %v12232_v6 = vsel %vm11974_vm15, %v7849_v29, %v5801_v33  ;;  %v7894_v49 = vrot.slane %v6298_v22, 9  ;;  %v8343_v1 = vld [vmem:[#allocation3 + $0x38] ss:$8 sps:$4 sm:$0xff]  }
 0x3d0   : > { %v5626_v5 = vsel %vm11817_vm2, %v5621_v62, %v5625_v59  ;;  %v6075_v42 = vrot.slane %v6073_v37, 4  ;;  %v6078_v13 = vrot.slane %v6076_v8, 5  ;;  %v6089_v12 = vrot.slane %v6087_v11, 4  ;;  %v6300_v58 = vld [vmem:[#allocation3 + $0x20] sm:$0xe] }
 0x3d1   : > { %v5630_v7 = vrot.slane %v5628_v25, 4  ;;  %v5633_v27 = vrot.slane %v5631_v21, 5  ;;  %v6092_v51 = vrot.slane %v6090_v30, 5  ;;  %v6324_v25 = vrot.slane %v12228_v16, 5  ;;  %v5762_v21 = vld [vmem:[#allocation3 + $0x40] sm:$0xe] }
 0x3d2   : > { %v12198_v24 = vld [vmem:[#allocation3 + $0x44] sm:$0x1]  ;;  %v12243_v50 = vsel %vm11974_vm15, %v7848_v26, %v5797_v4  ;;  %v12247_v36 = vsel %vm11974_vm15, %v7895_v0, %v6328_v60  ;;  %v6079_v62 = vor.u32 %v6078_v13, %v6075_v42  ;;  %v6066_v18 = vld [vmem:[#allocation3 + $0x38] sm:$0xf]  ;;  %v8345_v53 = vld [vmem:[#allocation3 + $0x20] ss:$8 sps:$4 sm:$0xff]  }
 0x3d3   : > { %v5637_v54 = vshll.u32 %v12198_v24, 16  ;;  %v5634_v40 = vor.u32 %v5633_v27, %v5630_v7  ;;  %v7858_v46 = vcombine.low %v12243_v50, %v12232_v6  ;;  %v12255_v3 = vsel %vm11974_vm15, %v7894_v49, %v6324_v25  ;;  %v12264_v31 = vld [vmem:[#allocation3 + $0x28] sm:$0xe]  ;;  %v6064_v8 = vld [vmem:[#allocation3 + $0x30] sm:$0xf] }
 0x3d4   : > { %8162 = vmatmul.mubr.msk.bf16.vlgmr.msra.gmra.mxu1 %vm278_vm0, %v8338_v20  ;;  %v5805_v7 = vrot.slane %v12185_v44, 5  ;;  %v7851_v27 = vrot.slane %v5762_v21, 9  ;;  %v6093_v59 = vor.u32 %v6092_v51, %v6089_v12  ;;  %v7906_v57 = vcombine.low %v12255_v3, %v12247_v36  ;;  %v6068_v60 = vld [vmem:[#allocation3 + $0x40] sm:$0xf]  ;;  %v6070_v12 = vld [vmem:[#allocation3 + $0x48] sm:$0xf] }
 0x3d5   : > { %8182 = vmatpush3.bf16.msra.mxu1 %v12166_v35  ;;  %8165 = vmatprep.mubr.msk.bf16.mxu1 %vm278_vm0, %v8339_v34  ;;  %v5635_v39 = vrot.slane %v5634_v40, 4  ;;  %v5639_v14 = vrot.slane %v5637_v54, 5  ;;  %v5793_v35 = vrot.slane %v12096_v10, 5  ;;  %v5761_v10 = vld [vmem:[#allocation3 + $0x38] sm:$0xe]  ;;  %v6082_v34 = vshll.u32 %v12228_v16, 16 }
 0x3d6   : > { %8183 = vmatprep.subr.bf16.mxu1 %v8341_v19  ;;  %v7850_v20 = vrot.slane %v5761_v10, 9  ;;  %v6060_v54 = vld [vmem:[#allocation3 + $0x20] sm:$0xf]  ;;  %v12262_v40 = vld [vmem:[#allocation3 + $0x24] sm:$0x1]  ;;  %v5809_v29 = vrot.slane %v12198_v24, 5 }
 0x3d7   : > { %v5640_v55 = vsel %vm11817_vm2, %v5635_v39, %v5639_v14  ;;  %v5794_v28 = vsel %vm11974_vm15, %v7847_v43, %v5793_v35  ;;  %v4400_v43 = vld [vmem:[#allocation3 + $0x4c] sm:$0x1]  ;;  %v6096_v41 = vshll.u32 %v12206_v9, 16  ;;  %v7896_v37 = vrot.slane %v6300_v58, 9  ;;  %v8351_v39 = vld [vmem:[%s12845_s3 + $0x80] sm:$0xff]  }
 0x3d8   : > { %v7837_v61 = vcombine.low %v5626_v5, %v5640_v55  ;;  %v7857_v32 = vcombine.low %v12221_v23, %v5794_v28  ;;  %v12268_v44 = vsel %vm11974_vm15, %v7850_v20, %v5805_v7  ;;  %v12275_v14 = vld [vmem:[#allocation3 + $0x2c] sm:$0x1]  ;;  %v6101_v22 = vshrl.u32 %v6060_v54, 16  ;;  %v8346_v23 = vld [vmem:[#allocation3 + $0x30] ss:$8 sps:$4 sm:$0xff]   ;;  %v8350_v55 = vld [vmem:[%s12845_s3 + $0x70] sm:$0xff]  }
 0x3d9   : > { %8184 = vmatpush3.bf16.msra.mxu1 %v8341_v19  ;;  %v6062_v19 = vld [vmem:[#allocation3 + $0x28] sm:$0xf]  ;;  %v6104_v11 = vshll.u32 %v6060_v54, 16  ;;  %v6143_v30 = vshrl.u32 %v6066_v18, 16  ;;  %v6146_v5 = vshll.u32 %v6066_v18, 16  ;;  %v12279_v35 = vsel %vm11974_vm15, %v7851_v27, %v5809_v29 }
 0x3da   : > { %8178 = vmatmul.mubr.msk.bf16.gmra.mxu0 %vm278_vm0, %v7837_v61  ;;  %8205 = vmatprep.subr.bf16.mxu1 %v12217_v38  ;;  %v6115_v52 = vshrl.u32 %v6062_v19, 16  ;;  %v6118_v17 = vshll.u32 %v6062_v19, 16  ;;  %v6080_v24 = vrot.slane %v6079_v62, 4  ;;  %v6094_v33 = vrot.slane %v6093_v59, 4  ;;  %v6302_v25 = vld [vmem:[#allocation3 + $0x30] sm:$0xe] }
 0x3db   : > { %8197 = vmatprep.mubr.msk.bf16.mxu0 %vm278_vm0, %v8342_v63  ;;  %v4401_v9 = vsel %vm11598_vm11, 0, %v4400_v43  ;;  %v6129_v16 = vshrl.u32 %v6064_v8, 16  ;;  %v6132_v0 = vshll.u32 %v6064_v8, 16  ;;  %v6084_v61 = vrot.slane %v6082_v34, 5  ;;  %v6303_v28 = vld [vmem:[#allocation3 + $0x38] sm:$0xe] }
 0x3dc   : > { %8166 = vmatmul.mubr.msk.bf16.gmra.mxu1 %vm278_vm0, %v8343_v1  ;;  %v6117_v26 = vrot.slane %v6115_v52, 4  ;;  %v6120_v4 = vrot.slane %v6118_v17, 5  ;;  %4402 = vst [vmem:[#allocation3 + $0x4c] sm:$0x1] %v4401_v9  ;;  %v6098_v6 = vrot.slane %v6096_v41, 5  ;;  %v6332_v15 = vrot.slane %v12262_v40, 5 }
 0x3dd   : > { %8185 = vmatprep.mubr.msk.bf16.mxu1 %vm278_vm0, %v7856_v47  ;;  %v7897_v49 = vrot.slane %v12264_v31, 9  ;;  %v6103_v10 = vrot.slane %v6101_v22, 4  ;;  %v6106_v63 = vrot.slane %v6104_v11, 5  ;;  %v6145_v42 = vrot.slane %v6143_v30, 4  ;;  %v8349_v27 = vld [vmem:[#allocation3 + $0x40] ss:$8 sps:$4 sm:$0xff]  }
 0x3de   : > { %v6148_v13 = vrot.slane %v6146_v5, 5  ;;  %v6085_v51 = vsel %vm11817_vm2, %v6080_v24, %v6084_v61  ;;  %v12300_v1 = vsel %vm11974_vm15, %v7896_v37, %v6332_v15  ;;  %v6336_v47 = vrot.slane %v12275_v14, 5  ;;  %v6065_v34 = vld [vmem:[#allocation3 + $0x34] sm:$0x1]  ;;  %v6304_v24 = vld [vmem:[#allocation3 + $0x40] sm:$0xe] }
 0x3df   : > { %v6099_v21 = vsel %vm11817_vm2, %v6094_v33, %v6098_v6  ;;  %v6121_v50 = vor.u32 %v6120_v4, %v6117_v26  ;;  %v6131_v20 = vrot.slane %v6129_v16, 4  ;;  %v6134_v19 = vrot.slane %v6132_v0, 5 }
 0x3e0   : > { %v6171_v58 = vshrl.u32 %v6070_v12, 16  ;;  %v6174_v7 = vshll.u32 %v6070_v12, 16  ;;  %v6337_v62 = vsel %vm11974_vm15, %v7897_v49, %v6336_v47  ;;  %v7898_v59 = vrot.slane %v6302_v25, 9 }
 0x3e1   : > { %v6107_v54 = vor.u32 %v6106_v63, %v6103_v10  ;;  %v6149_v18 = vor.u32 %v6148_v13, %v6145_v42  ;;  %v7899_v31 = vrot.slane %v6303_v28, 9  ;;  %v6110_v17 = vshll.u32 %v12262_v40, 16 }
 0x3e2   : > { %8198 = vmatmul.mubr.msk.bf16.vlgmr.msra.gmra.mxu0 %vm278_vm0, %v8345_v53  ;;  %v13266_v53 = vmov 0.0   ;;  %v6124_v43 = vshll.u32 %v12275_v14, 16  ;;  %v6122_v29 = vrot.slane %v6121_v50, 4  ;;  %v6135_v41 = vor.u32 %v6134_v19, %v6131_v20 }
 0x3e3   : > { %8201 = vmatprep.mubr.msk.bf16.mxu0 %vm278_vm0, %v8346_v23  ;;  %8218 = vmatpush3.bf16.msra.mxu0 %v12178_v48  ;;  %v7859_v48 = vcombine.low %v12268_v44, %v12279_v35  ;;  %v7884_v44 = vcombine.low %v6085_v51, %v6099_v21  ;;  %v6173_v22 = vrot.slane %v6171_v58, 4  ;;  %v6176_v11 = vrot.slane %v6174_v7, 5  ;;  %v6305_v23 = vld [vmem:[#allocation3 + $0x48] sm:$0xe]  ;;  %v6071_v4 = vld [vmem:[#allocation3 + $0x4c] sm:$0x1] }
 0x3e4   : > { %8186 = vmatmul.mubr.msk.bf16.vlgmr.msra.gmra.mxu1 %vm278_vm0, %v7857_v32  ;;  %8219 = vmatprep.subr.bf16.mxu0 %v8351_v39  ;;  %v6157_v32 = vshrl.u32 %v6068_v60, 16  ;;  %v6340_v40 = vrot.slane %v6065_v34, 5  ;;  %v6108_v14 = vrot.slane %v6107_v54, 4  ;;  %v6138_v30 = vshll.u32 %v6065_v34, 16 }
 0x3e5   : > { %8206 = vmatpush3.bf16.msra.mxu1 %v12217_v38  ;;  %8189 = vmatprep.mubr.msk.bf16.mxu1 %vm278_vm0, %v7858_v46  ;;  %v6067_v38 = vld [vmem:[#allocation3 + $0x3c] sm:$0x1]  ;;  %v6160_v46 = vshll.u32 %v6068_v60, 16  ;;  %v6150_v5 = vrot.slane %v6149_v18, 4  ;;  %v7907_v35 = vcombine.low %v12300_v1, %v6337_v62  ;;  %v6126_v3 = vrot.slane %v6124_v43, 5 }
 0x3e6   : > { %8207 = vmatprep.subr.bf16.mxu1 %v8350_v55  ;;  %v6344_v52 = vrot.slane %v6067_v38, 5  ;;  %v6152_v37 = vshll.u32 %v6067_v38, 16  ;;  %v6159_v8 = vrot.slane %v6157_v32, 4  ;;  %v6341_v33 = vsel %vm11974_vm15, %v7898_v59, %v6340_v40 }
 0x3e7   : > { %8220 = vmatpush3.bf16.msra.mxu0 %v8351_v39  ;;  %v6162_v39 = vrot.slane %v6160_v46, 5  ;;  %v6112_v9 = vrot.slane %v6110_v17, 5  ;;  %v6127_v16 = vsel %vm11817_vm2, %v6122_v29, %v6126_v3  ;;  %v6177_v61 = vor.u32 %v6176_v11, %v6173_v22 }
 0x3e8   : > { %8241 = vmatprep.subr.bf16.mxu0 %v13266_v53  ;;  %v6345_v36 = vsel %vm11974_vm15, %v7899_v31, %v6344_v52  ;;  %v6154_v26 = vrot.slane %v6152_v37, 5  ;;  %v6180_v6 = vshll.u32 %v6071_v4, 16  ;;  %v6140_v60 = vrot.slane %v6138_v30, 5 }
 0x3e9   : > { %8208 = vmatpush3.bf16.msra.mxu1 %v8350_v55  ;;  %v6136_v55 = vrot.slane %v6135_v41, 4  ;;  %v6163_v0 = vor.u32 %v6162_v39, %v6159_v8  ;;  %v7908_v15 = vcombine.low %v6341_v33, %v6345_v36  ;;  %v6113_v49 = vsel %vm11817_vm2, %v6108_v14, %v6112_v9 }
 0x3ea   : > { %8202 = vmatmul.mubr.msk.bf16.gmra.mxu0 %vm278_vm0, %v8349_v27  ;;  %8229 = vmatprep.subr.bf16.mxu1 %v13266_v53  ;;  %v6155_v10 = vsel %vm11817_vm2, %v6150_v5, %v6154_v26  ;;  %v7900_v63 = vrot.slane %v6304_v24, 9  ;;  %v7901_v42 = vrot.slane %v6305_v23, 9  ;;  %v6352_v13 = vrot.slane %v6071_v4, 5 }
 0x3eb   : > { %8221 = vmatprep.mubr.msk.bf16.mxu0 %vm278_vm0, %v7906_v57  ;;  %v6069_v57 = vld [vmem:[#allocation3 + $0x44] sm:$0x1]  ;;  %v6141_v51 = vsel %vm11817_vm2, %v6136_v55, %v6140_v60  ;;  %v6164_v25 = vrot.slane %v6163_v0, 4  ;;  %v6178_v21 = vrot.slane %v6177_v61, 4  ;;  %v6182_v38 = vrot.slane %v6180_v6, 5 }
 0x3ec   : > { %8190 = vmatmul.mubr.msk.bf16.gmra.mxu1 %vm278_vm0, %v7859_v48  ;;  %v6166_v12 = vshll.u32 %v6069_v57, 16  ;;  %v7885_v48 = vcombine.low %v6113_v49, %v6127_v16  ;;  %v6348_v1 = vrot.slane %v6069_v57, 5  ;;  %v7886_v47 = vcombine.low %v6141_v51, %v6155_v10 }
 0x3ed   : > { %8209 = vmatprep.mubr.msk.bf16.mxu1 %vm278_vm0, %v7884_v44  ;;  %v6353_v50 = vsel %vm11974_vm15, %v7901_v42, %v6352_v13  ;;  %v6183_v32 = vsel %vm11817_vm2, %v6178_v21, %v6182_v38  ;;  %vm7148_vm5 = vcmask 523264   ;;  %vm8552_vm6 = vmmov 0  }
 0x3ee   : > { %v6349_v28 = vsel %vm11974_vm15, %v7900_v63, %v6348_v1  ;;  %v6168_v20 = vrot.slane %v6166_v12, 5  ;;  %vm7230_vm7 = vcmask 1041409  }
 0x3ef   : > { %v7909_v46 = vcombine.low %v6349_v28, %v6353_v50 }
 0x3f0   : > { %v6169_v19 = vsel %vm11817_vm2, %v6164_v25, %v6168_v20 }
 0x3f1   : > { %v7887_v58 = vcombine.low %v6169_v19, %v6183_v32 }
 0x3f2   : > { %8222 = vmatmul.mubr.msk.bf16.vlgmr.msra.gmra.mxu0 %vm278_vm0, %v7907_v35 }
 0x3f3   : > { %8225 = vmatprep.mubr.msk.bf16.mxu0 %vm278_vm0, %v7908_v15 }
 0x3f4   : > { %8210 = vmatmul.mubr.msk.bf16.vlgmr.msra.gmra.mxu1 %vm278_vm0, %v7885_v48 }
 0x3f5   : > { %8213 = vmatprep.mubr.msk.bf16.mxu1 %vm278_vm0, %v7886_v47 }
 0x3fa   : > { %8226 = vmatmul.mubr.msk.bf16.gmra.mxu0 %vm278_vm0, %v7909_v46 }
 0x3fb   : > { %8249 = vmatprep.mubr.msk.bf16.mxu0 %vm8552_vm6, %v13266_v53 }
 0x3fc   : > { %8214 = vmatmul.mubr.msk.bf16.gmra.mxu1 %vm278_vm0, %v7887_v58  ;;  %vm6923_vm0 = vcmask 517120  }
 0x3fd   : > { %8237 = vmatprep.mubr.msk.bf16.mxu1 %vm8552_vm6, %v13266_v53 }
 0x471   : > { %v8127_v7 = vpop.f32.mrf.mxu0 }
 0x473   : > { %v5070_v27 = vpop.f32.mrf.mxu0 }
 0x475   : > { %v8128_v62 = vpop.f32.mrf.mxu0 }
 0x477   : > { %v12345_v59 = vpop.f32.mrf.mxu0 }
 0x479   : > { %v8151_v45 = vpop.f32.mrf.mxu0 }
 0x47b   : > { %v12347_v54 = vpop.f32.mrf.mxu0 }
 0x47c   : > { %v8131_v34 = vpop.f32.mrf.mxu1 }
 0x47d   : > { %v12349_v18 = vpop.f32.mrf.mxu0 }
 0x47e   : > { %v5086_v56 = vpop.f32.mrf.mxu1 }
 0x47f   : > { %v12351_v31 = vpop.f32.mrf.mxu0 }
 0x480   : > { %v8132_v17 = vpop.f32.mrf.mxu1 }
 0x481   : > { %v8155_v52 = vpop.f32.mrf.mxu0 }
 0x482   : > { %v5089_v44 = vpop.f32.mrf.mxu1 }
 0x483   : > { %v5360_v43 = vpop.f32.mrf.mxu0 }
 0x484   : > { %v8139_v41 = vpop.f32.mrf.mxu1 }
 0x485   : > { %v8156_v29 = vpop.f32.mrf.mxu0  ;;  %v5188_v38 = vadd.f32 %v8139_v41, %v8127_v7 }
 0x486   : > { %v5179_v37 = vpop.f32.mrf.mxu1 }
 0x487   : > { %v5363_v8 = vpop.f32.mrf.mxu0  ;;  %v5180_v32 = vadd.f32 %v5179_v37, %v5070_v27 }
 0x488   : > { %v8140_v39 = vpop.f32.mrf.mxu1 }
 0x489   : > { %v8175_v11 = vpop.f32.mrf.mxu0 }
 0x48a   : > { %v5182_v22 = vpop.f32.mrf.mxu1 }
 0x48b   : > { %v5716_v5 = vpop.f32.mrf.mxu0 }
 0x48c   : > { %v8143_v40 = vpop.f32.mrf.mxu1 }
 0x48d   : > { %v5204_v14 = vadd.f32 %v8143_v40, %v8131_v34  ;;  %v8176_v33 = vpop.f32.mrf.mxu0 }
 0x48e   : > { %v5195_v30 = vpop.f32.mrf.mxu1 }
 0x48f   : > { %v5196_v23 = vadd.f32 %v5195_v30, %v5086_v56  ;;  %v5381_v35 = vadd.f32 %v8155_v52, %v5204_v14  ;;  %v5719_v0 = vpop.f32.mrf.mxu0  ;;  %v5191_v56 = vadd.f32 %v8140_v39, %v8128_v62  ;;  %v5377_v52 = vadd.f32 %v8151_v45, %v5188_v38 }
 0x490   : > { %v8144_v36 = vpop.f32.mrf.mxu1 }
 0x491   : > { %v5207_v3 = vadd.f32 %v8144_v36, %v8132_v17  ;;  %v5379_v57 = vadd.f32 %v5360_v43, %v5196_v23  ;;  %v5378_v14 = vadd.f32 %v12349_v18, %v5191_v56 }
 0x492   : > { %v5198_v24 = vpop.f32.mrf.mxu1 }
 0x493   : > { %v5199_v9 = vadd.f32 %v5198_v24, %v5089_v44  ;;  %v5382_v55 = vadd.f32 %v8156_v29, %v5207_v3  ;;  %v5375_v29 = vadd.f32 %v12347_v54, %v5180_v32 }
 0x494   : > { %v8163_v26 = vpop.f32.mrf.mxu1 }
 0x495   : > { %v5380_v4 = vadd.f32 %v5363_v8, %v5199_v9  ;;  %v5507_v44 = vadd.f32 %v8163_v26, %v5377_v52  ;;  %v5183_v8 = vadd.f32 %v5182_v22, %v12345_v59 }
 0x496   : > { %v5474_v16 = vpop.f32.mrf.mxu1 }
 0x497   : > { %v5505_v41 = vadd.f32 %v5474_v16, %v5375_v29  ;;  %v5749_v37 = vadd.f32 %v8175_v11, %v5507_v44  ;;  %v5376_v62 = vadd.f32 %v12351_v31, %v5183_v8 }
 0x498   : > { %v8164_v61 = vpop.f32.mrf.mxu1 }
 0x499   : > { %v5508_v27 = vadd.f32 %v8164_v61, %v5378_v14  ;;  %v5747_v3 = vadd.f32 %v5716_v5, %v5505_v41 }
 0x49a   : > { %v5477_v6 = vpop.f32.mrf.mxu1  ;;  %v8179_v15 = vpop.f32.mrf.mxu0 }
 0x49b   : > { %v5506_v59 = vadd.f32 %v5477_v6, %v5376_v62  ;;  %v5750_v18 = vadd.f32 %v8176_v33, %v5508_v27  ;;  %v12368_v6 = vld [vmem:[%s12846_s4] ss:$0 sm:$0xff] }
 0x49c   : > { %v8167_v49 = vpop.f32.mrf.mxu1  ;;  %v5732_v60 = vpop.f32.mrf.mxu0 }
 0x49d   : > { %v5511_v10 = vadd.f32 %v8167_v49, %v5381_v35  ;;  %v5748_v31 = vadd.f32 %v5719_v0, %v5506_v59 }
 0x49e   : > { %v5490_v63 = vpop.f32.mrf.mxu1  ;;  %v8180_v42 = vpop.f32.mrf.mxu0 }
 0x49f   : > { %v5509_v13 = vadd.f32 %v5490_v63, %v5379_v57  ;;  %v5753_v12 = vadd.f32 %v8179_v15, %v5511_v10 }
 0x4a0   : > { %v8168_v48 = vpop.f32.mrf.mxu1  ;;  %v5735_v51 = vpop.f32.mrf.mxu0 }
 0x4a1   : > { %v5512_v1 = vadd.f32 %v8168_v48, %v5382_v55  ;;  %v5751_v47 = vadd.f32 %v5732_v60, %v5509_v13 }
 0x4a2   : > { %v5493_v25 = vpop.f32.mrf.mxu1  ;;  %v8199_v21 = vpop.f32.mrf.mxu0 }
 0x4a3   : > { %v5510_v28 = vadd.f32 %v5493_v25, %v5380_v4  ;;  %v12353_v50 = vadd.f32 %v8180_v42, %v5512_v1 }
 0x4a4   : > { %v8187_v20 = vpop.f32.mrf.mxu1  ;;  %v6017_v19 = vpop.f32.mrf.mxu0 }
 0x4a5   : > { %v5752_v46 = vadd.f32 %v5735_v51, %v5510_v28  ;;  %v5919_v36 = vadd.f32 %v8187_v20, %v5749_v37 }
 0x4a6   : > { %v5886_v58 = vpop.f32.mrf.mxu1  ;;  %v8200_v34 = vpop.f32.mrf.mxu0 }
 0x4a7   : > { %v5917_v9 = vadd.f32 %v5886_v58, %v5747_v3  ;;  %v6050_v61 = vadd.f32 %v8199_v21, %v5919_v36 }
 0x4a8   : > { %v8188_v17 = vpop.f32.mrf.mxu1  ;;  %v6020_v43 = vpop.f32.mrf.mxu0 }
 0x4a9   : > { %v5920_v11 = vadd.f32 %v8188_v17, %v5750_v18  ;;  %v6048_v10 = vadd.f32 %v6017_v19, %v5917_v9 }
 0x4aa   : > { %v5889_v40 = vpop.f32.mrf.mxu1  ;;  %v8203_v7 = vpop.f32.mrf.mxu0 }
 0x4ab   : > { %v5918_v63 = vadd.f32 %v5889_v40, %v5748_v31  ;;  %v6051_v48 = vadd.f32 %v8200_v34, %v5920_v11 }
 0x4ac   : > { %v8191_v30 = vpop.f32.mrf.mxu1  ;;  %v6033_v23 = vpop.f32.mrf.mxu0 }
 0x4ad   : > { %v5923_v35 = vadd.f32 %v8191_v30, %v5753_v12  ;;  %v6049_v25 = vadd.f32 %v6020_v43, %v5918_v63 }
 0x4ae   : > { %v5902_v45 = vpop.f32.mrf.mxu1  ;;  %v12359_v39 = vpop.f32.mrf.mxu0 }
 0x4af   : > { %v5921_v54 = vadd.f32 %v5902_v45, %v5751_v47  ;;  %v6054_v57 = vadd.f32 %v8203_v7, %v5923_v35 }
 0x4b0   : > { %v12361_v22 = vpop.f32.mrf.mxu1  ;;  %v6036_v24 = vpop.f32.mrf.mxu0 }
 0x4b1   : > { %v6052_v55 = vadd.f32 %v6033_v23, %v5921_v54 }
 0x4b2   : > { %v5905_v26 = vpop.f32.mrf.mxu1  ;;  %v8223_v4 = vpop.f32.mrf.mxu0 }
 0x4b3   : > { %v5922_v16 = vadd.f32 %v5905_v26, %v5752_v46 }
 0x4b4   : > { %v8211_v15 = vpop.f32.mrf.mxu1  ;;  %v6429_v49 = vpop.f32.mrf.mxu0 }
 0x4b5   : > { %v6292_v60 = vadd.f32 %v8211_v15, %v6050_v61  ;;  %v12363_v5 = vadd.f32 %v6036_v24, %v5922_v16 }
 0x4b6   : > { %v6259_v33 = vpop.f32.mrf.mxu1  ;;  %v8224_v12 = vpop.f32.mrf.mxu0 }
 0x4b7   : > { %v6462_v42 = vadd.f32 %v8223_v4, %v6292_v60  ;;  %v6290_v13 = vadd.f32 %v6259_v33, %v6048_v10 }
 0x4b8   : > { %v8212_v51 = vpop.f32.mrf.mxu1  ;;  %v6432_v19 = vpop.f32.mrf.mxu0 }
 0x4b9   : > { %v12371_v0 = vadd.f32 %v12368_v6, %v6462_v42  ;;  %v6460_v1 = vadd.f32 %v6429_v49, %v6290_v13  ;;  %v6293_v47 = vadd.f32 %v8212_v51, %v6051_v48 }
 0x4ba   : > { %v6262_v21 = vpop.f32.mrf.mxu1  ;;  %v8227_v8 = vpop.f32.mrf.mxu0 }
 0x4bb   : > { %v6493_v38 = vmul.f32 0.70710677, %v12371_v0  ;;  %v12375_v28 = vadd.f32 %v12368_v6, %v6460_v1  ;;  %v6463_v20 = vadd.f32 %v8224_v12, %v6293_v47  ;;  %v6291_v32 = vadd.f32 %v6262_v21, %v6049_v25 }
 0x4bc   : > { %v8215_v46 = vpop.f32.mrf.mxu1 }
 0x4bd   : > { %v12377_v58 = vclamps-f32 %v6493_v38, 4.0  ;;  %v6491_v34 = vmul.f32 0.70710677, %v12375_v28  ;;  %v12381_v56 = vadd.f32 %v12368_v6, %v6463_v20  ;;  %v6461_v52 = vadd.f32 %v6432_v19, %v6291_v32 }
 0x4be   : > { %v6296_v17 = vadd.f32 %v8215_v46, %v6054_v57  ;;  %v6275_v27 = vpop.f32.mrf.mxu1 }
 0x4bf   : > { %v12385_v43 = vmul.f32 %v12377_v58, %v12377_v58  ;;  %v12387_v44 = vclamps-f32 %v6491_v34, 4.0  ;;  %v6494_v29 = vmul.f32 0.70710677, %v12381_v56  ;;  %v12391_v40 = vadd.f32 %v12368_v6, %v6461_v52 }
 0x4c0   : > { %v6466_v7 = vadd.f32 %v8227_v8, %v6296_v17  ;;  %v6294_v59 = vadd.f32 %v6275_v27, %v6052_v55 }
 0x4c1   : > { %v6525_v41 = vmul.f32 -2.7261424e-10, %v12385_v43  ;;  %v6629_v14 = vmul.f32 -1.45660715e-05, %v12385_v43  ;;  %v12397_v30 = vmul.f32 %v12387_v44, %v12387_v44  ;;  %v12399_v23 = vclamps-f32 %v6494_v29, 4.0 }
 0x4c2   : > { %v6492_v37 = vmul.f32 0.70710677, %v12391_v40  ;;  %v12403_v35 = vadd.f32 %v12368_v6, %v6466_v7 }
 0x4c3   : > { %v6533_v62 = vadd.f32 2.7706815e-08, %v6525_v41  ;;  %v6637_v45 = vadd.f32 -0.00021337405, %v6629_v14  ;;  %v6523_v36 = vmul.f32 -2.7261424e-10, %v12397_v30  ;;  %v12408_v3 = vmul.f32 %v12399_v23, %v12399_v23 }
 0x4c4   : > { %v6627_v54 = vmul.f32 -1.45660715e-05, %v12397_v30  ;;  %v12411_v57 = vclamps-f32 %v6492_v37, 4.0  ;;  %v6497_v61 = vmul.f32 0.70710677, %v12403_v35 }
 0x4c5   : > { %v6541_v24 = vmul.f32 %v6533_v62, %v12385_v43  ;;  %v6645_v9 = vmul.f32 %v6637_v45, %v12385_v43  ;;  %v6531_v18 = vadd.f32 2.7706815e-08, %v6523_v36  ;;  %v6526_v26 = vmul.f32 -2.7261424e-10, %v12408_v3 }
 0x4c6   : > { %v6635_v4 = vadd.f32 -0.00021337405, %v6627_v54  ;;  %v6630_v11 = vmul.f32 -1.45660715e-05, %v12408_v3  ;;  %v12419_v16 = vmul.f32 %v12411_v57, %v12411_v57  ;;  %v12439_v54 = vclamps-f32 %v6497_v61, 4.0 }
 0x4c7   : > { %v6549_v31 = vadd.f32 -2.101024e-06, %v6541_v24  ;;  %v6653_v15 = vadd.f32 -0.001682827, %v6645_v9  ;;  %v6539_v55 = vmul.f32 %v6531_v18, %v12397_v30  ;;  %v6534_v49 = vadd.f32 2.7706815e-08, %v6526_v26 }
 0x4c8   : > { %v6643_v60 = vmul.f32 %v6635_v4, %v12397_v30  ;;  %v6638_v10 = vadd.f32 -0.00021337405, %v6630_v11  ;;  %v6524_v63 = vmul.f32 -2.7261424e-10, %v12419_v16  ;;  %v6628_v33 = vmul.f32 -1.45660715e-05, %v12419_v16 }
 0x4c9   : > { %v6557_v42 = vmul.f32 %v6549_v31, %v12385_v43  ;;  %v6661_v13 = vmul.f32 %v6653_v15, %v12385_v43  ;;  %v6547_v12 = vadd.f32 -2.101024e-06, %v6539_v55  ;;  %v6542_v48 = vmul.f32 %v6534_v49, %v12408_v3 }
 0x4ca   : > { %v6651_v51 = vadd.f32 -0.001682827, %v6643_v60  ;;  %v6646_v1 = vmul.f32 %v6638_v10, %v12408_v3  ;;  %v6532_v47 = vadd.f32 2.7706815e-08, %v6524_v63  ;;  %v6636_v25 = vadd.f32 -0.00021337405, %v6628_v33  ;;  %v6445_v60 = vpop.f32.mrf.mxu0 }
 0x4cb   : > { %v6565_v21 = vadd.f32 -5.6925062e-05, %v6557_v42  ;;  %v6669_v38 = vadd.f32 -0.0073733293, %v6661_v13  ;;  %v6555_v20 = vmul.f32 %v6547_v12, %v12397_v30  ;;  %v6550_v19 = vadd.f32 -2.101024e-06, %v6542_v48 }
 0x4cc   : > { %v6659_v32 = vmul.f32 %v6651_v51, %v12397_v30  ;;  %v6654_v46 = vadd.f32 -0.001682827, %v6646_v1  ;;  %v6540_v34 = vmul.f32 %v6532_v47, %v12419_v16  ;;  %v6644_v52 = vmul.f32 %v6636_v25, %v12419_v16  ;;  %v8352_v42 = vld [vmem:[%s12847_s5 + $0x38] sm:$0xff]  }
 0x4cd   : > { %v6573_v17 = vmul.f32 %v6565_v21, %v12385_v43  ;;  %v6677_v29 = vmul.f32 %v6669_v38, %v12385_v43  ;;  %v6563_v8 = vadd.f32 -5.6925062e-05, %v6555_v20  ;;  %v6558_v7 = vmul.f32 %v6550_v19, %v12408_v3  ;;  %8230 = vmatpush3.bf16.msra.mxu1 %v8352_v42  ;;  %v8353_v38 = vld [vmem:[%s12847_s5 + $0x18] sm:$0xff]   ;;  %v8354_v20 = vld [vmem:[%s12847_s5 + $0x30] sm:$0xff]  }
 0x4ce   : > { %v6667_v41 = vadd.f32 -0.0073733293, %v6659_v32  ;;  %v6662_v14 = vmul.f32 %v6654_v46, %v12408_v3  ;;  %v6548_v27 = vadd.f32 -2.101024e-06, %v6540_v34  ;;  %v6652_v37 = vadd.f32 -0.001682827, %v6644_v52  ;;  %8231 = vmatprep.subr.bf16.mxu1 %v13266_v53  ;;  %8242 = vmatpush3.bf16.msra.mxu0 %v8353_v38 }
 0x4cf   : > { %v6581_v62 = vadd.f32 -0.00073499064, %v6573_v17  ;;  %v6685_v45 = vadd.f32 -0.014264739, %v6677_v29  ;;  %v6571_v36 = vmul.f32 %v6563_v8, %v12397_v30  ;;  %v6566_v9 = vadd.f32 -5.6925062e-05, %v6558_v7  ;;  %8243 = vmatprep.subr.bf16.mxu0 %v13266_v53 }
 0x4d0   : > { %v6675_v24 = vmul.f32 %v6667_v41, %v12397_v30  ;;  %v6670_v18 = vadd.f32 -0.0073733293, %v6662_v14  ;;  %v6660_v26 = vmul.f32 %v6652_v37, %v12419_v16  ;;  %v6556_v15 = vmul.f32 %v6548_v27, %v12419_v16  ;;  %v8355_v17 = vld [vmem:[%s12847_s5 + $0x10] sm:$0xff]   ;;  %v8356_v27 = vld [vmem:[%s12847_s5 + $0x28] sm:$0xff]  }
 0x4d1   : > { %8432 = vrcp.f32 %v6685_v45  ;;  %v6579_v4 = vadd.f32 -0.00073499064, %v6571_v36  ;;  %v6589_v49 = vmul.f32 %v6581_v62, %v12385_v43  ;;  %v12450_v61 = vmul.f32 %v12439_v54, %v12439_v54  ;;  %8232 = vmatpush3.bf16.msra.mxu1 %v8354_v20  ;;  %v8228_v20 = vpop.f32.mrf.mxu0 }
 0x4d2   : > { %v12443_v11 = vadd.f32 -0.014264739, %v6675_v24  ;;  %v6678_v31 = vmul.f32 %v6670_v18, %v12408_v3  ;;  %v6668_v55 = vadd.f32 -0.0073733293, %v6660_v26  ;;  %v6574_v10 = vmul.f32 %v6566_v9, %v12408_v3  ;;  %8233 = vmatprep.subr.bf16.mxu1 %v13266_v53  ;;  %8244 = vmatpush3.bf16.msra.mxu0 %v8355_v17  ;;  %v8216_v26 = vpop.f32.mrf.mxu1 }
 0x4d3   : > { %v6464_v33 = vadd.f32 %v6445_v60, %v6294_v59  ;;  %v6587_v13 = vmul.f32 %v6579_v4, %v12397_v30  ;;  %v6529_v48 = vmul.f32 -2.7261424e-10, %v12450_v61  ;;  %v6564_v51 = vadd.f32 -5.6925062e-05, %v6556_v15  ;;  %8245 = vmatprep.subr.bf16.mxu0 %v13266_v53  ;;  %v8358_v60 = vld [vmem:[%s12847_s5 + $0x20] sm:$0xff]  }
 0x4d4   : > { %8434 = vrcp.f32 %v12443_v11  ;;  %v12454_v63 = vadd.f32 -0.014264739, %v6678_v31  ;;  %v6676_v12 = vmul.f32 %v6668_v55, %v12419_v16  ;;  %v6633_v1 = vmul.f32 -1.45660715e-05, %v12450_v61 }
 0x4d5   : > { %v6597_v47 = vadd.f32 -0.0029546, %v6589_v49  ;;  %v6537_v25 = vadd.f32 2.7706815e-08, %v6529_v48  ;;  %v6582_v59 = vadd.f32 -0.00073499064, %v6574_v10  ;;  %v12466_v21 = vadd.f32 %v12368_v6, %v6464_v33  ;;  %8234 = vmatpush3.bf16.msra.mxu1 %v8356_v27 }
 0x4d6   : > { %8436 = vrcp.f32 %v12454_v63  ;;  %v6595_v19 = vadd.f32 -0.0029546, %v6587_v13  ;;  %v12474_v32 = vadd.f32 -0.014264739, %v6676_v12  ;;  %v6572_v34 = vmul.f32 %v6564_v51, %v12419_v16  ;;  %8235 = vmatprep.subr.bf16.mxu1 %v13266_v53  ;;  %v8359_v13 = vld [vmem:[%s12847_s5] sm:$0xff]  }
 0x4d7   : > { %v6545_v46 = vmul.f32 %v6537_v25, %v12450_v61  ;;  %v6641_v52 = vadd.f32 -0.00021337405, %v6633_v1  ;;  %v6605_v29 = vmul.f32 %v6597_v47, %v12385_v43  ;;  %v6495_v7 = vmul.f32 0.70710677, %v12466_v21 }
 0x4d8   : > { %v5924_v41 = vadd.f32 %v12361_v22, %v12353_v50  ;;  %v6590_v14 = vmul.f32 %v6582_v59, %v12408_v3  ;;  %v6603_v37 = vmul.f32 %v6595_v19, %v12397_v30  ;;  %8438 = vrcp.f32 %v12474_v32  ;;  %v8357_v50 = vld [vmem:[%s12847_s5 + $0x8] sm:$0xff]  }
 0x4d9   : > { %v6553_v8 = vadd.f32 -2.101024e-06, %v6545_v46  ;;  %v6580_v36 = vadd.f32 -0.00073499064, %v6572_v34  ;;  %v6649_v24 = vmul.f32 %v6641_v52, %v12450_v61  ;;  %v6613_v22 = vadd.f32 -0.016096033, %v6605_v29  ;;  %8246 = vmatpush3.bf16.msra.mxu0 %v8357_v50  ;;  %8236 = vmatpush3.bf16.msra.mxu1 %v8358_v60 }
 0x4da   : > { %v12498_v18 = vclamps-f32 %v6495_v7, 4.0  ;;  %v6598_v30 = vadd.f32 -0.0029546, %v6590_v14  ;;  %v6055_v31 = vadd.f32 %v12359_v39, %v5924_v41  ;;  %v6611_v49 = vadd.f32 -0.016096033, %v6603_v37  ;;  %8247 = vmatprep.subr.bf16.mxu0 %v13266_v53  ;;  %8253 = vmatprep.subr.bf16.mxu1 %v13266_v53 }
 0x4db   : > { %v6561_v43 = vmul.f32 %v6553_v8, %v12450_v61  ;;  %v6588_v10 = vmul.f32 %v6580_v36, %v12419_v16  ;;  %v6657_v33 = vadd.f32 -0.001682827, %v6649_v24  ;;  %v6621_v39 = vmul.f32 %v12377_v58, %v6613_v22 }
 0x4dc   : > { %v6297_v42 = vadd.f32 %v8216_v26, %v6055_v31  ;;  %v12514_v51 = vmul.f32 %v12498_v18, %v12498_v18  ;;  %v6606_v1 = vmul.f32 %v6598_v30, %v12408_v3  ;;  %v6485_v59 = vmul.f32 0.5, %v12371_v0 }
 0x4dd   : > { %v6569_v4 = vadd.f32 -5.6925062e-05, %v6561_v43  ;;  %v6619_v38 = vmul.f32 %v12387_v44, %v6611_v49  ;;  %v6665_v34 = vmul.f32 %v6657_v33, %v12450_v61  ;;  %8248 = vmatpush3.bf16.msra.mxu0 %v8359_v13  ;;  %v6596_v7 = vadd.f32 -0.0029546, %v6588_v10 }
 0x4de   : > { %v8433_v62 = vpop.eup %8432  ;;  %v6467_v52 = vadd.f32 %v8228_v20, %v6297_v42  ;;  %v6527_v17 = vmul.f32 -2.7261424e-10, %v12514_v51  ;;  %v6631_v29 = vmul.f32 -1.45660715e-05, %v12514_v51  ;;  %8265 = vmatprep.subr.bf16.mxu0 %v13266_v53  ;;  %v6614_v8 = vadd.f32 -0.016096033, %v6606_v1 }
 0x4df   : > { %v6701_v9 = vmul.f32 %v8433_v62, %v6685_v45  ;;  %v6577_v25 = vmul.f32 %v6569_v4, %v12450_v61  ;;  %v6486_v14 = vmul.f32 0.5, %v12381_v56  ;;  %v12530_v27 = vmul.f32 0.5, %v12391_v40  ;;  %v6278_v4 = vpop.f32.mrf.mxu1 }
 0x4e0   : > { %v12533_v37 = vmul.f32 0.5, %v12403_v35  ;;  %v6673_v36 = vadd.f32 -0.0073733293, %v6665_v34  ;;  %v12536_v24 = vadd.f32 %v12368_v6, %v6467_v52  ;;  %v6639_v26 = vadd.f32 -0.00021337405, %v6631_v29  ;;  %v6448_v29 = vpop.f32.mrf.mxu0 }
 0x4e1   : > { %v8435_v15 = vpop.eup %8434  ;;  %v6709_v55 = vsub.f32 2.0, %v6701_v9  ;;  %v6585_v44 = vadd.f32 -0.00073499064, %v6577_v25  ;;  %v6535_v9 = vadd.f32 2.7706815e-08, %v6527_v17  ;;  %v6622_v56 = vmul.f32 %v12399_v23, %v6614_v8 }
 0x4e2   : > { %v6699_v45 = vmul.f32 %v8435_v15, %v12443_v11  ;;  %v6604_v40 = vmul.f32 %v6596_v7, %v12419_v16  ;;  %v6681_v10 = vmul.f32 %v6673_v36, %v12450_v61  ;;  %v6498_v33 = vmul.f32 0.70710677, %v12536_v24 }
 0x4e3   : > { %v8437_v12 = vpop.eup %8436  ;;  %v6717_v48 = vmul.f32 %v8433_v62, %v6709_v55  ;;  %v6593_v35 = vmul.f32 %v6585_v44, %v12450_v61  ;;  %v6543_v16 = vmul.f32 %v6535_v9, %v12514_v51  ;;  %v6647_v42 = vmul.f32 %v6639_v26, %v12514_v51 }
 0x4e4   : > { %v6707_v11 = vsub.f32 2.0, %v6699_v45  ;;  %v6702_v47 = vmul.f32 %v8437_v12, %v12454_v63  ;;  %v6483_v63 = vmul.f32 0.5, %v12375_v28  ;;  %v6295_v13 = vadd.f32 %v6278_v4, %v12363_v5 }
 0x4e5   : > { %v6725_v58 = vmul.f32 %v6717_v48, %v6621_v39  ;;  %v8439_v28 = vpop.eup %8438  ;;  %v12555_v20 = vclamps-f32 %v6498_v33, 4.0  ;;  %v6551_v5 = vadd.f32 -2.101024e-06, %v6543_v16  ;;  %v6655_v34 = vadd.f32 -0.001682827, %v6647_v42 }
 0x4e6   : > { %v6715_v19 = vmul.f32 %v8435_v15, %v6707_v11  ;;  %v6710_v46 = vsub.f32 2.0, %v6702_v47  ;;  %v6700_v49 = vmul.f32 %v8439_v28, %v12474_v32  ;;  %v6601_v32 = vadd.f32 -0.0029546, %v6593_v35 }
 0x4e7   : > { %v6733_v3 = vadd.f32 1.0, %v6725_v58  ;;  %v6612_v47 = vadd.f32 -0.016096033, %v6604_v40  ;;  %v6465_v44 = vadd.f32 %v6448_v29, %v6295_v13  ;;  %v6559_v26 = vmul.f32 %v6551_v5, %v12514_v51 }
 0x4e8   : > { %v6723_v0 = vmul.f32 %v6715_v19, %v6619_v38  ;;  %v6718_v62 = vmul.f32 %v8437_v12, %v6710_v46  ;;  %v6708_v25 = vsub.f32 2.0, %v6700_v49  ;;  %v12553_v38 = vadd.f32 -0.014264739, %v6681_v10 }
 0x4e9   : > { %v6741_v41 = vmul.f32 %v6733_v3, %v6485_v59  ;;  %v12558_v46 = vmul.f32 0.5, %v12466_v21  ;;  %v6609_v17 = vmul.f32 %v6601_v32, %v12450_v61  ;;  %v6620_v21 = vmul.f32 %v12411_v57, %v6612_v47 }
 0x4ea   : > { %v6731_v43 = vadd.f32 1.0, %v6723_v0  ;;  %v6726_v45 = vmul.f32 %v6718_v62, %v6622_v56  ;;  %v6716_v7 = vmul.f32 %v8439_v28, %v6708_v25  ;;  %v12567_v62 = vmul.f32 %v12555_v20, %v12555_v20 }
 0x4eb   : > { %v6789_v50 = vcombine.high %v6741_v41, %v6741_v41  ;;  %v6796_v22 = vrot.slane %v6741_v41, %v13206_v2  ;;  %8440 = vrcp.f32 %v12553_v38  ;;  %v6617_v9 = vadd.f32 -0.016096033, %v6609_v17 }
 0x4ec   : > { %v6739_v30 = vmul.f32 %v6731_v43, %v6483_v63  ;;  %v6734_v58 = vadd.f32 1.0, %v6726_v45  ;;  %v6663_v28 = vmul.f32 %v6655_v34, %v12514_v51  ;;  %v6724_v56 = vmul.f32 %v6716_v7, %v6620_v21 }
 0x4ed   : > { %v6803_v31 = vrot.slane %v6789_v50, %v13206_v2  ;;  %v6804_v15 = vcombine.high %v6796_v22, %v6796_v22  ;;  %v6980_v55 = vsel %vm6923_vm0, %v6796_v22, -inf  ;;  %v12574_v57 = vadd.f32 %v12368_v6, %v6465_v44 }
 0x4ee   : > { %v6981_v60 = vrot.slane %v6980_v55, 4  ;;  %v6762_v48 = vrot.slane %v6739_v30, %v13206_v2  ;;  %v6755_v1 = vcombine.high %v6739_v30, %v6739_v30  ;;  %v6742_v43 = vmul.f32 %v6734_v58, %v6486_v14 }
 0x4ef   : > { %v6987_v23 = vsel %vm6923_vm0, %v6804_v15, -inf  ;;  %v6805_v12 = vcombine.high %v6803_v31, %v6803_v31  ;;  %v6994_v39 = vsel %vm6923_vm0, %v6803_v31, -inf  ;;  %v12578_v31 = vmul.f32 -2.7261424e-10, %v12567_v62 }
 0x4f0   : > { %v6982_v11 = vmax.f32 %v6980_v55, %v6981_v60  ;;  %v6988_v59 = vrot.slane %v6987_v23, 4  ;;  %v6995_v19 = vrot.slane %v6994_v39, 4  ;;  %v6770_v3 = vcombine.high %v6762_v48, %v6762_v48 }
 0x4f1   : > { %v7001_v52 = vsel %vm6923_vm0, %v6805_v12, -inf  ;;  %v6924_v63 = vsel %vm6923_vm0, %v6762_v48, -inf  ;;  %v6769_v8 = vrot.slane %v6755_v1, %v13206_v2  ;;  %v6806_v4 = vcombine.high %v6742_v43, %v6742_v43 }
 0x4f2   : > { %v6983_v0 = vrot.slane %v6982_v11, 2  ;;  %v6989_v41 = vmax.f32 %v6987_v23, %v6988_v59  ;;  %v6996_v36 = vmax.f32 %v6994_v39, %v6995_v19  ;;  %v7002_v50 = vrot.slane %v7001_v52, 4 }
 0x4f3   : > { %v6925_v22 = vrot.slane %v6924_v63, 4  ;;  %v6931_v61 = vsel %vm6923_vm0, %v6770_v3, -inf  ;;  %v6771_v14 = vcombine.high %v6769_v8, %v6769_v8  ;;  %v6938_v35 = vsel %vm6923_vm0, %v6769_v8, -inf }
 0x4f4   : > { %v6984_v30 = vmax.f32 %v6982_v11, %v6983_v0  ;;  %v6990_v40 = vrot.slane %v6989_v41, 2  ;;  %v6997_v15 = vrot.slane %v6996_v36, 2  ;;  %v7003_v55 = vmax.f32 %v7001_v52, %v7002_v50 }
 0x4f5   : > { %v6926_v49 = vmax.f32 %v6924_v63, %v6925_v22  ;;  %v6932_v60 = vrot.slane %v6931_v61, 4  ;;  %v6813_v45 = vrot.slane %v6742_v43, %v13206_v2  ;;  %v12582_v10 = vmul.f32 %v12439_v54, %v6617_v9 }
 0x4f6   : > { %v12584_v33 = vadd.f32 -5.6925062e-05, %v6559_v26  ;;  %v12586_v6 = vadd.f32 -0.0073733293, %v6663_v28  ;;  %v6985_v23 = vrot.slane %v6984_v30, 1  ;;  %v6939_v16 = vrot.slane %v6938_v35, 4 }
 0x4f7   : > { %v6945_v42 = vsel %vm6923_vm0, %v6771_v14, -inf  ;;  %v6732_v13 = vadd.f32 1.0, %v6724_v56  ;;  %v6991_v12 = vmax.f32 %v6989_v41, %v6990_v40  ;;  %v6820_v39 = vrot.slane %v6806_v4, %v13206_v2 }
 0x4f8   : > { %v6821_v48 = vcombine.high %v6813_v45, %v6813_v45  ;;  %v7008_v32 = vsel %vm6923_vm0, %v6813_v45, -inf  ;;  %v6998_v11 = vmax.f32 %v6996_v36, %v6997_v15  ;;  %v7004_v1 = vrot.slane %v7003_v55, 2  ;;  %v8441_v43 = vpop.eup %8440 }
 0x4f9   : > { %v6927_v54 = vrot.slane %v6926_v49, 2  ;;  %v6933_v47 = vmax.f32 %v6931_v61, %v6932_v60  ;;  %v6822_v25 = vcombine.high %v6820_v39, %v6820_v39  ;;  %v7009_v59 = vrot.slane %v7008_v32, 4 }
 0x4fa   : > { %v7015_v58 = vsel %vm6923_vm0, %v6821_v48, -inf  ;;  %v7022_v19 = vsel %vm6923_vm0, %v6820_v39, -inf  ;;  %v6986_v5 = vmax.f32 %v6984_v30, %v6985_v23  ;;  %v6940_v34 = vmax.f32 %v6938_v35, %v6939_v16 }
 0x4fb   : > { %v6946_v52 = vrot.slane %v6945_v42, 4  ;;  %v7016_v3 = vrot.slane %v7015_v58, 4  ;;  %v7010_v63 = vmax.f32 %v7008_v32, %v7009_v59  ;;  %v7023_v17 = vrot.slane %v7022_v19, 4 }
 0x4fc   : > { %v7029_v29 = vsel %vm6923_vm0, %v6822_v25, -inf  ;;  %v6740_v0 = vmul.f32 %v6732_v13, %v12530_v27  ;;  %v6992_v8 = vrot.slane %v6991_v12, 1  ;;  %v6999_v7 = vrot.slane %v6998_v11, 1 }
 0x4fd   : > { %v7017_v44 = vmax.f32 %v7015_v58, %v7016_v3  ;;  %v7030_v41 = vrot.slane %v7029_v29, 4  ;;  %v7011_v21 = vrot.slane %v7010_v63, 2  ;;  %v7024_v36 = vmax.f32 %v7022_v19, %v7023_v17 }
 0x4fe   : > { %v6772_v50 = vcombine.high %v6740_v0, %v6740_v0  ;;  %v6779_v22 = vrot.slane %v6740_v0, %v13206_v2  ;;  %v7005_v61 = vmax.f32 %v7003_v55, %v7004_v1  ;;  %v6928_v9 = vmax.f32 %v6926_v49, %v6927_v54 }
 0x4ff   : > { %v6934_v26 = vrot.slane %v6933_v47, 2  ;;  %v7018_v28 = vrot.slane %v7017_v44, 2  ;;  %v6941_v30 = vrot.slane %v6940_v34, 2  ;;  %v6947_v14 = vmax.f32 %v6945_v42, %v6946_v52 }
 0x500   : > { %v6786_v56 = vrot.slane %v6772_v50, %v13206_v2  ;;  %v6787_v40 = vcombine.high %v6779_v22, %v6779_v22  ;;  %v6993_v27 = vmax.f32 %v6991_v12, %v6992_v8  ;;  %v7000_v35 = vmax.f32 %v6998_v11, %v6999_v7 }
 0x501   : > { %v6952_v4 = vsel %vm6923_vm0, %v6779_v22, -inf  ;;  %v6705_v15 = vmul.f32 %v8441_v43, %v12553_v38  ;;  %v7012_v60 = vmax.f32 %v7010_v63, %v7011_v21  ;;  %v7025_v45 = vrot.slane %v7024_v36, 2 }
 0x502   : > { %v7031_v23 = vmax.f32 %v7029_v29, %v7030_v41  ;;  %v6953_v16 = vrot.slane %v6952_v4, 4  ;;  %v7019_v13 = vmax.f32 %v7017_v44, %v7018_v28  ;;  %v6788_v55 = vcombine.high %v6786_v56, %v6786_v56 }
 0x503   : > { %v6959_v49 = vsel %vm6923_vm0, %v6787_v40, -inf  ;;  %v6966_v39 = vsel %vm6923_vm0, %v6786_v56, -inf  ;;  %v7006_v42 = vrot.slane %v7005_v61, 1  ;;  %v7161_v48 = vsel %vm7148_vm5, %v6986_v5, -inf }
 0x504   : > { %v6954_v32 = vmax.f32 %v6952_v4, %v6953_v16  ;;  %v6960_v12 = vrot.slane %v6959_v49, 4  ;;  %v6929_v11 = vrot.slane %v6928_v9, 1  ;;  %v6948_v1 = vrot.slane %v6947_v14, 2 }
 0x505   : > { %v6967_v54 = vrot.slane %v6966_v39, 4  ;;  %v6713_v25 = vsub.f32 2.0, %v6705_v15  ;;  %v7026_v38 = vmax.f32 %v7024_v36, %v7025_v45  ;;  %v7032_v59 = vrot.slane %v7031_v23, 2 }
 0x506   : > { %v6955_v58 = vrot.slane %v6954_v32, 2  ;;  %v6961_v19 = vmax.f32 %v6959_v49, %v6960_v12  ;;  %v7013_v52 = vrot.slane %v7012_v60, 1  ;;  %v7020_v3 = vrot.slane %v7019_v13, 1 }
 0x507   : > { %v6968_v63 = vmax.f32 %v6966_v39, %v6967_v54  ;;  %v6973_v17 = vsel %vm6923_vm0, %v6788_v55, -inf  ;;  %v6935_v29 = vmax.f32 %v6933_v47, %v6934_v26  ;;  %v6942_v0 = vmax.f32 %v6940_v34, %v6941_v30 }
 0x508   : > { %v6956_v8 = vmax.f32 %v6954_v32, %v6955_v58  ;;  %v6962_v7 = vrot.slane %v6961_v19, 2  ;;  %v7007_v5 = vmax.f32 %v7005_v61, %v7006_v42  ;;  %v7164_v44 = vsel %vm7148_vm5, %v6993_v27, -inf }
 0x509   : > { %v6969_v41 = vrot.slane %v6968_v63, 2  ;;  %v6721_v21 = vmul.f32 %v8441_v43, %v6713_v25  ;;  %v6949_v50 = vmax.f32 %v6947_v14, %v6948_v1  ;;  %v7027_v22 = vrot.slane %v7026_v38, 1 }
 0x50a   : > { %v6963_v36 = vmax.f32 %v6961_v19, %v6962_v7  ;;  %v6974_v28 = vrot.slane %v6973_v17, 4  ;;  %v7014_v56 = vmax.f32 %v7012_v60, %v7013_v52  ;;  %v7021_v40 = vmax.f32 %v7019_v13, %v7020_v3 }
 0x50b   : > { %v7033_v4 = vmax.f32 %v7031_v23, %v7032_v59  ;;  %v6957_v15 = vrot.slane %v6956_v8, 1  ;;  %v7167_v45 = vsel %vm7148_vm5, %v7000_v35, -inf  ;;  %v6970_v47 = vmax.f32 %v6968_v63, %v6969_v41 }
 0x50c   : > { %v6964_v16 = vrot.slane %v6963_v36, 1  ;;  %v6575_v34 = vmul.f32 %v12584_v33, %v12514_v51  ;;  %v6930_v61 = vmax.f32 %v6928_v9, %v6929_v11  ;;  %v6936_v26 = vrot.slane %v6935_v29, 1 }
 0x50d   : > { %v6975_v30 = vmax.f32 %v6973_v17, %v6974_v28  ;;  %v6729_v43 = vmul.f32 %v6721_v21, %v12582_v10  ;;  %v6943_v14 = vrot.slane %v6942_v0, 1  ;;  %v6950_v27 = vrot.slane %v6949_v50, 1 }
 0x50e   : > { %v7028_v55 = vmax.f32 %v7026_v38, %v7027_v22  ;;  %v6679_v60 = vmul.f32 %v12586_v6, %v12514_v51  ;;  %v7034_v23 = vrot.slane %v7033_v4, 1  ;;  %v7162_v13 = vsel %vm7148_vm5, %v7014_v56, -inf }
 0x50f   : > { %v7165_v35 = vsel %vm7148_vm5, %v7021_v40, -inf  ;;  %v6958_v49 = vmax.f32 %v6956_v8, %v6957_v15  ;;  %v6965_v39 = vmax.f32 %v6963_v36, %v6964_v16  ;;  %v6971_v42 = vrot.slane %v6970_v47, 1 }
 0x510   : > { %v6583_v33 = vadd.f32 -0.00073499064, %v6575_v34  ;;  %v12612_v9 = vadd.f32 -0.014264739, %v6679_v60  ;;  %v12615_v32 = vsel %vm7148_vm5, %v7007_v5, -inf  ;;  %v6937_v10 = vmax.f32 %v6935_v29, %v6936_v26 }
 0x511   : > { %v6976_v12 = vrot.slane %v6975_v30, 2  ;;  %v6737_v11 = vadd.f32 1.0, %v6729_v43  ;;  %v6944_v1 = vmax.f32 %v6942_v0, %v6943_v14  ;;  %v6951_v54 = vmax.f32 %v6949_v50, %v6950_v27 }
 0x512   : > { %v7163_v6 = vmax.f32 %v7161_v48, %v7162_v13  ;;  %v7168_v25 = vsel %vm7148_vm5, %v7028_v55, -inf  ;;  %v7035_v38 = vmax.f32 %v7033_v4, %v7034_v23  ;;  %v7166_v59 = vmax.f32 %v7164_v44, %v7165_v35 }
 0x513   : > { %v7150_v58 = vsel %vm7148_vm5, %v6958_v49, -inf  ;;  %8442 = vrcp.f32 %v12612_v9  ;;  %v6972_v19 = vmax.f32 %v6970_v47, %v6971_v42  ;;  %v7153_v52 = vsel %vm7148_vm5, %v6965_v39, -inf }
 0x514   : > { %v6591_v3 = vmul.f32 %v6583_v33, %v12514_v51  ;;  %v6538_v63 = vadd.f32 2.7706815e-08, %v12578_v31  ;;  %v7149_v17 = vsel %vm7148_vm5, %v6930_v61, -inf  ;;  %v7169_v29 = vmax.f32 %v7167_v45, %v7168_v25 }
 0x515   : > { %v6977_v0 = vmax.f32 %v6975_v30, %v6976_v12  ;;  %v6745_v48 = vmul.f32 %v6737_v11, %v12533_v37  ;;  %v7152_v8 = vsel %vm7148_vm5, %v6937_v10, -inf  ;;  %v7155_v7 = vsel %vm7148_vm5, %v6944_v1, -inf }
 0x516   : > { %v7209_v5 = vpack.c.bf16 %v7163_v6, %v7163_v6  ;;  %v7151_v44 = vmax.f32 %v7149_v17, %v7150_v58  ;;  %v12628_v41 = vsel %vm7148_vm5, %v6951_v54, -inf  ;;  %v7171_v21 = vsel %vm7148_vm5, %v7035_v38, -inf }
 0x517   : > { %v7210_v50 = vpack.c.bf16 %v7166_v59, %v7166_v59  ;;  %v7154_v22 = vmax.f32 %v7152_v8, %v7153_v52  ;;  %v7156_v31 = vsel %vm7148_vm5, %v6972_v19, -inf  ;;  %v6599_v36 = vadd.f32 -0.0029546, %v6591_v3 }
 0x518   : > { %v6546_v28 = vmul.f32 %v6538_v63, %v12567_v62  ;;  %v6634_v37 = vmul.f32 -1.45660715e-05, %v12567_v62  ;;  %v7211_v56 = vpack.c.bf16 %v7169_v29, %v7169_v29  ;;  %v6978_v40 = vrot.slane %v6977_v0, 1 }
 0x519   : > { %v6857_v4 = vcombine.high %v6745_v48, %v6745_v48  ;;  %v6496_v15 = vmul.f32 0.70710677, %v12574_v57  ;;  %v7226_v45 = vunpack.c.l.b16 %v7209_v5  ;;  %v7197_v16 = vpack.c.bf16 %v7151_v44, %v7151_v44 }
 0x51a   : > { %v6554_v47 = vadd.f32 -2.101024e-06, %v6546_v28  ;;  %v6642_v34 = vadd.f32 -0.00021337405, %v6634_v37  ;;  %v7227_v61 = vunpack.c.l.b16 %v7210_v50  ;;  %v7157_v26 = vmax.f32 %v7155_v7, %v7156_v31 }
 0x51b   : > { %v6864_v30 = vrot.slane %v6745_v48, %v13206_v2  ;;  %v12636_v43 = vclamps-f32 %v6496_v15, 4.0  ;;  %v7198_v14 = vpack.c.bf16 %v7154_v22, %v7154_v22  ;;  %v6607_v27 = vmul.f32 %v6599_v36, %v12514_v51 }
 0x51c   : > { %v6562_v55 = vmul.f32 %v6554_v47, %v12567_v62  ;;  %v6650_v60 = vmul.f32 %v6642_v34, %v12567_v62  ;;  %v6979_v23 = vmax.f32 %v6977_v0, %v6978_v40  ;;  %v12642_v13 = vrot.slane %v6857_v4, %v13206_v2 }
 0x51d   : > { %v12646_v35 = vmul.f32 %v12636_v43, %v12636_v43  ;;  %v7228_v49 = vunpack.c.l.b16 %v7211_v56  ;;  %v7306_v39 = vunpack.c.l.b16 %v7197_v16  ;;  %v7199_v51 = vpack.c.bf16 %v7157_v26, %v7157_v26 }
 0x51e   : > { %v6570_v42 = vadd.f32 -5.6925062e-05, %v6562_v55  ;;  %v6658_v33 = vadd.f32 -0.001682827, %v6650_v60  ;;  %v6872_v10 = vcombine.high %v6864_v30, %v6864_v30  ;;  %v7307_v54 = vunpack.c.l.b16 %v7198_v14 }
 0x51f   : > { %v6528_v12 = vmul.f32 -2.7261424e-10, %v12646_v35  ;;  %v6632_v11 = vmul.f32 -1.45660715e-05, %v12646_v35  ;;  %v12655_v6 = vsel %vm6923_vm0, %v6864_v30, -inf  ;;  %v7159_v59 = vsel %vm7148_vm5, %v6979_v23, -inf }
 0x520   : > { %v8443_v1 = vpop.eup %8442  ;;  %v6615_v25 = vadd.f32 -0.016096033, %v6607_v27  ;;  %v6666_v38 = vmul.f32 %v6658_v33, %v12567_v62  ;;  %v6873_v58 = vcombine.high %v12642_v13, %v12642_v13  ;;  %v6578_v3 = vmul.f32 %v6570_v42, %v12567_v62 }
 0x521   : > { %v6703_v19 = vmul.f32 %v8443_v1, %v12612_v9  ;;  %v6536_v52 = vadd.f32 2.7706815e-08, %v6528_v12  ;;  %v6640_v17 = vadd.f32 -0.00021337405, %v6632_v11  ;;  %v7172_v29 = vmax.f32 %v12615_v32, %v7171_v21 }
 0x522   : > { %v6674_v63 = vadd.f32 -0.0073733293, %v6666_v38  ;;  %v7308_v0 = vunpack.c.l.b16 %v7199_v51  ;;  %v6623_v7 = vmul.f32 %v12498_v18, %v6615_v25  ;;  %v7231_v31 = vsel %vm7230_vm7, %v7227_v61, %v7226_v45 }
 0x523   : > { %v6711_v48 = vsub.f32 2.0, %v6703_v19  ;;  %v6544_v8 = vmul.f32 %v6536_v52, %v12646_v35  ;;  %v6648_v44 = vmul.f32 %v6640_v17, %v12646_v35  ;;  %v7212_v50 = vpack.c.bf16 %v7172_v29, %v7172_v29  ;;  %v8363_v17 = vld [vmem:[%s12847_s5 + $0x70] sm:$0xff]  }
 0x524   : > { %v6682_v5 = vmul.f32 %v6674_v63, %v12567_v62  ;;  %v7160_v36 = vmax.f32 %v12628_v41, %v7159_v59  ;;  %v6586_v28 = vadd.f32 -0.00073499064, %v6578_v3  ;;  %v7232_v18 = vsel %vm4723_vm3, %v7228_v49, %v7231_v31  ;;  %v8360_v41 = vld [vmem:[%s12847_s5 + $0x58] sm:$0xff]  }
 0x525   : > { %v6719_v9 = vmul.f32 %v8443_v1, %v6711_v48  ;;  %v6552_v22 = vadd.f32 -2.101024e-06, %v6544_v8  ;;  %v6656_v21 = vadd.f32 -0.001682827, %v6648_v44  ;;  %v7229_v37 = vunpack.c.l.b16 %v7212_v50 }
 0x526   : > { %v12670_v32 = vadd.f32 -0.014264739, %v6682_v5  ;;  %v7200_v4 = vpack.c.bf16 %v7160_v36, %v7160_v36  ;;  %v7099_v15 = vsel %vm6923_vm0, %v6872_v10, -inf  ;;  %v7093_v30 = vrot.slane %v12655_v6, 4  ;;  %v8365_v36 = vld [vmem:[%s12847_s5 + $0x68] sm:$0xff]  }
 0x527   : > { %v6727_v56 = vmul.f32 %v6719_v9, %v6623_v7  ;;  %v6560_v40 = vmul.f32 %v6552_v22, %v12646_v35  ;;  %v6664_v16 = vmul.f32 %v6656_v21, %v12646_v35  ;;  %v7233_v45 = vsel %vm4725_vm4, %v7229_v37, %v7232_v18 }
 0x528   : > { %8444 = vrcp.f32 %v12670_v32  ;;  %v7234_v61 = vpack.c.b16 %v7233_v45, %v7233_v45  ;;  %v7309_v26 = vunpack.c.l.b16 %v7200_v4  ;;  %v7106_v14 = vsel %vm6923_vm0, %v12642_v13, -inf  ;;  %v8361_v13 = vld [vmem:[%s12847_s5 + $0x78] sm:$0xff]  }
 0x529   : > { %v6735_v47 = vadd.f32 1.0, %v6727_v56  ;;  %v6568_v34 = vadd.f32 -5.6925062e-05, %v6560_v40  ;;  %v6672_v27 = vadd.f32 -0.0073733293, %v6664_v16  ;;  %v7310_v55 = vsel %vm7230_vm7, %v7307_v54, %v7306_v39 }
 0x52a   : > { %v6594_v23 = vmul.f32 %v6586_v28, %v12567_v62  ;;  %8238 = vmatmul.mubr.msk.bf16.vlgmr.msra.gmra.mxu1 %vm7148_vm5, %v7234_v61  ;;  %v7311_v42 = vsel %vm4723_vm3, %v7308_v0, %v7310_v55  ;;  %v7100_v33 = vrot.slane %v7099_v15, 4  ;;  %v7113_v39 = vsel %vm6923_vm0, %v6873_v58, -inf  ;;  %v8366_v28 = vld [vmem:[%s12847_s5 + $0x40] sm:$0xff]  }
 0x52b   : > { %v6743_v60 = vmul.f32 %v6735_v47, %v12558_v46  ;;  %v6576_v49 = vmul.f32 %v6568_v34, %v12646_v35  ;;  %v6680_v51 = vmul.f32 %v6672_v27, %v12646_v35  ;;  %8254 = vmatpush3.bf16.msra.mxu1 %v8360_v41  ;;  %v7312_v10 = vsel %vm4725_vm4, %v7309_v26, %v7311_v42  ;;  %v8362_v46 = vld [vmem:[%s12847_s5 + $0x50] sm:$0xff]   ;;  %v8367_v34 = vld [vmem:[%s12847_s5 + $0x60] sm:$0xff]  }
 0x52c   : > { %8261 = vmatprep.mubr.msk.bf16.mxu1 %vm8552_vm6, %v13266_v53  ;;  %v7313_v1 = vpack.c.b16 %v7312_v10, %v7312_v10  ;;  %8255 = vmatprep.subr.bf16.mxu1 %v13266_v53  ;;  %v7107_v54 = vrot.slane %v7106_v14, 4  ;;  %v7094_v59 = vmax.f32 %v12655_v6, %v7093_v30  ;;  %v6602_v3 = vadd.f32 -0.0029546, %v6594_v23  ;;  %v8364_v6 = vld [vmem:[%s12847_s5 + $0x48] sm:$0xff]  }
 0x52d   : > { %v6823_v12 = vcombine.high %v6743_v60, %v6743_v60  ;;  %v6830_v11 = vrot.slane %v6743_v60, %v13206_v2  ;;  %v6584_v25 = vadd.f32 -0.00073499064, %v6576_v49  ;;  %v12703_v38 = vadd.f32 -0.014264739, %v6680_v51 }
 0x52e   : > { %8250 = vmatmul.mubr.msk.bf16.vlgmr.msra.gmra.mxu0 %vm7148_vm5, %v7313_v1  ;;  %v7101_v63 = vmax.f32 %v7099_v15, %v7100_v33  ;;  %v7114_v58 = vrot.slane %v7113_v39, 4  ;;  %v7108_v0 = vmax.f32 %v7106_v14, %v7107_v54  ;;  %v7095_v7 = vrot.slane %v7094_v59, 2 }
 0x52f   : > { %v6837_v19 = vrot.slane %v6823_v12, %v13206_v2  ;;  %v6838_v52 = vcombine.high %v6830_v11, %v6830_v11  ;;  %8446 = vrcp.f32 %v12703_v38  ;;  %8266 = vmatpush3.bf16.msra.mxu0 %v8361_v13  ;;  %8256 = vmatpush3.bf16.msra.mxu1 %v8362_v46  ;;  %v7036_v29 = vsel %vm6923_vm0, %v6830_v11, -inf }
 0x530   : > { %8267 = vmatprep.subr.bf16.mxu0 %v13266_v53  ;;  %8257 = vmatprep.subr.bf16.mxu1 %v13266_v53  ;;  %v6592_v8 = vmul.f32 %v6584_v25, %v12646_v35  ;;  %v6610_v44 = vmul.f32 %v6602_v3, %v12567_v62  ;;  %v7102_v50 = vrot.slane %v7101_v63, 2  ;;  %v7115_v9 = vmax.f32 %v7113_v39, %v7114_v58 }
 0x531   : > { %v7043_v48 = vsel %vm6923_vm0, %v6838_v52, -inf  ;;  %8273 = vmatprep.mubr.msk.bf16.mxu0 %vm8552_vm6, %v13266_v53  ;;  %v7050_v5 = vsel %vm6923_vm0, %v6837_v19, -inf  ;;  %v6839_v22 = vcombine.high %v6837_v19, %v6837_v19  ;;  %v7037_v31 = vrot.slane %v7036_v29, 4 }
 0x532   : > { %v7044_v37 = vrot.slane %v7043_v48, 4  ;;  %v7109_v62 = vrot.slane %v7108_v0, 2  ;;  %v7051_v56 = vrot.slane %v7050_v5, 4  ;;  %v6600_v40 = vadd.f32 -0.0029546, %v6592_v8 }
 0x533   : > { %8268 = vmatpush3.bf16.msra.mxu0 %v8363_v17  ;;  %8258 = vmatpush3.bf16.msra.mxu1 %v8364_v6  ;;  %v7096_v18 = vmax.f32 %v7094_v59, %v7095_v7  ;;  %v6618_v4 = vadd.f32 -0.016096033, %v6610_v44  ;;  %v7103_v16 = vmax.f32 %v7101_v63, %v7102_v50  ;;  %v7116_v45 = vrot.slane %v7115_v9, 2 }
 0x534   : > { %8269 = vmatprep.subr.bf16.mxu0 %v13266_v53  ;;  %8259 = vmatprep.subr.bf16.mxu1 %v13266_v53  ;;  %v7038_v41 = vmax.f32 %v7036_v29, %v7037_v31  ;;  %v7057_v47 = vsel %vm6923_vm0, %v6839_v22, -inf  ;;  %v7045_v61 = vmax.f32 %v7043_v48, %v7044_v37  ;;  %v7110_v30 = vmax.f32 %v7108_v0, %v7109_v62 }
 0x535   : > { %v8445_v21 = vpop.eup %8444  ;;  %v7052_v14 = vmax.f32 %v7050_v5, %v7051_v56  ;;  %v6608_v27 = vmul.f32 %v6600_v40, %v12646_v35  ;;  %v7058_v55 = vrot.slane %v7057_v47, 4  ;;  %v6626_v60 = vmul.f32 %v12555_v20, %v6618_v4 }
 0x536   : > { %v6706_v15 = vmul.f32 %v8445_v21, %v12670_v32  ;;  %v7097_v32 = vrot.slane %v7096_v18, 1  ;;  %v7104_v49 = vrot.slane %v7103_v16, 1  ;;  %v7117_v42 = vmax.f32 %v7115_v9, %v7116_v45 }
 0x537   : > { %8270 = vmatpush3.bf16.msra.mxu0 %v8365_v36  ;;  %8260 = vmatpush3.bf16.msra.mxu1 %v8366_v28  ;;  %v7039_v33 = vrot.slane %v7038_v41, 2  ;;  %v7046_v10 = vrot.slane %v7045_v61, 2  ;;  %v7111_v46 = vrot.slane %v7110_v30, 1  ;;  %v7053_v39 = vrot.slane %v7052_v14, 2 }
 0x538   : > { %v6714_v26 = vsub.f32 2.0, %v6706_v15  ;;  %8271 = vmatprep.subr.bf16.mxu0 %v13266_v53  ;;  %v6616_v12 = vadd.f32 -0.016096033, %v6608_v27  ;;  %v7098_v11 = vmax.f32 %v7096_v18, %v7097_v32  ;;  %v7059_v1 = vmax.f32 %v7057_v47, %v7058_v55 }
 0x539   : > { %v6490_v35 = vmul.f32 0.5, %v12536_v24  ;;  %v7105_v25 = vmax.f32 %v7103_v16, %v7104_v49  ;;  %v7118_v20 = vrot.slane %v7117_v42, 1  ;;  %v7040_v59 = vmax.f32 %v7038_v41, %v7039_v33 }
 0x53a   : > { %v6722_v23 = vmul.f32 %v8445_v21, %v6714_v26  ;;  %v7047_v52 = vmax.f32 %v7045_v61, %v7046_v10  ;;  %v6488_v63 = vmul.f32 0.5, %v12574_v57  ;;  %v7112_v58 = vmax.f32 %v7110_v30, %v7111_v46 }
 0x53b   : > { %8272 = vmatpush3.bf16.msra.mxu0 %v8367_v34  ;;  %v7054_v17 = vmax.f32 %v7052_v14, %v7053_v39  ;;  %v6624_v6 = vmul.f32 %v12636_v43, %v6616_v12  ;;  %v7060_v0 = vrot.slane %v7059_v1, 2  ;;  %v12749_v8 = vsel %vm7148_vm5, %v7105_v25, -inf }
 0x53c   : > { %v8447_v51 = vpop.eup %8446  ;;  %v6730_v13 = vmul.f32 %v6722_v23, %v6626_v60  ;;  %v7041_v7 = vrot.slane %v7040_v59, 1  ;;  %v7119_v44 = vmax.f32 %v7117_v42, %v7118_v20  ;;  %v7048_v50 = vrot.slane %v7047_v52, 1 }
 0x53d   : > { %v6704_v53 = vmul.f32 %v8447_v51, %v12703_v38  ;;  %v12745_v38 = vsel %vm7148_vm5, %v7098_v11, -inf  ;;  %v7055_v22 = vrot.slane %v7054_v17, 1  ;;  %v12754_v28 = vsel %vm7148_vm5, %v7112_v58, -inf }
 0x53e   : > { %v6738_v54 = vadd.f32 1.0, %v6730_v13  ;;  %v12756_v21 = vmax.f32 %v7059_v1, %v7060_v0  ;;  %v7042_v16 = vmax.f32 %v7040_v59, %v7041_v7  ;;  %v7049_v45 = vmax.f32 %v7047_v52, %v7048_v50 }
 0x53f   : > { %v6712_v19 = vsub.f32 2.0, %v6704_v53  ;;  %v7194_v47 = vsel %vm7148_vm5, %v7119_v44, -inf  ;;  %v12762_v14 = vmax.f32 %v7054_v17, %v7055_v22 }
 0x540   : > { %v6746_v3 = vmul.f32 %v6738_v54, %v6490_v35  ;;  %v7062_v27 = vrot.slane %v12756_v21, 1  ;;  %v7173_v33 = vsel %vm7148_vm5, %v7042_v16, -inf }
 0x541   : > { %v6720_v29 = vmul.f32 %v8447_v51, %v6712_v19 }
 0x542   : > { %v6874_v48 = vcombine.high %v6746_v3, %v6746_v3  ;;  %v6881_v24 = vrot.slane %v6746_v3, %v13206_v2 }
 0x543   : > { %v6728_v5 = vmul.f32 %v6720_v29, %v6624_v6 }
 0x544   : > { %v6888_v57 = vrot.slane %v6874_v48, %v13206_v2  ;;  %v6889_v9 = vcombine.high %v6881_v24, %v6881_v24  ;;  %v7120_v43 = vsel %vm6923_vm0, %v6881_v24, -inf }
 0x545   : > { %v7121_v31 = vrot.slane %v7120_v43, 4  ;;  %v6736_v36 = vadd.f32 1.0, %v6728_v5 }
 0x546   : > { %v6890_v37 = vcombine.high %v6888_v57, %v6888_v57  ;;  %v7127_v62 = vsel %vm6923_vm0, %v6889_v9, -inf  ;;  %v7134_v56 = vsel %vm6923_vm0, %v6888_v57, -inf }
 0x547   : > { %v7122_v40 = vmax.f32 %v7120_v43, %v7121_v31  ;;  %v7128_v18 = vrot.slane %v7127_v62, 4  ;;  %v7135_v4 = vrot.slane %v7134_v56, 4  ;;  %v6744_v15 = vmul.f32 %v6736_v36, %v6488_v63 }
 0x548   : > { %v7141_v41 = vsel %vm6923_vm0, %v6890_v37, -inf }
 0x549   : > { %v7123_v34 = vrot.slane %v7122_v40, 2  ;;  %v7129_v61 = vmax.f32 %v7127_v62, %v7128_v18  ;;  %v7136_v26 = vmax.f32 %v7134_v56, %v7135_v4  ;;  %v7142_v30 = vrot.slane %v7141_v41, 4 }
 0x54a   : > { %v6840_v32 = vcombine.high %v6744_v15, %v6744_v15  ;;  %v6847_v55 = vrot.slane %v6744_v15, %v13206_v2  ;;  %v7176_v15 = vsel %vm7148_vm5, %v7049_v45, -inf  ;;  %v7063_v45 = vmax.f32 %v12756_v21, %v7062_v27 }
 0x54b   : > { %v7124_v60 = vmax.f32 %v7122_v40, %v7123_v34  ;;  %v7130_v23 = vrot.slane %v7129_v61, 2  ;;  %v7137_v49 = vrot.slane %v7136_v26, 2  ;;  %v7143_v42 = vmax.f32 %v7141_v41, %v7142_v30 }
 0x54c   : > { %v6854_v51 = vrot.slane %v6840_v32, %v13206_v2  ;;  %v6855_v10 = vcombine.high %v6847_v55, %v6847_v55  ;;  %v7064_v13 = vsel %vm6923_vm0, %v6847_v55, -inf }
 0x54d   : > { %v7125_v46 = vrot.slane %v7124_v60, 1  ;;  %v7131_v39 = vmax.f32 %v7129_v61, %v7130_v23  ;;  %v7138_v12 = vmax.f32 %v7136_v26, %v7137_v49  ;;  %v7144_v53 = vrot.slane %v7143_v42, 2 }
 0x54e   : > { %v6856_v11 = vcombine.high %v6854_v51, %v6854_v51  ;;  %v7065_v1 = vrot.slane %v7064_v13, 4  ;;  %v7071_v35 = vsel %vm6923_vm0, %v6855_v10, -inf  ;;  %v7078_v54 = vsel %vm6923_vm0, %v6854_v51, -inf }
 0x54f   : > { %v7126_v25 = vmax.f32 %v7124_v60, %v7125_v46  ;;  %v7132_v20 = vrot.slane %v7131_v39, 1  ;;  %v7139_v59 = vrot.slane %v7138_v12, 1  ;;  %v7145_v19 = vmax.f32 %v7143_v42, %v7144_v53 }
 0x550   : > { %v7066_v52 = vmax.f32 %v7064_v13, %v7065_v1  ;;  %v7072_v3 = vrot.slane %v7071_v35, 4  ;;  %v7079_v2 = vrot.slane %v7078_v54, 4  ;;  %v7085_v63 = vsel %vm6923_vm0, %v6856_v11, -inf }
 0x551   : > { %v7133_v58 = vmax.f32 %v7131_v39, %v7132_v20  ;;  %v7140_v17 = vmax.f32 %v7138_v12, %v7139_v59  ;;  %v7146_v6 = vrot.slane %v7145_v19, 1  ;;  %v7186_v29 = vsel %vm7148_vm5, %v7126_v25, -inf }
 0x552   : > { %v7187_v0 = vmax.f32 %v12745_v38, %v7186_v29  ;;  %v7067_v48 = vrot.slane %v7066_v52, 2  ;;  %v7073_v24 = vmax.f32 %v7071_v35, %v7072_v3  ;;  %v7080_v7 = vmax.f32 %v7078_v54, %v7079_v2 }
 0x553   : > { %v7189_v5 = vsel %vm7148_vm5, %v7133_v58, -inf  ;;  %v7086_v44 = vrot.slane %v7085_v63, 4  ;;  %v7147_v50 = vmax.f32 %v7145_v19, %v7146_v6  ;;  %v7192_v57 = vsel %vm7148_vm5, %v7140_v17, -inf }
 0x554   : > { %v7474_v9 = vpack.c.bf16 %v7187_v0, %v7187_v0  ;;  %v7068_v43 = vmax.f32 %v7066_v52, %v7067_v48  ;;  %v7074_v22 = vrot.slane %v7073_v24, 2  ;;  %v7081_v31 = vrot.slane %v7080_v7, 2 }
 0x555   : > { %v7087_v36 = vmax.f32 %v7085_v63, %v7086_v44  ;;  %v7190_v37 = vmax.f32 %v12749_v8, %v7189_v5  ;;  %v7193_v62 = vmax.f32 %v12754_v28, %v7192_v57  ;;  %v7195_v38 = vsel %vm7148_vm5, %v7147_v50, -inf }
 0x556   : > { %v7069_v56 = vrot.slane %v7068_v43, 1  ;;  %v7075_v40 = vmax.f32 %v7073_v24, %v7074_v22  ;;  %v7082_v18 = vmax.f32 %v7080_v7, %v7081_v31  ;;  %v7196_v4 = vmax.f32 %v7194_v47, %v7195_v38 }
 0x557   : > { %v7088_v16 = vrot.slane %v7087_v36, 2  ;;  %v7475_v41 = vpack.c.bf16 %v7190_v37, %v7190_v37  ;;  %v7476_v34 = vpack.c.bf16 %v7193_v62, %v7193_v62  ;;  %v7491_v60 = vunpack.c.l.b16 %v7474_v9 }
 0x558   : > { %v7070_v61 = vmax.f32 %v7068_v43, %v7069_v56  ;;  %v7076_v26 = vrot.slane %v7075_v40, 1  ;;  %v7083_v30 = vrot.slane %v7082_v18, 1  ;;  %v7477_v32 = vpack.c.bf16 %v7196_v4, %v7196_v4  ;;  %v7969_v56 = vld [vmem:[%s12848_s6] ss:$0 sm:$0xff] }
 0x559   : > { %v7089_v55 = vmax.f32 %v7087_v36, %v7088_v16  ;;  %v7492_v8 = vunpack.c.l.b16 %v7475_v41  ;;  %v7493_v23 = vunpack.c.l.b16 %v7476_v34  ;;  %v7179_v39 = vsel %vm7148_vm5, %v12762_v14, -inf }
 0x55a   : > { %v7077_v28 = vmax.f32 %v7075_v40, %v7076_v26  ;;  %v7084_v49 = vmax.f32 %v7082_v18, %v7083_v30  ;;  %v7174_v42 = vsel %vm7148_vm5, %v7070_v61, -inf  ;;  %v7494_v51 = vunpack.c.l.b16 %v7477_v32 }
 0x55b   : > { %v7090_v10 = vrot.slane %v7089_v55, 1  ;;  %v7175_v47 = vmax.f32 %v7173_v33, %v7174_v42  ;;  %v7495_v13 = vsel %vm7230_vm7, %v7492_v8, %v7491_v60  ;;  %v7182_v25 = vsel %vm7148_vm5, %v7063_v45, -inf }
 0x55c   : > { %v7177_v46 = vsel %vm7148_vm5, %v7077_v28, -inf  ;;  %v7180_v12 = vsel %vm7148_vm5, %v7084_v49, -inf  ;;  %v7496_v53 = vsel %vm4723_vm3, %v7493_v23, %v7495_v13 }
 0x55d   : > { %v7381_v11 = vpack.c.bf16 %v7175_v47, %v7175_v47  ;;  %v7091_v1 = vmax.f32 %v7089_v55, %v7090_v10  ;;  %v7178_v35 = vmax.f32 %v7176_v15, %v7177_v46  ;;  %v7181_v54 = vmax.f32 %v7179_v39, %v7180_v12 }
 0x55e   : > { %v7497_v33 = vsel %vm4725_vm4, %v7494_v51, %v7496_v53 }
 0x55f   : > { %v7183_v21 = vsel %vm7148_vm5, %v7091_v1, -inf  ;;  %v7382_v27 = vpack.c.bf16 %v7178_v35, %v7178_v35  ;;  %v7383_v20 = vpack.c.bf16 %v7181_v54, %v7181_v54  ;;  %v7498_v19 = vpack.c.b16 %v7497_v33, %v7497_v33 }
 0x560   : > { %v7184_v59 = vmax.f32 %v7182_v25, %v7183_v21  ;;  %v7398_v52 = vunpack.c.l.b16 %v7381_v11 }
 0x561   : > { %v7399_v14 = vunpack.c.l.b16 %v7382_v27  ;;  %v7400_v3 = vunpack.c.l.b16 %v7383_v20  ;;  %8274 = vmatmul.mubr.msk.bf16.vlgmr.msra.gmra.mxu0 %vm7148_vm5, %v7498_v19 }
 0x562   : > { %v7384_v2 = vpack.c.bf16 %v7184_v59, %v7184_v59 }
 0x563   : > { %v7402_v63 = vsel %vm7230_vm7, %v7399_v14, %v7398_v52 }
 0x564   : > { %v7401_v58 = vunpack.c.l.b16 %v7384_v2  ;;  %v7403_v17 = vsel %vm4723_vm3, %v7400_v3, %v7402_v63 }
 0x566   : > { %v7404_v6 = vsel %vm4725_vm4, %v7401_v58, %v7403_v17 }
 0x567   : > { %v7405_v29 = vpack.c.b16 %v7404_v6, %v7404_v6 }
 0x569   : > { %8262 = vmatmul.mubr.msk.bf16.vlgmr.msra.gmra.mxu1 %vm7148_vm5, %v7405_v29 }
 0x5ea   : > { %v7296_v0 = vpop.f32.mrf.mxu1 }
 0x5ec   : > { %v8239_v48 = vpop.f32.mrf.mxu1 }
 0x5ee   : > { %v7375_v24 = vpop.f32.mrf.mxu0  ;;  %v7299_v7 = vpop.f32.mrf.mxu1 }
 0x5ef   : > { %v7376_v31 = vadd.f32 %v7375_v24, %v7296_v0 }
 0x5f0   : > { %v8251_v5 = vpop.f32.mrf.mxu0  ;;  %v8240_v44 = vpop.f32.mrf.mxu1 }
 0x5f2   : > { %v7378_v50 = vpop.f32.mrf.mxu0 }
 0x5f4   : > { %v8252_v57 = vpop.f32.mrf.mxu0 }
 0x621   : > { %v7560_v9 = vpop.f32.mrf.mxu0 }
 0x623   : > { %v8275_v43 = vpop.f32.mrf.mxu0 }
 0x625   : > { %v7563_v22 = vpop.f32.mrf.mxu0 }
 0x627   : > { %v8276_v36 = vpop.f32.mrf.mxu0 }
 0x629   : > { %v7467_v37 = vpop.f32.mrf.mxu1 }
 0x62a   : > { %v7473_v62 = vadd.f32 %v7467_v37, %v7376_v31 }
 0x62b   : > { %v8263_v38 = vpop.f32.mrf.mxu1 }
 0x62c   : > { %v7566_v40 = vadd.f32 %v7560_v9, %v7473_v62 }
 0x62d   : > { %v7470_v18 = vpop.f32.mrf.mxu1 }
 0x62e   : > { %v7574_v4 = vadd.f32 %v7969_v56, %v7566_v40 }
 0x62f   : > { %v8264_v15 = vpop.f32.mrf.mxu1 }
 0x630   : > { %7575 = vst.msk [vmem:[%s271_s19] sm:$0xf] %vm4332_vm13, %v7574_v4 }
 0x631   : > { %8500 = shalt.err (!%p8497_p3)
}
 0x632   : > { %s8501_s15 = scalar_lea.hbm %s12806_s23, 64  ;;  %s8505_s17 = scalar_lea.hbm %s12849_s7, 128 }
 0x633   : > { %p8502_p4 = scmp.ne.s32.totalorder %s12806_s23, %s8501_s15  ;;  %p8506_p9 = scmp.lt.s32.totalorder %s12806_s23, %s12849_s7 }
 0x634   : > { %p8507_p10 = scmp.lt.s32.totalorder %s8505_s17, %s8501_s15 }
 0x635   : > { %p8503_p7 = pnand %p8502_p4, %p8632_p5 }
 0x636   : > { %p8508_p11 = por %p8507_p10, %p8506_p9 }
 0x637   : > { %p8504_p8 = pneg %p8503_p7 }
 0x639   : > { %p8509_p12 = pnand %p8508_p11, %p8504_p8 }
 0x63b   : > { %8512 = shalt.err (!%p8509_p12)
}
 0x63c   : > { %8281 = dma.vmem_to_hbm [thread:$0]  (%p8632_p5), %s7591_s20, 64, %s12806_s23, %s7577_s29  }
 0x63d PF: > { %p8287_p13 = scmp.ge.s32.totalorder %s8547_s27, 2  ;;  %s7602_s21 = sand.u32 1, %s8535_s24  }
 0x63e   : > { %s7603_s22 = scalar_lea.sflag [#allocation5], %s7602_s21 }
 0x63f   : > { %p8284_p0 = pnand %p8287_p13, %p8636_p6 }
 0x641   : > { %p8285_p1 = pneg %p8284_p0 }
 0x643   : > { %8530 = dma.done.wait (%p8285_p1), %s7603_s22, 64  }
 0x644   : > { %8532 = vsyncadd (%p8285_p1), %s7603_s22, 4294967232  ;;  %p17_p2 = scmp.ge.s32.totalorder %s8619_s30, 4   ;;  %s13267_s24 = smov %s8539_s25 }
 0x645   : > { %s13268_s25 = smov %s8543_s26  ;;  %s13269_s26 = smov %s8630_s10 }
 0x646   : > { %s13270_s27 = smov %s8619_s30  ;;  %19 = sbr.rel (!%p17_p2) target bundleno = 3 (0x3), region = 100 }
 0x64b   :  { %7608 = vsyncpa [#allocation5], 1 }
 0x64c   :  { %7610 = vsyncpa [#allocation5 + $0x1], 1 }

</bundles_post_ra>
